<compile_context>
chip_gen: v6e
topology: v6e:2x2x1
jax: 0.10.0
libtpu: 0.0.40
codegen_flags: <defaults>
</compile_context>

<pallas_src>
import functools

import jax
import jax.numpy as jnp
from jax import lax
from jax.experimental import pallas as pl
from jax.experimental.pallas import tpu as pltpu

KERNEL_SIZES = (3, 5, 7)
DILATIONS = (1, 2, 4)
KMAX = max(KERNEL_SIZES)
N_GROUPS = 16
EPS = 1e-5


def _time_pad(dilations):
    # Halo big enough for the widest dilated kernel, rounded up to a sublane
    # multiple so the centre slice of the scratch is 8-aligned.
    p = (KMAX - 1) // 2 * max(dilations)
    return ((p + 7) // 8) * 8


# ----------------------------------------------------------------------------
# Fused Pallas kernel: the full 3-block TemporalEncoding stack for a tile of
# samples. Grid iterates over sample tiles only.
# ----------------------------------------------------------------------------
def temporal_encoding_kernel(
        x_ref, dww_ref, dwb_ref, pww_ref, pwb_ref, gamma_ref, beta_ref,
        res0w_ref, res0b_ref, fusew_ref, fuseb_ref, gmat_ref, gmatt_ref,
        out_ref, xp_ref, *, dilations, pad, block0_residual):
    tile, T, C = out_ref.shape
    M = tile * T
    inv_count = 1.0 / float(T * (C // N_GROUPS))
    G = gmat_ref[...]                               # (C, n_groups) f32
    Gt = gmatt_ref[...]                             # (n_groups, C) f32

    # Zero-initialised padded activation scratch; only the centre [pad:pad+T]
    # is ever (re)written, so the temporal halo stays zero for every block.
    xp_ref[...] = jnp.zeros_like(xp_ref)
    xp_ref[:, pad:pad + T, :] = x_ref[...]

    n_blocks = len(dilations)
    for blk, d in enumerate(dilations):
        x_center = xp_ref[:, pad:pad + T, :]        # block input (tile, T, C)
        x2 = x_center.reshape(M, C)

        branch_outs = []
        for br, k in enumerate(KERNEL_SIZES):
            ctr = (k - 1) // 2
            dw = dww_ref[blk, br]                   # (KMAX, C); taps [0:k] real

            # depthwise dilated conv: exactly k shifted MACs on the VPU (f32)
            off0 = pad - ctr * d
            y = xp_ref[:, off0:off0 + T, :] * dw[0:1, :]
            for j in range(1, k):
                off = pad + (j - ctr) * d
                y = y + xp_ref[:, off:off + T, :] * dw[j:j + 1, :]
            y = y + dwb_ref[blk, br]                # (tile, T, C)

            # pointwise 1x1 conv: bf16 operands on the MXU, f32 accumulation
            z = jnp.dot(y.reshape(M, C).astype(jnp.bfloat16), pww_ref[blk, br],
                        preferred_element_type=jnp.float32)
            z = z + pwb_ref[blk, br]                # (M, C) f32

            # GroupNorm(16): per-sample stats; sum & sum-of-squares share one
            # stacked indicator matmul (all stats in f32).
            z3 = z.reshape(tile, T, C)
            zsq = jnp.concatenate([z3, z3 * z3], axis=0)   # (2*tile, T, C)
            s_all = jnp.sum(zsq, axis=1)                   # (2*tile, C)
            g = jnp.dot(s_all, G,
                        preferred_element_type=jnp.float32) * inv_count
            mean_g = g[:tile]                              # (tile, n_groups)
            var_g = g[tile:] - mean_g * mean_g
            inv_g = lax.rsqrt(var_g + EPS)
            mean_c = jnp.dot(mean_g, Gt,
                             preferred_element_type=jnp.float32)[:, None, :]
            inv_c = jnp.dot(inv_g, Gt,
                            preferred_element_type=jnp.float32)[:, None, :]
            zn = (z3 - mean_c) * inv_c * gamma_ref[blk, br] + beta_ref[blk, br]
            zr = jnp.maximum(zn, 0.0).reshape(M, C)        # ReLU

            # residual: real 1x1 conv only when c_in != c_out (block 0);
            # identity residual is a plain add (no matmul).
            if blk == 0 and block0_residual:
                r = jnp.dot(x2.astype(jnp.bfloat16), res0w_ref[br],
                            preferred_element_type=jnp.float32)
                r = r + res0b_ref[br]
            else:
                r = x2
            branch_outs.append(zr + r)                     # (M, C)

        # fuse 1x1 conv over the lane-concatenated branches: one K=3*C matmul
        cat = jnp.concatenate(branch_outs, axis=1)         # (M, 3*C)
        fused = jnp.dot(cat.astype(jnp.bfloat16), fusew_ref[blk],
                        preferred_element_type=jnp.float32)
        fused = fused + fuseb_ref[blk]
        block_out = fused.reshape(tile, T, C)

        if blk + 1 < n_blocks:
            xp_ref[:, pad:pad + T, :] = block_out          # stays in VMEM
        else:
            out_ref[...] = block_out.astype(out_ref.dtype)


def fused_temporal_encoding(x_ntc, kp, dilations, block0_residual):
    """x_ntc: (N, T, C) channel-padded input -> (N, T, C) f32."""
    N, T, C = x_ntc.shape
    n_tiles = 2 if (N % 2 == 0 and N >= 2) else 1   # keep both v7x TCs busy
    tile = N // n_tiles
    pad = _time_pad(dilations)
    Tp = T + 2 * pad

    kernel = functools.partial(
        temporal_encoding_kernel, dilations=tuple(dilations), pad=pad,
        block0_residual=block0_residual)

    def _const_spec(a):
        return pl.BlockSpec(a.shape, lambda i, _r=a.ndim: (0,) * _r)

    weight_names = ("dww", "dwb", "pww", "pwb", "gamma", "beta",
                    "res0w", "res0b", "fusew", "fuseb", "gmat", "gmat_t")
    weights = [kp[n] for n in weight_names]

    return pl.pallas_call(
        kernel,
        out_shape=jax.ShapeDtypeStruct((N, T, C), jnp.float32),
        grid=(n_tiles,),
        in_specs=[pl.BlockSpec((tile, T, C), lambda i: (i, 0, 0))]
                 + [_const_spec(w) for w in weights],
        out_specs=pl.BlockSpec((tile, T, C), lambda i: (i, 0, 0)),
        scratch_shapes=[pltpu.VMEM((tile, Tp, C), jnp.float32)],
        compiler_params=pltpu.CompilerParams(
            dimension_semantics=("parallel",)),
    )(x_ntc, *weights)


# ----------------------------------------------------------------------------
# Deterministic synthetic parameters (shapes follow the torch module).
# ----------------------------------------------------------------------------
def init_block_params(key, c_in, c_out):
    nb = len(KERNEL_SIZES)
    ks = jax.random.split(key, 12)
    dww = [0.1 * jax.random.normal(ks[br], (k, c_in), jnp.float32)
           for br, k in enumerate(KERNEL_SIZES)]
    dwb = 0.05 * jax.random.normal(ks[3], (nb, c_in), jnp.float32)
    pww = jax.random.normal(ks[4], (nb, c_in, c_out), jnp.float32) / jnp.sqrt(c_in)
    pwb = 0.05 * jax.random.normal(ks[5], (nb, c_out), jnp.float32)
    gamma = 1.0 + 0.1 * jax.random.normal(ks[6], (nb, c_out), jnp.float32)
    beta = 0.1 * jax.random.normal(ks[7], (nb, c_out), jnp.float32)
    if c_in != c_out:
        resw = jax.random.normal(ks[8], (nb, c_in, c_out), jnp.float32) / jnp.sqrt(c_in)
        resb = 0.05 * jax.random.normal(ks[9], (nb, c_out), jnp.float32)
    else:                       # nn.Identity residual
        resw, resb = None, None
    fusew = jax.random.normal(ks[10], (nb * c_out, c_out),
                              jnp.float32) / jnp.sqrt(nb * c_out)
    fuseb = 0.05 * jax.random.normal(ks[11], (c_out,), jnp.float32)
    return dict(c_in=c_in, c_out=c_out, dww=dww, dwb=dwb, pww=pww, pwb=pwb,
                gamma=gamma, beta=beta, resw=resw, resb=resb,
                fusew=fusew, fuseb=fuseb)


def pack_kernel_params(blocks, C):
    """Stack all block parameters into kernel-friendly arrays.

    Block 0's channel dimension is zero-padded from c_in0 to C; padded input
    channels feed zero weights, so the math is unchanged.
    """
    nbk = len(blocks)
    nb = len(KERNEL_SIZES)
    f32 = jnp.float32
    dww = jnp.zeros((nbk, nb, KMAX, C), f32)
    dwb = jnp.zeros((nbk, nb, 1, C), f32)
    pww = jnp.zeros((nbk, nb, C, C), f32)
    pwb = jnp.zeros((nbk, nb, 1, C), f32)
    gamma = jnp.zeros((nbk, nb, 1, C), f32)
    beta = jnp.zeros((nbk, nb, 1, C), f32)
    fusew = jnp.zeros((nbk, nb * C, C), f32)
    fuseb = jnp.zeros((nbk, 1, C), f32)
    for blk, p in enumerate(blocks):
        ci = p["c_in"]
        for br, k in enumerate(KERNEL_SIZES):
            dww = dww.at[blk, br, :k, :ci].set(p["dww"][br])
            dwb = dwb.at[blk, br, 0, :ci].set(p["dwb"][br])
            pww = pww.at[blk, br, :ci, :].set(p["pww"][br])
            pwb = pwb.at[blk, br, 0, :].set(p["pwb"][br])
            gamma = gamma.at[blk, br, 0, :].set(p["gamma"][br])
            beta = beta.at[blk, br, 0, :].set(p["beta"][br])
        fusew = fusew.at[blk].set(p["fusew"])
        fuseb = fuseb.at[blk, 0].set(p["fuseb"])

    # Block-0 residual 1x1 conv (only block 0 can have c_in != c_out).
    p0 = blocks[0]
    res0w = jnp.zeros((nb, C, C), f32)
    res0b = jnp.zeros((nb, 1, C), f32)
    if p0["resw"] is not None:
        res0w = res0w.at[:, :p0["c_in"], :].set(p0["resw"])
        res0b = res0b.at[:, 0, :].set(p0["resb"])

    gsize = C // N_GROUPS
    gidx = jnp.arange(C) // gsize
    gmat = (gidx[:, None] == jnp.arange(N_GROUPS)[None, :]).astype(f32)

    return dict(
        dww=dww, dwb=dwb,
        pww=pww.astype(jnp.bfloat16), pwb=pwb,
        gamma=gamma, beta=beta,
        res0w=res0w.astype(jnp.bfloat16), res0b=res0b,
        fusew=fusew.astype(jnp.bfloat16), fuseb=fuseb,
        gmat=gmat, gmat_t=gmat.T)


# ----------------------------------------------------------------------------
# Pure-JAX reference (lax grouped conv + einsum) for correctness checking.
# ----------------------------------------------------------------------------
def ref_block(x_ntc, p, dilation):
    N, T, c_in = x_ntc.shape
    c_out = p["c_out"]
    gs = c_out // N_GROUPS
    hp = lax.Precision.HIGHEST
    branch_outs = []
    for br, k in enumerate(KERNEL_SIZES):
        pad = (k - 1) * dilation // 2
        w = p["dww"][br][:, None, :]                       # (k, 1, c_in)
        y = lax.conv_general_dilated(
            x_ntc, w, window_strides=(1,), padding=[(pad, pad)],
            rhs_dilation=(dilation,), feature_group_count=c_in,
            dimension_numbers=("NWC", "WIO", "NWC"), precision=hp)
        y = y + p["dwb"][br][None, None, :]
        z = jnp.einsum("ntc,cd->ntd", y, p["pww"][br], precision=hp)
        z = z + p["pwb"][br][None, None, :]
        zg = z.reshape(N, T, N_GROUPS, gs)
        mean = zg.mean(axis=(1, 3), keepdims=True)
        var = zg.var(axis=(1, 3), keepdims=True)
        zn = ((zg - mean) / jnp.sqrt(var + EPS)).reshape(N, T, c_out)
        zn = zn * p["gamma"][br][None, None, :] + p["beta"][br][None, None, :]
        zr = jnp.maximum(zn, 0.0)
        if p["resw"] is None:
            r = x_ntc
        else:
            r = jnp.einsum("ntc,cd->ntd", x_ntc, p["resw"][br], precision=hp)
            r = r + p["resb"][br][None, None, :]
        branch_outs.append(zr + r)
    cat = jnp.concatenate(branch_outs, axis=-1)
    fused = jnp.einsum("ntk,kd->ntd", cat, p["fusew"], precision=hp)
    return fused + p["fuseb"][None, None, :]


# ----------------------------------------------------------------------------
# TemporalEncoding forward (wrappers reproduce torch view/permute semantics).
# ----------------------------------------------------------------------------
def temporal_encoding_forward(x, blocks, dilations):
    B, T, H, D = x.shape
    N = B * H
    C = blocks[0]["c_out"]
    assert D <= C
    # torch: x.view(B*num_hands, D_spatial, T)  (raw reinterpretation)
    y = jnp.transpose(x.reshape(N, D, T), (0, 2, 1))       # (N, T, D)
    if D < C:                                              # padded channels feed zero weights
        y = jnp.pad(y, ((0, 0), (0, 0), (0, C - D)))
    kp = pack_kernel_params(blocks, C)
    y = fused_temporal_encoding(y, kp, tuple(dilations),
                                block0_residual=blocks[0]["resw"] is not None)
    # torch: x.view(B, H, C, T).permute(0, 3, 1, 2) -> (B, T, H, C)
    out = jnp.transpose(y.reshape(B, H, T, C), (0, 2, 1, 3))
    # TODO(synk): aux head (aux_conv/aux_linear) is only built when
    # vocab_size is not None; default config has no aux head.
    return out, None


def temporal_encoding_forward_ref(x, blocks, dilations):
    B, T, H, D = x.shape
    N = B * H
    y = jnp.transpose(x.reshape(N, D, T), (0, 2, 1))
    for p, d in zip(blocks, dilations):
        y = ref_block(y, p, d)
    C = y.shape[-1]
    out = jnp.transpose(y.reshape(B, H, T, C), (0, 2, 1, 3))
    return out, None


if __name__ == "__main__":
    B, T, H, D = 2, 16, 2, 32          # batch, time, num_hands, D_spatial
    C_OUT = 128

    x = jax.random.normal(jax.random.PRNGKey(0), (B, T, H, D), jnp.float32)

    pkeys = jax.random.split(jax.random.PRNGKey(42), len(DILATIONS))
    blocks, c_in = [], D
    for i in range(len(DILATIONS)):
        blocks.append(init_block_params(pkeys[i], c_in, C_OUT))
        c_in = C_OUT

    out, aux = temporal_encoding_forward(x, blocks, DILATIONS)
    out = jax.block_until_ready(out)
    assert out.shape == (B, T, H, C_OUT), out.shape
    assert aux is None

    out_ref, _ = temporal_encoding_forward_ref(x, blocks, DILATIONS)
    out_ref = jax.block_until_ready(out_ref)
    max_err = float(jnp.max(jnp.abs(out - out_ref)))
    scale = float(jnp.max(jnp.abs(out_ref)))
    # bf16 MXU operands (f32 accumulation) => relative tolerance
    assert max_err <= 5e-2 * scale + 1e-3, (max_err, scale)

    print("KERNEL_OK")
</pallas_src>

<mosaic_0001>
module attributes {stable_mosaic.version = 11 : i64} {
  func.func @temporal_encoding_kernel(%arg0: i32, %arg1: memref<2x16x128xf32, #tpu.memory_space<vmem>>, %arg2: memref<3x3x7x128xf32, #tpu.memory_space<vmem>>, %arg3: memref<3x3x1x128xf32, #tpu.memory_space<vmem>>, %arg4: memref<3x3x128x128xbf16, #tpu.memory_space<vmem>>, %arg5: memref<3x3x1x128xf32, #tpu.memory_space<vmem>>, %arg6: memref<3x3x1x128xf32, #tpu.memory_space<vmem>>, %arg7: memref<3x3x1x128xf32, #tpu.memory_space<vmem>>, %arg8: memref<3x128x128xbf16, #tpu.memory_space<vmem>>, %arg9: memref<3x1x128xf32, #tpu.memory_space<vmem>>, %arg10: memref<3x384x128xbf16, #tpu.memory_space<vmem>>, %arg11: memref<3x1x128xf32, #tpu.memory_space<vmem>>, %arg12: memref<128x16xf32, #tpu.memory_space<vmem>>, %arg13: memref<16x128xf32, #tpu.memory_space<vmem>>, %arg14: memref<2x16x128xf32, #tpu.memory_space<vmem>>, %arg15: memref<2x48x128xf32, #tpu.memory_space<vmem>>) attributes {dimension_semantics = [#tpu.dimension_semantics<parallel>], iteration_bounds = array<i64: 2>, scalar_prefetch = 0 : i64, scratch_operands = 1 : i64, tpu.core_type = #tpu.core_type<tc>, window_params = [{transform_indices = @transform_0, window_bounds = array<i64: 2, 16, 128>}, {pipeline_mode = #tpu.pipeline_mode<synchronous>, transform_indices = @transform_1, window_bounds = array<i64: 3, 3, 7, 128>}, {pipeline_mode = #tpu.pipeline_mode<synchronous>, transform_indices = @transform_2, window_bounds = array<i64: 3, 3, 1, 128>}, {pipeline_mode = #tpu.pipeline_mode<synchronous>, transform_indices = @transform_3, window_bounds = array<i64: 3, 3, 128, 128>}, {pipeline_mode = #tpu.pipeline_mode<synchronous>, transform_indices = @transform_4, window_bounds = array<i64: 3, 3, 1, 128>}, {pipeline_mode = #tpu.pipeline_mode<synchronous>, transform_indices = @transform_5, window_bounds = array<i64: 3, 3, 1, 128>}, {pipeline_mode = #tpu.pipeline_mode<synchronous>, transform_indices = @transform_6, window_bounds = array<i64: 3, 3, 1, 128>}, {pipeline_mode = #tpu.pipeline_mode<synchronous>, transform_indices = @transform_7, window_bounds = array<i64: 3, 128, 128>}, {pipeline_mode = #tpu.pipeline_mode<synchronous>, transform_indices = @transform_8, window_bounds = array<i64: 3, 1, 128>}, {pipeline_mode = #tpu.pipeline_mode<synchronous>, transform_indices = @transform_9, window_bounds = array<i64: 3, 384, 128>}, {pipeline_mode = #tpu.pipeline_mode<synchronous>, transform_indices = @transform_10, window_bounds = array<i64: 3, 1, 128>}, {pipeline_mode = #tpu.pipeline_mode<synchronous>, transform_indices = @transform_11, window_bounds = array<i64: 128, 16>}, {pipeline_mode = #tpu.pipeline_mode<synchronous>, transform_indices = @transform_12, window_bounds = array<i64: 16, 128>}, {transform_indices = @transform_13, window_bounds = array<i64: 2, 16, 128>}]} {
    %c0 = arith.constant 0 : index
    %c0_0 = arith.constant 0 : index
    %0 = vector.load %arg12[%c0, %c0_0] : memref<128x16xf32, #tpu.memory_space<vmem>>, vector<128x16xf32>
    %c0_1 = arith.constant 0 : index
    %c0_2 = arith.constant 0 : index
    %1 = vector.load %arg13[%c0_1, %c0_2] : memref<16x128xf32, #tpu.memory_space<vmem>>, vector<16x128xf32>
    %cst = arith.constant 0.000000e+00 : f32
    %2 = vector.broadcast %cst : f32 to vector<2x48x128xf32>
    %c0_3 = arith.constant 0 : index
    %c0_4 = arith.constant 0 : index
    %c0_5 = arith.constant 0 : index
    %3 = vector.load %arg15[%c0_3, %c0_4, %c0_5] : memref<2x48x128xf32, #tpu.memory_space<vmem>>, vector<2x48x128xf32>
    tpu.vector_store %arg15[%c0_3, %c0_4, %c0_5], %2 {strides = array<i32>} : memref<2x48x128xf32, #tpu.memory_space<vmem>>, vector<2x48x128xf32>,
    %c0_6 = arith.constant 0 : index
    %c0_7 = arith.constant 0 : index
    %c0_8 = arith.constant 0 : index
    %4 = vector.load %arg1[%c0_6, %c0_7, %c0_8] : memref<2x16x128xf32, #tpu.memory_space<vmem>>, vector<2x16x128xf32>
    %c0_9 = arith.constant 0 : index
    %c16 = arith.constant 16 : index
    %c0_10 = arith.constant 0 : index
    %5 = vector.load %arg15[%c0_9, %c16, %c0_10] : memref<2x48x128xf32, #tpu.memory_space<vmem>>, vector<2x16x128xf32>
    tpu.vector_store %arg15[%c0_9, %c16, %c0_10], %4 {strides = array<i32>} : memref<2x48x128xf32, #tpu.memory_space<vmem>>, vector<2x16x128xf32>,
    %c0_11 = arith.constant 0 : index
    %c16_12 = arith.constant 16 : index
    %c0_13 = arith.constant 0 : index
    %6 = vector.load %arg15[%c0_11, %c16_12, %c0_13] : memref<2x48x128xf32, #tpu.memory_space<vmem>>, vector<2x16x128xf32>
    %7 = vector.shape_cast %6 : vector<2x16x128xf32> to vector<32x128xf32>
    %c0_14 = arith.constant 0 : index
    %c0_15 = arith.constant 0 : index
    %c0_16 = arith.constant 0 : index
    %c0_17 = arith.constant 0 : index
    %8 = vector.load %arg2[%c0_14, %c0_15, %c0_16, %c0_17] : memref<3x3x7x128xf32, #tpu.memory_space<vmem>>, vector<1x1x7x128xf32>
    %9 = vector.shape_cast %8 : vector<1x1x7x128xf32> to vector<7x128xf32>
    %c0_18 = arith.constant 0 : index
    %c15 = arith.constant 15 : index
    %c0_19 = arith.constant 0 : index
    %10 = vector.load %arg15[%c0_18, %c15, %c0_19] : memref<2x48x128xf32, #tpu.memory_space<vmem>>, vector<2x16x128xf32>
    %11 = vector.extract_strided_slice %9 {offsets = [0, 0], sizes = [1, 128], strides = [1, 1]} : vector<7x128xf32> to vector<1x128xf32>
    %12 = vector.shape_cast %11 : vector<1x128xf32> to vector<1x1x128xf32>
    %13 = vector.broadcast %12 : vector<1x1x128xf32> to vector<2x16x128xf32>
    %14 = arith.mulf %10, %13 : vector<2x16x128xf32>
    %c0_20 = arith.constant 0 : index
    %c16_21 = arith.constant 16 : index
    %c0_22 = arith.constant 0 : index
    %15 = vector.load %arg15[%c0_20, %c16_21, %c0_22] : memref<2x48x128xf32, #tpu.memory_space<vmem>>, vector<2x16x128xf32>
    %16 = vector.extract_strided_slice %9 {offsets = [1, 0], sizes = [1, 128], strides = [1, 1]} : vector<7x128xf32> to vector<1x128xf32>
    %17 = vector.shape_cast %16 : vector<1x128xf32> to vector<1x1x128xf32>
    %18 = vector.broadcast %17 : vector<1x1x128xf32> to vector<2x16x128xf32>
    %19 = arith.mulf %15, %18 : vector<2x16x128xf32>
    %20 = arith.addf %14, %19 : vector<2x16x128xf32>
    %c0_23 = arith.constant 0 : index
    %c17 = arith.constant 17 : index
    %c0_24 = arith.constant 0 : index
    %21 = vector.load %arg15[%c0_23, %c17, %c0_24] : memref<2x48x128xf32, #tpu.memory_space<vmem>>, vector<2x16x128xf32>
    %22 = vector.extract_strided_slice %9 {offsets = [2, 0], sizes = [1, 128], strides = [1, 1]} : vector<7x128xf32> to vector<1x128xf32>
    %23 = vector.shape_cast %22 : vector<1x128xf32> to vector<1x1x128xf32>
    %24 = vector.broadcast %23 : vector<1x1x128xf32> to vector<2x16x128xf32>
    %25 = arith.mulf %21, %24 : vector<2x16x128xf32>
    %26 = arith.addf %20, %25 : vector<2x16x128xf32>
    %c0_25 = arith.constant 0 : index
    %c0_26 = arith.constant 0 : index
    %c0_27 = arith.constant 0 : index
    %c0_28 = arith.constant 0 : index
    %27 = vector.load %arg3[%c0_25, %c0_26, %c0_27, %c0_28] : memref<3x3x1x128xf32, #tpu.memory_space<vmem>>, vector<1x1x1x128xf32>
    %28 = vector.shape_cast %27 : vector<1x1x1x128xf32> to vector<1x128xf32>
    %29 = vector.shape_cast %28 : vector<1x128xf32> to vector<1x1x128xf32>
    %30 = vector.broadcast %29 : vector<1x1x128xf32> to vector<2x16x128xf32>
    %31 = arith.addf %26, %30 : vector<2x16x128xf32>
    %32 = vector.shape_cast %31 : vector<2x16x128xf32> to vector<32x128xf32>
    %33 = arith.truncf %32 : vector<32x128xf32> to vector<32x128xbf16>
    %c0_29 = arith.constant 0 : index
    %c0_30 = arith.constant 0 : index
    %c0_31 = arith.constant 0 : index
    %c0_32 = arith.constant 0 : index
    %34 = vector.load %arg4[%c0_29, %c0_30, %c0_31, %c0_32] : memref<3x3x128x128xbf16, #tpu.memory_space<vmem>>, vector<1x1x128x128xbf16>
    %35 = vector.shape_cast %34 : vector<1x1x128x128xbf16> to vector<128x128xbf16>
    %cst_33 = arith.constant dense<0.000000e+00> : vector<32x128xf32>
    %36 = tpu.matmul %33, %35, %cst_33 {dimension_numbers = #tpu.dot_dimension_numbers<[1], [0], [0], [1], [0, 0, 1, 1], [], []>} : vector<32x128xbf16>, vector<128x128xbf16>, vector<32x128xf32> -> vector<32x128xf32>
    %c0_34 = arith.constant 0 : index
    %c0_35 = arith.constant 0 : index
    %c0_36 = arith.constant 0 : index
    %c0_37 = arith.constant 0 : index
    %37 = vector.load %arg5[%c0_34, %c0_35, %c0_36, %c0_37] : memref<3x3x1x128xf32, #tpu.memory_space<vmem>>, vector<1x1x1x128xf32>
    %38 = vector.shape_cast %37 : vector<1x1x1x128xf32> to vector<1x128xf32>
    %39 = vector.broadcast %38 : vector<1x128xf32> to vector<32x128xf32>
    %40 = arith.addf %36, %39 : vector<32x128xf32>
    %41 = vector.shape_cast %40 : vector<32x128xf32> to vector<2x16x128xf32>
    %42 = arith.mulf %41, %41 : vector<2x16x128xf32>
    %43 = tpu.concatenate %41, %42 in 0 : vector<2x16x128xf32>, vector<2x16x128xf32> -> vector<4x16x128xf32>
    %cst_38 = arith.constant dense<0.000000e+00> : vector<4x128xf32>
    %44 = vector.multi_reduction <add>, %43, %cst_38 [1] : vector<4x16x128xf32> to vector<4x128xf32>
    %cst_39 = arith.constant dense<0.000000e+00> : vector<4x16xf32>
    %45 = tpu.matmul %44, %0, %cst_39 {dimension_numbers = #tpu.dot_dimension_numbers<[1], [0], [0], [1], [0, 0, 1, 1], [], []>} : vector<4x128xf32>, vector<128x16xf32>, vector<4x16xf32> -> vector<4x16xf32>
    %cst_40 = arith.constant 7.812500e-03 : f32
    %46 = vector.broadcast %cst_40 : f32 to vector<4x16xf32>
    %47 = arith.mulf %45, %46 : vector<4x16xf32>
    %48 = vector.extract_strided_slice %47 {offsets = [0, 0], sizes = [2, 16], strides = [1, 1]} : vector<4x16xf32> to vector<2x16xf32>
    %49 = vector.extract_strided_slice %47 {offsets = [2, 0], sizes = [2, 16], strides = [1, 1]} : vector<4x16xf32> to vector<2x16xf32>
    %50 = arith.mulf %48, %48 : vector<2x16xf32>
    %51 = arith.subf %49, %50 : vector<2x16xf32>
    %cst_41 = arith.constant 9.99999974E-6 : f32
    %52 = vector.broadcast %cst_41 : f32 to vector<2x16xf32>
    %53 = arith.addf %51, %52 : vector<2x16xf32>
    %54 = math.rsqrt %53 : vector<2x16xf32>
    %cst_42 = arith.constant dense<0.000000e+00> : vector<2x128xf32>
    %55 = tpu.matmul %48, %1, %cst_42 {dimension_numbers = #tpu.dot_dimension_numbers<[1], [0], [0], [1], [0, 0, 1, 1], [], []>} : vector<2x16xf32>, vector<16x128xf32>, vector<2x128xf32> -> vector<2x128xf32>
    %56 = vector.shape_cast %55 : vector<2x128xf32> to vector<2x1x128xf32>
    %cst_43 = arith.constant dense<0.000000e+00> : vector<2x128xf32>
    %57 = tpu.matmul %54, %1, %cst_43 {dimension_numbers = #tpu.dot_dimension_numbers<[1], [0], [0], [1], [0, 0, 1, 1], [], []>} : vector<2x16xf32>, vector<16x128xf32>, vector<2x128xf32> -> vector<2x128xf32>
    %58 = vector.shape_cast %57 : vector<2x128xf32> to vector<2x1x128xf32>
    %59 = vector.broadcast %56 : vector<2x1x128xf32> to vector<2x16x128xf32>
    %60 = arith.subf %41, %59 : vector<2x16x128xf32>
    %61 = vector.broadcast %58 : vector<2x1x128xf32> to vector<2x16x128xf32>
    %62 = arith.mulf %60, %61 : vector<2x16x128xf32>
    %c0_44 = arith.constant 0 : index
    %c0_45 = arith.constant 0 : index
    %c0_46 = arith.constant 0 : index
    %c0_47 = arith.constant 0 : index
    %63 = vector.load %arg6[%c0_44, %c0_45, %c0_46, %c0_47] : memref<3x3x1x128xf32, #tpu.memory_space<vmem>>, vector<1x1x1x128xf32>
    %64 = vector.shape_cast %63 : vector<1x1x1x128xf32> to vector<1x128xf32>
    %65 = vector.shape_cast %64 : vector<1x128xf32> to vector<1x1x128xf32>
    %66 = vector.broadcast %65 : vector<1x1x128xf32> to vector<2x16x128xf32>
    %67 = arith.mulf %62, %66 : vector<2x16x128xf32>
    %c0_48 = arith.constant 0 : index
    %c0_49 = arith.constant 0 : index
    %c0_50 = arith.constant 0 : index
    %c0_51 = arith.constant 0 : index
    %68 = vector.load %arg7[%c0_48, %c0_49, %c0_50, %c0_51] : memref<3x3x1x128xf32, #tpu.memory_space<vmem>>, vector<1x1x1x128xf32>
    %69 = vector.shape_cast %68 : vector<1x1x1x128xf32> to vector<1x128xf32>
    %70 = vector.shape_cast %69 : vector<1x128xf32> to vector<1x1x128xf32>
    %71 = vector.broadcast %70 : vector<1x1x128xf32> to vector<2x16x128xf32>
    %72 = arith.addf %67, %71 : vector<2x16x128xf32>
    %cst_52 = arith.constant 0.000000e+00 : f32
    %73 = vector.broadcast %cst_52 : f32 to vector<2x16x128xf32>
    %74 = arith.maximumf %72, %73 : vector<2x16x128xf32>
    %75 = vector.shape_cast %74 : vector<2x16x128xf32> to vector<32x128xf32>
    %76 = arith.truncf %7 : vector<32x128xf32> to vector<32x128xbf16>
    %c0_53 = arith.constant 0 : index
    %c0_54 = arith.constant 0 : index
    %c0_55 = arith.constant 0 : index
    %77 = vector.load %arg8[%c0_53, %c0_54, %c0_55] : memref<3x128x128xbf16, #tpu.memory_space<vmem>>, vector<1x128x128xbf16>
    %78 = vector.shape_cast %77 : vector<1x128x128xbf16> to vector<128x128xbf16>
    %cst_56 = arith.constant dense<0.000000e+00> : vector<32x128xf32>
    %79 = tpu.matmul %76, %78, %cst_56 {dimension_numbers = #tpu.dot_dimension_numbers<[1], [0], [0], [1], [0, 0, 1, 1], [], []>} : vector<32x128xbf16>, vector<128x128xbf16>, vector<32x128xf32> -> vector<32x128xf32>
    %c0_57 = arith.constant 0 : index
    %c0_58 = arith.constant 0 : index
    %c0_59 = arith.constant 0 : index
    %80 = vector.load %arg9[%c0_57, %c0_58, %c0_59] : memref<3x1x128xf32, #tpu.memory_space<vmem>>, vector<1x1x128xf32>
    %81 = vector.shape_cast %80 : vector<1x1x128xf32> to vector<1x128xf32>
    %82 = vector.broadcast %81 : vector<1x128xf32> to vector<32x128xf32>
    %83 = arith.addf %79, %82 : vector<32x128xf32>
    %84 = arith.addf %75, %83 : vector<32x128xf32>
    %c0_60 = arith.constant 0 : index
    %c1 = arith.constant 1 : index
    %c0_61 = arith.constant 0 : index
    %c0_62 = arith.constant 0 : index
    %85 = vector.load %arg2[%c0_60, %c1, %c0_61, %c0_62] : memref<3x3x7x128xf32, #tpu.memory_space<vmem>>, vector<1x1x7x128xf32>
    %86 = vector.shape_cast %85 : vector<1x1x7x128xf32> to vector<7x128xf32>
    %c0_63 = arith.constant 0 : index
    %c14 = arith.constant 14 : index
    %c0_64 = arith.constant 0 : index
    %87 = vector.load %arg15[%c0_63, %c14, %c0_64] : memref<2x48x128xf32, #tpu.memory_space<vmem>>, vector<2x16x128xf32>
    %88 = vector.extract_strided_slice %86 {offsets = [0, 0], sizes = [1, 128], strides = [1, 1]} : vector<7x128xf32> to vector<1x128xf32>
    %89 = vector.shape_cast %88 : vector<1x128xf32> to vector<1x1x128xf32>
    %90 = vector.broadcast %89 : vector<1x1x128xf32> to vector<2x16x128xf32>
    %91 = arith.mulf %87, %90 : vector<2x16x128xf32>
    %c0_65 = arith.constant 0 : index
    %c15_66 = arith.constant 15 : index
    %c0_67 = arith.constant 0 : index
    %92 = vector.load %arg15[%c0_65, %c15_66, %c0_67] : memref<2x48x128xf32, #tpu.memory_space<vmem>>, vector<2x16x128xf32>
    %93 = vector.extract_strided_slice %86 {offsets = [1, 0], sizes = [1, 128], strides = [1, 1]} : vector<7x128xf32> to vector<1x128xf32>
    %94 = vector.shape_cast %93 : vector<1x128xf32> to vector<1x1x128xf32>
    %95 = vector.broadcast %94 : vector<1x1x128xf32> to vector<2x16x128xf32>
    %96 = arith.mulf %92, %95 : vector<2x16x128xf32>
    %97 = arith.addf %91, %96 : vector<2x16x128xf32>
    %c0_68 = arith.constant 0 : index
    %c16_69 = arith.constant 16 : index
    %c0_70 = arith.constant 0 : index
    %98 = vector.load %arg15[%c0_68, %c16_69, %c0_70] : memref<2x48x128xf32, #tpu.memory_space<vmem>>, vector<2x16x128xf32>
    %99 = vector.extract_strided_slice %86 {offsets = [2, 0], sizes = [1, 128], strides = [1, 1]} : vector<7x128xf32> to vector<1x128xf32>
    %100 = vector.shape_cast %99 : vector<1x128xf32> to vector<1x1x128xf32>
    %101 = vector.broadcast %100 : vector<1x1x128xf32> to vector<2x16x128xf32>
    %102 = arith.mulf %98, %101 : vector<2x16x128xf32>
    %103 = arith.addf %97, %102 : vector<2x16x128xf32>
    %c0_71 = arith.constant 0 : index
    %c17_72 = arith.constant 17 : index
    %c0_73 = arith.constant 0 : index
    %104 = vector.load %arg15[%c0_71, %c17_72, %c0_73] : memref<2x48x128xf32, #tpu.memory_space<vmem>>, vector<2x16x128xf32>
    %105 = vector.extract_strided_slice %86 {offsets = [3, 0], sizes = [1, 128], strides = [1, 1]} : vector<7x128xf32> to vector<1x128xf32>
    %106 = vector.shape_cast %105 : vector<1x128xf32> to vector<1x1x128xf32>
    %107 = vector.broadcast %106 : vector<1x1x128xf32> to vector<2x16x128xf32>
    %108 = arith.mulf %104, %107 : vector<2x16x128xf32>
    %109 = arith.addf %103, %108 : vector<2x16x128xf32>
    %c0_74 = arith.constant 0 : index
    %c18 = arith.constant 18 : index
    %c0_75 = arith.constant 0 : index
    %110 = vector.load %arg15[%c0_74, %c18, %c0_75] : memref<2x48x128xf32, #tpu.memory_space<vmem>>, vector<2x16x128xf32>
    %111 = vector.extract_strided_slice %86 {offsets = [4, 0], sizes = [1, 128], strides = [1, 1]} : vector<7x128xf32> to vector<1x128xf32>
    %112 = vector.shape_cast %111 : vector<1x128xf32> to vector<1x1x128xf32>
    %113 = vector.broadcast %112 : vector<1x1x128xf32> to vector<2x16x128xf32>
    %114 = arith.mulf %110, %113 : vector<2x16x128xf32>
    %115 = arith.addf %109, %114 : vector<2x16x128xf32>
    %c0_76 = arith.constant 0 : index
    %c1_77 = arith.constant 1 : index
    %c0_78 = arith.constant 0 : index
    %c0_79 = arith.constant 0 : index
    %116 = vector.load %arg3[%c0_76, %c1_77, %c0_78, %c0_79] : memref<3x3x1x128xf32, #tpu.memory_space<vmem>>, vector<1x1x1x128xf32>
    %117 = vector.shape_cast %116 : vector<1x1x1x128xf32> to vector<1x128xf32>
    %118 = vector.shape_cast %117 : vector<1x128xf32> to vector<1x1x128xf32>
    %119 = vector.broadcast %118 : vector<1x1x128xf32> to vector<2x16x128xf32>
    %120 = arith.addf %115, %119 : vector<2x16x128xf32>
    %121 = vector.shape_cast %120 : vector<2x16x128xf32> to vector<32x128xf32>
    %122 = arith.truncf %121 : vector<32x128xf32> to vector<32x128xbf16>
    %c0_80 = arith.constant 0 : index
    %c1_81 = arith.constant 1 : index
    %c0_82 = arith.constant 0 : index
    %c0_83 = arith.constant 0 : index
    %123 = vector.load %arg4[%c0_80, %c1_81, %c0_82, %c0_83] : memref<3x3x128x128xbf16, #tpu.memory_space<vmem>>, vector<1x1x128x128xbf16>
    %124 = vector.shape_cast %123 : vector<1x1x128x128xbf16> to vector<128x128xbf16>
    %cst_84 = arith.constant dense<0.000000e+00> : vector<32x128xf32>
    %125 = tpu.matmul %122, %124, %cst_84 {dimension_numbers = #tpu.dot_dimension_numbers<[1], [0], [0], [1], [0, 0, 1, 1], [], []>} : vector<32x128xbf16>, vector<128x128xbf16>, vector<32x128xf32> -> vector<32x128xf32>
    %c0_85 = arith.constant 0 : index
    %c1_86 = arith.constant 1 : index
    %c0_87 = arith.constant 0 : index
    %c0_88 = arith.constant 0 : index
    %126 = vector.load %arg5[%c0_85, %c1_86, %c0_87, %c0_88] : memref<3x3x1x128xf32, #tpu.memory_space<vmem>>, vector<1x1x1x128xf32>
    %127 = vector.shape_cast %126 : vector<1x1x1x128xf32> to vector<1x128xf32>
    %128 = vector.broadcast %127 : vector<1x128xf32> to vector<32x128xf32>
    %129 = arith.addf %125, %128 : vector<32x128xf32>
    %130 = vector.shape_cast %129 : vector<32x128xf32> to vector<2x16x128xf32>
    %131 = arith.mulf %130, %130 : vector<2x16x128xf32>
    %132 = tpu.concatenate %130, %131 in 0 : vector<2x16x128xf32>, vector<2x16x128xf32> -> vector<4x16x128xf32>
    %cst_89 = arith.constant dense<0.000000e+00> : vector<4x128xf32>
    %133 = vector.multi_reduction <add>, %132, %cst_89 [1] : vector<4x16x128xf32> to vector<4x128xf32>
    %cst_90 = arith.constant dense<0.000000e+00> : vector<4x16xf32>
    %134 = tpu.matmul %133, %0, %cst_90 {dimension_numbers = #tpu.dot_dimension_numbers<[1], [0], [0], [1], [0, 0, 1, 1], [], []>} : vector<4x128xf32>, vector<128x16xf32>, vector<4x16xf32> -> vector<4x16xf32>
    %cst_91 = arith.constant 7.812500e-03 : f32
    %135 = vector.broadcast %cst_91 : f32 to vector<4x16xf32>
    %136 = arith.mulf %134, %135 : vector<4x16xf32>
    %137 = vector.extract_strided_slice %136 {offsets = [0, 0], sizes = [2, 16], strides = [1, 1]} : vector<4x16xf32> to vector<2x16xf32>
    %138 = vector.extract_strided_slice %136 {offsets = [2, 0], sizes = [2, 16], strides = [1, 1]} : vector<4x16xf32> to vector<2x16xf32>
    %139 = arith.mulf %137, %137 : vector<2x16xf32>
    %140 = arith.subf %138, %139 : vector<2x16xf32>
    %cst_92 = arith.constant 9.99999974E-6 : f32
    %141 = vector.broadcast %cst_92 : f32 to vector<2x16xf32>
    %142 = arith.addf %140, %141 : vector<2x16xf32>
    %143 = math.rsqrt %142 : vector<2x16xf32>
    %cst_93 = arith.constant dense<0.000000e+00> : vector<2x128xf32>
    %144 = tpu.matmul %137, %1, %cst_93 {dimension_numbers = #tpu.dot_dimension_numbers<[1], [0], [0], [1], [0, 0, 1, 1], [], []>} : vector<2x16xf32>, vector<16x128xf32>, vector<2x128xf32> -> vector<2x128xf32>
    %145 = vector.shape_cast %144 : vector<2x128xf32> to vector<2x1x128xf32>
    %cst_94 = arith.constant dense<0.000000e+00> : vector<2x128xf32>
    %146 = tpu.matmul %143, %1, %cst_94 {dimension_numbers = #tpu.dot_dimension_numbers<[1], [0], [0], [1], [0, 0, 1, 1], [], []>} : vector<2x16xf32>, vector<16x128xf32>, vector<2x128xf32> -> vector<2x128xf32>
    %147 = vector.shape_cast %146 : vector<2x128xf32> to vector<2x1x128xf32>
    %148 = vector.broadcast %145 : vector<2x1x128xf32> to vector<2x16x128xf32>
    %149 = arith.subf %130, %148 : vector<2x16x128xf32>
    %150 = vector.broadcast %147 : vector<2x1x128xf32> to vector<2x16x128xf32>
    %151 = arith.mulf %149, %150 : vector<2x16x128xf32>
    %c0_95 = arith.constant 0 : index
    %c1_96 = arith.constant 1 : index
    %c0_97 = arith.constant 0 : index
    %c0_98 = arith.constant 0 : index
    %152 = vector.load %arg6[%c0_95, %c1_96, %c0_97, %c0_98] : memref<3x3x1x128xf32, #tpu.memory_space<vmem>>, vector<1x1x1x128xf32>
    %153 = vector.shape_cast %152 : vector<1x1x1x128xf32> to vector<1x128xf32>
    %154 = vector.shape_cast %153 : vector<1x128xf32> to vector<1x1x128xf32>
    %155 = vector.broadcast %154 : vector<1x1x128xf32> to vector<2x16x128xf32>
    %156 = arith.mulf %151, %155 : vector<2x16x128xf32>
    %c0_99 = arith.constant 0 : index
    %c1_100 = arith.constant 1 : index
    %c0_101 = arith.constant 0 : index
    %c0_102 = arith.constant 0 : index
    %157 = vector.load %arg7[%c0_99, %c1_100, %c0_101, %c0_102] : memref<3x3x1x128xf32, #tpu.memory_space<vmem>>, vector<1x1x1x128xf32>
    %158 = vector.shape_cast %157 : vector<1x1x1x128xf32> to vector<1x128xf32>
    %159 = vector.shape_cast %158 : vector<1x128xf32> to vector<1x1x128xf32>
    %160 = vector.broadcast %159 : vector<1x1x128xf32> to vector<2x16x128xf32>
    %161 = arith.addf %156, %160 : vector<2x16x128xf32>
    %cst_103 = arith.constant 0.000000e+00 : f32
    %162 = vector.broadcast %cst_103 : f32 to vector<2x16x128xf32>
    %163 = arith.maximumf %161, %162 : vector<2x16x128xf32>
    %164 = vector.shape_cast %163 : vector<2x16x128xf32> to vector<32x128xf32>
    %165 = arith.truncf %7 : vector<32x128xf32> to vector<32x128xbf16>
    %c1_104 = arith.constant 1 : index
    %c0_105 = arith.constant 0 : index
    %c0_106 = arith.constant 0 : index
    %166 = vector.load %arg8[%c1_104, %c0_105, %c0_106] : memref<3x128x128xbf16, #tpu.memory_space<vmem>>, vector<1x128x128xbf16>
    %167 = vector.shape_cast %166 : vector<1x128x128xbf16> to vector<128x128xbf16>
    %cst_107 = arith.constant dense<0.000000e+00> : vector<32x128xf32>
    %168 = tpu.matmul %165, %167, %cst_107 {dimension_numbers = #tpu.dot_dimension_numbers<[1], [0], [0], [1], [0, 0, 1, 1], [], []>} : vector<32x128xbf16>, vector<128x128xbf16>, vector<32x128xf32> -> vector<32x128xf32>
    %c1_108 = arith.constant 1 : index
    %c0_109 = arith.constant 0 : index
    %c0_110 = arith.constant 0 : index
    %169 = vector.load %arg9[%c1_108, %c0_109, %c0_110] : memref<3x1x128xf32, #tpu.memory_space<vmem>>, vector<1x1x128xf32>
    %170 = vector.shape_cast %169 : vector<1x1x128xf32> to vector<1x128xf32>
    %171 = vector.broadcast %170 : vector<1x128xf32> to vector<32x128xf32>
    %172 = arith.addf %168, %171 : vector<32x128xf32>
    %173 = arith.addf %164, %172 : vector<32x128xf32>
    %c0_111 = arith.constant 0 : index
    %c2 = arith.constant 2 : index
    %c0_112 = arith.constant 0 : index
    %c0_113 = arith.constant 0 : index
    %174 = vector.load %arg2[%c0_111, %c2, %c0_112, %c0_113] : memref<3x3x7x128xf32, #tpu.memory_space<vmem>>, vector<1x1x7x128xf32>
    %175 = vector.shape_cast %174 : vector<1x1x7x128xf32> to vector<7x128xf32>
    %c0_114 = arith.constant 0 : index
    %c13 = arith.constant 13 : index
    %c0_115 = arith.constant 0 : index
    %176 = vector.load %arg15[%c0_114, %c13, %c0_115] : memref<2x48x128xf32, #tpu.memory_space<vmem>>, vector<2x16x128xf32>
    %177 = vector.extract_strided_slice %175 {offsets = [0, 0], sizes = [1, 128], strides = [1, 1]} : vector<7x128xf32> to vector<1x128xf32>
    %178 = vector.shape_cast %177 : vector<1x128xf32> to vector<1x1x128xf32>
    %179 = vector.broadcast %178 : vector<1x1x128xf32> to vector<2x16x128xf32>
    %180 = arith.mulf %176, %179 : vector<2x16x128xf32>
    %c0_116 = arith.constant 0 : index
    %c14_117 = arith.constant 14 : index
    %c0_118 = arith.constant 0 : index
    %181 = vector.load %arg15[%c0_116, %c14_117, %c0_118] : memref<2x48x128xf32, #tpu.memory_space<vmem>>, vector<2x16x128xf32>
    %182 = vector.extract_strided_slice %175 {offsets = [1, 0], sizes = [1, 128], strides = [1, 1]} : vector<7x128xf32> to vector<1x128xf32>
    %183 = vector.shape_cast %182 : vector<1x128xf32> to vector<1x1x128xf32>
    %184 = vector.broadcast %183 : vector<1x1x128xf32> to vector<2x16x128xf32>
    %185 = arith.mulf %181, %184 : vector<2x16x128xf32>
    %186 = arith.addf %180, %185 : vector<2x16x128xf32>
    %c0_119 = arith.constant 0 : index
    %c15_120 = arith.constant 15 : index
    %c0_121 = arith.constant 0 : index
    %187 = vector.load %arg15[%c0_119, %c15_120, %c0_121] : memref<2x48x128xf32, #tpu.memory_space<vmem>>, vector<2x16x128xf32>
    %188 = vector.extract_strided_slice %175 {offsets = [2, 0], sizes = [1, 128], strides = [1, 1]} : vector<7x128xf32> to vector<1x128xf32>
    %189 = vector.shape_cast %188 : vector<1x128xf32> to vector<1x1x128xf32>
    %190 = vector.broadcast %189 : vector<1x1x128xf32> to vector<2x16x128xf32>
    %191 = arith.mulf %187, %190 : vector<2x16x128xf32>
    %192 = arith.addf %186, %191 : vector<2x16x128xf32>
    %c0_122 = arith.constant 0 : index
    %c16_123 = arith.constant 16 : index
    %c0_124 = arith.constant 0 : index
    %193 = vector.load %arg15[%c0_122, %c16_123, %c0_124] : memref<2x48x128xf32, #tpu.memory_space<vmem>>, vector<2x16x128xf32>
    %194 = vector.extract_strided_slice %175 {offsets = [3, 0], sizes = [1, 128], strides = [1, 1]} : vector<7x128xf32> to vector<1x128xf32>
    %195 = vector.shape_cast %194 : vector<1x128xf32> to vector<1x1x128xf32>
    %196 = vector.broadcast %195 : vector<1x1x128xf32> to vector<2x16x128xf32>
    %197 = arith.mulf %193, %196 : vector<2x16x128xf32>
    %198 = arith.addf %192, %197 : vector<2x16x128xf32>
    %c0_125 = arith.constant 0 : index
    %c17_126 = arith.constant 17 : index
    %c0_127 = arith.constant 0 : index
    %199 = vector.load %arg15[%c0_125, %c17_126, %c0_127] : memref<2x48x128xf32, #tpu.memory_space<vmem>>, vector<2x16x128xf32>
    %200 = vector.extract_strided_slice %175 {offsets = [4, 0], sizes = [1, 128], strides = [1, 1]} : vector<7x128xf32> to vector<1x128xf32>
    %201 = vector.shape_cast %200 : vector<1x128xf32> to vector<1x1x128xf32>
    %202 = vector.broadcast %201 : vector<1x1x128xf32> to vector<2x16x128xf32>
    %203 = arith.mulf %199, %202 : vector<2x16x128xf32>
    %204 = arith.addf %198, %203 : vector<2x16x128xf32>
    %c0_128 = arith.constant 0 : index
    %c18_129 = arith.constant 18 : index
    %c0_130 = arith.constant 0 : index
    %205 = vector.load %arg15[%c0_128, %c18_129, %c0_130] : memref<2x48x128xf32, #tpu.memory_space<vmem>>, vector<2x16x128xf32>
    %206 = vector.extract_strided_slice %175 {offsets = [5, 0], sizes = [1, 128], strides = [1, 1]} : vector<7x128xf32> to vector<1x128xf32>
    %207 = vector.shape_cast %206 : vector<1x128xf32> to vector<1x1x128xf32>
    %208 = vector.broadcast %207 : vector<1x1x128xf32> to vector<2x16x128xf32>
    %209 = arith.mulf %205, %208 : vector<2x16x128xf32>
    %210 = arith.addf %204, %209 : vector<2x16x128xf32>
    %c0_131 = arith.constant 0 : index
    %c19 = arith.constant 19 : index
    %c0_132 = arith.constant 0 : index
    %211 = vector.load %arg15[%c0_131, %c19, %c0_132] : memref<2x48x128xf32, #tpu.memory_space<vmem>>, vector<2x16x128xf32>
    %212 = vector.extract_strided_slice %175 {offsets = [6, 0], sizes = [1, 128], strides = [1, 1]} : vector<7x128xf32> to vector<1x128xf32>
    %213 = vector.shape_cast %212 : vector<1x128xf32> to vector<1x1x128xf32>
    %214 = vector.broadcast %213 : vector<1x1x128xf32> to vector<2x16x128xf32>
    %215 = arith.mulf %211, %214 : vector<2x16x128xf32>
    %216 = arith.addf %210, %215 : vector<2x16x128xf32>
    %c0_133 = arith.constant 0 : index
    %c2_134 = arith.constant 2 : index
    %c0_135 = arith.constant 0 : index
    %c0_136 = arith.constant 0 : index
    %217 = vector.load %arg3[%c0_133, %c2_134, %c0_135, %c0_136] : memref<3x3x1x128xf32, #tpu.memory_space<vmem>>, vector<1x1x1x128xf32>
    %218 = vector.shape_cast %217 : vector<1x1x1x128xf32> to vector<1x128xf32>
    %219 = vector.shape_cast %218 : vector<1x128xf32> to vector<1x1x128xf32>
    %220 = vector.broadcast %219 : vector<1x1x128xf32> to vector<2x16x128xf32>
    %221 = arith.addf %216, %220 : vector<2x16x128xf32>
    %222 = vector.shape_cast %221 : vector<2x16x128xf32> to vector<32x128xf32>
    %223 = arith.truncf %222 : vector<32x128xf32> to vector<32x128xbf16>
    %c0_137 = arith.constant 0 : index
    %c2_138 = arith.constant 2 : index
    %c0_139 = arith.constant 0 : index
    %c0_140 = arith.constant 0 : index
    %224 = vector.load %arg4[%c0_137, %c2_138, %c0_139, %c0_140] : memref<3x3x128x128xbf16, #tpu.memory_space<vmem>>, vector<1x1x128x128xbf16>
    %225 = vector.shape_cast %224 : vector<1x1x128x128xbf16> to vector<128x128xbf16>
    %cst_141 = arith.constant dense<0.000000e+00> : vector<32x128xf32>
    %226 = tpu.matmul %223, %225, %cst_141 {dimension_numbers = #tpu.dot_dimension_numbers<[1], [0], [0], [1], [0, 0, 1, 1], [], []>} : vector<32x128xbf16>, vector<128x128xbf16>, vector<32x128xf32> -> vector<32x128xf32>
    %c0_142 = arith.constant 0 : index
    %c2_143 = arith.constant 2 : index
    %c0_144 = arith.constant 0 : index
    %c0_145 = arith.constant 0 : index
    %227 = vector.load %arg5[%c0_142, %c2_143, %c0_144, %c0_145] : memref<3x3x1x128xf32, #tpu.memory_space<vmem>>, vector<1x1x1x128xf32>
    %228 = vector.shape_cast %227 : vector<1x1x1x128xf32> to vector<1x128xf32>
    %229 = vector.broadcast %228 : vector<1x128xf32> to vector<32x128xf32>
    %230 = arith.addf %226, %229 : vector<32x128xf32>
    %231 = vector.shape_cast %230 : vector<32x128xf32> to vector<2x16x128xf32>
    %232 = arith.mulf %231, %231 : vector<2x16x128xf32>
    %233 = tpu.concatenate %231, %232 in 0 : vector<2x16x128xf32>, vector<2x16x128xf32> -> vector<4x16x128xf32>
    %cst_146 = arith.constant dense<0.000000e+00> : vector<4x128xf32>
    %234 = vector.multi_reduction <add>, %233, %cst_146 [1] : vector<4x16x128xf32> to vector<4x128xf32>
    %cst_147 = arith.constant dense<0.000000e+00> : vector<4x16xf32>
    %235 = tpu.matmul %234, %0, %cst_147 {dimension_numbers = #tpu.dot_dimension_numbers<[1], [0], [0], [1], [0, 0, 1, 1], [], []>} : vector<4x128xf32>, vector<128x16xf32>, vector<4x16xf32> -> vector<4x16xf32>
    %cst_148 = arith.constant 7.812500e-03 : f32
    %236 = vector.broadcast %cst_148 : f32 to vector<4x16xf32>
    %237 = arith.mulf %235, %236 : vector<4x16xf32>
    %238 = vector.extract_strided_slice %237 {offsets = [0, 0], sizes = [2, 16], strides = [1, 1]} : vector<4x16xf32> to vector<2x16xf32>
    %239 = vector.extract_strided_slice %237 {offsets = [2, 0], sizes = [2, 16], strides = [1, 1]} : vector<4x16xf32> to vector<2x16xf32>
    %240 = arith.mulf %238, %238 : vector<2x16xf32>
    %241 = arith.subf %239, %240 : vector<2x16xf32>
    %cst_149 = arith.constant 9.99999974E-6 : f32
    %242 = vector.broadcast %cst_149 : f32 to vector<2x16xf32>
    %243 = arith.addf %241, %242 : vector<2x16xf32>
    %244 = math.rsqrt %243 : vector<2x16xf32>
    %cst_150 = arith.constant dense<0.000000e+00> : vector<2x128xf32>
    %245 = tpu.matmul %238, %1, %cst_150 {dimension_numbers = #tpu.dot_dimension_numbers<[1], [0], [0], [1], [0, 0, 1, 1], [], []>} : vector<2x16xf32>, vector<16x128xf32>, vector<2x128xf32> -> vector<2x128xf32>
    %246 = vector.shape_cast %245 : vector<2x128xf32> to vector<2x1x128xf32>
    %cst_151 = arith.constant dense<0.000000e+00> : vector<2x128xf32>
    %247 = tpu.matmul %244, %1, %cst_151 {dimension_numbers = #tpu.dot_dimension_numbers<[1], [0], [0], [1], [0, 0, 1, 1], [], []>} : vector<2x16xf32>, vector<16x128xf32>, vector<2x128xf32> -> vector<2x128xf32>
    %248 = vector.shape_cast %247 : vector<2x128xf32> to vector<2x1x128xf32>
    %249 = vector.broadcast %246 : vector<2x1x128xf32> to vector<2x16x128xf32>
    %250 = arith.subf %231, %249 : vector<2x16x128xf32>
    %251 = vector.broadcast %248 : vector<2x1x128xf32> to vector<2x16x128xf32>
    %252 = arith.mulf %250, %251 : vector<2x16x128xf32>
    %c0_152 = arith.constant 0 : index
    %c2_153 = arith.constant 2 : index
    %c0_154 = arith.constant 0 : index
    %c0_155 = arith.constant 0 : index
    %253 = vector.load %arg6[%c0_152, %c2_153, %c0_154, %c0_155] : memref<3x3x1x128xf32, #tpu.memory_space<vmem>>, vector<1x1x1x128xf32>
    %254 = vector.shape_cast %253 : vector<1x1x1x128xf32> to vector<1x128xf32>
    %255 = vector.shape_cast %254 : vector<1x128xf32> to vector<1x1x128xf32>
    %256 = vector.broadcast %255 : vector<1x1x128xf32> to vector<2x16x128xf32>
    %257 = arith.mulf %252, %256 : vector<2x16x128xf32>
    %c0_156 = arith.constant 0 : index
    %c2_157 = arith.constant 2 : index
    %c0_158 = arith.constant 0 : index
    %c0_159 = arith.constant 0 : index
    %258 = vector.load %arg7[%c0_156, %c2_157, %c0_158, %c0_159] : memref<3x3x1x128xf32, #tpu.memory_space<vmem>>, vector<1x1x1x128xf32>
    %259 = vector.shape_cast %258 : vector<1x1x1x128xf32> to vector<1x128xf32>
    %260 = vector.shape_cast %259 : vector<1x128xf32> to vector<1x1x128xf32>
    %261 = vector.broadcast %260 : vector<1x1x128xf32> to vector<2x16x128xf32>
    %262 = arith.addf %257, %261 : vector<2x16x128xf32>
    %cst_160 = arith.constant 0.000000e+00 : f32
    %263 = vector.broadcast %cst_160 : f32 to vector<2x16x128xf32>
    %264 = arith.maximumf %262, %263 : vector<2x16x128xf32>
    %265 = vector.shape_cast %264 : vector<2x16x128xf32> to vector<32x128xf32>
    %266 = arith.truncf %7 : vector<32x128xf32> to vector<32x128xbf16>
    %c2_161 = arith.constant 2 : index
    %c0_162 = arith.constant 0 : index
    %c0_163 = arith.constant 0 : index
    %267 = vector.load %arg8[%c2_161, %c0_162, %c0_163] : memref<3x128x128xbf16, #tpu.memory_space<vmem>>, vector<1x128x128xbf16>
    %268 = vector.shape_cast %267 : vector<1x128x128xbf16> to vector<128x128xbf16>
    %cst_164 = arith.constant dense<0.000000e+00> : vector<32x128xf32>
    %269 = tpu.matmul %266, %268, %cst_164 {dimension_numbers = #tpu.dot_dimension_numbers<[1], [0], [0], [1], [0, 0, 1, 1], [], []>} : vector<32x128xbf16>, vector<128x128xbf16>, vector<32x128xf32> -> vector<32x128xf32>
    %c2_165 = arith.constant 2 : index
    %c0_166 = arith.constant 0 : index
    %c0_167 = arith.constant 0 : index
    %270 = vector.load %arg9[%c2_165, %c0_166, %c0_167] : memref<3x1x128xf32, #tpu.memory_space<vmem>>, vector<1x1x128xf32>
    %271 = vector.shape_cast %270 : vector<1x1x128xf32> to vector<1x128xf32>
    %272 = vector.broadcast %271 : vector<1x128xf32> to vector<32x128xf32>
    %273 = arith.addf %269, %272 : vector<32x128xf32>
    %274 = arith.addf %265, %273 : vector<32x128xf32>
    %275 = tpu.concatenate %84, %173, %274 in 1 : vector<32x128xf32>, vector<32x128xf32>, vector<32x128xf32> -> vector<32x384xf32>
    %276 = arith.truncf %275 : vector<32x384xf32> to vector<32x384xbf16>
    %c0_168 = arith.constant 0 : index
    %c0_169 = arith.constant 0 : index
    %c0_170 = arith.constant 0 : index
    %277 = vector.load %arg10[%c0_168, %c0_169, %c0_170] : memref<3x384x128xbf16, #tpu.memory_space<vmem>>, vector<1x384x128xbf16>
    %278 = vector.shape_cast %277 : vector<1x384x128xbf16> to vector<384x128xbf16>
    %cst_171 = arith.constant dense<0.000000e+00> : vector<32x128xf32>
    %279 = tpu.matmul %276, %278, %cst_171 {dimension_numbers = #tpu.dot_dimension_numbers<[1], [0], [0], [1], [0, 0, 1, 1], [], []>} : vector<32x384xbf16>, vector<384x128xbf16>, vector<32x128xf32> -> vector<32x128xf32>
    %c0_172 = arith.constant 0 : index
    %c0_173 = arith.constant 0 : index
    %c0_174 = arith.constant 0 : index
    %280 = vector.load %arg11[%c0_172, %c0_173, %c0_174] : memref<3x1x128xf32, #tpu.memory_space<vmem>>, vector<1x1x128xf32>
    %281 = vector.shape_cast %280 : vector<1x1x128xf32> to vector<1x128xf32>
    %282 = vector.broadcast %281 : vector<1x128xf32> to vector<32x128xf32>
    %283 = arith.addf %279, %282 : vector<32x128xf32>
    %284 = vector.shape_cast %283 : vector<32x128xf32> to vector<2x16x128xf32>
    %c0_175 = arith.constant 0 : index
    %c16_176 = arith.constant 16 : index
    %c0_177 = arith.constant 0 : index
    %285 = vector.load %arg15[%c0_175, %c16_176, %c0_177] : memref<2x48x128xf32, #tpu.memory_space<vmem>>, vector<2x16x128xf32>
    tpu.vector_store %arg15[%c0_175, %c16_176, %c0_177], %284 {strides = array<i32>} : memref<2x48x128xf32, #tpu.memory_space<vmem>>, vector<2x16x128xf32>,
    %c0_178 = arith.constant 0 : index
    %c16_179 = arith.constant 16 : index
    %c0_180 = arith.constant 0 : index
    %286 = vector.load %arg15[%c0_178, %c16_179, %c0_180] : memref<2x48x128xf32, #tpu.memory_space<vmem>>, vector<2x16x128xf32>
    %287 = vector.shape_cast %286 : vector<2x16x128xf32> to vector<32x128xf32>
    %c1_181 = arith.constant 1 : index
    %c0_182 = arith.constant 0 : index
    %c0_183 = arith.constant 0 : index
    %c0_184 = arith.constant 0 : index
    %288 = vector.load %arg2[%c1_181, %c0_182, %c0_183, %c0_184] : memref<3x3x7x128xf32, #tpu.memory_space<vmem>>, vector<1x1x7x128xf32>
    %289 = vector.shape_cast %288 : vector<1x1x7x128xf32> to vector<7x128xf32>
    %c0_185 = arith.constant 0 : index
    %c14_186 = arith.constant 14 : index
    %c0_187 = arith.constant 0 : index
    %290 = vector.load %arg15[%c0_185, %c14_186, %c0_187] : memref<2x48x128xf32, #tpu.memory_space<vmem>>, vector<2x16x128xf32>
    %291 = vector.extract_strided_slice %289 {offsets = [0, 0], sizes = [1, 128], strides = [1, 1]} : vector<7x128xf32> to vector<1x128xf32>
    %292 = vector.shape_cast %291 : vector<1x128xf32> to vector<1x1x128xf32>
    %293 = vector.broadcast %292 : vector<1x1x128xf32> to vector<2x16x128xf32>
    %294 = arith.mulf %290, %293 : vector<2x16x128xf32>
    %c0_188 = arith.constant 0 : index
    %c16_189 = arith.constant 16 : index
    %c0_190 = arith.constant 0 : index
    %295 = vector.load %arg15[%c0_188, %c16_189, %c0_190] : memref<2x48x128xf32, #tpu.memory_space<vmem>>, vector<2x16x128xf32>
    %296 = vector.extract_strided_slice %289 {offsets = [1, 0], sizes = [1, 128], strides = [1, 1]} : vector<7x128xf32> to vector<1x128xf32>
    %297 = vector.shape_cast %296 : vector<1x128xf32> to vector<1x1x128xf32>
    %298 = vector.broadcast %297 : vector<1x1x128xf32> to vector<2x16x128xf32>
    %299 = arith.mulf %295, %298 : vector<2x16x128xf32>
    %300 = arith.addf %294, %299 : vector<2x16x128xf32>
    %c0_191 = arith.constant 0 : index
    %c18_192 = arith.constant 18 : index
    %c0_193 = arith.constant 0 : index
    %301 = vector.load %arg15[%c0_191, %c18_192, %c0_193] : memref<2x48x128xf32, #tpu.memory_space<vmem>>, vector<2x16x128xf32>
    %302 = vector.extract_strided_slice %289 {offsets = [2, 0], sizes = [1, 128], strides = [1, 1]} : vector<7x128xf32> to vector<1x128xf32>
    %303 = vector.shape_cast %302 : vector<1x128xf32> to vector<1x1x128xf32>
    %304 = vector.broadcast %303 : vector<1x1x128xf32> to vector<2x16x128xf32>
    %305 = arith.mulf %301, %304 : vector<2x16x128xf32>
    %306 = arith.addf %300, %305 : vector<2x16x128xf32>
    %c1_194 = arith.constant 1 : index
    %c0_195 = arith.constant 0 : index
    %c0_196 = arith.constant 0 : index
    %c0_197 = arith.constant 0 : index
    %307 = vector.load %arg3[%c1_194, %c0_195, %c0_196, %c0_197] : memref<3x3x1x128xf32, #tpu.memory_space<vmem>>, vector<1x1x1x128xf32>
    %308 = vector.shape_cast %307 : vector<1x1x1x128xf32> to vector<1x128xf32>
    %309 = vector.shape_cast %308 : vector<1x128xf32> to vector<1x1x128xf32>
    %310 = vector.broadcast %309 : vector<1x1x128xf32> to vector<2x16x128xf32>
    %311 = arith.addf %306, %310 : vector<2x16x128xf32>
    %312 = vector.shape_cast %311 : vector<2x16x128xf32> to vector<32x128xf32>
    %313 = arith.truncf %312 : vector<32x128xf32> to vector<32x128xbf16>
    %c1_198 = arith.constant 1 : index
    %c0_199 = arith.constant 0 : index
    %c0_200 = arith.constant 0 : index
    %c0_201 = arith.constant 0 : index
    %314 = vector.load %arg4[%c1_198, %c0_199, %c0_200, %c0_201] : memref<3x3x128x128xbf16, #tpu.memory_space<vmem>>, vector<1x1x128x128xbf16>
    %315 = vector.shape_cast %314 : vector<1x1x128x128xbf16> to vector<128x128xbf16>
    %cst_202 = arith.constant dense<0.000000e+00> : vector<32x128xf32>
    %316 = tpu.matmul %313, %315, %cst_202 {dimension_numbers = #tpu.dot_dimension_numbers<[1], [0], [0], [1], [0, 0, 1, 1], [], []>} : vector<32x128xbf16>, vector<128x128xbf16>, vector<32x128xf32> -> vector<32x128xf32>
    %c1_203 = arith.constant 1 : index
    %c0_204 = arith.constant 0 : index
    %c0_205 = arith.constant 0 : index
    %c0_206 = arith.constant 0 : index
    %317 = vector.load %arg5[%c1_203, %c0_204, %c0_205, %c0_206] : memref<3x3x1x128xf32, #tpu.memory_space<vmem>>, vector<1x1x1x128xf32>
    %318 = vector.shape_cast %317 : vector<1x1x1x128xf32> to vector<1x128xf32>
    %319 = vector.broadcast %318 : vector<1x128xf32> to vector<32x128xf32>
    %320 = arith.addf %316, %319 : vector<32x128xf32>
    %321 = vector.shape_cast %320 : vector<32x128xf32> to vector<2x16x128xf32>
    %322 = arith.mulf %321, %321 : vector<2x16x128xf32>
    %323 = tpu.concatenate %321, %322 in 0 : vector<2x16x128xf32>, vector<2x16x128xf32> -> vector<4x16x128xf32>
    %cst_207 = arith.constant dense<0.000000e+00> : vector<4x128xf32>
    %324 = vector.multi_reduction <add>, %323, %cst_207 [1] : vector<4x16x128xf32> to vector<4x128xf32>
    %cst_208 = arith.constant dense<0.000000e+00> : vector<4x16xf32>
    %325 = tpu.matmul %324, %0, %cst_208 {dimension_numbers = #tpu.dot_dimension_numbers<[1], [0], [0], [1], [0, 0, 1, 1], [], []>} : vector<4x128xf32>, vector<128x16xf32>, vector<4x16xf32> -> vector<4x16xf32>
    %cst_209 = arith.constant 7.812500e-03 : f32
    %326 = vector.broadcast %cst_209 : f32 to vector<4x16xf32>
    %327 = arith.mulf %325, %326 : vector<4x16xf32>
    %328 = vector.extract_strided_slice %327 {offsets = [0, 0], sizes = [2, 16], strides = [1, 1]} : vector<4x16xf32> to vector<2x16xf32>
    %329 = vector.extract_strided_slice %327 {offsets = [2, 0], sizes = [2, 16], strides = [1, 1]} : vector<4x16xf32> to vector<2x16xf32>
    %330 = arith.mulf %328, %328 : vector<2x16xf32>
    %331 = arith.subf %329, %330 : vector<2x16xf32>
    %cst_210 = arith.constant 9.99999974E-6 : f32
    %332 = vector.broadcast %cst_210 : f32 to vector<2x16xf32>
    %333 = arith.addf %331, %332 : vector<2x16xf32>
    %334 = math.rsqrt %333 : vector<2x16xf32>
    %cst_211 = arith.constant dense<0.000000e+00> : vector<2x128xf32>
    %335 = tpu.matmul %328, %1, %cst_211 {dimension_numbers = #tpu.dot_dimension_numbers<[1], [0], [0], [1], [0, 0, 1, 1], [], []>} : vector<2x16xf32>, vector<16x128xf32>, vector<2x128xf32> -> vector<2x128xf32>
    %336 = vector.shape_cast %335 : vector<2x128xf32> to vector<2x1x128xf32>
    %cst_212 = arith.constant dense<0.000000e+00> : vector<2x128xf32>
    %337 = tpu.matmul %334, %1, %cst_212 {dimension_numbers = #tpu.dot_dimension_numbers<[1], [0], [0], [1], [0, 0, 1, 1], [], []>} : vector<2x16xf32>, vector<16x128xf32>, vector<2x128xf32> -> vector<2x128xf32>
    %338 = vector.shape_cast %337 : vector<2x128xf32> to vector<2x1x128xf32>
    %339 = vector.broadcast %336 : vector<2x1x128xf32> to vector<2x16x128xf32>
    %340 = arith.subf %321, %339 : vector<2x16x128xf32>
    %341 = vector.broadcast %338 : vector<2x1x128xf32> to vector<2x16x128xf32>
    %342 = arith.mulf %340, %341 : vector<2x16x128xf32>
    %c1_213 = arith.constant 1 : index
    %c0_214 = arith.constant 0 : index
    %c0_215 = arith.constant 0 : index
    %c0_216 = arith.constant 0 : index
    %343 = vector.load %arg6[%c1_213, %c0_214, %c0_215, %c0_216] : memref<3x3x1x128xf32, #tpu.memory_space<vmem>>, vector<1x1x1x128xf32>
    %344 = vector.shape_cast %343 : vector<1x1x1x128xf32> to vector<1x128xf32>
    %345 = vector.shape_cast %344 : vector<1x128xf32> to vector<1x1x128xf32>
    %346 = vector.broadcast %345 : vector<1x1x128xf32> to vector<2x16x128xf32>
    %347 = arith.mulf %342, %346 : vector<2x16x128xf32>
    %c1_217 = arith.constant 1 : index
    %c0_218 = arith.constant 0 : index
    %c0_219 = arith.constant 0 : index
    %c0_220 = arith.constant 0 : index
    %348 = vector.load %arg7[%c1_217, %c0_218, %c0_219, %c0_220] : memref<3x3x1x128xf32, #tpu.memory_space<vmem>>, vector<1x1x1x128xf32>
    %349 = vector.shape_cast %348 : vector<1x1x1x128xf32> to vector<1x128xf32>
    %350 = vector.shape_cast %349 : vector<1x128xf32> to vector<1x1x128xf32>
    %351 = vector.broadcast %350 : vector<1x1x128xf32> to vector<2x16x128xf32>
    %352 = arith.addf %347, %351 : vector<2x16x128xf32>
    %cst_221 = arith.constant 0.000000e+00 : f32
    %353 = vector.broadcast %cst_221 : f32 to vector<2x16x128xf32>
    %354 = arith.maximumf %352, %353 : vector<2x16x128xf32>
    %355 = vector.shape_cast %354 : vector<2x16x128xf32> to vector<32x128xf32>
    %356 = arith.addf %355, %287 : vector<32x128xf32>
    %c1_222 = arith.constant 1 : index
    %c1_223 = arith.constant 1 : index
    %c0_224 = arith.constant 0 : index
    %c0_225 = arith.constant 0 : index
    %357 = vector.load %arg2[%c1_222, %c1_223, %c0_224, %c0_225] : memref<3x3x7x128xf32, #tpu.memory_space<vmem>>, vector<1x1x7x128xf32>
    %358 = vector.shape_cast %357 : vector<1x1x7x128xf32> to vector<7x128xf32>
    %c0_226 = arith.constant 0 : index
    %c12 = arith.constant 12 : index
    %c0_227 = arith.constant 0 : index
    %359 = vector.load %arg15[%c0_226, %c12, %c0_227] : memref<2x48x128xf32, #tpu.memory_space<vmem>>, vector<2x16x128xf32>
    %360 = vector.extract_strided_slice %358 {offsets = [0, 0], sizes = [1, 128], strides = [1, 1]} : vector<7x128xf32> to vector<1x128xf32>
    %361 = vector.shape_cast %360 : vector<1x128xf32> to vector<1x1x128xf32>
    %362 = vector.broadcast %361 : vector<1x1x128xf32> to vector<2x16x128xf32>
    %363 = arith.mulf %359, %362 : vector<2x16x128xf32>
    %c0_228 = arith.constant 0 : index
    %c14_229 = arith.constant 14 : index
    %c0_230 = arith.constant 0 : index
    %364 = vector.load %arg15[%c0_228, %c14_229, %c0_230] : memref<2x48x128xf32, #tpu.memory_space<vmem>>, vector<2x16x128xf32>
    %365 = vector.extract_strided_slice %358 {offsets = [1, 0], sizes = [1, 128], strides = [1, 1]} : vector<7x128xf32> to vector<1x128xf32>
    %366 = vector.shape_cast %365 : vector<1x128xf32> to vector<1x1x128xf32>
    %367 = vector.broadcast %366 : vector<1x1x128xf32> to vector<2x16x128xf32>
    %368 = arith.mulf %364, %367 : vector<2x16x128xf32>
    %369 = arith.addf %363, %368 : vector<2x16x128xf32>
    %c0_231 = arith.constant 0 : index
    %c16_232 = arith.constant 16 : index
    %c0_233 = arith.constant 0 : index
    %370 = vector.load %arg15[%c0_231, %c16_232, %c0_233] : memref<2x48x128xf32, #tpu.memory_space<vmem>>, vector<2x16x128xf32>
    %371 = vector.extract_strided_slice %358 {offsets = [2, 0], sizes = [1, 128], strides = [1, 1]} : vector<7x128xf32> to vector<1x128xf32>
    %372 = vector.shape_cast %371 : vector<1x128xf32> to vector<1x1x128xf32>
    %373 = vector.broadcast %372 : vector<1x1x128xf32> to vector<2x16x128xf32>
    %374 = arith.mulf %370, %373 : vector<2x16x128xf32>
    %375 = arith.addf %369, %374 : vector<2x16x128xf32>
    %c0_234 = arith.constant 0 : index
    %c18_235 = arith.constant 18 : index
    %c0_236 = arith.constant 0 : index
    %376 = vector.load %arg15[%c0_234, %c18_235, %c0_236] : memref<2x48x128xf32, #tpu.memory_space<vmem>>, vector<2x16x128xf32>
    %377 = vector.extract_strided_slice %358 {offsets = [3, 0], sizes = [1, 128], strides = [1, 1]} : vector<7x128xf32> to vector<1x128xf32>
    %378 = vector.shape_cast %377 : vector<1x128xf32> to vector<1x1x128xf32>
    %379 = vector.broadcast %378 : vector<1x1x128xf32> to vector<2x16x128xf32>
    %380 = arith.mulf %376, %379 : vector<2x16x128xf32>
    %381 = arith.addf %375, %380 : vector<2x16x128xf32>
    %c0_237 = arith.constant 0 : index
    %c20 = arith.constant 20 : index
    %c0_238 = arith.constant 0 : index
    %382 = vector.load %arg15[%c0_237, %c20, %c0_238] : memref<2x48x128xf32, #tpu.memory_space<vmem>>, vector<2x16x128xf32>
    %383 = vector.extract_strided_slice %358 {offsets = [4, 0], sizes = [1, 128], strides = [1, 1]} : vector<7x128xf32> to vector<1x128xf32>
    %384 = vector.shape_cast %383 : vector<1x128xf32> to vector<1x1x128xf32>
    %385 = vector.broadcast %384 : vector<1x1x128xf32> to vector<2x16x128xf32>
    %386 = arith.mulf %382, %385 : vector<2x16x128xf32>
    %387 = arith.addf %381, %386 : vector<2x16x128xf32>
    %c1_239 = arith.constant 1 : index
    %c1_240 = arith.constant 1 : index
    %c0_241 = arith.constant 0 : index
    %c0_242 = arith.constant 0 : index
    %388 = vector.load %arg3[%c1_239, %c1_240, %c0_241, %c0_242] : memref<3x3x1x128xf32, #tpu.memory_space<vmem>>, vector<1x1x1x128xf32>
    %389 = vector.shape_cast %388 : vector<1x1x1x128xf32> to vector<1x128xf32>
    %390 = vector.shape_cast %389 : vector<1x128xf32> to vector<1x1x128xf32>
    %391 = vector.broadcast %390 : vector<1x1x128xf32> to vector<2x16x128xf32>
    %392 = arith.addf %387, %391 : vector<2x16x128xf32>
    %393 = vector.shape_cast %392 : vector<2x16x128xf32> to vector<32x128xf32>
    %394 = arith.truncf %393 : vector<32x128xf32> to vector<32x128xbf16>
    %c1_243 = arith.constant 1 : index
    %c1_244 = arith.constant 1 : index
    %c0_245 = arith.constant 0 : index
    %c0_246 = arith.constant 0 : index
    %395 = vector.load %arg4[%c1_243, %c1_244, %c0_245, %c0_246] : memref<3x3x128x128xbf16, #tpu.memory_space<vmem>>, vector<1x1x128x128xbf16>
    %396 = vector.shape_cast %395 : vector<1x1x128x128xbf16> to vector<128x128xbf16>
    %cst_247 = arith.constant dense<0.000000e+00> : vector<32x128xf32>
    %397 = tpu.matmul %394, %396, %cst_247 {dimension_numbers = #tpu.dot_dimension_numbers<[1], [0], [0], [1], [0, 0, 1, 1], [], []>} : vector<32x128xbf16>, vector<128x128xbf16>, vector<32x128xf32> -> vector<32x128xf32>
    %c1_248 = arith.constant 1 : index
    %c1_249 = arith.constant 1 : index
    %c0_250 = arith.constant 0 : index
    %c0_251 = arith.constant 0 : index
    %398 = vector.load %arg5[%c1_248, %c1_249, %c0_250, %c0_251] : memref<3x3x1x128xf32, #tpu.memory_space<vmem>>, vector<1x1x1x128xf32>
    %399 = vector.shape_cast %398 : vector<1x1x1x128xf32> to vector<1x128xf32>
    %400 = vector.broadcast %399 : vector<1x128xf32> to vector<32x128xf32>
    %401 = arith.addf %397, %400 : vector<32x128xf32>
    %402 = vector.shape_cast %401 : vector<32x128xf32> to vector<2x16x128xf32>
    %403 = arith.mulf %402, %402 : vector<2x16x128xf32>
    %404 = tpu.concatenate %402, %403 in 0 : vector<2x16x128xf32>, vector<2x16x128xf32> -> vector<4x16x128xf32>
    %cst_252 = arith.constant dense<0.000000e+00> : vector<4x128xf32>
    %405 = vector.multi_reduction <add>, %404, %cst_252 [1] : vector<4x16x128xf32> to vector<4x128xf32>
    %cst_253 = arith.constant dense<0.000000e+00> : vector<4x16xf32>
    %406 = tpu.matmul %405, %0, %cst_253 {dimension_numbers = #tpu.dot_dimension_numbers<[1], [0], [0], [1], [0, 0, 1, 1], [], []>} : vector<4x128xf32>, vector<128x16xf32>, vector<4x16xf32> -> vector<4x16xf32>
    %cst_254 = arith.constant 7.812500e-03 : f32
    %407 = vector.broadcast %cst_254 : f32 to vector<4x16xf32>
    %408 = arith.mulf %406, %407 : vector<4x16xf32>
    %409 = vector.extract_strided_slice %408 {offsets = [0, 0], sizes = [2, 16], strides = [1, 1]} : vector<4x16xf32> to vector<2x16xf32>
    %410 = vector.extract_strided_slice %408 {offsets = [2, 0], sizes = [2, 16], strides = [1, 1]} : vector<4x16xf32> to vector<2x16xf32>
    %411 = arith.mulf %409, %409 : vector<2x16xf32>
    %412 = arith.subf %410, %411 : vector<2x16xf32>
    %cst_255 = arith.constant 9.99999974E-6 : f32
    %413 = vector.broadcast %cst_255 : f32 to vector<2x16xf32>
    %414 = arith.addf %412, %413 : vector<2x16xf32>
    %415 = math.rsqrt %414 : vector<2x16xf32>
    %cst_256 = arith.constant dense<0.000000e+00> : vector<2x128xf32>
    %416 = tpu.matmul %409, %1, %cst_256 {dimension_numbers = #tpu.dot_dimension_numbers<[1], [0], [0], [1], [0, 0, 1, 1], [], []>} : vector<2x16xf32>, vector<16x128xf32>, vector<2x128xf32> -> vector<2x128xf32>
    %417 = vector.shape_cast %416 : vector<2x128xf32> to vector<2x1x128xf32>
    %cst_257 = arith.constant dense<0.000000e+00> : vector<2x128xf32>
    %418 = tpu.matmul %415, %1, %cst_257 {dimension_numbers = #tpu.dot_dimension_numbers<[1], [0], [0], [1], [0, 0, 1, 1], [], []>} : vector<2x16xf32>, vector<16x128xf32>, vector<2x128xf32> -> vector<2x128xf32>
    %419 = vector.shape_cast %418 : vector<2x128xf32> to vector<2x1x128xf32>
    %420 = vector.broadcast %417 : vector<2x1x128xf32> to vector<2x16x128xf32>
    %421 = arith.subf %402, %420 : vector<2x16x128xf32>
    %422 = vector.broadcast %419 : vector<2x1x128xf32> to vector<2x16x128xf32>
    %423 = arith.mulf %421, %422 : vector<2x16x128xf32>
    %c1_258 = arith.constant 1 : index
    %c1_259 = arith.constant 1 : index
    %c0_260 = arith.constant 0 : index
    %c0_261 = arith.constant 0 : index
    %424 = vector.load %arg6[%c1_258, %c1_259, %c0_260, %c0_261] : memref<3x3x1x128xf32, #tpu.memory_space<vmem>>, vector<1x1x1x128xf32>
    %425 = vector.shape_cast %424 : vector<1x1x1x128xf32> to vector<1x128xf32>
    %426 = vector.shape_cast %425 : vector<1x128xf32> to vector<1x1x128xf32>
    %427 = vector.broadcast %426 : vector<1x1x128xf32> to vector<2x16x128xf32>
    %428 = arith.mulf %423, %427 : vector<2x16x128xf32>
    %c1_262 = arith.constant 1 : index
    %c1_263 = arith.constant 1 : index
    %c0_264 = arith.constant 0 : index
    %c0_265 = arith.constant 0 : index
    %429 = vector.load %arg7[%c1_262, %c1_263, %c0_264, %c0_265] : memref<3x3x1x128xf32, #tpu.memory_space<vmem>>, vector<1x1x1x128xf32>
    %430 = vector.shape_cast %429 : vector<1x1x1x128xf32> to vector<1x128xf32>
    %431 = vector.shape_cast %430 : vector<1x128xf32> to vector<1x1x128xf32>
    %432 = vector.broadcast %431 : vector<1x1x128xf32> to vector<2x16x128xf32>
    %433 = arith.addf %428, %432 : vector<2x16x128xf32>
    %cst_266 = arith.constant 0.000000e+00 : f32
    %434 = vector.broadcast %cst_266 : f32 to vector<2x16x128xf32>
    %435 = arith.maximumf %433, %434 : vector<2x16x128xf32>
    %436 = vector.shape_cast %435 : vector<2x16x128xf32> to vector<32x128xf32>
    %437 = arith.addf %436, %287 : vector<32x128xf32>
    %c1_267 = arith.constant 1 : index
    %c2_268 = arith.constant 2 : index
    %c0_269 = arith.constant 0 : index
    %c0_270 = arith.constant 0 : index
    %438 = vector.load %arg2[%c1_267, %c2_268, %c0_269, %c0_270] : memref<3x3x7x128xf32, #tpu.memory_space<vmem>>, vector<1x1x7x128xf32>
    %439 = vector.shape_cast %438 : vector<1x1x7x128xf32> to vector<7x128xf32>
    %c0_271 = arith.constant 0 : index
    %c10 = arith.constant 10 : index
    %c0_272 = arith.constant 0 : index
    %440 = vector.load %arg15[%c0_271, %c10, %c0_272] : memref<2x48x128xf32, #tpu.memory_space<vmem>>, vector<2x16x128xf32>
    %441 = vector.extract_strided_slice %439 {offsets = [0, 0], sizes = [1, 128], strides = [1, 1]} : vector<7x128xf32> to vector<1x128xf32>
    %442 = vector.shape_cast %441 : vector<1x128xf32> to vector<1x1x128xf32>
    %443 = vector.broadcast %442 : vector<1x1x128xf32> to vector<2x16x128xf32>
    %444 = arith.mulf %440, %443 : vector<2x16x128xf32>
    %c0_273 = arith.constant 0 : index
    %c12_274 = arith.constant 12 : index
    %c0_275 = arith.constant 0 : index
    %445 = vector.load %arg15[%c0_273, %c12_274, %c0_275] : memref<2x48x128xf32, #tpu.memory_space<vmem>>, vector<2x16x128xf32>
    %446 = vector.extract_strided_slice %439 {offsets = [1, 0], sizes = [1, 128], strides = [1, 1]} : vector<7x128xf32> to vector<1x128xf32>
    %447 = vector.shape_cast %446 : vector<1x128xf32> to vector<1x1x128xf32>
    %448 = vector.broadcast %447 : vector<1x1x128xf32> to vector<2x16x128xf32>
    %449 = arith.mulf %445, %448 : vector<2x16x128xf32>
    %450 = arith.addf %444, %449 : vector<2x16x128xf32>
    %c0_276 = arith.constant 0 : index
    %c14_277 = arith.constant 14 : index
    %c0_278 = arith.constant 0 : index
    %451 = vector.load %arg15[%c0_276, %c14_277, %c0_278] : memref<2x48x128xf32, #tpu.memory_space<vmem>>, vector<2x16x128xf32>
    %452 = vector.extract_strided_slice %439 {offsets = [2, 0], sizes = [1, 128], strides = [1, 1]} : vector<7x128xf32> to vector<1x128xf32>
    %453 = vector.shape_cast %452 : vector<1x128xf32> to vector<1x1x128xf32>
    %454 = vector.broadcast %453 : vector<1x1x128xf32> to vector<2x16x128xf32>
    %455 = arith.mulf %451, %454 : vector<2x16x128xf32>
    %456 = arith.addf %450, %455 : vector<2x16x128xf32>
    %c0_279 = arith.constant 0 : index
    %c16_280 = arith.constant 16 : index
    %c0_281 = arith.constant 0 : index
    %457 = vector.load %arg15[%c0_279, %c16_280, %c0_281] : memref<2x48x128xf32, #tpu.memory_space<vmem>>, vector<2x16x128xf32>
    %458 = vector.extract_strided_slice %439 {offsets = [3, 0], sizes = [1, 128], strides = [1, 1]} : vector<7x128xf32> to vector<1x128xf32>
    %459 = vector.shape_cast %458 : vector<1x128xf32> to vector<1x1x128xf32>
    %460 = vector.broadcast %459 : vector<1x1x128xf32> to vector<2x16x128xf32>
    %461 = arith.mulf %457, %460 : vector<2x16x128xf32>
    %462 = arith.addf %456, %461 : vector<2x16x128xf32>
    %c0_282 = arith.constant 0 : index
    %c18_283 = arith.constant 18 : index
    %c0_284 = arith.constant 0 : index
    %463 = vector.load %arg15[%c0_282, %c18_283, %c0_284] : memref<2x48x128xf32, #tpu.memory_space<vmem>>, vector<2x16x128xf32>
    %464 = vector.extract_strided_slice %439 {offsets = [4, 0], sizes = [1, 128], strides = [1, 1]} : vector<7x128xf32> to vector<1x128xf32>
    %465 = vector.shape_cast %464 : vector<1x128xf32> to vector<1x1x128xf32>
    %466 = vector.broadcast %465 : vector<1x1x128xf32> to vector<2x16x128xf32>
    %467 = arith.mulf %463, %466 : vector<2x16x128xf32>
    %468 = arith.addf %462, %467 : vector<2x16x128xf32>
    %c0_285 = arith.constant 0 : index
    %c20_286 = arith.constant 20 : index
    %c0_287 = arith.constant 0 : index
    %469 = vector.load %arg15[%c0_285, %c20_286, %c0_287] : memref<2x48x128xf32, #tpu.memory_space<vmem>>, vector<2x16x128xf32>
    %470 = vector.extract_strided_slice %439 {offsets = [5, 0], sizes = [1, 128], strides = [1, 1]} : vector<7x128xf32> to vector<1x128xf32>
    %471 = vector.shape_cast %470 : vector<1x128xf32> to vector<1x1x128xf32>
    %472 = vector.broadcast %471 : vector<1x1x128xf32> to vector<2x16x128xf32>
    %473 = arith.mulf %469, %472 : vector<2x16x128xf32>
    %474 = arith.addf %468, %473 : vector<2x16x128xf32>
    %c0_288 = arith.constant 0 : index
    %c22 = arith.constant 22 : index
    %c0_289 = arith.constant 0 : index
    %475 = vector.load %arg15[%c0_288, %c22, %c0_289] : memref<2x48x128xf32, #tpu.memory_space<vmem>>, vector<2x16x128xf32>
    %476 = vector.extract_strided_slice %439 {offsets = [6, 0], sizes = [1, 128], strides = [1, 1]} : vector<7x128xf32> to vector<1x128xf32>
    %477 = vector.shape_cast %476 : vector<1x128xf32> to vector<1x1x128xf32>
    %478 = vector.broadcast %477 : vector<1x1x128xf32> to vector<2x16x128xf32>
    %479 = arith.mulf %475, %478 : vector<2x16x128xf32>
    %480 = arith.addf %474, %479 : vector<2x16x128xf32>
    %c1_290 = arith.constant 1 : index
    %c2_291 = arith.constant 2 : index
    %c0_292 = arith.constant 0 : index
    %c0_293 = arith.constant 0 : index
    %481 = vector.load %arg3[%c1_290, %c2_291, %c0_292, %c0_293] : memref<3x3x1x128xf32, #tpu.memory_space<vmem>>, vector<1x1x1x128xf32>
    %482 = vector.shape_cast %481 : vector<1x1x1x128xf32> to vector<1x128xf32>
    %483 = vector.shape_cast %482 : vector<1x128xf32> to vector<1x1x128xf32>
    %484 = vector.broadcast %483 : vector<1x1x128xf32> to vector<2x16x128xf32>
    %485 = arith.addf %480, %484 : vector<2x16x128xf32>
    %486 = vector.shape_cast %485 : vector<2x16x128xf32> to vector<32x128xf32>
    %487 = arith.truncf %486 : vector<32x128xf32> to vector<32x128xbf16>
    %c1_294 = arith.constant 1 : index
    %c2_295 = arith.constant 2 : index
    %c0_296 = arith.constant 0 : index
    %c0_297 = arith.constant 0 : index
    %488 = vector.load %arg4[%c1_294, %c2_295, %c0_296, %c0_297] : memref<3x3x128x128xbf16, #tpu.memory_space<vmem>>, vector<1x1x128x128xbf16>
    %489 = vector.shape_cast %488 : vector<1x1x128x128xbf16> to vector<128x128xbf16>
    %cst_298 = arith.constant dense<0.000000e+00> : vector<32x128xf32>
    %490 = tpu.matmul %487, %489, %cst_298 {dimension_numbers = #tpu.dot_dimension_numbers<[1], [0], [0], [1], [0, 0, 1, 1], [], []>} : vector<32x128xbf16>, vector<128x128xbf16>, vector<32x128xf32> -> vector<32x128xf32>
    %c1_299 = arith.constant 1 : index
    %c2_300 = arith.constant 2 : index
    %c0_301 = arith.constant 0 : index
    %c0_302 = arith.constant 0 : index
    %491 = vector.load %arg5[%c1_299, %c2_300, %c0_301, %c0_302] : memref<3x3x1x128xf32, #tpu.memory_space<vmem>>, vector<1x1x1x128xf32>
    %492 = vector.shape_cast %491 : vector<1x1x1x128xf32> to vector<1x128xf32>
    %493 = vector.broadcast %492 : vector<1x128xf32> to vector<32x128xf32>
    %494 = arith.addf %490, %493 : vector<32x128xf32>
    %495 = vector.shape_cast %494 : vector<32x128xf32> to vector<2x16x128xf32>
    %496 = arith.mulf %495, %495 : vector<2x16x128xf32>
    %497 = tpu.concatenate %495, %496 in 0 : vector<2x16x128xf32>, vector<2x16x128xf32> -> vector<4x16x128xf32>
    %cst_303 = arith.constant dense<0.000000e+00> : vector<4x128xf32>
    %498 = vector.multi_reduction <add>, %497, %cst_303 [1] : vector<4x16x128xf32> to vector<4x128xf32>
    %cst_304 = arith.constant dense<0.000000e+00> : vector<4x16xf32>
    %499 = tpu.matmul %498, %0, %cst_304 {dimension_numbers = #tpu.dot_dimension_numbers<[1], [0], [0], [1], [0, 0, 1, 1], [], []>} : vector<4x128xf32>, vector<128x16xf32>, vector<4x16xf32> -> vector<4x16xf32>
    %cst_305 = arith.constant 7.812500e-03 : f32
    %500 = vector.broadcast %cst_305 : f32 to vector<4x16xf32>
    %501 = arith.mulf %499, %500 : vector<4x16xf32>
    %502 = vector.extract_strided_slice %501 {offsets = [0, 0], sizes = [2, 16], strides = [1, 1]} : vector<4x16xf32> to vector<2x16xf32>
    %503 = vector.extract_strided_slice %501 {offsets = [2, 0], sizes = [2, 16], strides = [1, 1]} : vector<4x16xf32> to vector<2x16xf32>
    %504 = arith.mulf %502, %502 : vector<2x16xf32>
    %505 = arith.subf %503, %504 : vector<2x16xf32>
    %cst_306 = arith.constant 9.99999974E-6 : f32
    %506 = vector.broadcast %cst_306 : f32 to vector<2x16xf32>
    %507 = arith.addf %505, %506 : vector<2x16xf32>
    %508 = math.rsqrt %507 : vector<2x16xf32>
    %cst_307 = arith.constant dense<0.000000e+00> : vector<2x128xf32>
    %509 = tpu.matmul %502, %1, %cst_307 {dimension_numbers = #tpu.dot_dimension_numbers<[1], [0], [0], [1], [0, 0, 1, 1], [], []>} : vector<2x16xf32>, vector<16x128xf32>, vector<2x128xf32> -> vector<2x128xf32>
    %510 = vector.shape_cast %509 : vector<2x128xf32> to vector<2x1x128xf32>
    %cst_308 = arith.constant dense<0.000000e+00> : vector<2x128xf32>
    %511 = tpu.matmul %508, %1, %cst_308 {dimension_numbers = #tpu.dot_dimension_numbers<[1], [0], [0], [1], [0, 0, 1, 1], [], []>} : vector<2x16xf32>, vector<16x128xf32>, vector<2x128xf32> -> vector<2x128xf32>
    %512 = vector.shape_cast %511 : vector<2x128xf32> to vector<2x1x128xf32>
    %513 = vector.broadcast %510 : vector<2x1x128xf32> to vector<2x16x128xf32>
    %514 = arith.subf %495, %513 : vector<2x16x128xf32>
    %515 = vector.broadcast %512 : vector<2x1x128xf32> to vector<2x16x128xf32>
    %516 = arith.mulf %514, %515 : vector<2x16x128xf32>
    %c1_309 = arith.constant 1 : index
    %c2_310 = arith.constant 2 : index
    %c0_311 = arith.constant 0 : index
    %c0_312 = arith.constant 0 : index
    %517 = vector.load %arg6[%c1_309, %c2_310, %c0_311, %c0_312] : memref<3x3x1x128xf32, #tpu.memory_space<vmem>>, vector<1x1x1x128xf32>
    %518 = vector.shape_cast %517 : vector<1x1x1x128xf32> to vector<1x128xf32>
    %519 = vector.shape_cast %518 : vector<1x128xf32> to vector<1x1x128xf32>
    %520 = vector.broadcast %519 : vector<1x1x128xf32> to vector<2x16x128xf32>
    %521 = arith.mulf %516, %520 : vector<2x16x128xf32>
    %c1_313 = arith.constant 1 : index
    %c2_314 = arith.constant 2 : index
    %c0_315 = arith.constant 0 : index
    %c0_316 = arith.constant 0 : index
    %522 = vector.load %arg7[%c1_313, %c2_314, %c0_315, %c0_316] : memref<3x3x1x128xf32, #tpu.memory_space<vmem>>, vector<1x1x1x128xf32>
    %523 = vector.shape_cast %522 : vector<1x1x1x128xf32> to vector<1x128xf32>
    %524 = vector.shape_cast %523 : vector<1x128xf32> to vector<1x1x128xf32>
    %525 = vector.broadcast %524 : vector<1x1x128xf32> to vector<2x16x128xf32>
    %526 = arith.addf %521, %525 : vector<2x16x128xf32>
    %cst_317 = arith.constant 0.000000e+00 : f32
    %527 = vector.broadcast %cst_317 : f32 to vector<2x16x128xf32>
    %528 = arith.maximumf %526, %527 : vector<2x16x128xf32>
    %529 = vector.shape_cast %528 : vector<2x16x128xf32> to vector<32x128xf32>
    %530 = arith.addf %529, %287 : vector<32x128xf32>
    %531 = tpu.concatenate %356, %437, %530 in 1 : vector<32x128xf32>, vector<32x128xf32>, vector<32x128xf32> -> vector<32x384xf32>
    %532 = arith.truncf %531 : vector<32x384xf32> to vector<32x384xbf16>
    %c1_318 = arith.constant 1 : index
    %c0_319 = arith.constant 0 : index
    %c0_320 = arith.constant 0 : index
    %533 = vector.load %arg10[%c1_318, %c0_319, %c0_320] : memref<3x384x128xbf16, #tpu.memory_space<vmem>>, vector<1x384x128xbf16>
    %534 = vector.shape_cast %533 : vector<1x384x128xbf16> to vector<384x128xbf16>
    %cst_321 = arith.constant dense<0.000000e+00> : vector<32x128xf32>
    %535 = tpu.matmul %532, %534, %cst_321 {dimension_numbers = #tpu.dot_dimension_numbers<[1], [0], [0], [1], [0, 0, 1, 1], [], []>} : vector<32x384xbf16>, vector<384x128xbf16>, vector<32x128xf32> -> vector<32x128xf32>
    %c1_322 = arith.constant 1 : index
    %c0_323 = arith.constant 0 : index
    %c0_324 = arith.constant 0 : index
    %536 = vector.load %arg11[%c1_322, %c0_323, %c0_324] : memref<3x1x128xf32, #tpu.memory_space<vmem>>, vector<1x1x128xf32>
    %537 = vector.shape_cast %536 : vector<1x1x128xf32> to vector<1x128xf32>
    %538 = vector.broadcast %537 : vector<1x128xf32> to vector<32x128xf32>
    %539 = arith.addf %535, %538 : vector<32x128xf32>
    %540 = vector.shape_cast %539 : vector<32x128xf32> to vector<2x16x128xf32>
    %c0_325 = arith.constant 0 : index
    %c16_326 = arith.constant 16 : index
    %c0_327 = arith.constant 0 : index
    %541 = vector.load %arg15[%c0_325, %c16_326, %c0_327] : memref<2x48x128xf32, #tpu.memory_space<vmem>>, vector<2x16x128xf32>
    tpu.vector_store %arg15[%c0_325, %c16_326, %c0_327], %540 {strides = array<i32>} : memref<2x48x128xf32, #tpu.memory_space<vmem>>, vector<2x16x128xf32>,
    %c0_328 = arith.constant 0 : index
    %c16_329 = arith.constant 16 : index
    %c0_330 = arith.constant 0 : index
    %542 = vector.load %arg15[%c0_328, %c16_329, %c0_330] : memref<2x48x128xf32, #tpu.memory_space<vmem>>, vector<2x16x128xf32>
    %543 = vector.shape_cast %542 : vector<2x16x128xf32> to vector<32x128xf32>
    %c2_331 = arith.constant 2 : index
    %c0_332 = arith.constant 0 : index
    %c0_333 = arith.constant 0 : index
    %c0_334 = arith.constant 0 : index
    %544 = vector.load %arg2[%c2_331, %c0_332, %c0_333, %c0_334] : memref<3x3x7x128xf32, #tpu.memory_space<vmem>>, vector<1x1x7x128xf32>
    %545 = vector.shape_cast %544 : vector<1x1x7x128xf32> to vector<7x128xf32>
    %c0_335 = arith.constant 0 : index
    %c12_336 = arith.constant 12 : index
    %c0_337 = arith.constant 0 : index
    %546 = vector.load %arg15[%c0_335, %c12_336, %c0_337] : memref<2x48x128xf32, #tpu.memory_space<vmem>>, vector<2x16x128xf32>
    %547 = vector.extract_strided_slice %545 {offsets = [0, 0], sizes = [1, 128], strides = [1, 1]} : vector<7x128xf32> to vector<1x128xf32>
    %548 = vector.shape_cast %547 : vector<1x128xf32> to vector<1x1x128xf32>
    %549 = vector.broadcast %548 : vector<1x1x128xf32> to vector<2x16x128xf32>
    %550 = arith.mulf %546, %549 : vector<2x16x128xf32>
    %c0_338 = arith.constant 0 : index
    %c16_339 = arith.constant 16 : index
    %c0_340 = arith.constant 0 : index
    %551 = vector.load %arg15[%c0_338, %c16_339, %c0_340] : memref<2x48x128xf32, #tpu.memory_space<vmem>>, vector<2x16x128xf32>
    %552 = vector.extract_strided_slice %545 {offsets = [1, 0], sizes = [1, 128], strides = [1, 1]} : vector<7x128xf32> to vector<1x128xf32>
    %553 = vector.shape_cast %552 : vector<1x128xf32> to vector<1x1x128xf32>
    %554 = vector.broadcast %553 : vector<1x1x128xf32> to vector<2x16x128xf32>
    %555 = arith.mulf %551, %554 : vector<2x16x128xf32>
    %556 = arith.addf %550, %555 : vector<2x16x128xf32>
    %c0_341 = arith.constant 0 : index
    %c20_342 = arith.constant 20 : index
    %c0_343 = arith.constant 0 : index
    %557 = vector.load %arg15[%c0_341, %c20_342, %c0_343] : memref<2x48x128xf32, #tpu.memory_space<vmem>>, vector<2x16x128xf32>
    %558 = vector.extract_strided_slice %545 {offsets = [2, 0], sizes = [1, 128], strides = [1, 1]} : vector<7x128xf32> to vector<1x128xf32>
    %559 = vector.shape_cast %558 : vector<1x128xf32> to vector<1x1x128xf32>
    %560 = vector.broadcast %559 : vector<1x1x128xf32> to vector<2x16x128xf32>
    %561 = arith.mulf %557, %560 : vector<2x16x128xf32>
    %562 = arith.addf %556, %561 : vector<2x16x128xf32>
    %c2_344 = arith.constant 2 : index
    %c0_345 = arith.constant 0 : index
    %c0_346 = arith.constant 0 : index
    %c0_347 = arith.constant 0 : index
    %563 = vector.load %arg3[%c2_344, %c0_345, %c0_346, %c0_347] : memref<3x3x1x128xf32, #tpu.memory_space<vmem>>, vector<1x1x1x128xf32>
    %564 = vector.shape_cast %563 : vector<1x1x1x128xf32> to vector<1x128xf32>
    %565 = vector.shape_cast %564 : vector<1x128xf32> to vector<1x1x128xf32>
    %566 = vector.broadcast %565 : vector<1x1x128xf32> to vector<2x16x128xf32>
    %567 = arith.addf %562, %566 : vector<2x16x128xf32>
    %568 = vector.shape_cast %567 : vector<2x16x128xf32> to vector<32x128xf32>
    %569 = arith.truncf %568 : vector<32x128xf32> to vector<32x128xbf16>
    %c2_348 = arith.constant 2 : index
    %c0_349 = arith.constant 0 : index
    %c0_350 = arith.constant 0 : index
    %c0_351 = arith.constant 0 : index
    %570 = vector.load %arg4[%c2_348, %c0_349, %c0_350, %c0_351] : memref<3x3x128x128xbf16, #tpu.memory_space<vmem>>, vector<1x1x128x128xbf16>
    %571 = vector.shape_cast %570 : vector<1x1x128x128xbf16> to vector<128x128xbf16>
    %cst_352 = arith.constant dense<0.000000e+00> : vector<32x128xf32>
    %572 = tpu.matmul %569, %571, %cst_352 {dimension_numbers = #tpu.dot_dimension_numbers<[1], [0], [0], [1], [0, 0, 1, 1], [], []>} : vector<32x128xbf16>, vector<128x128xbf16>, vector<32x128xf32> -> vector<32x128xf32>
    %c2_353 = arith.constant 2 : index
    %c0_354 = arith.constant 0 : index
    %c0_355 = arith.constant 0 : index
    %c0_356 = arith.constant 0 : index
    %573 = vector.load %arg5[%c2_353, %c0_354, %c0_355, %c0_356] : memref<3x3x1x128xf32, #tpu.memory_space<vmem>>, vector<1x1x1x128xf32>
    %574 = vector.shape_cast %573 : vector<1x1x1x128xf32> to vector<1x128xf32>
    %575 = vector.broadcast %574 : vector<1x128xf32> to vector<32x128xf32>
    %576 = arith.addf %572, %575 : vector<32x128xf32>
    %577 = vector.shape_cast %576 : vector<32x128xf32> to vector<2x16x128xf32>
    %578 = arith.mulf %577, %577 : vector<2x16x128xf32>
    %579 = tpu.concatenate %577, %578 in 0 : vector<2x16x128xf32>, vector<2x16x128xf32> -> vector<4x16x128xf32>
    %cst_357 = arith.constant dense<0.000000e+00> : vector<4x128xf32>
    %580 = vector.multi_reduction <add>, %579, %cst_357 [1] : vector<4x16x128xf32> to vector<4x128xf32>
    %cst_358 = arith.constant dense<0.000000e+00> : vector<4x16xf32>
    %581 = tpu.matmul %580, %0, %cst_358 {dimension_numbers = #tpu.dot_dimension_numbers<[1], [0], [0], [1], [0, 0, 1, 1], [], []>} : vector<4x128xf32>, vector<128x16xf32>, vector<4x16xf32> -> vector<4x16xf32>
    %cst_359 = arith.constant 7.812500e-03 : f32
    %582 = vector.broadcast %cst_359 : f32 to vector<4x16xf32>
    %583 = arith.mulf %581, %582 : vector<4x16xf32>
    %584 = vector.extract_strided_slice %583 {offsets = [0, 0], sizes = [2, 16], strides = [1, 1]} : vector<4x16xf32> to vector<2x16xf32>
    %585 = vector.extract_strided_slice %583 {offsets = [2, 0], sizes = [2, 16], strides = [1, 1]} : vector<4x16xf32> to vector<2x16xf32>
    %586 = arith.mulf %584, %584 : vector<2x16xf32>
    %587 = arith.subf %585, %586 : vector<2x16xf32>
    %cst_360 = arith.constant 9.99999974E-6 : f32
    %588 = vector.broadcast %cst_360 : f32 to vector<2x16xf32>
    %589 = arith.addf %587, %588 : vector<2x16xf32>
    %590 = math.rsqrt %589 : vector<2x16xf32>
    %cst_361 = arith.constant dense<0.000000e+00> : vector<2x128xf32>
    %591 = tpu.matmul %584, %1, %cst_361 {dimension_numbers = #tpu.dot_dimension_numbers<[1], [0], [0], [1], [0, 0, 1, 1], [], []>} : vector<2x16xf32>, vector<16x128xf32>, vector<2x128xf32> -> vector<2x128xf32>
    %592 = vector.shape_cast %591 : vector<2x128xf32> to vector<2x1x128xf32>
    %cst_362 = arith.constant dense<0.000000e+00> : vector<2x128xf32>
    %593 = tpu.matmul %590, %1, %cst_362 {dimension_numbers = #tpu.dot_dimension_numbers<[1], [0], [0], [1], [0, 0, 1, 1], [], []>} : vector<2x16xf32>, vector<16x128xf32>, vector<2x128xf32> -> vector<2x128xf32>
    %594 = vector.shape_cast %593 : vector<2x128xf32> to vector<2x1x128xf32>
    %595 = vector.broadcast %592 : vector<2x1x128xf32> to vector<2x16x128xf32>
    %596 = arith.subf %577, %595 : vector<2x16x128xf32>
    %597 = vector.broadcast %594 : vector<2x1x128xf32> to vector<2x16x128xf32>
    %598 = arith.mulf %596, %597 : vector<2x16x128xf32>
    %c2_363 = arith.constant 2 : index
    %c0_364 = arith.constant 0 : index
    %c0_365 = arith.constant 0 : index
    %c0_366 = arith.constant 0 : index
    %599 = vector.load %arg6[%c2_363, %c0_364, %c0_365, %c0_366] : memref<3x3x1x128xf32, #tpu.memory_space<vmem>>, vector<1x1x1x128xf32>
    %600 = vector.shape_cast %599 : vector<1x1x1x128xf32> to vector<1x128xf32>
    %601 = vector.shape_cast %600 : vector<1x128xf32> to vector<1x1x128xf32>
    %602 = vector.broadcast %601 : vector<1x1x128xf32> to vector<2x16x128xf32>
    %603 = arith.mulf %598, %602 : vector<2x16x128xf32>
    %c2_367 = arith.constant 2 : index
    %c0_368 = arith.constant 0 : index
    %c0_369 = arith.constant 0 : index
    %c0_370 = arith.constant 0 : index
    %604 = vector.load %arg7[%c2_367, %c0_368, %c0_369, %c0_370] : memref<3x3x1x128xf32, #tpu.memory_space<vmem>>, vector<1x1x1x128xf32>
    %605 = vector.shape_cast %604 : vector<1x1x1x128xf32> to vector<1x128xf32>
    %606 = vector.shape_cast %605 : vector<1x128xf32> to vector<1x1x128xf32>
    %607 = vector.broadcast %606 : vector<1x1x128xf32> to vector<2x16x128xf32>
    %608 = arith.addf %603, %607 : vector<2x16x128xf32>
    %cst_371 = arith.constant 0.000000e+00 : f32
    %609 = vector.broadcast %cst_371 : f32 to vector<2x16x128xf32>
    %610 = arith.maximumf %608, %609 : vector<2x16x128xf32>
    %611 = vector.shape_cast %610 : vector<2x16x128xf32> to vector<32x128xf32>
    %612 = arith.addf %611, %543 : vector<32x128xf32>
    %c2_372 = arith.constant 2 : index
    %c1_373 = arith.constant 1 : index
    %c0_374 = arith.constant 0 : index
    %c0_375 = arith.constant 0 : index
    %613 = vector.load %arg2[%c2_372, %c1_373, %c0_374, %c0_375] : memref<3x3x7x128xf32, #tpu.memory_space<vmem>>, vector<1x1x7x128xf32>
    %614 = vector.shape_cast %613 : vector<1x1x7x128xf32> to vector<7x128xf32>
    %c0_376 = arith.constant 0 : index
    %c8 = arith.constant 8 : index
    %c0_377 = arith.constant 0 : index
    %615 = vector.load %arg15[%c0_376, %c8, %c0_377] : memref<2x48x128xf32, #tpu.memory_space<vmem>>, vector<2x16x128xf32>
    %616 = vector.extract_strided_slice %614 {offsets = [0, 0], sizes = [1, 128], strides = [1, 1]} : vector<7x128xf32> to vector<1x128xf32>
    %617 = vector.shape_cast %616 : vector<1x128xf32> to vector<1x1x128xf32>
    %618 = vector.broadcast %617 : vector<1x1x128xf32> to vector<2x16x128xf32>
    %619 = arith.mulf %615, %618 : vector<2x16x128xf32>
    %c0_378 = arith.constant 0 : index
    %c12_379 = arith.constant 12 : index
    %c0_380 = arith.constant 0 : index
    %620 = vector.load %arg15[%c0_378, %c12_379, %c0_380] : memref<2x48x128xf32, #tpu.memory_space<vmem>>, vector<2x16x128xf32>
    %621 = vector.extract_strided_slice %614 {offsets = [1, 0], sizes = [1, 128], strides = [1, 1]} : vector<7x128xf32> to vector<1x128xf32>
    %622 = vector.shape_cast %621 : vector<1x128xf32> to vector<1x1x128xf32>
    %623 = vector.broadcast %622 : vector<1x1x128xf32> to vector<2x16x128xf32>
    %624 = arith.mulf %620, %623 : vector<2x16x128xf32>
    %625 = arith.addf %619, %624 : vector<2x16x128xf32>
    %c0_381 = arith.constant 0 : index
    %c16_382 = arith.constant 16 : index
    %c0_383 = arith.constant 0 : index
    %626 = vector.load %arg15[%c0_381, %c16_382, %c0_383] : memref<2x48x128xf32, #tpu.memory_space<vmem>>, vector<2x16x128xf32>
    %627 = vector.extract_strided_slice %614 {offsets = [2, 0], sizes = [1, 128], strides = [1, 1]} : vector<7x128xf32> to vector<1x128xf32>
    %628 = vector.shape_cast %627 : vector<1x128xf32> to vector<1x1x128xf32>
    %629 = vector.broadcast %628 : vector<1x1x128xf32> to vector<2x16x128xf32>
    %630 = arith.mulf %626, %629 : vector<2x16x128xf32>
    %631 = arith.addf %625, %630 : vector<2x16x128xf32>
    %c0_384 = arith.constant 0 : index
    %c20_385 = arith.constant 20 : index
    %c0_386 = arith.constant 0 : index
    %632 = vector.load %arg15[%c0_384, %c20_385, %c0_386] : memref<2x48x128xf32, #tpu.memory_space<vmem>>, vector<2x16x128xf32>
    %633 = vector.extract_strided_slice %614 {offsets = [3, 0], sizes = [1, 128], strides = [1, 1]} : vector<7x128xf32> to vector<1x128xf32>
    %634 = vector.shape_cast %633 : vector<1x128xf32> to vector<1x1x128xf32>
    %635 = vector.broadcast %634 : vector<1x1x128xf32> to vector<2x16x128xf32>
    %636 = arith.mulf %632, %635 : vector<2x16x128xf32>
    %637 = arith.addf %631, %636 : vector<2x16x128xf32>
    %c0_387 = arith.constant 0 : index
    %c24 = arith.constant 24 : index
    %c0_388 = arith.constant 0 : index
    %638 = vector.load %arg15[%c0_387, %c24, %c0_388] : memref<2x48x128xf32, #tpu.memory_space<vmem>>, vector<2x16x128xf32>
    %639 = vector.extract_strided_slice %614 {offsets = [4, 0], sizes = [1, 128], strides = [1, 1]} : vector<7x128xf32> to vector<1x128xf32>
    %640 = vector.shape_cast %639 : vector<1x128xf32> to vector<1x1x128xf32>
    %641 = vector.broadcast %640 : vector<1x1x128xf32> to vector<2x16x128xf32>
    %642 = arith.mulf %638, %641 : vector<2x16x128xf32>
    %643 = arith.addf %637, %642 : vector<2x16x128xf32>
    %c2_389 = arith.constant 2 : index
    %c1_390 = arith.constant 1 : index
    %c0_391 = arith.constant 0 : index
    %c0_392 = arith.constant 0 : index
    %644 = vector.load %arg3[%c2_389, %c1_390, %c0_391, %c0_392] : memref<3x3x1x128xf32, #tpu.memory_space<vmem>>, vector<1x1x1x128xf32>
    %645 = vector.shape_cast %644 : vector<1x1x1x128xf32> to vector<1x128xf32>
    %646 = vector.shape_cast %645 : vector<1x128xf32> to vector<1x1x128xf32>
    %647 = vector.broadcast %646 : vector<1x1x128xf32> to vector<2x16x128xf32>
    %648 = arith.addf %643, %647 : vector<2x16x128xf32>
    %649 = vector.shape_cast %648 : vector<2x16x128xf32> to vector<32x128xf32>
    %650 = arith.truncf %649 : vector<32x128xf32> to vector<32x128xbf16>
    %c2_393 = arith.constant 2 : index
    %c1_394 = arith.constant 1 : index
    %c0_395 = arith.constant 0 : index
    %c0_396 = arith.constant 0 : index
    %651 = vector.load %arg4[%c2_393, %c1_394, %c0_395, %c0_396] : memref<3x3x128x128xbf16, #tpu.memory_space<vmem>>, vector<1x1x128x128xbf16>
    %652 = vector.shape_cast %651 : vector<1x1x128x128xbf16> to vector<128x128xbf16>
    %cst_397 = arith.constant dense<0.000000e+00> : vector<32x128xf32>
    %653 = tpu.matmul %650, %652, %cst_397 {dimension_numbers = #tpu.dot_dimension_numbers<[1], [0], [0], [1], [0, 0, 1, 1], [], []>} : vector<32x128xbf16>, vector<128x128xbf16>, vector<32x128xf32> -> vector<32x128xf32>
    %c2_398 = arith.constant 2 : index
    %c1_399 = arith.constant 1 : index
    %c0_400 = arith.constant 0 : index
    %c0_401 = arith.constant 0 : index
    %654 = vector.load %arg5[%c2_398, %c1_399, %c0_400, %c0_401] : memref<3x3x1x128xf32, #tpu.memory_space<vmem>>, vector<1x1x1x128xf32>
    %655 = vector.shape_cast %654 : vector<1x1x1x128xf32> to vector<1x128xf32>
    %656 = vector.broadcast %655 : vector<1x128xf32> to vector<32x128xf32>
    %657 = arith.addf %653, %656 : vector<32x128xf32>
    %658 = vector.shape_cast %657 : vector<32x128xf32> to vector<2x16x128xf32>
    %659 = arith.mulf %658, %658 : vector<2x16x128xf32>
    %660 = tpu.concatenate %658, %659 in 0 : vector<2x16x128xf32>, vector<2x16x128xf32> -> vector<4x16x128xf32>
    %cst_402 = arith.constant dense<0.000000e+00> : vector<4x128xf32>
    %661 = vector.multi_reduction <add>, %660, %cst_402 [1] : vector<4x16x128xf32> to vector<4x128xf32>
    %cst_403 = arith.constant dense<0.000000e+00> : vector<4x16xf32>
    %662 = tpu.matmul %661, %0, %cst_403 {dimension_numbers = #tpu.dot_dimension_numbers<[1], [0], [0], [1], [0, 0, 1, 1], [], []>} : vector<4x128xf32>, vector<128x16xf32>, vector<4x16xf32> -> vector<4x16xf32>
    %cst_404 = arith.constant 7.812500e-03 : f32
    %663 = vector.broadcast %cst_404 : f32 to vector<4x16xf32>
    %664 = arith.mulf %662, %663 : vector<4x16xf32>
    %665 = vector.extract_strided_slice %664 {offsets = [0, 0], sizes = [2, 16], strides = [1, 1]} : vector<4x16xf32> to vector<2x16xf32>
    %666 = vector.extract_strided_slice %664 {offsets = [2, 0], sizes = [2, 16], strides = [1, 1]} : vector<4x16xf32> to vector<2x16xf32>
    %667 = arith.mulf %665, %665 : vector<2x16xf32>
    %668 = arith.subf %666, %667 : vector<2x16xf32>
    %cst_405 = arith.constant 9.99999974E-6 : f32
    %669 = vector.broadcast %cst_405 : f32 to vector<2x16xf32>
    %670 = arith.addf %668, %669 : vector<2x16xf32>
    %671 = math.rsqrt %670 : vector<2x16xf32>
    %cst_406 = arith.constant dense<0.000000e+00> : vector<2x128xf32>
    %672 = tpu.matmul %665, %1, %cst_406 {dimension_numbers = #tpu.dot_dimension_numbers<[1], [0], [0], [1], [0, 0, 1, 1], [], []>} : vector<2x16xf32>, vector<16x128xf32>, vector<2x128xf32> -> vector<2x128xf32>
    %673 = vector.shape_cast %672 : vector<2x128xf32> to vector<2x1x128xf32>
    %cst_407 = arith.constant dense<0.000000e+00> : vector<2x128xf32>
    %674 = tpu.matmul %671, %1, %cst_407 {dimension_numbers = #tpu.dot_dimension_numbers<[1], [0], [0], [1], [0, 0, 1, 1], [], []>} : vector<2x16xf32>, vector<16x128xf32>, vector<2x128xf32> -> vector<2x128xf32>
    %675 = vector.shape_cast %674 : vector<2x128xf32> to vector<2x1x128xf32>
    %676 = vector.broadcast %673 : vector<2x1x128xf32> to vector<2x16x128xf32>
    %677 = arith.subf %658, %676 : vector<2x16x128xf32>
    %678 = vector.broadcast %675 : vector<2x1x128xf32> to vector<2x16x128xf32>
    %679 = arith.mulf %677, %678 : vector<2x16x128xf32>
    %c2_408 = arith.constant 2 : index
    %c1_409 = arith.constant 1 : index
    %c0_410 = arith.constant 0 : index
    %c0_411 = arith.constant 0 : index
    %680 = vector.load %arg6[%c2_408, %c1_409, %c0_410, %c0_411] : memref<3x3x1x128xf32, #tpu.memory_space<vmem>>, vector<1x1x1x128xf32>
    %681 = vector.shape_cast %680 : vector<1x1x1x128xf32> to vector<1x128xf32>
    %682 = vector.shape_cast %681 : vector<1x128xf32> to vector<1x1x128xf32>
    %683 = vector.broadcast %682 : vector<1x1x128xf32> to vector<2x16x128xf32>
    %684 = arith.mulf %679, %683 : vector<2x16x128xf32>
    %c2_412 = arith.constant 2 : index
    %c1_413 = arith.constant 1 : index
    %c0_414 = arith.constant 0 : index
    %c0_415 = arith.constant 0 : index
    %685 = vector.load %arg7[%c2_412, %c1_413, %c0_414, %c0_415] : memref<3x3x1x128xf32, #tpu.memory_space<vmem>>, vector<1x1x1x128xf32>
    %686 = vector.shape_cast %685 : vector<1x1x1x128xf32> to vector<1x128xf32>
    %687 = vector.shape_cast %686 : vector<1x128xf32> to vector<1x1x128xf32>
    %688 = vector.broadcast %687 : vector<1x1x128xf32> to vector<2x16x128xf32>
    %689 = arith.addf %684, %688 : vector<2x16x128xf32>
    %cst_416 = arith.constant 0.000000e+00 : f32
    %690 = vector.broadcast %cst_416 : f32 to vector<2x16x128xf32>
    %691 = arith.maximumf %689, %690 : vector<2x16x128xf32>
    %692 = vector.shape_cast %691 : vector<2x16x128xf32> to vector<32x128xf32>
    %693 = arith.addf %692, %543 : vector<32x128xf32>
    %c2_417 = arith.constant 2 : index
    %c2_418 = arith.constant 2 : index
    %c0_419 = arith.constant 0 : index
    %c0_420 = arith.constant 0 : index
    %694 = vector.load %arg2[%c2_417, %c2_418, %c0_419, %c0_420] : memref<3x3x7x128xf32, #tpu.memory_space<vmem>>, vector<1x1x7x128xf32>
    %695 = vector.shape_cast %694 : vector<1x1x7x128xf32> to vector<7x128xf32>
    %c0_421 = arith.constant 0 : index
    %c4 = arith.constant 4 : index
    %c0_422 = arith.constant 0 : index
    %696 = vector.load %arg15[%c0_421, %c4, %c0_422] : memref<2x48x128xf32, #tpu.memory_space<vmem>>, vector<2x16x128xf32>
    %697 = vector.extract_strided_slice %695 {offsets = [0, 0], sizes = [1, 128], strides = [1, 1]} : vector<7x128xf32> to vector<1x128xf32>
    %698 = vector.shape_cast %697 : vector<1x128xf32> to vector<1x1x128xf32>
    %699 = vector.broadcast %698 : vector<1x1x128xf32> to vector<2x16x128xf32>
    %700 = arith.mulf %696, %699 : vector<2x16x128xf32>
    %c0_423 = arith.constant 0 : index
    %c8_424 = arith.constant 8 : index
    %c0_425 = arith.constant 0 : index
    %701 = vector.load %arg15[%c0_423, %c8_424, %c0_425] : memref<2x48x128xf32, #tpu.memory_space<vmem>>, vector<2x16x128xf32>
    %702 = vector.extract_strided_slice %695 {offsets = [1, 0], sizes = [1, 128], strides = [1, 1]} : vector<7x128xf32> to vector<1x128xf32>
    %703 = vector.shape_cast %702 : vector<1x128xf32> to vector<1x1x128xf32>
    %704 = vector.broadcast %703 : vector<1x1x128xf32> to vector<2x16x128xf32>
    %705 = arith.mulf %701, %704 : vector<2x16x128xf32>
    %706 = arith.addf %700, %705 : vector<2x16x128xf32>
    %c0_426 = arith.constant 0 : index
    %c12_427 = arith.constant 12 : index
    %c0_428 = arith.constant 0 : index
    %707 = vector.load %arg15[%c0_426, %c12_427, %c0_428] : memref<2x48x128xf32, #tpu.memory_space<vmem>>, vector<2x16x128xf32>
    %708 = vector.extract_strided_slice %695 {offsets = [2, 0], sizes = [1, 128], strides = [1, 1]} : vector<7x128xf32> to vector<1x128xf32>
    %709 = vector.shape_cast %708 : vector<1x128xf32> to vector<1x1x128xf32>
    %710 = vector.broadcast %709 : vector<1x1x128xf32> to vector<2x16x128xf32>
    %711 = arith.mulf %707, %710 : vector<2x16x128xf32>
    %712 = arith.addf %706, %711 : vector<2x16x128xf32>
    %c0_429 = arith.constant 0 : index
    %c16_430 = arith.constant 16 : index
    %c0_431 = arith.constant 0 : index
    %713 = vector.load %arg15[%c0_429, %c16_430, %c0_431] : memref<2x48x128xf32, #tpu.memory_space<vmem>>, vector<2x16x128xf32>
    %714 = vector.extract_strided_slice %695 {offsets = [3, 0], sizes = [1, 128], strides = [1, 1]} : vector<7x128xf32> to vector<1x128xf32>
    %715 = vector.shape_cast %714 : vector<1x128xf32> to vector<1x1x128xf32>
    %716 = vector.broadcast %715 : vector<1x1x128xf32> to vector<2x16x128xf32>
    %717 = arith.mulf %713, %716 : vector<2x16x128xf32>
    %718 = arith.addf %712, %717 : vector<2x16x128xf32>
    %c0_432 = arith.constant 0 : index
    %c20_433 = arith.constant 20 : index
    %c0_434 = arith.constant 0 : index
    %719 = vector.load %arg15[%c0_432, %c20_433, %c0_434] : memref<2x48x128xf32, #tpu.memory_space<vmem>>, vector<2x16x128xf32>
    %720 = vector.extract_strided_slice %695 {offsets = [4, 0], sizes = [1, 128], strides = [1, 1]} : vector<7x128xf32> to vector<1x128xf32>
    %721 = vector.shape_cast %720 : vector<1x128xf32> to vector<1x1x128xf32>
    %722 = vector.broadcast %721 : vector<1x1x128xf32> to vector<2x16x128xf32>
    %723 = arith.mulf %719, %722 : vector<2x16x128xf32>
    %724 = arith.addf %718, %723 : vector<2x16x128xf32>
    %c0_435 = arith.constant 0 : index
    %c24_436 = arith.constant 24 : index
    %c0_437 = arith.constant 0 : index
    %725 = vector.load %arg15[%c0_435, %c24_436, %c0_437] : memref<2x48x128xf32, #tpu.memory_space<vmem>>, vector<2x16x128xf32>
    %726 = vector.extract_strided_slice %695 {offsets = [5, 0], sizes = [1, 128], strides = [1, 1]} : vector<7x128xf32> to vector<1x128xf32>
    %727 = vector.shape_cast %726 : vector<1x128xf32> to vector<1x1x128xf32>
    %728 = vector.broadcast %727 : vector<1x1x128xf32> to vector<2x16x128xf32>
    %729 = arith.mulf %725, %728 : vector<2x16x128xf32>
    %730 = arith.addf %724, %729 : vector<2x16x128xf32>
    %c0_438 = arith.constant 0 : index
    %c28 = arith.constant 28 : index
    %c0_439 = arith.constant 0 : index
    %731 = vector.load %arg15[%c0_438, %c28, %c0_439] : memref<2x48x128xf32, #tpu.memory_space<vmem>>, vector<2x16x128xf32>
    %732 = vector.extract_strided_slice %695 {offsets = [6, 0], sizes = [1, 128], strides = [1, 1]} : vector<7x128xf32> to vector<1x128xf32>
    %733 = vector.shape_cast %732 : vector<1x128xf32> to vector<1x1x128xf32>
    %734 = vector.broadcast %733 : vector<1x1x128xf32> to vector<2x16x128xf32>
    %735 = arith.mulf %731, %734 : vector<2x16x128xf32>
    %736 = arith.addf %730, %735 : vector<2x16x128xf32>
    %c2_440 = arith.constant 2 : index
    %c2_441 = arith.constant 2 : index
    %c0_442 = arith.constant 0 : index
    %c0_443 = arith.constant 0 : index
    %737 = vector.load %arg3[%c2_440, %c2_441, %c0_442, %c0_443] : memref<3x3x1x128xf32, #tpu.memory_space<vmem>>, vector<1x1x1x128xf32>
    %738 = vector.shape_cast %737 : vector<1x1x1x128xf32> to vector<1x128xf32>
    %739 = vector.shape_cast %738 : vector<1x128xf32> to vector<1x1x128xf32>
    %740 = vector.broadcast %739 : vector<1x1x128xf32> to vector<2x16x128xf32>
    %741 = arith.addf %736, %740 : vector<2x16x128xf32>
    %742 = vector.shape_cast %741 : vector<2x16x128xf32> to vector<32x128xf32>
    %743 = arith.truncf %742 : vector<32x128xf32> to vector<32x128xbf16>
    %c2_444 = arith.constant 2 : index
    %c2_445 = arith.constant 2 : index
    %c0_446 = arith.constant 0 : index
    %c0_447 = arith.constant 0 : index
    %744 = vector.load %arg4[%c2_444, %c2_445, %c0_446, %c0_447] : memref<3x3x128x128xbf16, #tpu.memory_space<vmem>>, vector<1x1x128x128xbf16>
    %745 = vector.shape_cast %744 : vector<1x1x128x128xbf16> to vector<128x128xbf16>
    %cst_448 = arith.constant dense<0.000000e+00> : vector<32x128xf32>
    %746 = tpu.matmul %743, %745, %cst_448 {dimension_numbers = #tpu.dot_dimension_numbers<[1], [0], [0], [1], [0, 0, 1, 1], [], []>} : vector<32x128xbf16>, vector<128x128xbf16>, vector<32x128xf32> -> vector<32x128xf32>
    %c2_449 = arith.constant 2 : index
    %c2_450 = arith.constant 2 : index
    %c0_451 = arith.constant 0 : index
    %c0_452 = arith.constant 0 : index
    %747 = vector.load %arg5[%c2_449, %c2_450, %c0_451, %c0_452] : memref<3x3x1x128xf32, #tpu.memory_space<vmem>>, vector<1x1x1x128xf32>
    %748 = vector.shape_cast %747 : vector<1x1x1x128xf32> to vector<1x128xf32>
    %749 = vector.broadcast %748 : vector<1x128xf32> to vector<32x128xf32>
    %750 = arith.addf %746, %749 : vector<32x128xf32>
    %751 = vector.shape_cast %750 : vector<32x128xf32> to vector<2x16x128xf32>
    %752 = arith.mulf %751, %751 : vector<2x16x128xf32>
    %753 = tpu.concatenate %751, %752 in 0 : vector<2x16x128xf32>, vector<2x16x128xf32> -> vector<4x16x128xf32>
    %cst_453 = arith.constant dense<0.000000e+00> : vector<4x128xf32>
    %754 = vector.multi_reduction <add>, %753, %cst_453 [1] : vector<4x16x128xf32> to vector<4x128xf32>
    %cst_454 = arith.constant dense<0.000000e+00> : vector<4x16xf32>
    %755 = tpu.matmul %754, %0, %cst_454 {dimension_numbers = #tpu.dot_dimension_numbers<[1], [0], [0], [1], [0, 0, 1, 1], [], []>} : vector<4x128xf32>, vector<128x16xf32>, vector<4x16xf32> -> vector<4x16xf32>
    %cst_455 = arith.constant 7.812500e-03 : f32
    %756 = vector.broadcast %cst_455 : f32 to vector<4x16xf32>
    %757 = arith.mulf %755, %756 : vector<4x16xf32>
    %758 = vector.extract_strided_slice %757 {offsets = [0, 0], sizes = [2, 16], strides = [1, 1]} : vector<4x16xf32> to vector<2x16xf32>
    %759 = vector.extract_strided_slice %757 {offsets = [2, 0], sizes = [2, 16], strides = [1, 1]} : vector<4x16xf32> to vector<2x16xf32>
    %760 = arith.mulf %758, %758 : vector<2x16xf32>
    %761 = arith.subf %759, %760 : vector<2x16xf32>
    %cst_456 = arith.constant 9.99999974E-6 : f32
    %762 = vector.broadcast %cst_456 : f32 to vector<2x16xf32>
    %763 = arith.addf %761, %762 : vector<2x16xf32>
    %764 = math.rsqrt %763 : vector<2x16xf32>
    %cst_457 = arith.constant dense<0.000000e+00> : vector<2x128xf32>
    %765 = tpu.matmul %758, %1, %cst_457 {dimension_numbers = #tpu.dot_dimension_numbers<[1], [0], [0], [1], [0, 0, 1, 1], [], []>} : vector<2x16xf32>, vector<16x128xf32>, vector<2x128xf32> -> vector<2x128xf32>
    %766 = vector.shape_cast %765 : vector<2x128xf32> to vector<2x1x128xf32>
    %cst_458 = arith.constant dense<0.000000e+00> : vector<2x128xf32>
    %767 = tpu.matmul %764, %1, %cst_458 {dimension_numbers = #tpu.dot_dimension_numbers<[1], [0], [0], [1], [0, 0, 1, 1], [], []>} : vector<2x16xf32>, vector<16x128xf32>, vector<2x128xf32> -> vector<2x128xf32>
    %768 = vector.shape_cast %767 : vector<2x128xf32> to vector<2x1x128xf32>
    %769 = vector.broadcast %766 : vector<2x1x128xf32> to vector<2x16x128xf32>
    %770 = arith.subf %751, %769 : vector<2x16x128xf32>
    %771 = vector.broadcast %768 : vector<2x1x128xf32> to vector<2x16x128xf32>
    %772 = arith.mulf %770, %771 : vector<2x16x128xf32>
    %c2_459 = arith.constant 2 : index
    %c2_460 = arith.constant 2 : index
    %c0_461 = arith.constant 0 : index
    %c0_462 = arith.constant 0 : index
    %773 = vector.load %arg6[%c2_459, %c2_460, %c0_461, %c0_462] : memref<3x3x1x128xf32, #tpu.memory_space<vmem>>, vector<1x1x1x128xf32>
    %774 = vector.shape_cast %773 : vector<1x1x1x128xf32> to vector<1x128xf32>
    %775 = vector.shape_cast %774 : vector<1x128xf32> to vector<1x1x128xf32>
    %776 = vector.broadcast %775 : vector<1x1x128xf32> to vector<2x16x128xf32>
    %777 = arith.mulf %772, %776 : vector<2x16x128xf32>
    %c2_463 = arith.constant 2 : index
    %c2_464 = arith.constant 2 : index
    %c0_465 = arith.constant 0 : index
    %c0_466 = arith.constant 0 : index
    %778 = vector.load %arg7[%c2_463, %c2_464, %c0_465, %c0_466] : memref<3x3x1x128xf32, #tpu.memory_space<vmem>>, vector<1x1x1x128xf32>
    %779 = vector.shape_cast %778 : vector<1x1x1x128xf32> to vector<1x128xf32>
    %780 = vector.shape_cast %779 : vector<1x128xf32> to vector<1x1x128xf32>
    %781 = vector.broadcast %780 : vector<1x1x128xf32> to vector<2x16x128xf32>
    %782 = arith.addf %777, %781 : vector<2x16x128xf32>
    %cst_467 = arith.constant 0.000000e+00 : f32
    %783 = vector.broadcast %cst_467 : f32 to vector<2x16x128xf32>
    %784 = arith.maximumf %782, %783 : vector<2x16x128xf32>
    %785 = vector.shape_cast %784 : vector<2x16x128xf32> to vector<32x128xf32>
    %786 = arith.addf %785, %543 : vector<32x128xf32>
    %787 = tpu.concatenate %612, %693, %786 in 1 : vector<32x128xf32>, vector<32x128xf32>, vector<32x128xf32> -> vector<32x384xf32>
    %788 = arith.truncf %787 : vector<32x384xf32> to vector<32x384xbf16>
    %c2_468 = arith.constant 2 : index
    %c0_469 = arith.constant 0 : index
    %c0_470 = arith.constant 0 : index
    %789 = vector.load %arg10[%c2_468, %c0_469, %c0_470] : memref<3x384x128xbf16, #tpu.memory_space<vmem>>, vector<1x384x128xbf16>
    %790 = vector.shape_cast %789 : vector<1x384x128xbf16> to vector<384x128xbf16>
    %cst_471 = arith.constant dense<0.000000e+00> : vector<32x128xf32>
    %791 = tpu.matmul %788, %790, %cst_471 {dimension_numbers = #tpu.dot_dimension_numbers<[1], [0], [0], [1], [0, 0, 1, 1], [], []>} : vector<32x384xbf16>, vector<384x128xbf16>, vector<32x128xf32> -> vector<32x128xf32>
    %c2_472 = arith.constant 2 : index
    %c0_473 = arith.constant 0 : index
    %c0_474 = arith.constant 0 : index
    %792 = vector.load %arg11[%c2_472, %c0_473, %c0_474] : memref<3x1x128xf32, #tpu.memory_space<vmem>>, vector<1x1x128xf32>
    %793 = vector.shape_cast %792 : vector<1x1x128xf32> to vector<1x128xf32>
    %794 = vector.broadcast %793 : vector<1x128xf32> to vector<32x128xf32>
    %795 = arith.addf %791, %794 : vector<32x128xf32>
    %796 = vector.shape_cast %795 : vector<32x128xf32> to vector<2x16x128xf32>
    %c0_475 = arith.constant 0 : index
    %c0_476 = arith.constant 0 : index
    %c0_477 = arith.constant 0 : index
    %797 = vector.load %arg14[%c0_475, %c0_476, %c0_477] : memref<2x16x128xf32, #tpu.memory_space<vmem>>, vector<2x16x128xf32>
    tpu.vector_store %arg14[%c0_475, %c0_476, %c0_477], %796 {strides = array<i32>} : memref<2x16x128xf32, #tpu.memory_space<vmem>>, vector<2x16x128xf32>,
    return
  }
  func.func @transform_0(%arg0: i32) -> (i32, i32, i32) {
    %c0_i32 = arith.constant 0 : i32
    %c0_i32_0 = arith.constant 0 : i32
    %c0_i32_1 = arith.constant 0 : i32
    return %arg0, %c0_i32, %c0_i32_0 : i32, i32, i32
  }
  func.func @transform_1(%arg0: i32) -> (i32, i32, i32, i32) {
    %c0_i32 = arith.constant 0 : i32
    %c0_i32_0 = arith.constant 0 : i32
    %c0_i32_1 = arith.constant 0 : i32
    %c0_i32_2 = arith.constant 0 : i32
    %c0_i32_3 = arith.constant 0 : i32
    return %c0_i32, %c0_i32_0, %c0_i32_1, %c0_i32_2 : i32, i32, i32, i32
  }
  func.func @transform_2(%arg0: i32) -> (i32, i32, i32, i32) {
    %c0_i32 = arith.constant 0 : i32
    %c0_i32_0 = arith.constant 0 : i32
    %c0_i32_1 = arith.constant 0 : i32
    %c0_i32_2 = arith.constant 0 : i32
    %c0_i32_3 = arith.constant 0 : i32
    return %c0_i32, %c0_i32_0, %c0_i32_1, %c0_i32_2 : i32, i32, i32, i32
  }
  func.func @transform_3(%arg0: i32) -> (i32, i32, i32, i32) {
    %c0_i32 = arith.constant 0 : i32
    %c0_i32_0 = arith.constant 0 : i32
    %c0_i32_1 = arith.constant 0 : i32
    %c0_i32_2 = arith.constant 0 : i32
    %c0_i32_3 = arith.constant 0 : i32
    return %c0_i32, %c0_i32_0, %c0_i32_1, %c0_i32_2 : i32, i32, i32, i32
  }
  func.func @transform_4(%arg0: i32) -> (i32, i32, i32, i32) {
    %c0_i32 = arith.constant 0 : i32
    %c0_i32_0 = arith.constant 0 : i32
    %c0_i32_1 = arith.constant 0 : i32
    %c0_i32_2 = arith.constant 0 : i32
    %c0_i32_3 = arith.constant 0 : i32
    return %c0_i32, %c0_i32_0, %c0_i32_1, %c0_i32_2 : i32, i32, i32, i32
  }
  func.func @transform_5(%arg0: i32) -> (i32, i32, i32, i32) {
    %c0_i32 = arith.constant 0 : i32
    %c0_i32_0 = arith.constant 0 : i32
    %c0_i32_1 = arith.constant 0 : i32
    %c0_i32_2 = arith.constant 0 : i32
    %c0_i32_3 = arith.constant 0 : i32
    return %c0_i32, %c0_i32_0, %c0_i32_1, %c0_i32_2 : i32, i32, i32, i32
  }
  func.func @transform_6(%arg0: i32) -> (i32, i32, i32, i32) {
    %c0_i32 = arith.constant 0 : i32
    %c0_i32_0 = arith.constant 0 : i32
    %c0_i32_1 = arith.constant 0 : i32
    %c0_i32_2 = arith.constant 0 : i32
    %c0_i32_3 = arith.constant 0 : i32
    return %c0_i32, %c0_i32_0, %c0_i32_1, %c0_i32_2 : i32, i32, i32, i32
  }
  func.func @transform_7(%arg0: i32) -> (i32, i32, i32) {
    %c0_i32 = arith.constant 0 : i32
    %c0_i32_0 = arith.constant 0 : i32
    %c0_i32_1 = arith.constant 0 : i32
    %c0_i32_2 = arith.constant 0 : i32
    return %c0_i32, %c0_i32_0, %c0_i32_1 : i32, i32, i32
  }
  func.func @transform_8(%arg0: i32) -> (i32, i32, i32) {
    %c0_i32 = arith.constant 0 : i32
    %c0_i32_0 = arith.constant 0 : i32
    %c0_i32_1 = arith.constant 0 : i32
    %c0_i32_2 = arith.constant 0 : i32
    return %c0_i32, %c0_i32_0, %c0_i32_1 : i32, i32, i32
  }
  func.func @transform_9(%arg0: i32) -> (i32, i32, i32) {
    %c0_i32 = arith.constant 0 : i32
    %c0_i32_0 = arith.constant 0 : i32
    %c0_i32_1 = arith.constant 0 : i32
    %c0_i32_2 = arith.constant 0 : i32
    return %c0_i32, %c0_i32_0, %c0_i32_1 : i32, i32, i32
  }
  func.func @transform_10(%arg0: i32) -> (i32, i32, i32) {
    %c0_i32 = arith.constant 0 : i32
    %c0_i32_0 = arith.constant 0 : i32
    %c0_i32_1 = arith.constant 0 : i32
    %c0_i32_2 = arith.constant 0 : i32
    return %c0_i32, %c0_i32_0, %c0_i32_1 : i32, i32, i32
  }
  func.func @transform_11(%arg0: i32) -> (i32, i32) {
    %c0_i32 = arith.constant 0 : i32
    %c0_i32_0 = arith.constant 0 : i32
    %c0_i32_1 = arith.constant 0 : i32
    return %c0_i32, %c0_i32_0 : i32, i32
  }
  func.func @transform_12(%arg0: i32) -> (i32, i32) {
    %c0_i32 = arith.constant 0 : i32
    %c0_i32_0 = arith.constant 0 : i32
    %c0_i32_1 = arith.constant 0 : i32
    return %c0_i32, %c0_i32_0 : i32, i32
  }
  func.func @transform_13(%arg0: i32) -> (i32, i32, i32) {
    %c0_i32 = arith.constant 0 : i32
    %c0_i32_0 = arith.constant 0 : i32
    %c0_i32_1 = arith.constant 0 : i32
    return %arg0, %c0_i32, %c0_i32_0 : i32, i32, i32
  }
}

</mosaic_0001>

<bundles_post_ra>
// kernel: tpu_custom_call.1
= control target key start
LH: loop header
LB: loop body
LE: loop exit
PB: predicated region body
PF: predicated region fallthrough
CT: control target
= control target key end

     0   :  { %s11509_s0 = inlined_call_operand.vmem [shape: f32[4,16,128], index: 0, kind: input, shape index: {}]   ;;  %s11510_s1 = inlined_call_operand.vmem [shape: f32[3,3,7,128], index: 1, kind: input, shape index: {}]   ;;  %s11511_s2 = inlined_call_operand.vmem [shape: f32[3,3,1,128], index: 2, kind: input, shape index: {}]   ;;  %s11512_s3 = inlined_call_operand.hbm [shape: bf16[3,3,128,128], index: 3, kind: input, shape index: {}]   ;;  %s11513_s4 = inlined_call_operand.hbm [shape: f32[3,3,1,128], index: 4, kind: input, shape index: {}]   ;;  %s11514_s5 = inlined_call_operand.hbm [shape: f32[3,3,1,128], index: 5, kind: input, shape index: {}]   ;;  %s11515_s6 = inlined_call_operand.hbm [shape: f32[3,3,1,128], index: 6, kind: input, shape index: {}]   ;;  %s11516_s7 = inlined_call_operand.hbm [shape: bf16[3,128,128], index: 7, kind: input, shape index: {}]   ;;  %s11517_s8 = inlined_call_operand.vmem [shape: f32[3,1,128], index: 8, kind: input, shape index: {}]   ;;  %s11518_s9 = inlined_call_operand.hbm [shape: bf16[3,384,128], index: 9, kind: input, shape index: {}]   ;;  %s11519_s10 = inlined_call_operand.hbm [shape: f32[3,1,128], index: 10, kind: input, shape index: {}]   ;;  %s11520_s11 = inlined_call_operand.vmem [shape: f32[128,16], index: 11, kind: input, shape index: {}]   ;;  %s11521_s12 = inlined_call_operand.hbm [shape: f32[16,128], index: 12, kind: input, shape index: {}]   ;;  %s11522_s13 = inlined_call_operand.hbm [shape: f32[4,16,128], index: 13, kind: output, shape index: {}]  }
   0x1   :  { %11564 = sst [smem:[#allocation40_spill]] %s11512_s3 }
   0x2   :  { %11565 = sst [smem:[#allocation41_spill]] %s11513_s4 }
   0x3   :  { %11566 = sst [smem:[#allocation42_spill]] %s11514_s5 }
   0x4   :  { %18 = vsyncpa [#allocation4], 0 }
   0x5   :  { %19 = vsyncpa [#allocation7], 0 }
   0x6   :  { %20 = vsyncpa [#allocation10], 0 }
   0x7   :  { %21 = vsyncpa [#allocation13], 0 }
   0x8   :  { %22 = vsyncpa [#allocation16], 0 }
   0x9   :  { %23 = vsyncpa [#allocation5], 0 }
   0xa   :  { %25 = vsyncpa [#allocation5 + $0x1], 0  ;;  %s9447_s25 = smov 0   ;;  %s9449_s26 = smov 0  }
   0xb   :  { %s9451_s27 = smov 0   ;;  %s9453_s28 = smov 0  }
   0xc LB: > { %11567 = sst [smem:[#allocation24_spill]] %s9343_s25  ;;  %s9468_s29 = sadd.s32 4294967295, %s9355_s28   ;;  %s9355_s28 = sphi %s9453_s28, %s11642_s28   ;;  %s9351_s27 = sphi %s9451_s27, %s11644_s27   ;;  %s9347_s26 = sphi %s9449_s26, %s11646_s26   ;;  %s9343_s25 = sphi %s9447_s25, %s11645_s25  }
   0xd   : > { %11568 = sst [smem:[#allocation25_spill]] %s9351_s27  ;;  %s7211_s30 = sadd.s32 4294967294, %s9355_s28  }
   0xe   : > { %s9472_s14 = sadd.s32 1, %s9355_s28   ;;  %s316_s15 = sadd.s32 1, %s9351_s27 }
   0xf   : > { %11569 = sst [smem:[#allocation26_spill]] %s9472_s14  ;;  %s313_s16 = ssub.s32 %s9355_s28, %s9472_s14 }
  0x10   : > { %p326_p0 = scmp.ne.s32.totalorder %s9351_s27, %s9347_s26  ;;  %p314_p1 = scmp.eq.s32.totalorder %s313_s16, 0 }
  0x11   : > { %p327_p2 = scmp.eq.s32.totalorder %s9468_s29, 1  ;;  %p332_p3 = scmp.ne.s32.totalorder %s9347_s26, %s9343_s25 }
  0x12   : > { %p333_p4 = scmp.eq.s32.totalorder %s7211_s30, 1  ;;  %p7212_p7 = scmp.ge.s32.totalorder %s9355_s28, 1 }
  0x13   : > { %s9483_s17 = scalar_select %p314_p1, %s9351_s27, %s316_s15  }
  0x14   : > { %p9485_p5 = por %p327_p2, %p326_p0  ;;  %p9489_p6 = por %p333_p4, %p332_p3 }
  0x15   : > { %11570 = sst [smem:[#allocation27_spill]] %s9483_s17  ;;  %p340_p8 = scmp.lt.s32.totalorder %s9355_s28, 3 }
  0x16   : > { %s11572_s19 = scalar_select %p9489_p6, 1, 0 }
  0x17   : > { %p11532_p9 = scmp.eq.s32.totalorder %s9468_s29, 0  ;;  %p9496_p10 = pnand %p7212_p7, %p340_p8 }
  0x18   : > { %11573 = sst [smem:[#allocation28_spill]] %s11572_s19  ;;  %s9357_s21 = smov [#allocation6]  }
  0x19   : > { %s371_s22 = sshll.u32 %s9357_s21, 4  ;;  %p8706_p11 = pneg %p9496_p10  ;;  %s372_s22 = int_to_ptr.vmem [resolvable:$true] %s371_s22 }
  0x1a   : > { %s9358_s24 = smov [#allocation9]   ;;  %s9078_s16 = scalar_lea.vmem %s372_s22, 144 }
  0x1b   : > { %p9504_p12 = pnand %p11532_p9, %p8706_p11  ;;  %s397_s30 = sshll.u32 %s9358_s24, 4  ;;  %s398_s30 = int_to_ptr.vmem [resolvable:$true] %s397_s30 }
  0x1c   : > { %p9079_p0 = scmp.ne.s32.totalorder %s372_s22, %s9078_s16  ;;  %s9085_s21 = scalar_lea.vmem %s372_s22, 160 }
  0x1d   : > { %p9510_p13 = pneg %p9504_p12  ;;  %p9086_p3 = scmp.lt.s32.totalorder %s372_s22, %s372_s22 }
  0x1e   : > { %p9087_p4 = scmp.lt.s32.totalorder %s9085_s21, %s9078_s16 }
  0x1f   : > { %p9081_p1 = pnand %p9079_p0, %p9510_p13 }
  0x20   : > { %p9088_p7 = por %p9087_p4, %p9086_p3 }
  0x21   : > { %p9082_p2 = pneg %p9081_p1 }
  0x23   : > { %p9089_p8 = pnand %p9088_p7, %p9082_p2 }
  0x25   : > { %9092 = shalt.err (!%p9089_p8)
}
  0x26   : > { %s11528_s17 = smov 16   ;;  %s11530_s24 = smov 1  }
  0x27   : > { %s11577_s4 = sld [smem:[#allocation41_spill]]  ;;  %s9104_s19 = scalar_lea.vmem %s398_s30, 144 }
  0x28   : > { %p9105_p11 = scmp.ne.s32.totalorder %s398_s30, %s9104_s19  ;;  %s9111_s16 = scalar_lea.vmem %s398_s30, 160 }
  0x29   : > { %p9112_p2 = scmp.lt.s32.totalorder %s398_s30, %s398_s30  ;;  %p9113_p3 = scmp.lt.s32.totalorder %s9111_s16, %s9104_s19 }
  0x2a   : > { %p9107_p0 = pnand %p9105_p11, %p9510_p13 }
  0x2b   : > { %p9114_p4 = por %p9113_p3, %p9112_p2 }
  0x2c   : > { %p9108_p1 = pneg %p9107_p0 }
  0x2d   : > { %8712 = dma.hbm_to_vmem [thread:$0]  (!%p9504_p12), %s11577_s4, 144, %s372_s22, [#allocation7], %s11528_s17, %s11528_s17, %s11530_s24  }
  0x2e   : > { %p9115_p7 = pnand %p9114_p4, %p9108_p1 }
  0x30   : > { %9118 = shalt.err (!%p9115_p7)
}
  0x31   : > { %8718 = dma.hbm_to_vmem [thread:$0]  (!%p9504_p12), %s11515_s6, 144, %s398_s30, [#allocation10], %s11528_s17, %s11528_s17, %s11530_s24  }
  0x32   : > { %s9361_s27 = smov [#allocation12]   ;;  %s9362_s22 = smov [#allocation3]  }
  0x33   : > { %s426_s14 = sshll.u32 %s9361_s27, 4  ;;  %s358_s4 = sshll.u32 %s9362_s22, 4  ;;  %s427_s14 = int_to_ptr.vmem [resolvable:$true] %s426_s14  ;;  %s359_s4 = int_to_ptr.vmem [resolvable:$true] %s358_s4 }
  0x34   : > { %s9130_s19 = scalar_lea.vmem %s427_s14, 9216  ;;  %p9138_p1 = scmp.lt.s32.totalorder %s427_s14, %s427_s14 }
  0x35   : > { %p9131_p8 = scmp.ne.s32.totalorder %s427_s14, %s9130_s19  ;;  %p9139_p2 = scmp.lt.s32.totalorder %s9130_s19, %s9130_s19 }
  0x37   : > { %p9133_p11 = pnand %p9131_p8, %p9510_p13  ;;  %p9140_p3 = por %p9139_p2, %p9138_p1 }
  0x39   : > { %p9134_p0 = pneg %p9133_p11 }
  0x3b   : > { %p9141_p4 = pnand %p9140_p3, %p9134_p0 }
  0x3d   : > { %9144 = shalt.err (!%p9141_p4)
}
  0x3e   : > { %s9363_s16 = smov 64   ;;  %s9364_s25 = smov 4  }
  0x3f   : > { %8724 = dma.hbm_to_vmem [thread:$0]  (!%p9504_p12), %s11518_s9, 9216, %s427_s14, [#allocation13], %s9363_s16, %s9363_s16, %s9364_s25  }
  0x40   : > { %s9156_s27 = scalar_lea.vmem %s359_s4, 9216  ;;  %p9164_p1 = scmp.lt.s32.totalorder %s359_s4, %s359_s4 }
  0x41   : > { %p9157_p7 = scmp.ne.s32.totalorder %s359_s4, %s9156_s27  ;;  %p9165_p0 = scmp.lt.s32.totalorder %s9156_s27, %s9156_s27 }
  0x43   : > { %p9159_p8 = pnand %p9157_p7, %p9510_p13  ;;  %p9166_p2 = por %p9165_p0, %p9164_p1 }
  0x45   : > { %p9160_p11 = pneg %p9159_p8 }
  0x47   : > { %p9167_p3 = pnand %p9166_p2, %p9160_p11 }
  0x49   : > { %9170 = shalt.err (!%p9167_p3)
}
  0x4a   : > { %s11578_s3 = sld [smem:[#allocation40_spill]]  ;;  %s9365_s14 = smov [#allocation8]  }
  0x4b   : > { %s384_s30 = sshll.u32 %s9365_s14, 4  ;;  %s9366_s21 = smov [#allocation11]   ;;  %s385_s30 = int_to_ptr.vmem [resolvable:$true] %s384_s30 }
  0x4c   : > { %s410_s17 = sshll.u32 %s9366_s21, 4  ;;  %s9182_s27 = scalar_lea.vmem %s385_s30, 144  ;;  %s411_s17 = int_to_ptr.vmem [resolvable:$true] %s410_s17 }
  0x4d   : > { %p9183_p4 = scmp.ne.s32.totalorder %s385_s30, %s9182_s27  ;;  %s9189_s24 = scalar_lea.vmem %s385_s30, 160 }
  0x4e   : > { %p9190_p11 = scmp.lt.s32.totalorder %s385_s30, %s385_s30  ;;  %p9191_p1 = scmp.lt.s32.totalorder %s9189_s24, %s9182_s27 }
  0x4f   : > { %p9185_p7 = pnand %p9183_p4, %p9510_p13 }
  0x50   : > { %8709 = dma.hbm_to_vmem [thread:$0]  (!%p9504_p12), %s11578_s3, 9216, %s359_s4, [#allocation4], %s9363_s16, %s9363_s16, %s9364_s25  }
  0x51   : > { %p9186_p8 = pneg %p9185_p7  ;;  %p9192_p0 = por %p9191_p1, %p9190_p11 }
  0x53   : > { %p9193_p2 = pnand %p9192_p0, %p9186_p8 }
  0x55   : > { %9196 = shalt.err (!%p9193_p2)
}
  0x56   : > { %s11579_s4 = smov 1   ;;  %s11580_s22 = smov 16  }
  0x57   : > { %s11581_s5 = sld [smem:[#allocation42_spill]]  ;;  %s9208_s21 = scalar_lea.vmem %s411_s17, 3072 }
  0x58   : > { %p9209_p3 = scmp.ne.s32.totalorder %s411_s17, %s9208_s21  ;;  %p9216_p9 = scmp.lt.s32.totalorder %s411_s17, %s411_s17 }
  0x59   : > { %p9217_p6 = scmp.lt.s32.totalorder %s9208_s21, %s9208_s21 }
  0x5a   : > { %p9211_p4 = pnand %p9209_p3, %p9510_p13 }
  0x5b   : > { %p9218_p11 = por %p9217_p6, %p9216_p9 }
  0x5c   : > { %p9212_p7 = pneg %p9211_p4 }
  0x5d   : > { %8715 = dma.hbm_to_vmem [thread:$0]  (!%p9504_p12), %s11581_s5, 144, %s385_s30, [#allocation7], %s11580_s22, %s11580_s22, %s11579_s4  }
  0x5e   : > { %p9219_p8 = pnand %p9218_p11, %p9212_p7 }
  0x60   : > { %9222 = shalt.err (!%p9219_p8)
}
  0x61   : > { %8721 = dma.hbm_to_vmem [thread:$0]  (!%p9504_p12), %s11516_s7, 3072, %s411_s17, [#allocation10], %s9363_s16, %s9363_s16, %s9364_s25  }
  0x62   : > { %s9367_s30 = smov [#allocation14]   ;;  %s9368_s14 = smov [#allocation15]  }
  0x63   : > { %s439_s19 = sshll.u32 %s9367_s30, 4  ;;  %s455_s3 = sshll.u32 %s9368_s14, 4  ;;  %s440_s19 = int_to_ptr.vmem [resolvable:$true] %s439_s19  ;;  %s456_s3 = int_to_ptr.vmem [resolvable:$true] %s455_s3 }
  0x64   : > { %s9234_s21 = scalar_lea.vmem %s440_s19, 48  ;;  %s9241_s5 = scalar_lea.vmem %s440_s19, 64 }
  0x65   : > { %p9235_p6 = scmp.ne.s32.totalorder %s440_s19, %s9234_s21  ;;  %p9242_p0 = scmp.lt.s32.totalorder %s440_s19, %s440_s19 }
  0x66   : > { %p9243_p2 = scmp.lt.s32.totalorder %s9241_s5, %s9234_s21 }
  0x67   : > { %p9237_p9 = pnand %p9235_p6, %p9510_p13 }
  0x68   : > { %p9244_p3 = por %p9243_p2, %p9242_p0 }
  0x69   : > { %p9238_p1 = pneg %p9237_p9 }
  0x6b   : > { %p9245_p4 = pnand %p9244_p3, %p9238_p1 }
  0x6d   : > { %9248 = shalt.err (!%p9245_p4)
}
  0x6e   : > { %8727 = dma.hbm_to_vmem [thread:$0]  (!%p9504_p12), %s11519_s10, 48, %s440_s19, [#allocation13], %s11580_s22, %s11580_s22, %s11579_s4  }
  0x6f   : > { %s9260_s25 = scalar_lea.vmem %s456_s3, 256  ;;  %p9268_p6 = scmp.lt.s32.totalorder %s456_s3, %s456_s3 }
  0x70   : > { %p9261_p7 = scmp.ne.s32.totalorder %s456_s3, %s9260_s25  ;;  %p9269_p9 = scmp.lt.s32.totalorder %s9260_s25, %s9260_s25 }
  0x72   : > { %p9263_p11 = pnand %p9261_p7, %p9510_p13  ;;  %p9270_p0 = por %p9269_p9, %p9268_p6 }
  0x74   : > { %p9264_p8 = pneg %p9263_p11 }
  0x76   : > { %p9271_p1 = pnand %p9270_p0, %p9264_p8 }
  0x78   : > { %9274 = shalt.err (!%p9271_p1)
}
  0x79   : > { %s9369_s5 = smov 128   ;;  %s9370_s24 = smov 8  }
  0x7a   : > { %8730 = dma.hbm_to_vmem [thread:$0]  (!%p9504_p12), %s11521_s12, 256, %s456_s3, [#allocation16], %s9369_s5, %s9369_s5, %s9370_s24  }
  0x7b   : > { %481 = sbr.rel (%p9496_p10) target bundleno = 5394 (0x1512), region = 72 }
  0x80   : > { %p11582_p2 = scmp.eq.s32.totalorder %s9468_s29, 0 }
  0x82   : > { %9318 = dma.done.wait (%p11582_p2), [#allocation4], 9216   ;;  %p11583_p13 = pmov %p11582_p2 }
  0x83   : > { %p11584_p3 = pmov %p11582_p2 }
  0x84   : > { %9320 = vsyncadd (%p11583_p13), [#allocation4], 4294958080 }
  0x85   : > { %9322 = dma.done.wait (%p11584_p3), [#allocation7], 288   ;;  %p11585_p4 = pmov %p11582_p2 }
  0x86   : > { %p11586_p7 = pmov %p11582_p2 }
  0x87   : > { %9324 = vsyncadd (%p11585_p4), [#allocation7], 4294967008 }
  0x88   : > { %9326 = dma.done.wait (%p11586_p7), [#allocation10], 3216   ;;  %p11587_p12 = pmov %p11582_p2 }
  0x89   : > { %p11588_p10 = pmov %p11582_p2 }
  0x8a   : > { %9328 = vsyncadd (%p11587_p12), [#allocation10], 4294964080 }
  0x8b   : > { %9330 = dma.done.wait (%p11588_p10), [#allocation13], 9264   ;;  %p11589_p11 = pmov %p11582_p2 }
  0x8c   : > { %p11590_p8 = pmov %p11582_p2 }
  0x8d   : > { %9332 = vsyncadd (%p11589_p11), [#allocation13], 4294958032 }
  0x8e   : > { %9334 = dma.done.wait (%p11590_p8), [#allocation16], 256   ;;  %p11591_p6 = pmov %p11582_p2 }
  0x8f   : > { %s7232_s3 = sshll.u32 %s9468_s29, 1  ;;  %v9371_v0 = vmov 0.0   ;;  %v610_v1 = vlaneseq  ;;  %v8803_v2 = vld [vmem:[#allocation3 + $0x38] sm:$0xff]   ;;  %v8804_v3 = vld [vmem:[#allocation3 + $0x30] sm:$0xff]   ;;  %v8805_v5 = vld [vmem:[#allocation3 + $0x28] sm:$0xff]   ;;  %vm9372_vm0 = vmmov 0  }
  0x90   : > { %9336 = vsyncadd (%p11591_p6), [#allocation16], 4294967040  ;;  %p555_p9 = scmp.lt.s32.totalorder %s7232_s3, 3  ;;  %582 = vst [vmem:[#allocation2 + $0x8] sm:$0xff] %v9371_v0  ;;  %7951 = vmatprep.subr.mxu1 %v9371_v0  ;;  %7931 = vmatprep.subr.bf16.mxu0 %v8803_v2  ;;  %v8806_v6 = vld [vmem:[#allocation3 + $0x20] sm:$0xff]   ;;  %v8807_v15 = vld [vmem:[#allocation3 + $0x18] sm:$0xff]  }
  0x91   : > { %585 = vst [vmem:[#allocation2 + $0x20] sm:$0xff] %v9371_v0  ;;  %581 = vst [vmem:[#allocation2] sm:$0xff] %v9371_v0  ;;  %7932 = vmatpush3.bf16.msra.mxu0 %v8803_v2  ;;  %v9623_v4 = vshrl.u32 %v610_v1, 7  ;;  %v605_v10 = vld [vmem:[%s11510_s1] sm:$0x7f]  ;;  %v578_v16 = vld [vmem:[%s11520_s11 + $0x78] sm:$0xff]  ;;  %7983 = vmatprep.mubr.msk.f32.mxu1 %vm9372_vm0, %v9371_v0 }
  0x92   : > { %586 = vst [vmem:[#allocation2 + $0x28] sm:$0xff] %v9371_v0  ;;  %587 = vst [vmem:[#allocation2 + $0x30] sm:$0xff] %v9371_v0  ;;  %s11648_s3 = smov (!%p555_p9, %s7232_s3), 3  ;;  %7933 = vmatprep.subr.bf16.mxu0 %v8804_v3  ;;  %v577_v17 = vld [vmem:[%s11520_s11 + $0x70] sm:$0xff]  ;;  %7952 = vmatpush3.msra.mxu1 %v578_v16  ;;  %v8809_v35 = vld [vmem:[#allocation3 + $0x8] sm:$0xff]   ;;  %vm815_vm1 = vcmask 1041409  }
  0x93   : > { %588 = vst [vmem:[#allocation2 + $0x38] sm:$0xff] %v9371_v0  ;;  %591 = vst [vmem:[#allocation2 + $0x50] sm:$0xff] %v9371_v0  ;;  %s7487_s20 = sshll.u32 %s11648_s3, 4  ;;  %v9629_v7 = vsub.s32 1, %v9623_v4  ;;  %v9641_v11 = vsub.s32 0, %v9623_v4  ;;  %v9644_v12 = vsub.s32 2, %v9623_v4  ;;  %7953 = vmatprep.subr.mxu1 %v9371_v0 }
  0x94   : > { %592 = vst [vmem:[#allocation2 + $0x58] sm:$0xff] %v9371_v0  ;;  %s559_s4 = scalar_lea.vmem %s11509_s0, %s7487_s20  ;;  %v8808_v21 = vld [vmem:[#allocation3 + $0x10] sm:$0xff]   ;;  %7954 = vmatpush3.msra.mxu1 %v577_v17  ;;  %v7235_v37 = vld [vmem:[%s11511_s2] ss:$0 sm:$0xff]  ;;  %v9678_v59 = vld [vmem:[%s11520_s11 + $0x68] sm:$0xff]  ;;  %vm817_vm2 = vcmask 1042434  }
  0x95   : > { %7934 = vmatpush3.bf16.msra.mxu0 %v8804_v3  ;;  %11592 = vst [vmem:[#allocation29_spill] sm:$0xff] %v9629_v7  ;;  %v9631_v8 = vld [vmem:[%s559_s4] sm:$0xff]  ;;  %v9633_v9 = vld [vmem:[%s559_s4 + $0x8] sm:$0xff]  ;;  %11593 = vst [vmem:[#allocation30_spill] sm:$0xff] %v9644_v12  ;;  %v621_v18 = vrot.slane %v605_v10, %v9629_v7  ;;  %v613_v19 = vrot.slane %v605_v10, %v9641_v11  ;;  %v637_v20 = vrot.slane %v605_v10, %v9644_v12  ;;  %vm819_vm3 = vcmask 1043459   ;;  %s551_s30 = sand.u32 1, %s9347_s26  }
  0x96   : > { %7935 = vmatprep.subr.bf16.mxu0 %v8805_v5  ;;  %597 = vst [vmem:[#allocation2 + $0x10] sm:$0xff] %v9631_v8  ;;  %598 = vst [vmem:[#allocation2 + $0x18] sm:$0xff] %v9633_v9  ;;  %v595_v13 = vld [vmem:[%s559_s4 + $0x10] sm:$0xff]  ;;  %v596_v14 = vld [vmem:[%s559_s4 + $0x18] sm:$0xff]  ;;  %7955 = vmatprep.subr.mxu1 %v9371_v0  ;;  %vm900_vm4 = vcmask 130048   ;;  %s7231_s3 = sshll.u32 %s551_s30, 5 }
  0x97   : > { %599 = vst [vmem:[#allocation2 + $0x40] sm:$0xff] %v595_v13  ;;  %600 = vst [vmem:[#allocation2 + $0x48] sm:$0xff] %v596_v14  ;;  %v622_v22 = vmul.f32 %v621_v18, %v9631_v8  ;;  %v623_v23 = vmul.f32 %v621_v18, %v9633_v9  ;;  %v624_v27 = vmul.f32 %v621_v18, %v595_v13  ;;  %v8810_v50 = vld [vmem:[#allocation3] sm:$0xff]   ;;  %7956 = vmatpush3.msra.mxu1 %v9678_v59  ;;  %v9692_v61 = vld [vmem:[%s11520_s11 + $0x58] sm:$0xff]  ;;  %s553_s20 = scalar_lea.vmem [#allocation17], %s7231_s3  ;;  %s7489_s15 = sshll.u32 %s9468_s29, 9 }
  0x98   : > { %v625_v28 = vmul.f32 %v621_v18, %v596_v14  ;;  %7957 = vmatprep.subr.mxu1 %v9371_v0  ;;  %v9685_v60 = vld [vmem:[%s11520_s11 + $0x60] sm:$0xff]  ;;  %v9699_v62 = vld [vmem:[%s11520_s11 + $0x50] sm:$0xff]  ;;  %v9706_v63 = vld [vmem:[%s11520_s11 + $0x48] sm:$0xff]  ;;  %s7070_s23 = sshll.u32 %s553_s20, 4  ;;  %s11467_s19 = scalar_lea.hbm %s11522_s13, %s7489_s15  ;;  %s11462_s23 = int_to_ptr.vmem [resolvable:$true] %s7070_s23 }
  0x99   : > { %7936 = vmatpush3.bf16.msra.mxu0 %v8805_v5  ;;  %7958 = vmatpush3.msra.mxu1 %v9685_v60  ;;  %v9713_v1 = vld [vmem:[%s11520_s11 + $0x40] sm:$0xff]  ;;  %v9720_v2 = vld [vmem:[%s11520_s11 + $0x38] sm:$0xff]  ;;  %v9727_v3 = vld [vmem:[%s11520_s11 + $0x30] sm:$0xff]  ;;  %s11469_s14 = scalar_lea.sflag [#allocation5], %s551_s30  ;;  %s9275_s29 = scalar_lea.vmem %s11462_s23, 512 }
  0x9a   : > { %7937 = vmatprep.subr.bf16.mxu0 %v8806_v6  ;;  %7959 = vmatprep.subr.mxu1 %v9371_v0  ;;  %v9734_v5 = vld [vmem:[%s11520_s11 + $0x28] sm:$0xff]  ;;  %v9748_v10 = vld [vmem:[%s11520_s11 + $0x18] sm:$0xff]  ;;  %v9753_v13 = vld [vmem:[%s11520_s11 + $0x10] sm:$0xff]  ;;  %p9276_p0 = scmp.ne.s32.totalorder %s11462_s23, %s9275_s29  ;;  %s9374_s21 = smov [#allocation17]  }
  0x9b   : > { %7960 = vmatpush3.msra.mxu1 %v9692_v61  ;;  %v9759_v14 = vld [vmem:[%s11520_s11 + $0x8] sm:$0xff]  ;;  %v7236_v18 = vld [vmem:[#allocation6] ss:$0 sm:$0xff]  ;;  %s9279_s17 = sshll.u32 %s9374_s21, 4  ;;  %s9280_s17 = int_to_ptr.vmem [resolvable:$false] %s9279_s17 }
  0x9c   : > { %7961 = vmatprep.subr.mxu1 %v9371_v0  ;;  %v9777_v16 = vld [vmem:[#allocation15 + $0x8] sm:$0xff]  ;;  %p9277_p1 = pnand %p9276_p0, %p9485_p5  ;;  %s9281_s16 = scalar_lea.vmem %s9280_s17, 1024 }
  0x9d   : > { %7938 = vmatpush3.bf16.msra.mxu0 %v8806_v6  ;;  %v9659_v24 = vld [vmem:[#allocation2 + $0xf] sm:$0xff]  ;;  %v9661_v25 = vld [vmem:[#allocation2 + $0x17] sm:$0xff]  ;;  %7962 = vmatpush3.msra.mxu1 %v9699_v62  ;;  %v9741_v6 = vld [vmem:[%s11520_s11 + $0x20] sm:$0xff]  ;;  %p9282_p13 = scmp.lt.s32.totalorder %s11462_s23, %s9280_s17  ;;  %p9283_p3 = scmp.lt.s32.totalorder %s9281_s16, %s9275_s29 }
  0x9e   : > { %7939 = vmatprep.subr.bf16.mxu0 %v8807_v15  ;;  %v9663_v26 = vld [vmem:[#allocation2 + $0x11] sm:$0xff]  ;;  %v614_v29 = vmul.f32 %v613_v19, %v9659_v24  ;;  %v615_v30 = vmul.f32 %v613_v19, %v9661_v25  ;;  %v9667_v31 = vld [vmem:[#allocation2 + $0x19] sm:$0xff]  ;;  %v609_v34 = vld [vmem:[#allocation2 + $0x47] sm:$0xff]  ;;  %7963 = vmatprep.subr.mxu1 %v9371_v0  ;;  %p9278_p2 = pneg %p9277_p1 }
  0x9f   : > { %v638_v32 = vmul.f32 %v637_v20, %v9663_v26  ;;  %v608_v33 = vld [vmem:[#allocation2 + $0x3f] sm:$0xff]  ;;  %v639_v36 = vmul.f32 %v637_v20, %v9667_v31  ;;  %v617_v39 = vmul.f32 %v613_v19, %v609_v34  ;;  %v633_v41 = vld [vmem:[#allocation2 + $0x49] sm:$0xff]  ;;  %7964 = vmatpush3.msra.mxu1 %v9706_v63  ;;  %p9284_p4 = por %p9283_p3, %p9282_p13 }
  0xa0   : > { %v616_v38 = vmul.f32 %v613_v19, %v608_v33  ;;  %v632_v40 = vld [vmem:[#allocation2 + $0x41] sm:$0xff]  ;;  %v626_v42 = vadd.f32 %v622_v22, %v614_v29  ;;  %v627_v43 = vadd.f32 %v623_v23, %v615_v30  ;;  %v641_v45 = vmul.f32 %v637_v20, %v633_v41  ;;  %7965 = vmatprep.subr.mxu1 %v9371_v0 }
  0xa1   : > { %7940 = vmatpush3.bf16.msra.mxu0 %v8807_v15  ;;  %v640_v44 = vmul.f32 %v637_v20, %v632_v40  ;;  %v629_v47 = vadd.f32 %v625_v28, %v617_v39  ;;  %7966 = vmatpush3.msra.mxu1 %v9713_v1  ;;  %v9771_v15 = vld [vmem:[%s11520_s11] sm:$0xff]  ;;  %p9285_p7 = pnand %p9284_p4, %p9278_p2 }
  0xa2   : > { %7941 = vmatprep.subr.bf16.mxu0 %v8808_v21  ;;  %v628_v46 = vadd.f32 %v624_v27, %v616_v38  ;;  %v642_v48 = vadd.f32 %v638_v32, %v626_v42  ;;  %v643_v49 = vadd.f32 %v639_v36, %v627_v43  ;;  %7967 = vmatprep.subr.mxu1 %v9371_v0 }
  0xa3   : > { %v645_v52 = vadd.f32 %v641_v45, %v629_v47  ;;  %7968 = vmatpush3.msra.mxu1 %v9720_v2 }
  0xa4   : > { %v644_v51 = vadd.f32 %v640_v44, %v628_v46  ;;  %v653_v53 = vadd.f32 %v7235_v37, %v642_v48  ;;  %v654_v54 = vadd.f32 %v7235_v37, %v643_v49  ;;  %7969 = vmatprep.subr.mxu1 %v9371_v0 }
  0xa5   : > { %7942 = vmatpush3.bf16.msra.mxu0 %v8808_v21  ;;  %v656_v57 = vadd.f32 %v7235_v37, %v645_v52  ;;  %7970 = vmatpush3.msra.mxu1 %v9727_v3 }
  0xa6   : > { %7943 = vmatprep.subr.bf16.mxu0 %v8809_v35  ;;  %v657_v55 = vpack.c.bf16 %v654_v54, %v653_v53  ;;  %v655_v56 = vadd.f32 %v7235_v37, %v644_v51  ;;  %7971 = vmatprep.subr.mxu1 %v9371_v0 }
  0xa7   : > { %7972 = vmatpush3.msra.mxu1 %v9734_v5 }
  0xa8   : > { %7947 = vmatprep.mubr.bf16.mxu0 %v657_v55  ;;  %v658_v58 = vpack.c.bf16 %v656_v57, %v655_v56  ;;  %7973 = vmatprep.subr.mxu1 %v9371_v0 }
  0xa9   : > { %7944 = vmatpush3.bf16.msra.mxu0 %v8809_v35  ;;  %7974 = vmatpush3.msra.mxu1 %v9741_v6 }
  0xaa   : > { %7945 = vmatprep.subr.bf16.mxu0 %v8810_v50  ;;  %7975 = vmatprep.subr.mxu1 %v9371_v0 }
  0xab   : > { %7976 = vmatpush3.msra.mxu1 %v9748_v10 }
  0xac   : > { %7977 = vmatprep.subr.mxu1 %v9371_v0 }
  0xad   : > { %7946 = vmatpush3.bf16.msra.mxu0 %v8810_v50  ;;  %7978 = vmatpush3.msra.mxu1 %v9753_v13 }
  0xae   : > { %7993 = vmatprep.subr.mxu0 %v9371_v0  ;;  %7979 = vmatprep.subr.mxu1 %v9371_v0 }
  0xaf   : > { %7980 = vmatpush3.msra.mxu1 %v9759_v14 }
  0xb0   : > { %7948 = vmatmul.mubr.bf16.vlgmr.msra.gmra.mxu0 %v658_v58  ;;  %7981 = vmatprep.subr.mxu1 %v9371_v0 }
  0xb1   : > { %7997 = vmatprep.mubr.msk.f32.mxu0 %vm9372_vm0, %v9371_v0  ;;  %7982 = vmatpush3.msra.mxu1 %v9771_v15 }
  0xb2   : > { %7986 = vmatprep.subr.mxu1 %v9371_v0  ;;  %7994 = vmatpush3.msra.mxu0 %v9777_v16 }
  0xb3   : > { %7995 = vmatprep.subr.mxu0 %v9371_v0 }
 0x170   : > { %v7949_v17 = vpop.f32.mrf.mxu0 }
 0x171   : > { %v9781_v20 = vadd.f32 %v7949_v17, %v7236_v18 }
 0x172   : > { %v764_v19 = vpop.f32.mrf.mxu0 }
 0x173   : > { %v9783_v21 = vadd.f32 %v7236_v18, %v764_v19  ;;  %v781_v28 = vmul.f32 %v9781_v20, %v9781_v20 }
 0x174   : > { %v7950_v22 = vpop.f32.mrf.mxu0 }
 0x175   : > { %v9785_v23 = vadd.f32 %v7950_v22, %v7236_v18  ;;  %v779_v32 = vmul.f32 %v9783_v21, %v9783_v21 }
 0x176   : > { %v767_v27 = vpop.f32.mrf.mxu0 }
 0x177   : > { %v782_v29 = vmul.f32 %v9785_v23, %v9785_v23  ;;  %v790_v0 = vadd.f32 %v9785_v23, %v9781_v20  ;;  %v9793_v30 = vadd.f32 %v7236_v18, %v767_v27 }
 0x179   : > { %v791_v33 = vrot.slane %v790_v0, 4  ;;  %v804_v34 = vadd.f32 %v782_v29, %v781_v28  ;;  %v780_v35 = vmul.f32 %v9793_v30, %v9793_v30  ;;  %v783_v36 = vadd.f32 %v9793_v30, %v9783_v21  ;;  %v9805_v28 = vld [vmem:[#allocation2 + $0x8] sm:$0xff] }
 0x17a   : > { %v9810_v29 = vld [vmem:[#allocation15] sm:$0xff] }
 0x17b   : > { %v792_v37 = vadd.f32 %v791_v33, %v790_v0  ;;  %v805_v38 = vrot.slane %v804_v34, 4  ;;  %v784_v39 = vrot.slane %v783_v36, 4  ;;  %v797_v40 = vadd.f32 %v780_v35, %v779_v32  ;;  %v8811_v0 = vld [vmem:[#allocation11 + $0x38] sm:$0xff]   ;;  %7996 = vmatpush3.msra.mxu0 %v9810_v29  ;;  %v7258_v33 = vld [vmem:[%s11510_s1 + $0x8] sm:$0x7f] }
 0x17c   : > { %v9814_v32 = vld [vmem:[#allocation3 + $0x78] sm:$0xff]   ;;  %v9824_v35 = vrot.slane %v7258_v33, %v9629_v7 }
 0x17d   : > { %v793_v41 = vrot.slane %v792_v37, 2  ;;  %v806_v42 = vadd.f32 %v805_v38, %v804_v34  ;;  %v785_v43 = vadd.f32 %v784_v39, %v783_v36  ;;  %v798_v44 = vrot.slane %v797_v40, 4  ;;  %8020 = vmatprep.subr.bf16.mxu0 %v9814_v32  ;;  %v9826_v36 = vld [vmem:[#allocation2 + $0xe] sm:$0xff] }
 0x17e   : > { %v9821_v34 = vrot.slane %v7258_v33, %v9641_v11  ;;  %v9832_v39 = vpack.c.bf16 %v9633_v9, %v9631_v8  ;;  %v9846_v8 = vsub.s32 3, %v9623_v4 }
 0x17f   : > { %v794_v45 = vadd.f32 %v793_v41, %v792_v37  ;;  %v786_v46 = vrot.slane %v785_v43, 2  ;;  %v799_v47 = vadd.f32 %v798_v44, %v797_v40  ;;  %v807_v48 = vrot.slane %v806_v42, 2  ;;  %v9828_v37 = vld [vmem:[#allocation2 + $0x16] sm:$0xff]  ;;  %v8812_v41 = vld [vmem:[#allocation11 + $0x30] sm:$0xff]  }
 0x180   : > { %11594 = vst [vmem:[#allocation31_spill] sm:$0xff] %v9846_v8 }
 0x181   : > { %v795_v49 = vrot.slane %v794_v45, 1  ;;  %v787_v50 = vadd.f32 %v786_v46, %v785_v43  ;;  %v800_v51 = vrot.slane %v799_v47, 2  ;;  %v808_v52 = vadd.f32 %v807_v48, %v806_v42  ;;  %v8813_v48 = vld [vmem:[#allocation11 + $0x28] sm:$0xff]  }
 0x182   : > { %v1284_v42 = vmul.f32 %v9821_v34, %v9826_v36  ;;  %v1292_v43 = vmul.f32 %v9824_v35, %v9659_v24  ;;  %v1293_v46 = vmul.f32 %v9824_v35, %v9661_v25 }
 0x183   : > { %v788_v53 = vrot.slane %v787_v50, 1  ;;  %v801_v54 = vadd.f32 %v800_v51, %v799_v47  ;;  %v809_v55 = vrot.slane %v808_v52, 1  ;;  %v796_v57 = vadd.f32 %v795_v49, %v794_v45  ;;  %v9853_v51 = vld [vmem:[#allocation2 + $0x10] sm:$0xff] }
 0x184   : > { %v1285_v45 = vmul.f32 %v9821_v34, %v9828_v37  ;;  %v9843_v47 = vrot.slane %v7258_v33, %v9644_v12  ;;  %v1296_v49 = vadd.f32 %v1292_v43, %v1284_v42 }
 0x185   : > { %v789_v56 = vadd.f32 %v788_v53, %v787_v50  ;;  %v802_v58 = vrot.slane %v801_v54, 1  ;;  %v810_v19 = vadd.f32 %v809_v55, %v808_v52  ;;  %v9851_v50 = vsub.s32 4, %v9623_v4  ;;  %v9857_v53 = vld [vmem:[#allocation2 + $0x18] sm:$0xff] }
 0x186   : > { %v1297_v25 = vadd.f32 %v1293_v46, %v1285_v45  ;;  %v1304_v52 = vmul.f32 %v9853_v51, %v9843_v47  ;;  %v9862_v55 = vrot.slane %v7258_v33, %v9846_v8  ;;  %v9882_v45 = vld [vmem:[%s11511_s2 + $0x1] ss:$0 sm:$0xff]  ;;  %v8817_v46 = vld [vmem:[#allocation11 + $0x8] sm:$0xff]  }
 0x187   : > { %v803_v17 = vadd.f32 %v802_v58, %v801_v54  ;;  %v816_v18 = vsel %vm815_vm1, %v796_v57, %v789_v56  ;;  %11595 = vst [vmem:[#allocation32_spill] sm:$0xff] %v9851_v50  ;;  %v1305_v54 = vmul.f32 %v9857_v53, %v9843_v47  ;;  %v8814_v58 = vld [vmem:[#allocation11 + $0x20] sm:$0xff]  }
 0x189   : > { %v818_v22 = vsel %vm817_vm2, %v803_v17, %v816_v18  ;;  %v9865_v17 = vrot.slane %v7258_v33, %v9851_v50  ;;  %v1308_v18 = vadd.f32 %v1304_v52, %v1296_v49  ;;  %v8820_v52 = vld [vmem:[#allocation3 + $0x70] sm:$0xff]  }
 0x18a   : > { %v820_v27 = vsel %vm819_vm3, %v810_v19, %v818_v22  ;;  %v1309_v19 = vadd.f32 %v1305_v54, %v1297_v25  ;;  %v1316_v22 = vmul.f32 %v9862_v55, %v9663_v26  ;;  %v8816_v26 = vld [vmem:[#allocation11 + $0x10] sm:$0xff]   ;;  %v8819_v25 = vld [vmem:[#allocation11] sm:$0xff]  }
 0x18b   : > { %7984 = vmatmul.mubr.f32.vlgmr.msra.gmra.mxu1 %v820_v27  ;;  %v1317_v27 = vmul.f32 %v9862_v55, %v9667_v31 }
 0x18c   : > { %7987 = vmatpush3.msra.mxu1 %v9777_v16  ;;  %7990 = vmatprep.mubr.msk.f32.mxu1 %vm9372_vm0, %v9805_v28 }
 0x18d   : > { %7988 = vmatprep.subr.mxu1 %v9805_v28  ;;  %v1321_v42 = vadd.f32 %v1317_v27, %v1309_v19  ;;  %v9894_v19 = vld [vmem:[#allocation2 + $0x48] sm:$0xff] }
 0x18e   : > { %7989 = vmatpush3.msra.mxu1 %v9810_v29 }
 0x18f   : > { %8000 = vmatprep.subr.bf16.mxu1 %v8811_v0 }
 0x24b   : > { %v888_v38 = vpop.f32.mrf.mxu1 }
 0x24c   : > { %v892_v40 = vmul.f32 0.0078125, %v888_v38  ;;  %v9873_v38 = vld [vmem:[#allocation2 + $0x1a] sm:$0xff] }
 0x24d   : > { %v7985_v44 = vpop.f32.mrf.mxu1  ;;  %v1333_v43 = vmul.f32 %v9865_v17, %v9873_v38 }
 0x24e   : > { %v893_v9 = vmul.f32 %v892_v40, %v892_v40  ;;  %7991 = vmatmul.mubr.msk.f32.vlgmr.msra.gmra.mxu1 %vm900_vm4, %v892_v40 }
 0x24f   : > { %8001 = vmatpush3.bf16.msra.mxu1 %v8811_v0  ;;  %8016 = vmatprep.mubr.bf16.mxu1 %v9832_v39  ;;  %v9871_v0 = vld [vmem:[#allocation2 + $0x12] sm:$0xff]  ;;  %v1337_v44 = vadd.f32 %v1333_v43, %v1321_v42  ;;  %v9908_v42 = vld [vmem:[#allocation2 + $0x47] sm:$0xff] }
 0x250   : > { %v895_v24 = vrot.slane %v893_v9, 6  ;;  %8002 = vmatprep.subr.bf16.mxu1 %v8812_v41  ;;  %v1332_v33 = vmul.f32 %v9865_v17, %v9871_v0  ;;  %v8822_v43 = vld [vmem:[#allocation3 + $0x60] sm:$0xff]  }
 0x252   : > { %v897_v56 = vsub.f32 %v892_v40, %v895_v24  ;;  %v8815_v40 = vld [vmem:[#allocation11 + $0x18] sm:$0xff]   ;;  %v1349_v24 = vadd.f32 %v9882_v45, %v1337_v44  ;;  %v1307_v44 = vmul.f32 %v9894_v19, %v9843_v47 }
 0x253   : > { %8003 = vmatpush3.bf16.msra.mxu1 %v8812_v41  ;;  %v1320_v41 = vadd.f32 %v1316_v22, %v1308_v18  ;;  %v9892_v18 = vld [vmem:[#allocation2 + $0x40] sm:$0xff] }
 0x254   : > { %v898_v57 = vadd.f32 1e-05, %v897_v56  ;;  %8004 = vmatprep.subr.bf16.mxu1 %v8813_v48  ;;  %v9888_v56 = vld [vmem:[#allocation2 + $0x3e] sm:$0xff]  ;;  %v9898_v22 = vpack.c.bf16 %v9894_v19, %v9892_v18 }
 0x255   : > { %v1336_v31 = vadd.f32 %v1332_v33, %v1320_v41  ;;  %v1286_v27 = vmul.f32 %v9821_v34, %v9888_v56  ;;  %v1295_v33 = vmul.f32 %v9908_v42, %v9824_v35 }
 0x256   : > { %8971 = vrsqrt.f32 %v898_v57  ;;  %v9890_v57 = vld [vmem:[#allocation2 + $0x46] sm:$0xff] }
 0x257   : > { %8005 = vmatpush3.bf16.msra.mxu1 %v8813_v48  ;;  %v1348_v9 = vadd.f32 %v9882_v45, %v1336_v31  ;;  %v1306_v31 = vmul.f32 %v9892_v18, %v9843_v47 }
 0x258   : > { %8006 = vmatprep.subr.bf16.mxu1 %v8814_v58 }
 0x259   : > { %v1352_v54 = vpack.c.bf16 %v1349_v24, %v1348_v9  ;;  %v9928_v9 = vld [vmem:[%s11520_s11 + $0x70] sm:$0xff] }
 0x25b   : > { %8007 = vmatpush3.bf16.msra.mxu1 %v8814_v58  ;;  %v8821_v58 = vld [vmem:[#allocation3 + $0x68] sm:$0xff]  }
 0x25c   : > { %8008 = vmatprep.subr.bf16.mxu1 %v8815_v40 }
 0x25f   : > { %8009 = vmatpush3.bf16.msra.mxu1 %v8815_v40  ;;  %v9904_v40 = vld [vmem:[#allocation2 + $0x3f] sm:$0xff] }
 0x260   : > { %8010 = vmatprep.subr.bf16.mxu1 %v8816_v26  ;;  %v1294_v41 = vmul.f32 %v9904_v40, %v9824_v35  ;;  %v9921_v35 = vld [vmem:[%s11520_s11 + $0x78] sm:$0xff] }
 0x263   : > { %v8972_v48 = vpop.eup %8971  ;;  %8011 = vmatpush3.bf16.msra.mxu1 %v8816_v26  ;;  %v1298_v26 = vadd.f32 %v1294_v41, %v1286_v27  ;;  %v8824_v27 = vld [vmem:[#allocation3 + $0x50] sm:$0xff]  }
 0x264   : > { %v998_v49 = vrot.slane %v8972_v48, 2  ;;  %8012 = vmatprep.subr.bf16.mxu1 %v8817_v46  ;;  %v9933_v48 = vld [vmem:[#allocation2 + $0x41] sm:$0xff] }
 0x265   : > { %v1310_v47 = vadd.f32 %v1306_v31, %v1298_v26 }
 0x266   : > { %7998 = vmatmul.mubr.msk.f32.vlgmr.msra.gmra.mxu0 %vm900_vm4, %v998_v49  ;;  %v1318_v49 = vmul.f32 %v9933_v48, %v9862_v55 }
 0x267   : > { %8013 = vmatpush3.bf16.msra.mxu1 %v8817_v46  ;;  %8021 = vmatpush3.bf16.msra.mxu0 %v9814_v32  ;;  %v1287_v32 = vmul.f32 %v9821_v34, %v9890_v57  ;;  %v8823_v46 = vld [vmem:[#allocation3 + $0x58] sm:$0xff]  }
 0x268   : > { %8014 = vmatprep.subr.bf16.mxu1 %v8819_v25  ;;  %8022 = vmatprep.subr.bf16.mxu0 %v8820_v52 }
 0x269   : > { %8036 = vmatprep.mubr.bf16.mxu0 %v1352_v54  ;;  %v1299_v34 = vadd.f32 %v1295_v33, %v1287_v32  ;;  %v9942_v54 = vld [vmem:[#allocation2 + $0x42] sm:$0xff]  ;;  %v1322_v32 = vadd.f32 %v1318_v49, %v1310_v47 }
 0x26b   : > { %8015 = vmatpush3.bf16.msra.mxu1 %v8819_v25  ;;  %8023 = vmatpush3.bf16.msra.mxu0 %v8820_v52  ;;  %v1311_v24 = vadd.f32 %v1307_v44, %v1299_v34  ;;  %v9937_v25 = vld [vmem:[#allocation2 + $0x49] sm:$0xff] }
 0x26c   : > { %8024 = vmatprep.subr.bf16.mxu0 %v8821_v58  ;;  %8040 = vmatprep.subr.mxu1 %v9805_v28  ;;  %v1319_v52 = vmul.f32 %v9937_v25, %v9862_v55  ;;  %v1334_v55 = vmul.f32 %v9865_v17, %v9942_v54 }
 0x26e   : > { %8017 = vmatmul.mubr.bf16.vlgmr.msra.gmra.mxu1 %v9898_v22  ;;  %v1323_v41 = vadd.f32 %v1319_v52, %v1311_v24 }
 0x26f   : > { %8025 = vmatpush3.bf16.msra.mxu0 %v8821_v58  ;;  %8041 = vmatpush3.msra.mxu1 %v9921_v35  ;;  %v9944_v58 = vld [vmem:[#allocation2 + $0x4a] sm:$0xff] }
 0x270   : > { %8026 = vmatprep.subr.bf16.mxu0 %v8822_v43  ;;  %8042 = vmatprep.subr.mxu1 %v9805_v28  ;;  %v1335_v33 = vmul.f32 %v9865_v17, %v9944_v58  ;;  %v8826_v17 = vld [vmem:[#allocation3 + $0x40] sm:$0xff]  }
 0x271   : > { %8043 = vmatpush3.msra.mxu1 %v9928_v9  ;;  %8072 = vmatprep.mubr.msk.f32.mxu1 %vm9372_vm0, %v9805_v28 }
 0x272   : > { %8044 = vmatprep.subr.mxu1 %v9805_v28 }
 0x273   : > { %8027 = vmatpush3.bf16.msra.mxu0 %v8822_v43  ;;  %8045 = vmatpush3.msra.mxu1 %v9678_v59  ;;  %v8825_v59 = vld [vmem:[#allocation3 + $0x48] sm:$0xff]   ;;  %v1339_v43 = vadd.f32 %v1335_v33, %v1323_v41 }
 0x274   : > { %8028 = vmatprep.subr.bf16.mxu0 %v8823_v46  ;;  %8046 = vmatprep.subr.mxu1 %v9805_v28  ;;  %v7247_v33 = vld [vmem:[#allocation8] ss:$0 sm:$0xff] }
 0x275   : > { %8047 = vmatpush3.msra.mxu1 %v9685_v60  ;;  %v1338_v60 = vadd.f32 %v1334_v55, %v1322_v32  ;;  %v1351_v26 = vadd.f32 %v9882_v45, %v1339_v43 }
 0x276   : > { %8048 = vmatprep.subr.mxu1 %v9805_v28 }
 0x277   : > { %8029 = vmatpush3.bf16.msra.mxu0 %v8823_v46  ;;  %8049 = vmatpush3.msra.mxu1 %v9692_v61  ;;  %v1350_v61 = vadd.f32 %v9882_v45, %v1338_v60 }
 0x278   : > { %8030 = vmatprep.subr.bf16.mxu0 %v8824_v27  ;;  %8050 = vmatprep.subr.mxu1 %v9805_v28 }
 0x279   : > { %8051 = vmatpush3.msra.mxu1 %v9699_v62  ;;  %v1353_v62 = vpack.c.bf16 %v1351_v26, %v1350_v61  ;;  %v7248_v61 = vld [vmem:[#allocation9] ss:$0 sm:$0xff] }
 0x27a   : > { %8052 = vmatprep.subr.mxu1 %v9805_v28 }
 0x27b   : > { %8031 = vmatpush3.bf16.msra.mxu0 %v8824_v27  ;;  %8053 = vmatpush3.msra.mxu1 %v9706_v63  ;;  %v9986_v63 = vld [vmem:[#allocation3 + $0xb8] sm:$0xff]  }
 0x27c   : > { %8032 = vmatprep.subr.bf16.mxu0 %v8825_v59  ;;  %8054 = vmatprep.subr.mxu1 %v9805_v28 }
 0x27d   : > { %8055 = vmatpush3.msra.mxu1 %v9713_v1 }
 0x27e   : > { %8056 = vmatprep.subr.mxu1 %v9805_v28 }
 0x27f   : > { %8033 = vmatpush3.bf16.msra.mxu0 %v8825_v59  ;;  %8057 = vmatpush3.msra.mxu1 %v9720_v2  ;;  %v9373_v2 = vmov 1966171168  }
 0x280   : > { %8034 = vmatprep.subr.bf16.mxu0 %v8826_v17  ;;  %8058 = vmatprep.subr.mxu1 %v9805_v28 }
 0x281   : > { %8059 = vmatpush3.msra.mxu1 %v9727_v3  ;;  %v976_v3 = vunpack.c.l.s4 %v9373_v2 }
 0x282   : > { %8060 = vmatprep.subr.mxu1 %v9805_v28 }
 0x283   : > { %8035 = vmatpush3.bf16.msra.mxu0 %v8826_v17  ;;  %8061 = vmatpush3.msra.mxu1 %v9734_v5 }
 0x284   : > { %8062 = vmatprep.subr.mxu1 %v9805_v28  ;;  %8075 = vmatprep.subr.mxu0 %v9805_v28 }
 0x285   : > { %8063 = vmatpush3.msra.mxu1 %v9741_v6  ;;  %v977_v6 = vunpack.c.0.s8 %v976_v3 }
 0x286   : > { %8037 = vmatmul.mubr.bf16.vlgmr.msra.gmra.mxu0 %v1353_v62  ;;  %8064 = vmatprep.subr.mxu1 %v9805_v28 }
 0x287   : > { %8065 = vmatpush3.msra.mxu1 %v9748_v10  ;;  %8076 = vmatpush3.msra.mxu0 %v9777_v16  ;;  %v9990_v10 = vsub.s32 %v977_v6, %v9623_v4 }
 0x288   : > { %8066 = vmatprep.subr.mxu1 %v9805_v28  ;;  %8077 = vmatprep.subr.mxu0 %v9805_v28 }
 0x289   : > { %8067 = vmatpush3.msra.mxu1 %v9753_v13  ;;  %8078 = vmatpush3.msra.mxu0 %v9810_v29 }
 0x28a   : > { %8068 = vmatprep.subr.mxu1 %v9805_v28  ;;  %8079 = vmatprep.mubr.msk.f32.mxu0 %vm9372_vm0, %v9805_v28 }
 0x28b   : > { %8069 = vmatpush3.msra.mxu1 %v9759_v14  ;;  %8082 = vmatprep.subr.mxu0 %v9805_v28 }
 0x28c   : > { %8070 = vmatprep.subr.mxu1 %v9805_v28 }
 0x28d   : > { %8071 = vmatpush3.msra.mxu1 %v9771_v15 }
 0x28e   : > { %8109 = vmatprep.subr.bf16.mxu1 %v9986_v63 }
 0x30e   : > { %v970_v1 = vpop.f32.mrf.mxu1 }
 0x30f   : > { %v981_v13 = vrot.slane %v970_v1, %v9990_v10 }
 0x310   : > { %v7992_v5 = vpop.f32.mrf.mxu1 }
 0x311   : > { %v982_v14 = vcombine.high %v981_v13, %v981_v13  ;;  %v989_v45 = vrot.slane %v981_v13, %v9990_v10 }
 0x313   : > { %v996_v34 = vrot.slane %v982_v14, %v9990_v10  ;;  %v1097_v31 = vrot.slane %v989_v45, %v9641_v11 }
 0x315   : > { %v1101_v46 = vrot.slane %v996_v34, %v9641_v11  ;;  %v1104_v52 = vsub.f32 %v9783_v21, %v1097_v31  ;;  %v1105_v27 = vsub.f32 %v9793_v30, %v1097_v31  ;;  %v7249_v21 = vld [vmem:[%s11517_s8] ss:$0 sm:$0xff] }
 0x317   : > { %v1106_v55 = vsub.f32 %v9781_v20, %v1101_v46  ;;  %v1107_v59 = vsub.f32 %v9785_v23, %v1101_v46 }
 0x326   : > { %v1067_v15 = vpop.f32.mrf.mxu0 }
 0x327   : > { %v1078_v44 = vrot.slane %v1067_v15, %v9990_v10 }
 0x328   : > { %v7999_v47 = vpop.f32.mrf.mxu0 }
 0x329   : > { %v1079_v24 = vcombine.high %v1078_v44, %v1078_v44  ;;  %v1086_v49 = vrot.slane %v1078_v44, %v9990_v10 }
 0x32b   : > { %v1093_v32 = vrot.slane %v1079_v24, %v9990_v10  ;;  %v1111_v41 = vrot.slane %v1086_v49, %v9641_v11 }
 0x32d   : > { %v1115_v60 = vrot.slane %v1093_v32, %v9641_v11  ;;  %v1118_v43 = vmul.f32 %v1111_v41, %v1104_v52  ;;  %v1119_v17 = vmul.f32 %v1111_v41, %v1105_v27 }
 0x32e   : > { %v8018_v26 = vpop.f32.mrf.mxu1 }
 0x32f   : > { %v1120_v30 = vmul.f32 %v1115_v60, %v1106_v55  ;;  %v1121_v62 = vmul.f32 %v1115_v60, %v1107_v59  ;;  %v1129_v1 = vmul.f32 %v7247_v33, %v1118_v43  ;;  %v1130_v3 = vmul.f32 %v7247_v33, %v1119_v17 }
 0x330   : > { %v1255_v2 = vpop.f32.mrf.mxu1  ;;  %v1264_v23 = vadd.f32 %v8018_v26, %v7249_v21  ;;  %v1972_v26 = vld [vmem:[#allocation2 + $0x15] sm:$0xff] }
 0x331   : > { %v1131_v5 = vmul.f32 %v7247_v33, %v1120_v30  ;;  %v1140_v20 = vadd.f32 %v7248_v61, %v1129_v1  ;;  %v1256_v6 = vadd.f32 %v7249_v21, %v1255_v2  ;;  %v1132_v13 = vmul.f32 %v7247_v33, %v1121_v62  ;;  %v7284_v33 = vld [vmem:[%s11510_s1 + $0x10] sm:$0x7f] }
 0x332   : > { %v8019_v14 = vpop.f32.mrf.mxu1  ;;  %v1141_v45 = vadd.f32 %v7248_v61, %v1130_v3  ;;  %v10025_v43 = vrot.slane %v7284_v33, %v9641_v11  ;;  %v10028_v17 = vrot.slane %v7284_v33, %v9629_v7  ;;  %v10040_v3 = vrot.slane %v7284_v33, %v9846_v8 }
 0x333   : > { %v1142_v34 = vadd.f32 %v7248_v61, %v1131_v5  ;;  %v1144_v15 = vmax.f32 %v1140_v20, 0.0  ;;  %v1143_v31 = vadd.f32 %v7248_v61, %v1132_v13  ;;  %v1267_v44 = vadd.f32 %v8019_v14, %v7249_v21  ;;  %v1971_v61 = vld [vmem:[#allocation2 + $0xd] sm:$0xff] }
 0x334   : > { %v1145_v46 = vmax.f32 %v1141_v45, 0.0  ;;  %v1258_v47 = vpop.f32.mrf.mxu1  ;;  %v1979_v30 = vmul.f32 %v10025_v43, %v1971_v61  ;;  %v1980_v62 = vmul.f32 %v10025_v43, %v1972_v26  ;;  %v1987_v1 = vmul.f32 %v10028_v17, %v9826_v36  ;;  %v9002_v61 = vld [vmem:[#allocation2 + $0x11] sm:$0xff] }
 0x335   : > { %v1146_v24 = vmax.f32 %v1142_v34, 0.0  ;;  %v10009_v49 = vadd.f32 %v1256_v6, %v1144_v15  ;;  %v1147_v52 = vmax.f32 %v1143_v31, 0.0  ;;  %v1259_v27 = vadd.f32 %v7249_v21, %v1258_v47  ;;  %v9000_v6 = vld [vmem:[#allocation2 + $0xf] sm:$0xff]  ;;  %v7261_v15 = vld [vmem:[#allocation6 + $0x1] ss:$0 sm:$0xff] }
 0x336   : > { %v10031_v21 = vrot.slane %v7284_v33, %v9644_v12  ;;  %v1988_v2 = vmul.f32 %v10028_v17, %v9828_v37  ;;  %v1991_v5 = vadd.f32 %v1987_v1, %v1979_v30  ;;  %v10045_v45 = vsub.s32 5, %v9623_v4 }
 0x337   : > { %v10011_v32 = vadd.f32 %v1264_v23, %v1146_v24  ;;  %v10013_v41 = vadd.f32 %v1267_v44, %v1147_v52  ;;  %v10015_v55 = vadd.f32 %v1259_v27, %v1145_v46  ;;  %v9001_v23 = vld [vmem:[#allocation2 + $0x17] sm:$0xff]  ;;  %v10048_v34 = vrot.slane %v7284_v33, %v9851_v50 }
 0x338   : > { %v1992_v20 = vadd.f32 %v1988_v2, %v1980_v62  ;;  %v1999_v13 = vmul.f32 %v9000_v6, %v10031_v21  ;;  %v2000_v14 = vmul.f32 %v9001_v23, %v10031_v21  ;;  %11598 = vst [vmem:[#allocation35_spill] sm:$0xff] %v10045_v45  ;;  %v2011_v44 = vmul.f32 %v9853_v51, %v10040_v3  ;;  %v9003_v2 = vld [vmem:[#allocation2 + $0x19] sm:$0xff] }
 0x339   : > { %11596 = vst [vmem:[#allocation33_spill] sm:$0xff] %v10011_v32  ;;  %11597 = vst [vmem:[#allocation34_spill] sm:$0xff] %v10013_v41  ;;  %v2012_v46 = vmul.f32 %v9857_v53, %v10040_v3  ;;  %v10055_v24 = vrot.slane %v7284_v33, %v10045_v45  ;;  %v10058_v52 = vsub.s32 6, %v9623_v4  ;;  %v2023_v26 = vmul.f32 %v9002_v61, %v10048_v34 }
 0x33a   : > { %v2003_v37 = vadd.f32 %v1999_v13, %v1991_v5  ;;  %v2004_v31 = vadd.f32 %v2000_v14, %v1992_v20  ;;  %v2024_v53 = vmul.f32 %v9003_v2, %v10048_v34  ;;  %v2044_v2 = vld [vmem:[#allocation2 + $0x1b] sm:$0xff] }
 0x33b   : > { %11599 = vst [vmem:[#allocation36_spill] sm:$0xff] %v10058_v52  ;;  %v2035_v4 = vmul.f32 %v10055_v24, %v9871_v0  ;;  %v10071_v6 = vrot.slane %v7284_v33, %v10058_v52  ;;  %v2036_v0 = vmul.f32 %v10055_v24, %v9873_v38 }
 0x33c   : > { %v2015_v1 = vadd.f32 %v2011_v44, %v2003_v37  ;;  %v2016_v51 = vadd.f32 %v2012_v46, %v2004_v31 }
 0x33d   : > { %v2052_v38 = vmul.f32 %v10071_v6, %v2044_v2 }
 0x33e   : > { %v2027_v31 = vadd.f32 %v2023_v26, %v2015_v1  ;;  %v2028_v44 = vadd.f32 %v2024_v53, %v2016_v51 }
 0x340   : > { %v2039_v52 = vadd.f32 %v2035_v4, %v2027_v31  ;;  %v2040_v26 = vadd.f32 %v2036_v0, %v2028_v44  ;;  %v10094_v4 = vld [vmem:[%s11511_s2 + $0x2] ss:$0 sm:$0xff] }
 0x341   : > { %v1973_v0 = vld [vmem:[#allocation2 + $0x3d] sm:$0xff] }
 0x342   : > { %v2056_v32 = vadd.f32 %v2052_v38, %v2040_v26 }
 0x346   : > { %v8038_v36 = vpop.f32.mrf.mxu0 }
 0x347   : > { %v10060_v27 = vadd.f32 %v8038_v36, %v7261_v15 }
 0x348   : > { %v1461_v47 = vpop.f32.mrf.mxu0 }
 0x349   : > { %v10063_v30 = vadd.f32 %v7261_v15, %v1461_v47  ;;  %v1478_v13 = vmul.f32 %v10060_v27, %v10060_v27 }
 0x34a   : > { %v8039_v62 = vpop.f32.mrf.mxu0 }
 0x34b   : > { %v10066_v5 = vadd.f32 %v8039_v62, %v7261_v15  ;;  %v1476_v37 = vmul.f32 %v10063_v30, %v10063_v30  ;;  %v2043_v62 = vld [vmem:[#allocation2 + $0x13] sm:$0xff] }
 0x34c   : > { %v1464_v20 = vpop.f32.mrf.mxu0  ;;  %v2051_v1 = vmul.f32 %v10071_v6, %v2043_v62 }
 0x34d   : > { %v1479_v23 = vmul.f32 %v10066_v5, %v10066_v5  ;;  %v1487_v14 = vadd.f32 %v10066_v5, %v10060_v27  ;;  %v10079_v36 = vadd.f32 %v7261_v15, %v1464_v20 }
 0x34e   : > { %v2055_v7 = vadd.f32 %v2051_v1, %v2039_v52 }
 0x34f   : > { %v1488_v33 = vrot.slane %v1487_v14, 4  ;;  %v1501_v46 = vadd.f32 %v1479_v23, %v1478_v13  ;;  %v1477_v47 = vmul.f32 %v10079_v36, %v10079_v36  ;;  %v1480_v61 = vadd.f32 %v10079_v36, %v10063_v30 }
 0x351   : > { %v1489_v15 = vadd.f32 %v1488_v33, %v1487_v14  ;;  %v1502_v20 = vrot.slane %v1501_v46, 4  ;;  %v1481_v60 = vrot.slane %v1480_v61, 4  ;;  %v1494_v59 = vadd.f32 %v1477_v47, %v1476_v37 }
 0x352   : > { %v2067_v47 = vadd.f32 %v10094_v4, %v2055_v7 }
 0x353   : > { %v1490_v51 = vrot.slane %v1489_v15, 2  ;;  %v1503_v53 = vadd.f32 %v1502_v20, %v1501_v46  ;;  %v1482_v13 = vadd.f32 %v1481_v60, %v1480_v61  ;;  %v1495_v23 = vrot.slane %v1494_v59, 4  ;;  %v1974_v60 = vld [vmem:[#allocation2 + $0x45] sm:$0xff] }
 0x355   : > { %v1491_v45 = vadd.f32 %v1490_v51, %v1489_v15  ;;  %v1504_v50 = vrot.slane %v1503_v53, 2  ;;  %v1483_v8 = vrot.slane %v1482_v13, 2  ;;  %v1496_v12 = vadd.f32 %v1495_v23, %v1494_v59  ;;  %v8830_v23 = vld [vmem:[#allocation3 + $0xa0] sm:$0xff]  }
 0x356   : > { %v2068_v59 = vadd.f32 %v10094_v4, %v2056_v32  ;;  %v2002_v51 = vmul.f32 %v9908_v42, %v10031_v21  ;;  %v2025_v42 = vmul.f32 %v9933_v48, %v10048_v34 }
 0x357   : > { %v1492_v14 = vrot.slane %v1491_v45, 1  ;;  %v1484_v33 = vadd.f32 %v1483_v8, %v1482_v13  ;;  %v1497_v41 = vrot.slane %v1496_v12, 2  ;;  %v1505_v37 = vadd.f32 %v1504_v50, %v1503_v53 }
 0x358   : > { %v1981_v8 = vmul.f32 %v10025_v43, %v1973_v0  ;;  %v1982_v50 = vmul.f32 %v10025_v43, %v1974_v60  ;;  %v2071_v7 = vpack.c.bf16 %v2068_v59, %v2067_v47  ;;  %v2001_v43 = vmul.f32 %v9904_v40, %v10031_v21  ;;  %v8831_v21 = vld [vmem:[#allocation3 + $0x98] sm:$0xff]   ;;  %v8833_v60 = vld [vmem:[#allocation3 + $0x88] sm:$0xff]  }
 0x359   : > { %v1485_v31 = vrot.slane %v1484_v33, 1  ;;  %v1498_v44 = vadd.f32 %v1497_v41, %v1496_v12  ;;  %v1506_v46 = vrot.slane %v1505_v37, 1  ;;  %v1493_v52 = vadd.f32 %v1492_v14, %v1491_v45  ;;  %v8828_v45 = vld [vmem:[#allocation3 + $0xb0] sm:$0xff]  }
 0x35a   : > { %v1989_v12 = vmul.f32 %v10028_v17, %v9888_v56  ;;  %v1990_v41 = vmul.f32 %v10028_v17, %v9890_v57  ;;  %v8829_v56 = vld [vmem:[#allocation3 + $0xa8] sm:$0xff]   ;;  %v2013_v53 = vmul.f32 %v9892_v18, %v10040_v3  ;;  %v2014_v13 = vmul.f32 %v9894_v19, %v10040_v3 }
 0x35b   : > { %v1486_v61 = vadd.f32 %v1485_v31, %v1484_v33  ;;  %v1499_v62 = vrot.slane %v1498_v44, 1  ;;  %v1507_v20 = vadd.f32 %v1506_v46, %v1505_v37  ;;  %v2037_v18 = vmul.f32 %v10055_v24, %v9942_v54  ;;  %v2045_v3 = vld [vmem:[#allocation2 + $0x43] sm:$0xff]  ;;  %v2046_v31 = vld [vmem:[#allocation2 + $0x4b] sm:$0xff] }
 0x35c   : > { %v1993_v1 = vadd.f32 %v1989_v12, %v1981_v8  ;;  %v1994_v38 = vadd.f32 %v1990_v41, %v1982_v50  ;;  %v2038_v19 = vmul.f32 %v10055_v24, %v9944_v58  ;;  %v8834_v54 = vld [vmem:[#allocation3 + $0x80] sm:$0xff]   ;;  %v8836_v41 = vld [vmem:[#allocation11 + $0x70] sm:$0xff]  }
 0x35d   : > { %v1500_v2 = vadd.f32 %v1499_v62, %v1498_v44  ;;  %v1512_v15 = vsel %vm815_vm1, %v1493_v52, %v1486_v61  ;;  %v8832_v44 = vld [vmem:[#allocation3 + $0x90] sm:$0xff]  }
 0x35e   : > { %v2005_v57 = vadd.f32 %v2001_v43, %v1993_v1  ;;  %v2006_v17 = vadd.f32 %v2002_v51, %v1994_v38  ;;  %v8835_v62 = vld [vmem:[#allocation11 + $0x78] sm:$0xff]   ;;  %v8841_v1 = vld [vmem:[#allocation11 + $0x48] sm:$0xff]   ;;  %v7287_v38 = vld [vmem:[#allocation6 + $0x2] ss:$0 sm:$0xff] }
 0x35f   : > { %v1513_v32 = vsel %vm817_vm2, %v1500_v2, %v1512_v15  ;;  %v8842_v51 = vld [vmem:[#allocation11 + $0x40] sm:$0xff]  }
 0x360   : > { %v1514_v26 = vsel %vm819_vm3, %v1507_v20, %v1513_v32  ;;  %v2017_v40 = vadd.f32 %v2013_v53, %v2005_v57  ;;  %v2018_v14 = vadd.f32 %v2014_v13, %v2006_v17  ;;  %v8838_v20 = vld [vmem:[#allocation11 + $0x60] sm:$0xff]  }
 0x361   : > { %8073 = vmatmul.mubr.f32.vlgmr.msra.gmra.mxu1 %v1514_v26 }
 0x362   : > { %8110 = vmatpush3.bf16.msra.mxu1 %v9986_v63  ;;  %8125 = vmatprep.mubr.bf16.mxu1 %v2071_v7  ;;  %v2026_v63 = vmul.f32 %v9937_v25, %v10048_v34  ;;  %v2029_v33 = vadd.f32 %v2025_v42, %v2017_v40  ;;  %v2053_v25 = vmul.f32 %v10071_v6, %v2045_v3 }
 0x363   : > { %8111 = vmatprep.subr.bf16.mxu1 %v8828_v45  ;;  %v2054_v34 = vmul.f32 %v10071_v6, %v2046_v31 }
 0x364   : > { %v2030_v37 = vadd.f32 %v2026_v63, %v2018_v14  ;;  %v2041_v48 = vadd.f32 %v2037_v18, %v2029_v33 }
 0x366   : > { %8112 = vmatpush3.bf16.msra.mxu1 %v8828_v45  ;;  %v2042_v0 = vadd.f32 %v2038_v19, %v2030_v37  ;;  %v2057_v46 = vadd.f32 %v2053_v25, %v2041_v48  ;;  %v8840_v45 = vld [vmem:[#allocation11 + $0x50] sm:$0xff]   ;;  %v10181_v48 = vld [vmem:[%s11520_s11 + $0x60] sm:$0xff] }
 0x367   : > { %8113 = vmatprep.subr.bf16.mxu1 %v8829_v56 }
 0x368   : > { %v2058_v47 = vadd.f32 %v2054_v34, %v2042_v0  ;;  %v2069_v58 = vadd.f32 %v10094_v4, %v2057_v46  ;;  %v10188_v34 = vld [vmem:[%s11520_s11 + $0x58] sm:$0xff]  ;;  %v10195_v46 = vld [vmem:[%s11520_s11 + $0x50] sm:$0xff] }
 0x36a   : > { %8114 = vmatpush3.bf16.msra.mxu1 %v8829_v56  ;;  %v2070_v24 = vadd.f32 %v10094_v4, %v2058_v47 }
 0x36b   : > { %8115 = vmatprep.subr.bf16.mxu1 %v8830_v23 }
 0x36c   : > { %v2072_v59 = vpack.c.bf16 %v2070_v24, %v2069_v58  ;;  %v10202_v24 = vld [vmem:[%s11520_s11 + $0x48] sm:$0xff] }
 0x36e   : > { %8116 = vmatpush3.bf16.msra.mxu1 %v8830_v23 }
 0x36f   : > { %8117 = vmatprep.subr.bf16.mxu1 %v8831_v21 }
 0x372   : > { %8118 = vmatpush3.bf16.msra.mxu1 %v8831_v21 }
 0x373   : > { %8119 = vmatprep.subr.bf16.mxu1 %v8832_v44 }
 0x376   : > { %8120 = vmatpush3.bf16.msra.mxu1 %v8832_v44  ;;  %v10174_v44 = vld [vmem:[%s11520_s11 + $0x68] sm:$0xff] }
 0x377   : > { %8121 = vmatprep.subr.bf16.mxu1 %v8833_v60 }
 0x37a   : > { %8122 = vmatpush3.bf16.msra.mxu1 %v8833_v60 }
 0x37b   : > { %8123 = vmatprep.subr.bf16.mxu1 %v8834_v54 }
 0x37e   : > { %8124 = vmatpush3.bf16.msra.mxu1 %v8834_v54 }
 0x37f   : > { %8164 = vmatprep.subr.mxu1 %v9805_v28 }
 0x381   : > { %8126 = vmatmul.mubr.bf16.vlgmr.msra.gmra.mxu1 %v2072_v59 }
 0x382   : > { %8165 = vmatpush3.msra.mxu1 %v9777_v16  ;;  %8168 = vmatprep.mubr.msk.f32.mxu1 %vm9372_vm0, %v9805_v28 }
 0x383   : > { %8166 = vmatprep.subr.mxu1 %v9805_v28 }
 0x384   : > { %8167 = vmatpush3.msra.mxu1 %v9810_v29 }
 0x385   : > { %8171 = vmatprep.subr.mxu1 %v9805_v28 }
 0x421   : > { %v1582_v6 = vpop.f32.mrf.mxu1 }
 0x422   : > { %v1586_v4 = vmul.f32 0.0078125, %v1582_v6  ;;  %v10209_v6 = vld [vmem:[%s11520_s11 + $0x40] sm:$0xff] }
 0x423   : > { %v8074_v52 = vpop.f32.mrf.mxu1 }
 0x424   : > { %v1587_v61 = vmul.f32 %v1586_v4, %v1586_v4  ;;  %8080 = vmatmul.mubr.msk.f32.vlgmr.msra.gmra.mxu0 %vm900_vm4, %v1586_v4 }
 0x425   : > { %8083 = vmatpush3.msra.mxu0 %v9777_v16  ;;  %8086 = vmatprep.mubr.msk.f32.mxu0 %vm9372_vm0, %v9805_v28  ;;  %v8837_v16 = vld [vmem:[#allocation11 + $0x68] sm:$0xff]  }
 0x426   : > { %v1589_v8 = vrot.slane %v1587_v61, 6  ;;  %8084 = vmatprep.subr.mxu0 %v9805_v28 }
 0x427   : > { %8085 = vmatpush3.msra.mxu0 %v9810_v29  ;;  %v8839_v29 = vld [vmem:[#allocation11 + $0x58] sm:$0xff]  }
 0x428   : > { %v1591_v50 = vsub.f32 %v1586_v4, %v1589_v8  ;;  %8089 = vmatprep.subr.bf16.mxu0 %v8835_v62  ;;  %v10223_v8 = vld [vmem:[%s11520_s11 + $0x30] sm:$0xff] }
 0x42a   : > { %v1592_v2 = vadd.f32 1e-05, %v1591_v50 }
 0x42c   : > { %8973 = vrsqrt.f32 %v1592_v2 }
 0x439   : > { %v8974_v15 = vpop.eup %8973 }
 0x43a   : > { %v1691_v12 = vrot.slane %v8974_v15, 2 }
 0x43c   : > { %8087 = vmatmul.mubr.msk.f32.vlgmr.msra.gmra.mxu0 %vm900_vm4, %v1691_v12 }
 0x43d   : > { %8090 = vmatpush3.bf16.msra.mxu0 %v8835_v62  ;;  %8105 = vmatprep.mubr.bf16.mxu0 %v9832_v39  ;;  %v10216_v62 = vld [vmem:[%s11520_s11 + $0x38] sm:$0xff] }
 0x43e   : > { %8091 = vmatprep.subr.bf16.mxu0 %v8836_v41 }
 0x441   : > { %8092 = vmatpush3.bf16.msra.mxu0 %v8836_v41  ;;  %v8127_v7 = vpop.f32.mrf.mxu1  ;;  %v10230_v41 = vld [vmem:[%s11520_s11 + $0x28] sm:$0xff] }
 0x442   : > { %8093 = vmatprep.subr.bf16.mxu0 %v8837_v16  ;;  %v10147_v17 = vadd.f32 %v8127_v7, %v7287_v38 }
 0x443   : > { %v2180_v32 = vpop.f32.mrf.mxu1 }
 0x444   : > { %v10143_v56 = vadd.f32 %v7287_v38, %v2180_v32  ;;  %v2197_v42 = vmul.f32 %v10147_v17, %v10147_v17 }
 0x445   : > { %8094 = vmatpush3.bf16.msra.mxu0 %v8837_v16  ;;  %v8128_v26 = vpop.f32.mrf.mxu1  ;;  %v10237_v16 = vld [vmem:[%s11520_s11 + $0x20] sm:$0xff] }
 0x446   : > { %8095 = vmatprep.subr.bf16.mxu0 %v8838_v20  ;;  %v10149_v53 = vadd.f32 %v8128_v26, %v7287_v38  ;;  %v2195_v13 = vmul.f32 %v10143_v56, %v10143_v56 }
 0x447   : > { %v2183_v43 = vpop.f32.mrf.mxu1 }
 0x448   : > { %v10145_v57 = vadd.f32 %v7287_v38, %v2183_v43  ;;  %v2206_v40 = vadd.f32 %v10149_v53, %v10147_v17  ;;  %v2198_v63 = vmul.f32 %v10149_v53, %v10149_v53  ;;  %v10260_v38 = vld [vmem:[%s11520_s11 + $0x8] sm:$0xff]  ;;  %v10267_v43 = vld [vmem:[%s11520_s11] sm:$0xff] }
 0x449   : > { %8096 = vmatpush3.bf16.msra.mxu0 %v8838_v20 }
 0x44a   : > { %8097 = vmatprep.subr.bf16.mxu0 %v8839_v29  ;;  %v2196_v23 = vmul.f32 %v10145_v57, %v10145_v57  ;;  %v2199_v14 = vadd.f32 %v10145_v57, %v10143_v56  ;;  %v2207_v33 = vrot.slane %v2206_v40, 4  ;;  %v2220_v18 = vadd.f32 %v2198_v63, %v2197_v42  ;;  %v8847_v42 = vld [vmem:[#allocation12 + $0x68] sm:$0xff]   ;;  %v8849_v63 = vld [vmem:[#allocation12 + $0x60] sm:$0xff]  }
 0x44c   : > { %v2213_v21 = vadd.f32 %v2196_v23, %v2195_v13  ;;  %v2200_v37 = vrot.slane %v2199_v14, 4  ;;  %v2208_v3 = vadd.f32 %v2207_v33, %v2206_v40  ;;  %v8843_v13 = vld [vmem:[#allocation12 + $0x78] sm:$0xff]   ;;  %v8845_v40 = vld [vmem:[#allocation12 + $0x70] sm:$0xff]  }
 0x44d   : > { %8098 = vmatpush3.bf16.msra.mxu0 %v8839_v29  ;;  %v10244_v29 = vld [vmem:[%s11520_s11 + $0x18] sm:$0xff] }
 0x44e   : > { %8099 = vmatprep.subr.bf16.mxu0 %v8840_v45  ;;  %v2214_v19 = vrot.slane %v2213_v21, 4  ;;  %v2201_v31 = vadd.f32 %v2200_v37, %v2199_v14  ;;  %v2209_v0 = vrot.slane %v2208_v3, 2  ;;  %v8844_v23 = vld [vmem:[#allocation12 + $0x38] sm:$0xff]   ;;  %v8846_v14 = vld [vmem:[#allocation12 + $0x30] sm:$0xff]  }
 0x44f   : > { %v8851_v33 = vld [vmem:[#allocation12 + $0x58] sm:$0xff]  }
 0x450   : > { %v2202_v25 = vrot.slane %v2201_v31, 2  ;;  %v2210_v54 = vadd.f32 %v2209_v0, %v2208_v3  ;;  %v8852_v37 = vld [vmem:[#allocation12 + $0x18] sm:$0xff]   ;;  %v8855_v3 = vld [vmem:[#allocation12 + $0x48] sm:$0xff]  }
 0x451   : > { %8100 = vmatpush3.bf16.msra.mxu0 %v8840_v45  ;;  %v10252_v45 = vld [vmem:[%s11520_s11 + $0x10] sm:$0xff] }
 0x452   : > { %8101 = vmatprep.subr.bf16.mxu0 %v8841_v1  ;;  %v2203_v58 = vadd.f32 %v2202_v25, %v2201_v31  ;;  %v2211_v52 = vrot.slane %v2210_v54, 1  ;;  %v8856_v31 = vld [vmem:[#allocation12 + $0x8] sm:$0xff]  }
 0x454   : > { %v2204_v61 = vrot.slane %v2203_v58, 1  ;;  %v2212_v15 = vadd.f32 %v2211_v52, %v2210_v54 }
 0x455   : > { %8102 = vmatpush3.bf16.msra.mxu0 %v8841_v1 }
 0x456   : > { %8103 = vmatprep.subr.bf16.mxu0 %v8842_v51  ;;  %v2205_v12 = vadd.f32 %v2204_v61, %v2203_v58 }
 0x458   : > { %v2231_v32 = vsel %vm815_vm1, %v2212_v15, %v2205_v12 }
 0x459   : > { %8104 = vmatpush3.bf16.msra.mxu0 %v8842_v51 }
 0x45a   : > { %8129 = vmatprep.subr.mxu0 %v9805_v28 }
 0x45c   : > { %8106 = vmatmul.mubr.bf16.vlgmr.msra.gmra.mxu0 %v9898_v22 }
 0x45d   : > { %8130 = vmatpush3.msra.mxu0 %v9921_v35  ;;  %8161 = vmatprep.mubr.msk.f32.mxu0 %vm9372_vm0, %v9805_v28  ;;  %v2221_v35 = vrot.slane %v2220_v18, 4 }
 0x45e   : > { %8131 = vmatprep.subr.mxu0 %v9805_v28 }
 0x45f   : > { %8132 = vmatpush3.msra.mxu0 %v9928_v9  ;;  %v2215_v9 = vadd.f32 %v2214_v19, %v2213_v21  ;;  %v2222_v60 = vadd.f32 %v2221_v35, %v2220_v18  ;;  %v8850_v21 = vld [vmem:[#allocation12 + $0x20] sm:$0xff]   ;;  %v8853_v18 = vld [vmem:[#allocation12 + $0x50] sm:$0xff]  }
 0x460   : > { %8133 = vmatprep.subr.mxu0 %v9805_v28  ;;  %v8854_v19 = vld [vmem:[#allocation12 + $0x10] sm:$0xff]   ;;  %v8857_v35 = vld [vmem:[#allocation12 + $0x40] sm:$0xff]  }
 0x461   : > { %8134 = vmatpush3.msra.mxu0 %v10174_v44  ;;  %v2216_v47 = vrot.slane %v2215_v9, 2  ;;  %v2223_v59 = vrot.slane %v2222_v60, 2 }
 0x462   : > { %8135 = vmatprep.subr.mxu0 %v9805_v28 }
 0x463   : > { %8136 = vmatpush3.msra.mxu0 %v10181_v48  ;;  %v2217_v4 = vadd.f32 %v2216_v47, %v2215_v9  ;;  %v2224_v50 = vadd.f32 %v2223_v59, %v2222_v60  ;;  %v8858_v9 = vld [vmem:[#allocation12] sm:$0xff]  }
 0x464   : > { %8137 = vmatprep.subr.mxu0 %v9805_v28 }
 0x465   : > { %8138 = vmatpush3.msra.mxu0 %v10188_v34  ;;  %v2218_v2 = vrot.slane %v2217_v4, 1  ;;  %v2225_v20 = vrot.slane %v2224_v50, 1 }
 0x466   : > { %8139 = vmatprep.subr.mxu0 %v9805_v28 }
 0x467   : > { %8140 = vmatpush3.msra.mxu0 %v10195_v46  ;;  %v2219_v7 = vadd.f32 %v2218_v2, %v2217_v4  ;;  %v2226_v26 = vadd.f32 %v2225_v20, %v2224_v50 }
 0x468   : > { %8141 = vmatprep.subr.mxu0 %v9805_v28 }
 0x469   : > { %8142 = vmatpush3.msra.mxu0 %v10202_v24  ;;  %v2232_v1 = vsel %vm817_vm2, %v2219_v7, %v2231_v32 }
 0x46a   : > { %8143 = vmatprep.subr.mxu0 %v9805_v28  ;;  %v2233_v51 = vsel %vm819_vm3, %v2226_v26, %v2232_v1 }
 0x46b   : > { %8144 = vmatpush3.msra.mxu0 %v10209_v6 }
 0x46c   : > { %8145 = vmatprep.subr.mxu0 %v9805_v28 }
 0x46d   : > { %8146 = vmatpush3.msra.mxu0 %v10216_v62 }
 0x46e   : > { %8147 = vmatprep.subr.mxu0 %v9805_v28 }
 0x46f   : > { %8148 = vmatpush3.msra.mxu0 %v10223_v8 }
 0x470   : > { %8149 = vmatprep.subr.mxu0 %v9805_v28 }
 0x471   : > { %8150 = vmatpush3.msra.mxu0 %v10230_v41 }
 0x472   : > { %8151 = vmatprep.subr.mxu0 %v9805_v28 }
 0x473   : > { %8152 = vmatpush3.msra.mxu0 %v10237_v16 }
 0x474   : > { %8153 = vmatprep.subr.mxu0 %v9805_v28 }
 0x475   : > { %8154 = vmatpush3.msra.mxu0 %v10244_v29 }
 0x476   : > { %8155 = vmatprep.subr.mxu0 %v9805_v28 }
 0x477   : > { %8156 = vmatpush3.msra.mxu0 %v10252_v45 }
 0x478   : > { %8157 = vmatprep.subr.mxu0 %v9805_v28 }
 0x479   : > { %8158 = vmatpush3.msra.mxu0 %v10260_v38 }
 0x47a   : > { %8159 = vmatprep.subr.mxu0 %v9805_v28  ;;  %v8848_v28 = vld [vmem:[#allocation12 + $0x28] sm:$0xff]  }
 0x47b   : > { %8160 = vmatpush3.msra.mxu0 %v10267_v43 }
 0x47c   : > { %8162 = vmatmul.mubr.f32.vlgmr.msra.gmra.mxu0 %v2233_v51  ;;  %7619 = vmatprep.subr.bf16.mxu0 %v8843_v13 }
 0x47d   : > { %7620 = vmatpush3.bf16.msra.mxu0 %v8844_v23 }
 0x47e   : > { %7621 = vmatprep.subr.bf16.mxu0 %v8845_v40 }
 0x481   : > { %7622 = vmatpush3.bf16.msra.mxu0 %v8846_v14  ;;  %v7272_v14 = vld [vmem:[#allocation8 + $0x1] ss:$0 sm:$0xff] }
 0x482   : > { %7623 = vmatprep.subr.bf16.mxu0 %v8847_v42 }
 0x485   : > { %7624 = vmatpush3.bf16.msra.mxu0 %v8848_v28 }
 0x486   : > { %7625 = vmatprep.subr.bf16.mxu0 %v8849_v63  ;;  %v7273_v63 = vld [vmem:[#allocation9 + $0x1] ss:$0 sm:$0xff] }
 0x489   : > { %7626 = vmatpush3.bf16.msra.mxu0 %v8850_v21 }
 0x48a   : > { %7627 = vmatprep.subr.bf16.mxu0 %v8851_v33 }
 0x48d   : > { %7628 = vmatpush3.bf16.msra.mxu0 %v8852_v37 }
 0x48e   : > { %7629 = vmatprep.subr.bf16.mxu0 %v8853_v18 }
 0x491   : > { %7630 = vmatpush3.bf16.msra.mxu0 %v8854_v19 }
 0x492   : > { %7631 = vmatprep.subr.bf16.mxu0 %v8855_v3 }
 0x495   : > { %7632 = vmatpush3.bf16.msra.mxu0 %v8856_v31 }
 0x496   : > { %7633 = vmatprep.subr.bf16.mxu0 %v8857_v35 }
 0x499   : > { %7634 = vmatpush3.bf16.msra.mxu0 %v8858_v9 }
 0x4e4   : > { %v1663_v0 = vpop.f32.mrf.mxu0 }
 0x4e5   : > { %v1674_v54 = vrot.slane %v1663_v0, %v9990_v10 }
 0x4e6   : > { %v8081_v25 = vpop.f32.mrf.mxu0 }
 0x4e7   : > { %v1675_v59 = vcombine.high %v1674_v54, %v1674_v54  ;;  %v1682_v52 = vrot.slane %v1674_v54, %v9990_v10 }
 0x4e9   : > { %v1689_v61 = vrot.slane %v1675_v59, %v9990_v10  ;;  %v1790_v15 = vrot.slane %v1682_v52, %v9641_v11 }
 0x4eb   : > { %v1794_v12 = vrot.slane %v1689_v61, %v9641_v11  ;;  %v1797_v32 = vsub.f32 %v10063_v30, %v1790_v15  ;;  %v1798_v26 = vsub.f32 %v10079_v36, %v1790_v15 }
 0x4ed   : > { %v1800_v1 = vsub.f32 %v10066_v5, %v1794_v12  ;;  %v1799_v13 = vsub.f32 %v10060_v27, %v1794_v12  ;;  %v7275_v5 = vld [vmem:[%s11517_s8 + $0x1] ss:$0 sm:$0xff]  ;;  %v11600_v12 = vpack.c.bf16 %v10015_v55, %v10009_v49  ;;  %v10303_v55 = vld [vmem:[#allocation15] sm:$0xff] }
 0x4fc   : > { %v1760_v60 = vpop.f32.mrf.mxu0 }
 0x4fd   : > { %v1771_v58 = vrot.slane %v1760_v60, %v9990_v10 }
 0x4fe   : > { %v8088_v47 = vpop.f32.mrf.mxu0 }
 0x4ff   : > { %v1772_v4 = vcombine.high %v1771_v58, %v1771_v58  ;;  %v1779_v50 = vrot.slane %v1771_v58, %v9990_v10 }
 0x501   : > { %v1786_v2 = vrot.slane %v1772_v4, %v9990_v10  ;;  %v1804_v20 = vrot.slane %v1779_v50, %v9641_v11 }
 0x503   : > { %v1808_v7 = vrot.slane %v1786_v2, %v9641_v11  ;;  %v1811_v51 = vmul.f32 %v1804_v20, %v1797_v32  ;;  %v1812_v23 = vmul.f32 %v1804_v20, %v1798_v26  ;;  %v11601_v20 = vld [vmem:[#allocation34_spill] sm:$0xff] }
 0x505   : > { %v1814_v40 = vmul.f32 %v1808_v7, %v1800_v1  ;;  %v1813_v42 = vmul.f32 %v1808_v7, %v1799_v13  ;;  %v1823_v28 = vmul.f32 %v7272_v14, %v1811_v51  ;;  %v1824_v33 = vmul.f32 %v7272_v14, %v1812_v23  ;;  %v11602_v7 = vld [vmem:[#allocation33_spill] sm:$0xff] }
 0x506   : > { %v11603_v32 = vpack.c.bf16 %v11601_v20, %v11602_v7  ;;  %v8859_v23 = vld [vmem:[#allocation11 + $0xb8] sm:$0xff]  }
 0x507   : > { %v1826_v21 = vmul.f32 %v7272_v14, %v1814_v40  ;;  %v1825_v18 = vmul.f32 %v7272_v14, %v1813_v42  ;;  %v1835_v19 = vadd.f32 %v7273_v63, %v1823_v28  ;;  %v1836_v31 = vadd.f32 %v7273_v63, %v1824_v33  ;;  %v10295_v40 = vld [vmem:[#allocation15 + $0x8] sm:$0xff] }
 0x508   : > { %v10298_v14 = vld [vmem:[#allocation2 + $0x8] sm:$0xff] }
 0x509   : > { %v1838_v30 = vadd.f32 %v7273_v63, %v1826_v21  ;;  %v1837_v27 = vadd.f32 %v7273_v63, %v1825_v18  ;;  %v1839_v0 = vmax.f32 %v1835_v19, 0.0  ;;  %v1840_v54 = vmax.f32 %v1836_v31, 0.0  ;;  %v8860_v33 = vld [vmem:[#allocation11 + $0xb0] sm:$0xff]   ;;  %v8862_v18 = vld [vmem:[#allocation11 + $0xa0] sm:$0xff]   ;;  %v8863_v19 = vld [vmem:[#allocation11 + $0x98] sm:$0xff]  }
 0x50a   : > { %v8866_v31 = vld [vmem:[#allocation11 + $0x80] sm:$0xff]  }
 0x50b   : > { %v1842_v47 = vmax.f32 %v1838_v30, 0.0  ;;  %v1841_v59 = vmax.f32 %v1837_v27, 0.0  ;;  %v8865_v30 = vld [vmem:[#allocation11 + $0x88] sm:$0xff]   ;;  %v8870_v27 = vld [vmem:[#allocation12 + $0xa0] sm:$0xff]  }
 0x51c   : > { %v8107_v37 = vpop.f32.mrf.mxu0 }
 0x51d   : > { %v1959_v60 = vadd.f32 %v8107_v37, %v7275_v5  ;;  %v8861_v37 = vld [vmem:[#allocation11 + $0xa8] sm:$0xff]  }
 0x51e   : > { %v1950_v3 = vpop.f32.mrf.mxu0 }
 0x51f   : > { %v1951_v35 = vadd.f32 %v7275_v5, %v1950_v3  ;;  %v1967_v50 = vadd.f32 %v1959_v60, %v1841_v59  ;;  %v8864_v3 = vld [vmem:[#allocation11 + $0x90] sm:$0xff]  }
 0x520   : > { %v8108_v36 = vpop.f32.mrf.mxu0 }
 0x521   : > { %v1962_v9 = vadd.f32 %v8108_v36, %v7275_v5  ;;  %v1965_v4 = vadd.f32 %v1951_v35, %v1839_v0  ;;  %v8869_v36 = vld [vmem:[#allocation12 + $0xa8] sm:$0xff]   ;;  %v8871_v35 = vld [vmem:[#allocation12 + $0x98] sm:$0xff]  }
 0x522   : > { %v1953_v25 = vpop.f32.mrf.mxu0  ;;  %v8873_v0 = vld [vmem:[#allocation12 + $0x88] sm:$0xff]  }
 0x523   : > { %v1954_v58 = vadd.f32 %v7275_v5, %v1953_v25  ;;  %v1968_v52 = vadd.f32 %v1962_v9, %v1842_v47  ;;  %v8868_v5 = vld [vmem:[#allocation12 + $0xb0] sm:$0xff]   ;;  %v8875_v25 = vld [vmem:[#allocation3 + $0xf8] sm:$0xff]  }
 0x524   : > { %v8872_v9 = vld [vmem:[#allocation12 + $0x90] sm:$0xff]   ;;  %8218 = vmatprep.subr.bf16.mxu0 %v8875_v25 }
 0x525   : > { %v1966_v61 = vadd.f32 %v1954_v58, %v1840_v54  ;;  %v2692_v15 = vpack.c.bf16 %v1968_v52, %v1967_v50 }
 0x527   : > { %v2689_v2 = vpack.c.bf16 %v1966_v61, %v1965_v4 }
 0x529   : > { %2925 = vmatprep.mubr.bf16.mxu0 %v2689_v2 }
 0x52a   : > { %2926 = vmatmul.mubr.bf16.vlgmr.msra.gmra.mxu0 %v11600_v12 }
 0x52b   : > { %2933 = vmatprep.mubr.bf16.mxu0 %v2692_v15  ;;  %8219 = vmatpush3.bf16.msra.mxu0 %v8875_v25 }
 0x532   : > { %2934 = vmatmul.mubr.bf16.gmra.mxu0 %v11603_v32 }
 0x53c   : > { %v2301_v26 = vpop.f32.mrf.mxu0 }
 0x53d   : > { %v2305_v1 = vmul.f32 0.0078125, %v2301_v26 }
 0x53e   : > { %v8163_v51 = vpop.f32.mrf.mxu0 }
 0x53f   : > { %v2306_v13 = vmul.f32 %v2305_v1, %v2305_v1  ;;  %8169 = vmatmul.mubr.msk.f32.vlgmr.msra.gmra.mxu1 %vm900_vm4, %v2305_v1 }
 0x540   : > { %8172 = vmatpush3.msra.mxu1 %v10295_v40  ;;  %8175 = vmatprep.mubr.msk.f32.mxu1 %vm9372_vm0, %v10298_v14 }
 0x541   : > { %v2308_v49 = vrot.slane %v2306_v13, 6  ;;  %8173 = vmatprep.subr.mxu1 %v10298_v14 }
 0x542   : > { %8174 = vmatpush3.msra.mxu1 %v10303_v55 }
 0x543   : > { %v2310_v42 = vsub.f32 %v2305_v1, %v2308_v49  ;;  %8178 = vmatprep.subr.bf16.mxu1 %v8859_v23 }
 0x545   : > { %v2311_v28 = vadd.f32 1e-05, %v2310_v42 }
 0x547   : > { %8975 = vrsqrt.f32 %v2311_v28 }
 0x554   : > { %v8976_v63 = vpop.eup %8975 }
 0x555   : > { %v2410_v21 = vrot.slane %v8976_v63, 2 }
 0x557   : > { %8176 = vmatmul.mubr.msk.f32.vlgmr.msra.gmra.mxu1 %vm900_vm4, %v2410_v21  ;;  %v7298_v21 = vld [vmem:[#allocation8 + $0x2] ss:$0 sm:$0xff] }
 0x558   : > { %8179 = vmatpush3.bf16.msra.mxu1 %v8859_v23  ;;  %8194 = vmatprep.mubr.bf16.mxu1 %v9832_v39  ;;  %v8867_v39 = vld [vmem:[#allocation12 + $0xb8] sm:$0xff]  }
 0x559   : > { %8180 = vmatprep.subr.bf16.mxu1 %v8860_v33 }
 0x55c   : > { %8181 = vmatpush3.bf16.msra.mxu1 %v8860_v33 }
 0x55d   : > { %8182 = vmatprep.subr.bf16.mxu1 %v8861_v37 }
 0x560   : > { %8183 = vmatpush3.bf16.msra.mxu1 %v8861_v37 }
 0x561   : > { %8184 = vmatprep.subr.bf16.mxu1 %v8862_v18 }
 0x564   : > { %8185 = vmatpush3.bf16.msra.mxu1 %v8862_v18 }
 0x565   : > { %8186 = vmatprep.subr.bf16.mxu1 %v8863_v19 }
 0x568   : > { %8187 = vmatpush3.bf16.msra.mxu1 %v8863_v19 }
 0x569   : > { %8188 = vmatprep.subr.bf16.mxu1 %v8864_v3 }
 0x56c   : > { %8189 = vmatpush3.bf16.msra.mxu1 %v8864_v3  ;;  %v7299_v3 = vld [vmem:[#allocation9 + $0x2] ss:$0 sm:$0xff] }
 0x56d   : > { %8190 = vmatprep.subr.bf16.mxu1 %v8865_v30 }
 0x570   : > { %8191 = vmatpush3.bf16.msra.mxu1 %v8865_v30 }
 0x571   : > { %8192 = vmatprep.subr.bf16.mxu1 %v8866_v31 }
 0x574   : > { %8193 = vmatpush3.bf16.msra.mxu1 %v8866_v31 }
 0x575   : > { %8198 = vmatprep.subr.bf16.mxu1 %v8867_v39 }
 0x577   : > { %8195 = vmatmul.mubr.bf16.vlgmr.msra.gmra.mxu1 %v9898_v22  ;;  %v8874_v22 = vld [vmem:[#allocation12 + $0x80] sm:$0xff]  }
 0x578   : > { %8199 = vmatpush3.bf16.msra.mxu1 %v8867_v39 }
 0x579   : > { %8200 = vmatprep.subr.bf16.mxu1 %v8868_v5 }
 0x57c   : > { %8201 = vmatpush3.bf16.msra.mxu1 %v8868_v5 }
 0x57d   : > { %8202 = vmatprep.subr.bf16.mxu1 %v8869_v36 }
 0x580   : > { %8203 = vmatpush3.bf16.msra.mxu1 %v8869_v36 }
 0x581   : > { %8204 = vmatprep.subr.bf16.mxu1 %v8870_v27 }
 0x584   : > { %8205 = vmatpush3.bf16.msra.mxu1 %v8870_v27 }
 0x585   : > { %8206 = vmatprep.subr.bf16.mxu1 %v8871_v35 }
 0x588   : > { %8207 = vmatpush3.bf16.msra.mxu1 %v8871_v35 }
 0x589   : > { %8208 = vmatprep.subr.bf16.mxu1 %v8872_v9 }
 0x58c   : > { %8209 = vmatpush3.bf16.msra.mxu1 %v8872_v9 }
 0x58d   : > { %8210 = vmatprep.subr.bf16.mxu1 %v8873_v0 }
 0x590   : > { %8211 = vmatpush3.bf16.msra.mxu1 %v8873_v0 }
 0x591   : > { %8212 = vmatprep.subr.bf16.mxu1 %v8874_v22 }
 0x594   : > { %8213 = vmatpush3.bf16.msra.mxu1 %v8874_v22 }
 0x595   : > { %8238 = vmatprep.subr.mxu1 %v10298_v14 }
 0x5ff   : > { %v2382_v60 = vpop.f32.mrf.mxu1 }
 0x600   : > { %v2393_v59 = vrot.slane %v2382_v60, %v9990_v10 }
 0x601   : > { %v8170_v47 = vpop.f32.mrf.mxu1 }
 0x602   : > { %v2394_v52 = vcombine.high %v2393_v59, %v2393_v59  ;;  %v2401_v2 = vrot.slane %v2393_v59, %v9990_v10 }
 0x604   : > { %v2408_v50 = vrot.slane %v2394_v52, %v9990_v10  ;;  %v2509_v7 = vrot.slane %v2401_v2, %v9641_v11  ;;  %v10339_v2 = vld [vmem:[%s11520_s11 + $0x70] sm:$0xff] }
 0x606   : > { %v2513_v20 = vrot.slane %v2408_v50, %v9641_v11  ;;  %v2516_v51 = vsub.f32 %v10143_v56, %v2509_v7  ;;  %v2517_v13 = vsub.f32 %v10145_v57, %v2509_v7  ;;  %v7301_v56 = vld [vmem:[%s11517_s8 + $0x2] ss:$0 sm:$0xff]  ;;  %v10330_v50 = vld [vmem:[%s11520_s11 + $0x78] sm:$0xff] }
 0x607   : > { %v8879_v7 = vld [vmem:[#allocation3 + $0xd8] sm:$0xff]  }
 0x608   : > { %v2519_v1 = vsub.f32 %v10149_v53, %v2513_v20  ;;  %v2518_v23 = vsub.f32 %v10147_v17, %v2513_v20  ;;  %v8878_v20 = vld [vmem:[#allocation3 + $0xe0] sm:$0xff]  }
 0x617   : > { %v2479_v54 = vpop.f32.mrf.mxu1 }
 0x618   : > { %v2490_v4 = vrot.slane %v2479_v54, %v9990_v10 }
 0x619   : > { %v8177_v58 = vpop.f32.mrf.mxu1 }
 0x61a   : > { %v2491_v61 = vcombine.high %v2490_v4, %v2490_v4  ;;  %v2498_v12 = vrot.slane %v2490_v4, %v9990_v10 }
 0x61c   : > { %v2505_v15 = vrot.slane %v2491_v61, %v9990_v10  ;;  %v2523_v26 = vrot.slane %v2498_v12, %v9641_v11  ;;  %v8877_v12 = vld [vmem:[#allocation3 + $0xe8] sm:$0xff]  }
 0x61e   : > { %v2527_v32 = vrot.slane %v2505_v15, %v9641_v11  ;;  %v2530_v42 = vmul.f32 %v2523_v26, %v2516_v51  ;;  %v2531_v28 = vmul.f32 %v2523_v26, %v2517_v13  ;;  %v8876_v15 = vld [vmem:[#allocation3 + $0xf0] sm:$0xff]   ;;  %v8881_v26 = vld [vmem:[#allocation3 + $0xc8] sm:$0xff]   ;;  %v7635_v51 = vpop.f32.mrf.mxu0 }
 0x61f   : > { %8220 = vmatprep.subr.bf16.mxu0 %v8876_v15 }
 0x620   : > { %v2533_v49 = vmul.f32 %v2527_v32, %v2519_v1  ;;  %v2532_v63 = vmul.f32 %v2527_v32, %v2518_v23  ;;  %v2542_v37 = vmul.f32 %v7298_v21, %v2530_v42  ;;  %v2543_v18 = vmul.f32 %v7298_v21, %v2531_v28  ;;  %8221 = vmatpush3.bf16.msra.mxu0 %v8876_v15  ;;  %v8880_v32 = vld [vmem:[#allocation3 + $0xd0] sm:$0xff]   ;;  %v8882_v1 = vld [vmem:[#allocation3 + $0xc0] sm:$0xff]   ;;  %v7636_v13 = vpop.f32.mrf.mxu0 }
 0x621   : > { %8222 = vmatprep.subr.bf16.mxu0 %v8877_v12 }
 0x622   : > { %v2545_v33 = vmul.f32 %v7298_v21, %v2533_v49  ;;  %v2544_v19 = vmul.f32 %v7298_v21, %v2532_v63  ;;  %v2554_v57 = vadd.f32 %v7299_v3, %v2542_v37  ;;  %v2555_v53 = vadd.f32 %v7299_v3, %v2543_v18  ;;  %v7638_v23 = vpop.f32.mrf.mxu0  ;;  %v7310_v18 = vld [vmem:[#allocation14] ss:$0 sm:$0xff] }
 0x623   : > { %v7637_v37 = vadd.f32 %v7636_v13, %v7635_v51 }
 0x624   : > { %v2557_v39 = vadd.f32 %v7299_v3, %v2545_v33  ;;  %v2556_v17 = vadd.f32 %v7299_v3, %v2544_v19  ;;  %v2558_v22 = vmax.f32 %v2554_v57, 0.0  ;;  %v2559_v25 = vmax.f32 %v2555_v53, 0.0  ;;  %8223 = vmatpush3.bf16.msra.mxu0 %v8877_v12  ;;  %v7639_v49 = vpop.f32.mrf.mxu0 }
 0x625   : > { %8224 = vmatprep.subr.bf16.mxu0 %v8878_v20 }
 0x626   : > { %v2561_v9 = vmax.f32 %v2557_v39, 0.0  ;;  %v2560_v47 = vmax.f32 %v2556_v17, 0.0  ;;  %v7641_v42 = vpop.f32.mrf.mxu0 }
 0x628   : > { %8225 = vmatpush3.bf16.msra.mxu0 %v8878_v20  ;;  %v7642_v28 = vpop.f32.mrf.mxu0 }
 0x629   : > { %8226 = vmatprep.subr.bf16.mxu0 %v8879_v7  ;;  %v7643_v21 = vadd.f32 %v7642_v28, %v7641_v42 }
 0x62a   : > { %v7644_v63 = vpop.f32.mrf.mxu0 }
 0x62b   : > { %v2936_v3 = vadd.f32 %v7643_v21, %v7310_v18 }
 0x62c   : > { %8227 = vmatpush3.bf16.msra.mxu0 %v8879_v7  ;;  %v7645_v33 = vpop.f32.mrf.mxu0 }
 0x62d   : > { %8228 = vmatprep.subr.bf16.mxu0 %v8880_v32  ;;  %v7646_v19 = vadd.f32 %v7645_v33, %v7644_v63 }
 0x62f   : > { %v2939_v17 = vadd.f32 %v7646_v19, %v7310_v18 }
 0x630   : > { %8229 = vmatpush3.bf16.msra.mxu0 %v8880_v32 }
 0x631   : > { %8230 = vmatprep.subr.bf16.mxu0 %v8881_v26 }
 0x634   : > { %8231 = vmatpush3.bf16.msra.mxu0 %v8881_v26 }
 0x635   : > { %8232 = vmatprep.subr.bf16.mxu0 %v8882_v1 }
 0x637   : > { %v8196_v30 = vpop.f32.mrf.mxu1 }
 0x638   : > { %v2678_v35 = vadd.f32 %v8196_v30, %v7301_v56  ;;  %8233 = vmatpush3.bf16.msra.mxu0 %v8882_v1 }
 0x639   : > { %v2669_v31 = vpop.f32.mrf.mxu1  ;;  %8273 = vmatprep.subr.mxu0 %v10298_v14 }
 0x63a   : > { %v2670_v36 = vadd.f32 %v7301_v56, %v2669_v31  ;;  %v2686_v4 = vadd.f32 %v2678_v35, %v2560_v47  ;;  %v7640_v31 = vadd.f32 %v7639_v49, %v7638_v23  ;;  %v11604_v47 = vld [vmem:[#allocation29_spill] sm:$0xff] }
 0x63b   : > { %v8197_v5 = vpop.f32.mrf.mxu1 }
 0x63c   : > { %v2681_v27 = vadd.f32 %v8197_v5, %v7301_v56  ;;  %v2684_v58 = vadd.f32 %v2670_v36, %v2558_v22 }
 0x63d   : > { %v2672_v0 = vpop.f32.mrf.mxu1 }
 0x63e   : > { %v2673_v60 = vadd.f32 %v7301_v56, %v2672_v0  ;;  %v2687_v54 = vadd.f32 %v2681_v27, %v2561_v9  ;;  %v2928_v56 = vadd.f32 %v7637_v37, %v7310_v18  ;;  %v2931_v27 = vadd.f32 %v7640_v31, %v7310_v18  ;;  %v7335_v0 = vld [vmem:[%s11510_s1 + $0x18] sm:$0x7f] }
 0x63f   : > { %v3008_v22 = vrot.slane %v7335_v0, %v9641_v11 }
 0x640   : > { %v2685_v59 = vadd.f32 %v2673_v60, %v2559_v25  ;;  %v2693_v61 = vpack.c.bf16 %v2687_v54, %v2686_v4  ;;  %v3016_v54 = vrot.slane %v7335_v0, %v11604_v47 }
 0x642   : > { %v2690_v52 = vpack.c.bf16 %v2685_v59, %v2684_v58  ;;  %v11605_v58 = vld [vmem:[#allocation30_spill] sm:$0xff] }
 0x643   : > { %v3032_v59 = vrot.slane %v7335_v0, %v11605_v58 }
 0x644   : > { %8214 = vmatprep.mubr.bf16.mxu1 %v2690_v52 }
 0x645   : > { %8215 = vmatmul.mubr.bf16.vlgmr.msra.gmra.mxu1 %v2693_v61 }
 0x646   : > { %8239 = vmatpush3.msra.mxu1 %v10330_v50  ;;  %8270 = vmatprep.mubr.msk.f32.mxu1 %vm9372_vm0, %v10298_v14 }
 0x647   : > { %8240 = vmatprep.subr.mxu1 %v10298_v14 }
 0x648   : > { %8241 = vmatpush3.msra.mxu1 %v10339_v2 }
 0x649   : > { %8242 = vmatprep.subr.mxu1 %v10298_v14 }
 0x64a   : > { %8243 = vmatpush3.msra.mxu1 %v10174_v44 }
 0x64b   : > { %8244 = vmatprep.subr.mxu1 %v10298_v14 }
 0x64c   : > { %8245 = vmatpush3.msra.mxu1 %v10181_v48 }
 0x64d   : > { %8246 = vmatprep.subr.mxu1 %v10298_v14 }
 0x64e   : > { %8247 = vmatpush3.msra.mxu1 %v10188_v34 }
 0x64f   : > { %8248 = vmatprep.subr.mxu1 %v10298_v14 }
 0x650   : > { %8249 = vmatpush3.msra.mxu1 %v10195_v46 }
 0x651   : > { %8250 = vmatprep.subr.mxu1 %v10298_v14 }
 0x652   : > { %8251 = vmatpush3.msra.mxu1 %v10202_v24 }
 0x653   : > { %8252 = vmatprep.subr.mxu1 %v10298_v14 }
 0x654   : > { %8253 = vmatpush3.msra.mxu1 %v10209_v6 }
 0x655   : > { %8254 = vmatprep.subr.mxu1 %v10298_v14 }
 0x656   : > { %8255 = vmatpush3.msra.mxu1 %v10216_v62 }
 0x657   : > { %8256 = vmatprep.subr.mxu1 %v10298_v14 }
 0x658   : > { %8257 = vmatpush3.msra.mxu1 %v10223_v8 }
 0x659   : > { %8258 = vmatprep.subr.mxu1 %v10298_v14 }
 0x65a   : > { %8259 = vmatpush3.msra.mxu1 %v10230_v41 }
 0x65b   : > { %8260 = vmatprep.subr.mxu1 %v10298_v14 }
 0x65c   : > { %8261 = vmatpush3.msra.mxu1 %v10237_v16 }
 0x65d   : > { %8262 = vmatprep.subr.mxu1 %v10298_v14 }
 0x65e   : > { %8263 = vmatpush3.msra.mxu1 %v10244_v29 }
 0x65f   : > { %8264 = vmatprep.subr.mxu1 %v10298_v14 }
 0x660   : > { %8265 = vmatpush3.msra.mxu1 %v10252_v45 }
 0x661   : > { %8266 = vmatprep.subr.mxu1 %v10298_v14 }
 0x662   : > { %8267 = vmatpush3.msra.mxu1 %v10260_v38 }
 0x663   : > { %8268 = vmatprep.subr.mxu1 %v10298_v14 }
 0x664   : > { %8269 = vmatpush3.msra.mxu1 %v10267_v43 }
 0x665   : > { %8307 = vmatprep.subr.mxu1 %v10298_v14 }
 0x705   : > { %v8216_v30 = vpop.f32.mrf.mxu1 }
 0x706   : > { %v10372_v39 = vadd.f32 %v8216_v30, %v2936_v3 }
 0x707   : > { %v2976_v57 = vpop.f32.mrf.mxu1 }
 0x708   : > { %2993 = vst [vmem:[#allocation2 + $0x40] sm:$0xff] %v10372_v39  ;;  %v10375_v53 = vadd.f32 %v2976_v57, %v2928_v56  ;;  %v3019_v49 = vmul.f32 %v3016_v54, %v10372_v39  ;;  %v7337_v57 = vld [vmem:[%s11511_s2 + $0x3] ss:$0 sm:$0xff] }
 0x709   : > { %v8217_v5 = vpop.f32.mrf.mxu1 }
 0x70a   : > { %2991 = vst [vmem:[#allocation2 + $0x10] sm:$0xff] %v10375_v53  ;;  %v10378_v36 = vadd.f32 %v8217_v5, %v2939_v17  ;;  %v3017_v52 = vmul.f32 %v3016_v54, %v10375_v53 }
 0x70b   : > { %v2979_v35 = vpop.f32.mrf.mxu1 }
 0x70c   : > { %2994 = vst [vmem:[#allocation2 + $0x48] sm:$0xff] %v10378_v36  ;;  %v10381_v9 = vadd.f32 %v2979_v35, %v2931_v27  ;;  %v3020_v32 = vmul.f32 %v3016_v54, %v10378_v36 }
 0x70e   : > { %2992 = vst [vmem:[#allocation2 + $0x18] sm:$0xff] %v10381_v9  ;;  %v3018_v1 = vmul.f32 %v3016_v54, %v10381_v9 }
 0x70f   : > { %v10388_v25 = vld [vmem:[#allocation2 + $0x3e] sm:$0xff] }
 0x710   : > { %v3011_v15 = vmul.f32 %v3008_v22, %v10388_v25 }
 0x711   : > { %v10390_v60 = vld [vmem:[#allocation2 + $0xe] sm:$0xff] }
 0x712   : > { %v3009_v4 = vmul.f32 %v3008_v22, %v10390_v60  ;;  %v3023_v37 = vadd.f32 %v3019_v49, %v3011_v15 }
 0x713   : > { %v10396_v61 = vld [vmem:[#allocation2 + $0x46] sm:$0xff] }
 0x714   : > { %v10399_v12 = vld [vmem:[#allocation2 + $0x42] sm:$0xff]  ;;  %v10401_v20 = vld [vmem:[#allocation2 + $0x4a] sm:$0xff]  ;;  %v3012_v7 = vmul.f32 %v3008_v22, %v10396_v61  ;;  %v3021_v51 = vadd.f32 %v3017_v52, %v3009_v4 }
 0x715   : > { %v10405_v26 = vld [vmem:[#allocation2 + $0x16] sm:$0xff]  ;;  %v3035_v42 = vmul.f32 %v3032_v59, %v10399_v12  ;;  %v3036_v33 = vmul.f32 %v3032_v59, %v10401_v20 }
 0x716   : > { %v10408_v13 = vld [vmem:[#allocation2 + $0x12] sm:$0xff]  ;;  %v10410_v23 = vld [vmem:[#allocation2 + $0x1a] sm:$0xff]  ;;  %v3010_v28 = vmul.f32 %v3008_v22, %v10405_v26  ;;  %v3024_v21 = vadd.f32 %v3020_v32, %v3012_v7 }
 0x717   : > { %v3033_v63 = vmul.f32 %v3032_v59, %v10408_v13  ;;  %v3034_v19 = vmul.f32 %v3032_v59, %v10410_v23  ;;  %v3039_v31 = vadd.f32 %v3035_v42, %v3023_v37  ;;  %v7338_v59 = vld [vmem:[#allocation6 + $0x3] ss:$0 sm:$0xff] }
 0x718   : > { %v3022_v18 = vadd.f32 %v3018_v1, %v3010_v28  ;;  %v3040_v30 = vadd.f32 %v3036_v33, %v3024_v21 }
 0x719   : > { %v3037_v3 = vadd.f32 %v3033_v63, %v3021_v51  ;;  %v3051_v35 = vadd.f32 %v7337_v57, %v3039_v31 }
 0x71a   : > { %v3038_v56 = vadd.f32 %v3034_v19, %v3022_v18  ;;  %v3052_v17 = vadd.f32 %v7337_v57, %v3040_v30 }
 0x71b   : > { %v3049_v5 = vadd.f32 %v7337_v57, %v3037_v3 }
 0x71c   : > { %v3050_v27 = vadd.f32 %v7337_v57, %v3038_v56  ;;  %v3054_v22 = vpack.c.bf16 %v3052_v17, %v3051_v35 }
 0x71e   : > { %v3053_v0 = vpack.c.bf16 %v3050_v27, %v3049_v5 }
 0x720   : > { %8234 = vmatprep.mubr.bf16.mxu0 %v3053_v0 }
 0x721   : > { %8235 = vmatmul.mubr.bf16.vlgmr.msra.gmra.mxu0 %v3054_v22 }
 0x722   : > { %8274 = vmatpush3.msra.mxu0 %v10295_v40  ;;  %8277 = vmatprep.mubr.msk.f32.mxu0 %vm9372_vm0, %v10298_v14 }
 0x723   : > { %8275 = vmatprep.subr.mxu0 %v10298_v14 }
 0x724   : > { %8276 = vmatpush3.msra.mxu0 %v10303_v55 }
 0x725   : > { %8280 = vmatprep.subr.mxu0 %v10298_v14 }
 0x7e1   : > { %v8236_v54 = vpop.f32.mrf.mxu0 }
 0x7e2   : > { %v10427_v52 = vadd.f32 %v8236_v54, %v7338_v59 }
 0x7e3   : > { %v3162_v4 = vpop.f32.mrf.mxu0 }
 0x7e4   : > { %11606 = vst [vmem:[#allocation34_spill] sm:$0xff] %v10427_v52  ;;  %v10429_v15 = vadd.f32 %v7338_v59, %v3162_v4  ;;  %v3179_v51 = vmul.f32 %v10427_v52, %v10427_v52 }
 0x7e5   : > { %v8237_v7 = vpop.f32.mrf.mxu0 }
 0x7e6   : > { %v10431_v32 = vadd.f32 %v8237_v7, %v7338_v59  ;;  %v3177_v63 = vmul.f32 %v10429_v15, %v10429_v15 }
 0x7e7   : > { %v3165_v1 = vpop.f32.mrf.mxu0 }
 0x7e8   : > { %11607 = vst [vmem:[#allocation33_spill] sm:$0xff] %v10431_v32  ;;  %v3180_v49 = vmul.f32 %v10431_v32, %v10431_v32  ;;  %v3188_v42 = vadd.f32 %v10431_v32, %v10427_v52  ;;  %v10439_v28 = vadd.f32 %v7338_v59, %v3165_v1 }
 0x7ea   : > { %v3189_v21 = vrot.slane %v3188_v42, 4  ;;  %v3202_v33 = vadd.f32 %v3180_v49, %v3179_v51  ;;  %v3178_v37 = vmul.f32 %v10439_v28, %v10439_v28  ;;  %v3181_v18 = vadd.f32 %v10439_v28, %v10429_v15 }
 0x7ec   : > { %v3190_v19 = vadd.f32 %v3189_v21, %v3188_v42  ;;  %v3203_v3 = vrot.slane %v3202_v33, 4  ;;  %v3182_v30 = vrot.slane %v3181_v18, 4  ;;  %v3195_v31 = vadd.f32 %v3178_v37, %v3177_v63 }
 0x7ee   : > { %v3191_v56 = vrot.slane %v3190_v19, 2  ;;  %v3204_v57 = vadd.f32 %v3203_v3, %v3202_v33  ;;  %v3183_v17 = vadd.f32 %v3182_v30, %v3181_v18  ;;  %v3196_v5 = vrot.slane %v3195_v31, 4 }
 0x7f0   : > { %v3192_v27 = vadd.f32 %v3191_v56, %v3190_v19  ;;  %v3205_v35 = vrot.slane %v3204_v57, 2  ;;  %v3184_v0 = vrot.slane %v3183_v17, 2  ;;  %v3197_v22 = vadd.f32 %v3196_v5, %v3195_v31  ;;  %v11608_v5 = vld [vmem:[#allocation31_spill] sm:$0xff] }
 0x7f2   : > { %v3193_v54 = vrot.slane %v3192_v27, 1  ;;  %v3185_v59 = vadd.f32 %v3184_v0, %v3183_v17  ;;  %v3198_v4 = vrot.slane %v3197_v22, 2  ;;  %v3206_v7 = vadd.f32 %v3205_v35, %v3204_v57 }
 0x7f4   : > { %v3186_v1 = vrot.slane %v3185_v59, 1  ;;  %v3199_v51 = vadd.f32 %v3198_v4, %v3197_v22  ;;  %v3207_v49 = vrot.slane %v3206_v7, 1  ;;  %v3194_v32 = vadd.f32 %v3193_v54, %v3192_v27  ;;  %v10509_v54 = vld [vmem:[#allocation2 + $0x1c] sm:$0xff]  ;;  %v11609_v4 = vld [vmem:[#allocation32_spill] sm:$0xff] }
 0x7f6   : > { %v3187_v42 = vadd.f32 %v3186_v1, %v3185_v59  ;;  %v3200_v21 = vrot.slane %v3199_v51, 1  ;;  %v3208_v33 = vadd.f32 %v3207_v49, %v3206_v7 }
 0x7f8   : > { %v3201_v52 = vadd.f32 %v3200_v21, %v3199_v51  ;;  %v3213_v63 = vsel %vm815_vm1, %v3194_v32, %v3187_v42 }
 0x7fa   : > { %v3214_v37 = vsel %vm817_vm2, %v3201_v52, %v3213_v63  ;;  %v7353_v63 = vld [vmem:[%s11511_s2 + $0x4] ss:$0 sm:$0xff] }
 0x7fb   : > { %v3215_v18 = vsel %vm819_vm3, %v3208_v33, %v3214_v37 }
 0x7fc   : > { %8271 = vmatmul.mubr.f32.vlgmr.msra.gmra.mxu1 %v3215_v18 }
 0x7fd   : > { %8308 = vmatpush3.msra.mxu1 %v10330_v50  ;;  %8339 = vmatprep.mubr.msk.f32.mxu1 %vm9372_vm0, %v10298_v14 }
 0x7fe   : > { %8309 = vmatprep.subr.mxu1 %v10298_v14 }
 0x7ff   : > { %8310 = vmatpush3.msra.mxu1 %v10339_v2 }
 0x800   : > { %8311 = vmatprep.subr.mxu1 %v10298_v14 }
 0x801   : > { %8312 = vmatpush3.msra.mxu1 %v10174_v44  ;;  %v7351_v44 = vld [vmem:[%s11510_s1 + $0x20] sm:$0x7f] }
 0x802   : > { %8313 = vmatprep.subr.mxu1 %v10298_v14  ;;  %v3577_v19 = vrot.slane %v7351_v44, %v11605_v58  ;;  %v3589_v27 = vrot.slane %v7351_v44, %v11608_v5  ;;  %v3603_v7 = vrot.slane %v7351_v44, %v11609_v4 }
 0x803   : > { %8314 = vmatpush3.msra.mxu1 %v10181_v48  ;;  %v10487_v48 = vld [vmem:[#allocation2 + $0x14] sm:$0xff] }
 0x804   : > { %8315 = vmatprep.subr.mxu1 %v10298_v14  ;;  %v3579_v31 = vmul.f32 %v3577_v19, %v10381_v9  ;;  %v3578_v57 = vmul.f32 %v3577_v19, %v10375_v53  ;;  %v3590_v0 = vmul.f32 %v3589_v27, %v10408_v13  ;;  %v3591_v22 = vmul.f32 %v3589_v27, %v10410_v23 }
 0x805   : > { %8316 = vmatpush3.msra.mxu1 %v10188_v34  ;;  %v3605_v51 = vmul.f32 %v3603_v7, %v10509_v54  ;;  %v3604_v49 = vmul.f32 %v3603_v7, %v10487_v48 }
 0x806   : > { %8317 = vmatprep.subr.mxu1 %v10298_v14 }
 0x807   : > { %8318 = vmatpush3.msra.mxu1 %v10195_v46  ;;  %v3557_v46 = vrot.slane %v7351_v44, %v9641_v11 }
 0x808   : > { %8319 = vmatprep.subr.mxu1 %v10298_v14 }
 0x809   : > { %8320 = vmatpush3.msra.mxu1 %v10202_v24  ;;  %v3565_v24 = vrot.slane %v7351_v44, %v11604_v47  ;;  %v8885_v44 = vld [vmem:[#allocation3 + $0x128] sm:$0xff]  }
 0x80a   : > { %8321 = vmatprep.subr.mxu1 %v10298_v14 }
 0x80b   : > { %8322 = vmatpush3.msra.mxu1 %v10209_v6 }
 0x80c   : > { %8323 = vmatprep.subr.mxu1 %v10298_v14 }
 0x80d   : > { %8324 = vmatpush3.msra.mxu1 %v10216_v62  ;;  %v10491_v62 = vld [vmem:[#allocation2 + $0xc] sm:$0xff] }
 0x80e   : > { %8325 = vmatprep.subr.mxu1 %v10298_v14 }
 0x80f   : > { %8326 = vmatpush3.msra.mxu1 %v10223_v8 }
 0x810   : > { %8327 = vmatprep.subr.mxu1 %v10298_v14 }
 0x811   : > { %8328 = vmatpush3.msra.mxu1 %v10230_v41  ;;  %v3559_v41 = vmul.f32 %v3557_v46, %v10487_v48 }
 0x812   : > { %8329 = vmatprep.subr.mxu1 %v10298_v14 }
 0x813   : > { %8330 = vmatpush3.msra.mxu1 %v10237_v16  ;;  %v3567_v16 = vmul.f32 %v3565_v24, %v10405_v26 }
 0x814   : > { %8331 = vmatprep.subr.mxu1 %v10298_v14 }
 0x815   : > { %8332 = vmatpush3.msra.mxu1 %v10244_v29  ;;  %v3571_v32 = vadd.f32 %v3567_v16, %v3559_v41  ;;  %v10518_v41 = vld [vmem:[#allocation2 + $0x44] sm:$0xff]  ;;  %v10520_v16 = vld [vmem:[#allocation2 + $0x3c] sm:$0xff] }
 0x816   : > { %8333 = vmatprep.subr.mxu1 %v10298_v14 }
 0x817   : > { %8334 = vmatpush3.msra.mxu1 %v10252_v45  ;;  %v8883_v45 = vld [vmem:[#allocation3 + $0x138] sm:$0xff]   ;;  %v3583_v17 = vadd.f32 %v3579_v31, %v3571_v32  ;;  %v3568_v32 = vmul.f32 %v3565_v24, %v10388_v25  ;;  %v3581_v31 = vmul.f32 %v3577_v19, %v10378_v36 }
 0x818   : > { %8335 = vmatprep.subr.mxu1 %v10298_v14 }
 0x819   : > { %8336 = vmatpush3.msra.mxu1 %v10260_v38  ;;  %v3558_v38 = vmul.f32 %v3557_v46, %v10491_v62  ;;  %v3595_v59 = vadd.f32 %v3591_v22, %v3583_v17  ;;  %v8889_v22 = vld [vmem:[#allocation3 + $0x108] sm:$0xff]  }
 0x81a   : > { %8337 = vmatprep.subr.mxu1 %v10298_v14 }
 0x81b   : > { %8338 = vmatpush3.msra.mxu1 %v10267_v43  ;;  %v3566_v43 = vmul.f32 %v3565_v24, %v10390_v60  ;;  %v3609_v42 = vadd.f32 %v3605_v51, %v3595_v59 }
 0x81c   : > { %8376 = vmatprep.subr.mxu1 %v10298_v14 }
 0x81d   : > { %v3570_v30 = vadd.f32 %v3566_v43, %v3558_v38  ;;  %v3621_v33 = vadd.f32 %v7353_v63, %v3609_v42  ;;  %v3561_v38 = vmul.f32 %v3557_v46, %v10518_v41  ;;  %v3569_v43 = vmul.f32 %v3565_v24, %v10396_v61  ;;  %v10530_v24 = vld [vmem:[#allocation2 + $0x4c] sm:$0xff] }
 0x81e   : > { %v3607_v51 = vmul.f32 %v3603_v7, %v10530_v24 }
 0x81f   : > { %v3582_v35 = vadd.f32 %v3578_v57, %v3570_v30  ;;  %v3580_v57 = vmul.f32 %v3577_v19, %v10372_v39  ;;  %v3606_v19 = vmul.f32 %v3603_v7, %v10518_v41 }
 0x821   : > { %v3594_v1 = vadd.f32 %v3590_v0, %v3582_v35  ;;  %v3592_v0 = vmul.f32 %v3589_v27, %v10399_v12 }
 0x823   : > { %v3608_v21 = vadd.f32 %v3604_v49, %v3594_v1  ;;  %v8890_v49 = vld [vmem:[#allocation3 + $0x100] sm:$0xff]  }
 0x825   : > { %v3620_v18 = vadd.f32 %v7353_v63, %v3608_v21 }
 0x8bc   : > { %v3283_v34 = vpop.f32.mrf.mxu1 }
 0x8bd   : > { %v3287_v6 = vmul.f32 0.0078125, %v3283_v34 }
 0x8be   : > { %v8272_v8 = vpop.f32.mrf.mxu1 }
 0x8bf   : > { %v3288_v29 = vmul.f32 %v3287_v6, %v3287_v6  ;;  %8278 = vmatmul.mubr.msk.f32.vlgmr.msra.gmra.mxu0 %vm900_vm4, %v3287_v6  ;;  %v3624_v8 = vpack.c.bf16 %v3621_v33, %v3620_v18 }
 0x8c0   : > { %8281 = vmatpush3.msra.mxu0 %v10295_v40  ;;  %8284 = vmatprep.mubr.msk.f32.mxu0 %vm9372_vm0, %v10298_v14 }
 0x8c1   : > { %v3290_v52 = vrot.slane %v3288_v29, 6  ;;  %8282 = vmatprep.subr.mxu0 %v10298_v14  ;;  %v8886_v29 = vld [vmem:[#allocation3 + $0x120] sm:$0xff]  }
 0x8c2   : > { %8283 = vmatpush3.msra.mxu0 %v10303_v55 }
 0x8c3   : > { %v3292_v3 = vsub.f32 %v3287_v6, %v3290_v52  ;;  %8287 = vmatprep.subr.bf16.mxu0 %v8883_v45  ;;  %v8884_v6 = vld [vmem:[#allocation3 + $0x130] sm:$0xff]   ;;  %v3560_v52 = vmul.f32 %v3557_v46, %v10520_v16  ;;  %v3593_v46 = vmul.f32 %v3589_v27, %v10401_v20 }
 0x8c5   : > { %v3293_v56 = vadd.f32 1e-05, %v3292_v3  ;;  %v3573_v3 = vadd.f32 %v3569_v43, %v3561_v38  ;;  %v3572_v30 = vadd.f32 %v3568_v32, %v3560_v52 }
 0x8c7   : > { %8977 = vrsqrt.f32 %v3293_v56  ;;  %v8888_v56 = vld [vmem:[#allocation3 + $0x110] sm:$0xff]   ;;  %v3585_v17 = vadd.f32 %v3581_v31, %v3573_v3  ;;  %v3584_v35 = vadd.f32 %v3580_v57, %v3572_v30  ;;  %v11610_v30 = vld [vmem:[#allocation34_spill] sm:$0xff] }
 0x8c8   : > { %v11611_v57 = vld [vmem:[#allocation33_spill] sm:$0xff] }
 0x8c9   : > { %v3597_v59 = vadd.f32 %v3593_v46, %v3585_v17  ;;  %v3596_v1 = vadd.f32 %v3592_v0, %v3584_v35 }
 0x8cb   : > { %v3611_v42 = vadd.f32 %v3607_v51, %v3597_v59  ;;  %v3610_v21 = vadd.f32 %v3606_v19, %v3596_v1 }
 0x8cd   : > { %v3623_v33 = vadd.f32 %v7353_v63, %v3611_v42  ;;  %v3622_v27 = vadd.f32 %v7353_v63, %v3610_v21 }
 0x8d4   : > { %v8978_v37 = vpop.eup %8977 }
 0x8d5   : > { %v3392_v34 = vrot.slane %v8978_v37, 2  ;;  %v3625_v37 = vpack.c.bf16 %v3623_v33, %v3622_v27 }
 0x8d7   : > { %8285 = vmatmul.mubr.msk.f32.vlgmr.msra.gmra.mxu0 %vm900_vm4, %v3392_v34 }
 0x8d8   : > { %8288 = vmatpush3.bf16.msra.mxu0 %v8883_v45  ;;  %8303 = vmatprep.mubr.bf16.mxu0 %v3624_v8  ;;  %v8887_v45 = vld [vmem:[#allocation3 + $0x118] sm:$0xff]  }
 0x8d9   : > { %8289 = vmatprep.subr.bf16.mxu0 %v8884_v6 }
 0x8dc   : > { %8290 = vmatpush3.bf16.msra.mxu0 %v8884_v6 }
 0x8dd   : > { %8291 = vmatprep.subr.bf16.mxu0 %v8885_v44 }
 0x8e0   : > { %8292 = vmatpush3.bf16.msra.mxu0 %v8885_v44 }
 0x8e1   : > { %8293 = vmatprep.subr.bf16.mxu0 %v8886_v29 }
 0x8e4   : > { %8294 = vmatpush3.bf16.msra.mxu0 %v8886_v29 }
 0x8e5   : > { %8295 = vmatprep.subr.bf16.mxu0 %v8887_v45 }
 0x8e8   : > { %8296 = vmatpush3.bf16.msra.mxu0 %v8887_v45 }
 0x8e9   : > { %8297 = vmatprep.subr.bf16.mxu0 %v8888_v56 }
 0x8ec   : > { %8298 = vmatpush3.bf16.msra.mxu0 %v8888_v56  ;;  %v7349_v56 = vld [vmem:[#allocation8 + $0x3] ss:$0 sm:$0xff] }
 0x8ed   : > { %8299 = vmatprep.subr.bf16.mxu0 %v8889_v22 }
 0x8f0   : > { %8300 = vmatpush3.bf16.msra.mxu0 %v8889_v22  ;;  %v7350_v22 = vld [vmem:[#allocation9 + $0x3] ss:$0 sm:$0xff] }
 0x8f1   : > { %8301 = vmatprep.subr.bf16.mxu0 %v8890_v49 }
 0x8f4   : > { %8302 = vmatpush3.bf16.msra.mxu0 %v8890_v49 }
 0x8f5   : > { %8342 = vmatprep.subr.mxu0 %v10298_v14 }
 0x8f7   : > { %8304 = vmatmul.mubr.bf16.vlgmr.msra.gmra.mxu0 %v3625_v37 }
 0x8f8   : > { %8343 = vmatpush3.msra.mxu0 %v10295_v40  ;;  %8346 = vmatprep.mubr.msk.f32.mxu0 %vm9372_vm0, %v10298_v14 }
 0x8f9   : > { %8344 = vmatprep.subr.mxu0 %v10298_v14 }
 0x8fa   : > { %8345 = vmatpush3.msra.mxu0 %v10303_v55 }
 0x8fb   : > { %8349 = vmatprep.subr.mxu0 %v10298_v14 }
 0x97f   : > { %v3364_v7 = vpop.f32.mrf.mxu0 }
 0x980   : > { %v3375_v63 = vrot.slane %v3364_v7, %v9990_v10 }
 0x981   : > { %v8279_v18 = vpop.f32.mrf.mxu0 }
 0x982   : > { %v3376_v34 = vcombine.high %v3375_v63, %v3375_v63  ;;  %v3383_v6 = vrot.slane %v3375_v63, %v9990_v10 }
 0x984   : > { %v3390_v8 = vrot.slane %v3376_v34, %v9990_v10  ;;  %v3491_v40 = vrot.slane %v3383_v6, %v9641_v11 }
 0x986   : > { %v3495_v38 = vrot.slane %v3390_v8, %v9641_v11  ;;  %v3498_v52 = vsub.f32 %v10429_v15, %v3491_v40  ;;  %v3499_v32 = vsub.f32 %v10439_v28, %v3491_v40 }
 0x988   : > { %v3500_v31 = vsub.f32 %v11610_v30, %v3495_v38  ;;  %v3501_v17 = vsub.f32 %v11611_v57, %v3495_v38  ;;  %v7354_v38 = vld [vmem:[#allocation6 + $0x4] ss:$0 sm:$0xff] }
 0x997   : > { %v3461_v44 = vpop.f32.mrf.mxu0 }
 0x998   : > { %v3472_v29 = vrot.slane %v3461_v44, %v9990_v10 }
 0x999   : > { %v8286_v43 = vpop.f32.mrf.mxu0 }
 0x99a   : > { %v3473_v55 = vcombine.high %v3472_v29, %v3472_v29  ;;  %v3480_v14 = vrot.slane %v3472_v29, %v9990_v10 }
 0x99c   : > { %v3487_v45 = vrot.slane %v3473_v55, %v9990_v10  ;;  %v3505_v3 = vrot.slane %v3480_v14, %v9641_v11 }
 0x99e   : > { %v3509_v35 = vrot.slane %v3487_v45, %v9641_v11  ;;  %v3512_v0 = vmul.f32 %v3505_v3, %v3498_v52  ;;  %v3513_v46 = vmul.f32 %v3505_v3, %v3499_v32 }
 0x9a0   : > { %v3514_v59 = vmul.f32 %v3509_v35, %v3500_v31  ;;  %v3515_v1 = vmul.f32 %v3509_v35, %v3501_v17  ;;  %v3524_v51 = vmul.f32 %v7349_v56, %v3512_v0  ;;  %v3525_v15 = vmul.f32 %v7349_v56, %v3513_v46 }
 0x9a2   : > { %v3536_v49 = vadd.f32 %v7350_v22, %v3524_v51  ;;  %v3537_v28 = vadd.f32 %v7350_v22, %v3525_v15  ;;  %v3526_v19 = vmul.f32 %v7349_v56, %v3514_v59  ;;  %v3527_v42 = vmul.f32 %v7349_v56, %v3515_v1 }
 0x9a4   : > { %v3540_v21 = vmax.f32 %v3536_v49, 0.0  ;;  %v3541_v33 = vmax.f32 %v3537_v28, 0.0  ;;  %v3538_v27 = vadd.f32 %v7350_v22, %v3526_v19  ;;  %v3539_v37 = vadd.f32 %v7350_v22, %v3527_v42 }
 0x9a6   : > { %v10556_v7 = vadd.f32 %v3540_v21, %v10375_v53  ;;  %v10559_v18 = vadd.f32 %v3541_v33, %v10381_v9  ;;  %v3542_v63 = vmax.f32 %v3538_v27, 0.0  ;;  %v3543_v34 = vmax.f32 %v3539_v37, 0.0 }
 0x9a8   : > { %v10564_v8 = vadd.f32 %v3542_v63, %v10372_v39  ;;  %v10567_v44 = vadd.f32 %v3543_v34, %v10378_v36 }
 0x9b7   : > { %v8305_v29 = vpop.f32.mrf.mxu0 }
 0x9b8   : > { %v10571_v55 = vadd.f32 %v8305_v29, %v7354_v38 }
 0x9b9   : > { %v3733_v43 = vpop.f32.mrf.mxu0 }
 0x9ba   : > { %v10573_v14 = vadd.f32 %v7354_v38, %v3733_v43  ;;  %v3750_v3 = vmul.f32 %v10571_v55, %v10571_v55 }
 0x9bb   : > { %v8306_v52 = vpop.f32.mrf.mxu0 }
 0x9bc   : > { %v10575_v32 = vadd.f32 %v8306_v52, %v7354_v38  ;;  %v3748_v57 = vmul.f32 %v10573_v14, %v10573_v14 }
 0x9bd   : > { %v3736_v45 = vpop.f32.mrf.mxu0 }
 0x9be   : > { %v3751_v30 = vmul.f32 %v10575_v32, %v10575_v32  ;;  %v3759_v31 = vadd.f32 %v10575_v32, %v10571_v55  ;;  %v10583_v56 = vadd.f32 %v7354_v38, %v3736_v45 }
 0x9c0   : > { %v3760_v17 = vrot.slane %v3759_v31, 4  ;;  %v3773_v35 = vadd.f32 %v3751_v30, %v3750_v3  ;;  %v3749_v0 = vmul.f32 %v10583_v56, %v10583_v56  ;;  %v3752_v46 = vadd.f32 %v10583_v56, %v10573_v14 }
 0x9c2   : > { %v3761_v22 = vadd.f32 %v3760_v17, %v3759_v31  ;;  %v3774_v59 = vrot.slane %v3773_v35, 4  ;;  %v3753_v1 = vrot.slane %v3752_v46, 4  ;;  %v3766_v51 = vadd.f32 %v3749_v0, %v3748_v57 }
 0x9c4   : > { %v3762_v15 = vrot.slane %v3761_v22, 2  ;;  %v3775_v49 = vadd.f32 %v3774_v59, %v3773_v35  ;;  %v3754_v28 = vadd.f32 %v3753_v1, %v3752_v46  ;;  %v3767_v19 = vrot.slane %v3766_v51, 4  ;;  %v10595_v46 = vld [vmem:[#allocation2 + $0x8] sm:$0xff]  ;;  %v10626_v59 = vld [vmem:[%s11520_s11 + $0x50] sm:$0xff] }
 0x9c5   : > { %v10633_v1 = vld [vmem:[%s11520_s11 + $0x48] sm:$0xff] }
 0x9c6   : > { %v3763_v42 = vadd.f32 %v3762_v15, %v3761_v22  ;;  %v3776_v21 = vrot.slane %v3775_v49, 2  ;;  %v3755_v33 = vrot.slane %v3754_v28, 2  ;;  %v3768_v27 = vadd.f32 %v3767_v19, %v3766_v51  ;;  %v10605_v22 = vld [vmem:[%s11520_s11 + $0x68] sm:$0xff]  ;;  %v10640_v51 = vld [vmem:[%s11520_s11 + $0x40] sm:$0xff]  ;;  %v10647_v15 = vld [vmem:[%s11520_s11 + $0x38] sm:$0xff] }
 0x9c7   : > { %v10668_v19 = vld [vmem:[%s11520_s11 + $0x20] sm:$0xff] }
 0x9c8   : > { %v3764_v37 = vrot.slane %v3763_v42, 1  ;;  %v3756_v63 = vadd.f32 %v3755_v33, %v3754_v28  ;;  %v3769_v34 = vrot.slane %v3768_v27, 2  ;;  %v3777_v29 = vadd.f32 %v3776_v21, %v3775_v49  ;;  %v10654_v49 = vld [vmem:[%s11520_s11 + $0x30] sm:$0xff]  ;;  %v10661_v28 = vld [vmem:[%s11520_s11 + $0x28] sm:$0xff]  ;;  %11612 = vst [vmem:[#allocation34_spill] sm:$0xff] %v10668_v19 }
 0x9c9   : > { %v10682_v21 = vld [vmem:[%s11520_s11 + $0x10] sm:$0xff]  ;;  %v10689_v33 = vld [vmem:[%s11520_s11 + $0x8] sm:$0xff] }
 0x9ca   : > { %v3757_v38 = vrot.slane %v3756_v63, 1  ;;  %v3770_v43 = vadd.f32 %v3769_v34, %v3768_v27  ;;  %v3778_v52 = vrot.slane %v3777_v29, 1  ;;  %v3765_v45 = vadd.f32 %v3764_v37, %v3763_v42  ;;  %v10675_v42 = vld [vmem:[%s11520_s11 + $0x18] sm:$0xff]  ;;  %11614 = vst [vmem:[#allocation37_spill] sm:$0xff] %v10682_v21  ;;  %11615 = vst [vmem:[#allocation38_spill] sm:$0xff] %v10689_v33  ;;  %v10696_v27 = vld [vmem:[%s11520_s11] sm:$0xff] }
 0x9cb   : > { %11613 = vst [vmem:[#allocation33_spill] sm:$0xff] %v10675_v42  ;;  %11616 = vst [vmem:[#allocation39_spill] sm:$0xff] %v10696_v27  ;;  %v7367_v37 = vld [vmem:[%s11510_s1 + $0x28] sm:$0x7f] }
 0x9cc   : > { %v3758_v3 = vadd.f32 %v3757_v38, %v3756_v63  ;;  %v3771_v30 = vrot.slane %v3770_v43, 1  ;;  %v3779_v17 = vadd.f32 %v3778_v52, %v3777_v29  ;;  %v10704_v63 = vrot.slane %v7367_v37, %v9641_v11  ;;  %v4121_v29 = vld [vmem:[#allocation2 + $0xa] sm:$0xff] }
 0x9cd   : > { %v10707_v34 = vrot.slane %v7367_v37, %v11604_v47 }
 0x9ce   : > { %v3772_v31 = vadd.f32 %v3771_v30, %v3770_v43  ;;  %v3784_v57 = vsel %vm815_vm1, %v3765_v45, %v3758_v3  ;;  %v4130_v38 = vmul.f32 %v10704_v63, %v10408_v13  ;;  %v4129_v52 = vmul.f32 %v10704_v63, %v4121_v29 }
 0x9cf   : > { %v4138_v43 = vmul.f32 %v10707_v34, %v10487_v48  ;;  %v4137_v45 = vmul.f32 %v10707_v34, %v10491_v62  ;;  %v10717_v30 = vrot.slane %v7367_v37, %v11605_v58  ;;  %v10724_v29 = vrot.slane %v7367_v37, %v11608_v5  ;;  %v8891_v62 = vld [vmem:[#allocation3 + $0x178] sm:$0xff]  }
 0x9d0   : > { %v3785_v35 = vsel %vm817_vm2, %v3772_v31, %v3784_v57 }
 0x9d1   : > { %v3786_v0 = vsel %vm819_vm3, %v3779_v17, %v3785_v35  ;;  %v4142_v3 = vadd.f32 %v4138_v43, %v4130_v38  ;;  %v4141_v57 = vadd.f32 %v4137_v45, %v4129_v52  ;;  %v4150_v17 = vmul.f32 %v10717_v30, %v10405_v26  ;;  %v10727_v38 = vld [vmem:[#allocation15 + $0x8] sm:$0xff]  ;;  %v10735_v45 = vld [vmem:[#allocation15] sm:$0xff] }
 0x9d2   : > { %8340 = vmatmul.mubr.f32.vlgmr.msra.gmra.mxu1 %v3786_v0  ;;  %v4149_v40 = vmul.f32 %v10717_v30, %v10390_v60  ;;  %v4162_v52 = vmul.f32 %v10724_v29, %v10381_v9 }
 0x9d3   : > { %8377 = vmatpush3.msra.mxu1 %v10330_v50  ;;  %8408 = vmatprep.mubr.msk.f32.mxu1 %vm9372_vm0, %v10595_v46  ;;  %v10612_v50 = vld [vmem:[%s11520_s11 + $0x60] sm:$0xff]  ;;  %v4154_v6 = vadd.f32 %v4150_v17, %v4142_v3  ;;  %v4161_v3 = vmul.f32 %v10724_v29, %v10375_v53  ;;  %v4172_v17 = vrot.slane %v7367_v37, %v11609_v4  ;;  %v11618_v4 = vld [vmem:[#allocation36_spill] sm:$0xff] }
 0x9d4   : > { %8378 = vmatprep.subr.mxu1 %v10595_v46  ;;  %v4153_v43 = vadd.f32 %v4149_v40, %v4141_v57 }
 0x9d5   : > { %8379 = vmatpush3.msra.mxu1 %v10339_v2  ;;  %v10619_v2 = vld [vmem:[%s11520_s11 + $0x58] sm:$0xff]  ;;  %v4174_v40 = vmul.f32 %v4172_v17, %v10410_v23 }
 0x9d6   : > { %8380 = vmatprep.subr.mxu1 %v10595_v46  ;;  %v4165_v5 = vadd.f32 %v4161_v3, %v4153_v43 }
 0x9d7   : > { %8381 = vmatpush3.msra.mxu1 %v10605_v22 }
 0x9d8   : > { %8382 = vmatprep.subr.mxu1 %v10595_v46 }
 0x9d9   : > { %8383 = vmatpush3.msra.mxu1 %v10612_v50 }
 0x9da   : > { %8384 = vmatprep.subr.mxu1 %v10595_v46 }
 0x9db   : > { %8385 = vmatpush3.msra.mxu1 %v10619_v2 }
 0x9dc   : > { %8386 = vmatprep.subr.mxu1 %v10595_v46 }
 0x9dd   : > { %8387 = vmatpush3.msra.mxu1 %v10626_v59 }
 0x9de   : > { %8388 = vmatprep.subr.mxu1 %v10595_v46 }
 0x9df   : > { %8389 = vmatpush3.msra.mxu1 %v10633_v1 }
 0x9e0   : > { %8390 = vmatprep.subr.mxu1 %v10595_v46 }
 0x9e1   : > { %8391 = vmatpush3.msra.mxu1 %v10640_v51 }
 0x9e2   : > { %8392 = vmatprep.subr.mxu1 %v10595_v46 }
 0x9e3   : > { %8393 = vmatpush3.msra.mxu1 %v10647_v15 }
 0x9e4   : > { %8394 = vmatprep.subr.mxu1 %v10595_v46 }
 0x9e5   : > { %8395 = vmatpush3.msra.mxu1 %v10654_v49 }
 0x9e6   : > { %8396 = vmatprep.subr.mxu1 %v10595_v46 }
 0x9e7   : > { %8397 = vmatpush3.msra.mxu1 %v10661_v28 }
 0x9e8   : > { %8398 = vmatprep.subr.mxu1 %v10595_v46 }
 0x9e9   : > { %8399 = vmatpush3.msra.mxu1 %v10668_v19  ;;  %v4194_v19 = vld [vmem:[#allocation2 + $0x1e] sm:$0xff] }
 0x9ea   : > { %8400 = vmatprep.subr.mxu1 %v10595_v46 }
 0x9eb   : > { %8401 = vmatpush3.msra.mxu1 %v10675_v42 }
 0x9ec   : > { %8402 = vmatprep.subr.mxu1 %v10595_v46 }
 0x9ed   : > { %8403 = vmatpush3.msra.mxu1 %v10682_v21 }
 0x9ee   : > { %8404 = vmatprep.subr.mxu1 %v10595_v46 }
 0x9ef   : > { %8405 = vmatpush3.msra.mxu1 %v10689_v33 }
 0x9f0   : > { %8406 = vmatprep.subr.mxu1 %v10595_v46 }
 0x9f1   : > { %8407 = vmatpush3.msra.mxu1 %v10696_v27  ;;  %v11617_v27 = vld [vmem:[#allocation35_spill] sm:$0xff] }
 0x9f2   : > { %8418 = vmatprep.subr.mxu1 %v10595_v46  ;;  %v4184_v33 = vrot.slane %v7367_v37, %v11617_v27 }
 0x9f4   : > { %v4186_v42 = vmul.f32 %v4184_v33, %v10509_v54  ;;  %v4123_v54 = vld [vmem:[#allocation2 + $0x3a] sm:$0xff] }
 0xa92   : > { %v3854_v31 = vpop.f32.mrf.mxu1 }
 0xa93   : > { %v3858_v35 = vmul.f32 0.0078125, %v3854_v31  ;;  %v4166_v31 = vadd.f32 %v4162_v52, %v4154_v6  ;;  %v4185_v6 = vmul.f32 %v4184_v33, %v10487_v48  ;;  %v4140_v48 = vmul.f32 %v10707_v34, %v10518_v41 }
 0xa94   : > { %v8341_v0 = vpop.f32.mrf.mxu1 }
 0xa95   : > { %v3859_v47 = vmul.f32 %v3858_v35, %v3858_v35  ;;  %8347 = vmatmul.mubr.msk.f32.vlgmr.msra.gmra.mxu0 %vm900_vm4, %v3858_v35  ;;  %v4178_v58 = vadd.f32 %v4174_v40, %v4166_v31 }
 0xa96   : > { %8350 = vmatpush3.msra.mxu0 %v10727_v38  ;;  %8353 = vmatprep.mubr.msk.f32.mxu0 %vm9372_vm0, %v10595_v46 }
 0xa97   : > { %v3861_v60 = vrot.slane %v3859_v47, 6  ;;  %8351 = vmatprep.subr.mxu0 %v10595_v46  ;;  %v4173_v47 = vmul.f32 %v4172_v17, %v10408_v13  ;;  %v4190_v52 = vadd.f32 %v4186_v42, %v4178_v58  ;;  %v7369_v13 = vld [vmem:[%s11511_s2 + $0x5] ss:$0 sm:$0xff]  ;;  %v4132_v58 = vmul.f32 %v10704_v63, %v10399_v12 }
 0xa98   : > { %8352 = vmatpush3.msra.mxu0 %v10735_v45  ;;  %v4139_v42 = vmul.f32 %v10707_v34, %v10520_v16  ;;  %v4164_v16 = vmul.f32 %v10724_v29, %v10378_v36  ;;  %v8895_v34 = vld [vmem:[#allocation3 + $0x158] sm:$0xff]   ;;  %v4196_v36 = vld [vmem:[#allocation2 + $0x4e] sm:$0xff] }
 0xa99   : > { %v3863_v0 = vsub.f32 %v3858_v35, %v3861_v60  ;;  %8356 = vmatprep.subr.bf16.mxu0 %v8891_v62  ;;  %v4177_v21 = vadd.f32 %v4173_v47, %v4165_v5  ;;  %v4200_v35 = vrot.slane %v7367_v37, %v11618_v4  ;;  %v8892_v47 = vld [vmem:[#allocation3 + $0x170] sm:$0xff]   ;;  %v4144_v37 = vadd.f32 %v4140_v48, %v4132_v58 }
 0xa9b   : > { %v3864_v57 = vadd.f32 1e-05, %v3863_v0  ;;  %v4189_v60 = vadd.f32 %v4185_v6, %v4177_v21  ;;  %v4202_v43 = vmul.f32 %v4200_v35, %v4194_v19  ;;  %v4201_v23 = vmul.f32 %v4200_v35, %v10405_v26  ;;  %v8893_v21 = vld [vmem:[#allocation3 + $0x168] sm:$0xff]  }
 0xa9c   : > { %v4131_v26 = vmul.f32 %v10704_v63, %v4123_v54  ;;  %v4188_v54 = vmul.f32 %v4184_v33, %v10530_v24  ;;  %v4204_v58 = vmul.f32 %v4200_v35, %v4196_v36  ;;  %v4203_v48 = vmul.f32 %v4200_v35, %v10396_v61 }
 0xa9d   : > { %8979 = vrsqrt.f32 %v3864_v57  ;;  %v4206_v3 = vadd.f32 %v4202_v43, %v4190_v52  ;;  %v4205_v0 = vadd.f32 %v4201_v23, %v4189_v60  ;;  %v4152_v52 = vmul.f32 %v10717_v30, %v10396_v61  ;;  %v8894_v60 = vld [vmem:[#allocation3 + $0x160] sm:$0xff]  }
 0xa9e   : > { %v4143_v6 = vadd.f32 %v4139_v42, %v4131_v26  ;;  %v4151_v43 = vmul.f32 %v10717_v30, %v10388_v25  ;;  %v4175_v25 = vmul.f32 %v4172_v17, %v10399_v12 }
 0xa9f   : > { %v4218_v31 = vadd.f32 %v7369_v13, %v4206_v3  ;;  %v4217_v40 = vadd.f32 %v7369_v13, %v4205_v0  ;;  %v4156_v23 = vadd.f32 %v4152_v52, %v4144_v37 }
 0xaa0   : > { %v4155_v63 = vadd.f32 %v4151_v43, %v4143_v6 }
 0xaa1   : > { %v4221_v19 = vpack.c.bf16 %v4218_v31, %v4217_v40  ;;  %v4168_v3 = vadd.f32 %v4164_v16, %v4156_v23  ;;  %v4176_v31 = vmul.f32 %v4172_v17, %v10401_v20  ;;  %v8898_v20 = vld [vmem:[#allocation3 + $0x140] sm:$0xff]  }
 0xaa3   : > { %v4180_v30 = vadd.f32 %v4176_v31, %v4168_v3 }
 0xaaa   : > { %v8980_v5 = vpop.eup %8979 }
 0xaab   : > { %v3963_v57 = vrot.slane %v8980_v5, 2  ;;  %v8896_v5 = vld [vmem:[#allocation3 + $0x150] sm:$0xff]  }
 0xaad   : > { %8354 = vmatmul.mubr.msk.f32.vlgmr.msra.gmra.mxu0 %vm900_vm4, %v3963_v57  ;;  %v8897_v57 = vld [vmem:[#allocation3 + $0x148] sm:$0xff]  }
 0xaae   : > { %8357 = vmatpush3.bf16.msra.mxu0 %v8891_v62  ;;  %8372 = vmatprep.mubr.bf16.mxu0 %v4221_v19  ;;  %v4163_v62 = vmul.f32 %v10724_v29, %v10372_v39  ;;  %v4192_v39 = vadd.f32 %v4188_v54, %v4180_v30 }
 0xaaf   : > { %8358 = vmatprep.subr.bf16.mxu0 %v8892_v47 }
 0xab0   : > { %v4167_v0 = vadd.f32 %v4163_v62, %v4155_v63  ;;  %v4208_v19 = vadd.f32 %v4204_v58, %v4192_v39 }
 0xab2   : > { %8359 = vmatpush3.bf16.msra.mxu0 %v8892_v47  ;;  %v4179_v40 = vadd.f32 %v4175_v25, %v4167_v0  ;;  %v4187_v47 = vmul.f32 %v4184_v33, %v10518_v41  ;;  %v4220_v17 = vadd.f32 %v7369_v13, %v4208_v19  ;;  %v7365_v0 = vld [vmem:[#allocation8 + $0x4] ss:$0 sm:$0xff] }
 0xab3   : > { %8360 = vmatprep.subr.bf16.mxu0 %v8893_v21 }
 0xab4   : > { %v4191_v29 = vadd.f32 %v4187_v47, %v4179_v40  ;;  %v7366_v40 = vld [vmem:[#allocation9 + $0x4] ss:$0 sm:$0xff] }
 0xab6   : > { %8361 = vmatpush3.bf16.msra.mxu0 %v8893_v21  ;;  %v4207_v12 = vadd.f32 %v4203_v48, %v4191_v29 }
 0xab7   : > { %8362 = vmatprep.subr.bf16.mxu0 %v8894_v60 }
 0xab8   : > { %v4219_v24 = vadd.f32 %v7369_v13, %v4207_v12 }
 0xaba   : > { %8363 = vmatpush3.bf16.msra.mxu0 %v8894_v60  ;;  %v4222_v26 = vpack.c.bf16 %v4220_v17, %v4219_v24 }
 0xabb   : > { %8364 = vmatprep.subr.bf16.mxu0 %v8895_v34 }
 0xabe   : > { %8365 = vmatpush3.bf16.msra.mxu0 %v8895_v34 }
 0xabf   : > { %8366 = vmatprep.subr.bf16.mxu0 %v8896_v5 }
 0xac2   : > { %8367 = vmatpush3.bf16.msra.mxu0 %v8896_v5 }
 0xac3   : > { %8368 = vmatprep.subr.bf16.mxu0 %v8897_v57 }
 0xac6   : > { %8369 = vmatpush3.bf16.msra.mxu0 %v8897_v57 }
 0xac7   : > { %8370 = vmatprep.subr.bf16.mxu0 %v8898_v20 }
 0xaca   : > { %8371 = vmatpush3.bf16.msra.mxu0 %v8898_v20 }
 0xacb   : > { %8411 = vmatprep.subr.mxu0 %v10595_v46 }
 0xacd   : > { %8373 = vmatmul.mubr.bf16.vlgmr.msra.gmra.mxu0 %v4222_v26  ;;  %v10800_v26 = vld [vmem:[#allocation2 + $0x40] sm:$0xff] }
 0xace   : > { %8412 = vmatpush3.msra.mxu0 %v10727_v38  ;;  %8415 = vmatprep.mubr.msk.f32.mxu0 %vm9372_vm0, %v10595_v46 }
 0xacf   : > { %8413 = vmatprep.subr.mxu0 %v10595_v46 }
 0xad0   : > { %8414 = vmatpush3.msra.mxu0 %v10735_v45 }
 0xb55   : > { %v3935_v61 = vpop.f32.mrf.mxu0 }
 0xb56   : > { %v3946_v33 = vrot.slane %v3935_v61, %v9990_v10 }
 0xb57   : > { %v8348_v41 = vpop.f32.mrf.mxu0 }
 0xb58   : > { %v3947_v35 = vcombine.high %v3946_v33, %v3946_v33  ;;  %v3954_v13 = vrot.slane %v3946_v33, %v9990_v10  ;;  %v10805_v41 = vld [vmem:[#allocation2 + $0x48] sm:$0xff] }
 0xb5a   : > { %v3961_v42 = vrot.slane %v3947_v35, %v9990_v10  ;;  %v4062_v37 = vrot.slane %v3954_v13, %v9641_v11  ;;  %v7370_v35 = vld [vmem:[#allocation6 + $0x5] ss:$0 sm:$0xff] }
 0xb5c   : > { %v4066_v52 = vrot.slane %v3961_v42, %v9641_v11  ;;  %v4069_v63 = vsub.f32 %v10573_v14, %v4062_v37  ;;  %v4070_v16 = vsub.f32 %v10583_v56, %v4062_v37 }
 0xb5e   : > { %v4071_v3 = vsub.f32 %v10571_v55, %v4066_v52  ;;  %v4072_v31 = vsub.f32 %v10575_v32, %v4066_v52 }
 0xb6d   : > { %v4032_v21 = vpop.f32.mrf.mxu0 }
 0xb6e   : > { %v4043_v6 = vrot.slane %v4032_v21, %v9990_v10 }
 0xb6f   : > { %v8355_v60 = vpop.f32.mrf.mxu0 }
 0xb70   : > { %v4044_v43 = vcombine.high %v4043_v6, %v4043_v6  ;;  %v4051_v23 = vrot.slane %v4043_v6, %v9990_v10 }
 0xb72   : > { %v4058_v34 = vrot.slane %v4044_v43, %v9990_v10  ;;  %v4076_v62 = vrot.slane %v4051_v23, %v9641_v11 }
 0xb74   : > { %v4080_v5 = vrot.slane %v4058_v34, %v9641_v11  ;;  %v4083_v25 = vmul.f32 %v4076_v62, %v4069_v63  ;;  %v4084_v30 = vmul.f32 %v4076_v62, %v4070_v16 }
 0xb76   : > { %v4085_v54 = vmul.f32 %v4080_v5, %v4071_v3  ;;  %v4086_v36 = vmul.f32 %v4080_v5, %v4072_v31  ;;  %v4095_v57 = vmul.f32 %v7365_v0, %v4083_v25  ;;  %v4096_v14 = vmul.f32 %v7365_v0, %v4084_v30 }
 0xb78   : > { %v4107_v47 = vadd.f32 %v7366_v40, %v4095_v57  ;;  %v4108_v56 = vadd.f32 %v7366_v40, %v4096_v14  ;;  %v4097_v39 = vmul.f32 %v7365_v0, %v4085_v54  ;;  %v4098_v29 = vmul.f32 %v7365_v0, %v4086_v36 }
 0xb7a   : > { %v4111_v58 = vmax.f32 %v4107_v47, 0.0  ;;  %v4112_v20 = vmax.f32 %v4108_v56, 0.0  ;;  %v4109_v48 = vadd.f32 %v7366_v40, %v4097_v39  ;;  %v4110_v55 = vadd.f32 %v7366_v40, %v4098_v29 }
 0xb7c   : > { %v10793_v19 = vadd.f32 %v4111_v58, %v10375_v53  ;;  %v10796_v32 = vadd.f32 %v4112_v20, %v10381_v9  ;;  %v4113_v12 = vmax.f32 %v4109_v48, 0.0  ;;  %v4114_v17 = vmax.f32 %v4110_v55, 0.0 }
 0xb7e   : > { %v4717_v24 = vpack.c.bf16 %v10796_v32, %v10793_v19  ;;  %v10803_v61 = vadd.f32 %v10800_v26, %v4113_v12  ;;  %v10808_v33 = vadd.f32 %v10805_v41, %v4114_v17  ;;  %v8909_v19 = vld [vmem:[#allocation12 + $0x110] sm:$0xff]  }
 0xb7f   : > { %v8910_v32 = vld [vmem:[#allocation12 + $0xd0] sm:$0xff]  }
 0xb80   : > { %v4720_v53 = vpack.c.bf16 %v10808_v33, %v10803_v61  ;;  %v8921_v61 = vld [vmem:[#allocation12 + $0x148] sm:$0xff]  }
 0xb8d   : > { %v8374_v9 = vpop.f32.mrf.mxu0 }
 0xb8e   : > { %v10812_v42 = vadd.f32 %v8374_v9, %v7370_v35 }
 0xb8f   : > { %v4330_v13 = vpop.f32.mrf.mxu0 }
 0xb90   : > { %v10814_v21 = vadd.f32 %v7370_v35, %v4330_v13  ;;  %v4347_v60 = vmul.f32 %v10812_v42, %v10812_v42 }
 0xb91   : > { %v8375_v37 = vpop.f32.mrf.mxu0 }
 0xb92   : > { %v10816_v6 = vadd.f32 %v8375_v37, %v7370_v35  ;;  %v4345_v16 = vmul.f32 %v10814_v21, %v10814_v21 }
 0xb93   : > { %v4333_v52 = vpop.f32.mrf.mxu0 }
 0xb94   : > { %v4348_v43 = vmul.f32 %v10816_v6, %v10816_v6  ;;  %v4356_v23 = vadd.f32 %v10816_v6, %v10812_v42  ;;  %v10824_v63 = vadd.f32 %v7370_v35, %v4333_v52 }
 0xb96   : > { %v4357_v34 = vrot.slane %v4356_v23, 4  ;;  %v4370_v62 = vadd.f32 %v4348_v43, %v4347_v60  ;;  %v4346_v3 = vmul.f32 %v10824_v63, %v10824_v63  ;;  %v4349_v0 = vadd.f32 %v10824_v63, %v10814_v21 }
 0xb98   : > { %v4358_v31 = vadd.f32 %v4357_v34, %v4356_v23  ;;  %v4371_v5 = vrot.slane %v4370_v62, 4  ;;  %v4350_v25 = vrot.slane %v4349_v0, 4  ;;  %v4363_v30 = vadd.f32 %v4346_v3, %v4345_v16  ;;  %v8899_v16 = vld [vmem:[#allocation12 + $0x138] sm:$0xff]  }
 0xb99   : > { %7756 = vmatprep.subr.bf16.mxu0 %v8899_v16 }
 0xb9a   : > { %v4359_v40 = vrot.slane %v4358_v31, 2  ;;  %v4372_v54 = vadd.f32 %v4371_v5, %v4370_v62  ;;  %v4351_v36 = vadd.f32 %v4350_v25, %v4349_v0  ;;  %v4364_v57 = vrot.slane %v4363_v30, 4  ;;  %v8900_v62 = vld [vmem:[#allocation12 + $0xf8] sm:$0xff]   ;;  %v8901_v0 = vld [vmem:[#allocation12 + $0x130] sm:$0xff]  }
 0xb9c   : > { %v4360_v14 = vadd.f32 %v4359_v40, %v4358_v31  ;;  %v4373_v47 = vrot.slane %v4372_v54, 2  ;;  %v4352_v56 = vrot.slane %v4351_v36, 2  ;;  %v4365_v39 = vadd.f32 %v4364_v57, %v4363_v30  ;;  %v8903_v30 = vld [vmem:[#allocation12 + $0x128] sm:$0xff]   ;;  %v8906_v57 = vld [vmem:[#allocation12 + $0xe0] sm:$0xff]  }
 0xb9d   : > { %v8904_v40 = vld [vmem:[#allocation12 + $0xe8] sm:$0xff]  }
 0xb9e   : > { %v4361_v29 = vrot.slane %v4360_v14, 1  ;;  %v4353_v58 = vadd.f32 %v4352_v56, %v4351_v36  ;;  %v4366_v20 = vrot.slane %v4365_v39, 2  ;;  %v4374_v48 = vadd.f32 %v4373_v47, %v4372_v54  ;;  %v8905_v36 = vld [vmem:[#allocation12 + $0x120] sm:$0xff]   ;;  %v8908_v47 = vld [vmem:[#allocation12 + $0xd8] sm:$0xff]  }
 0xba0   : > { %v4354_v55 = vrot.slane %v4353_v58, 1  ;;  %v4367_v12 = vadd.f32 %v4366_v20, %v4365_v39  ;;  %v4375_v17 = vrot.slane %v4374_v48, 1  ;;  %v4362_v9 = vadd.f32 %v4361_v29, %v4360_v14  ;;  %v8907_v14 = vld [vmem:[#allocation12 + $0x118] sm:$0xff]   ;;  %v8912_v39 = vld [vmem:[#allocation12 + $0xc8] sm:$0xff]   ;;  %v8914_v20 = vld [vmem:[#allocation12 + $0xc0] sm:$0xff]  }
 0xba2   : > { %v4355_v35 = vadd.f32 %v4354_v55, %v4353_v58  ;;  %v4368_v13 = vrot.slane %v4367_v12, 1  ;;  %v4376_v60 = vadd.f32 %v4375_v17, %v4374_v48  ;;  %v8913_v58 = vld [vmem:[#allocation12 + $0x100] sm:$0xff]   ;;  %v11619_v48 = vpack.c.bf16 %v10559_v18, %v10556_v7  ;;  %v8916_v17 = vld [vmem:[#allocation12 + $0x170] sm:$0xff]   ;;  %v8919_v7 = vld [vmem:[#allocation12 + $0x158] sm:$0xff]  }
 0xba3   : > { %v11620_v55 = vpack.c.bf16 %v10567_v44, %v10564_v8  ;;  %v8920_v18 = vld [vmem:[#allocation12 + $0x150] sm:$0xff]   ;;  %v8922_v8 = vld [vmem:[#allocation12 + $0x140] sm:$0xff]  }
 0xba4   : > { %v4369_v37 = vadd.f32 %v4368_v13, %v4367_v12  ;;  %v4381_v52 = vsel %vm815_vm1, %v4362_v9, %v4355_v35  ;;  %v8915_v12 = vld [vmem:[#allocation12 + $0x178] sm:$0xff]   ;;  %v8917_v9 = vld [vmem:[#allocation12 + $0x168] sm:$0xff]   ;;  %v8918_v35 = vld [vmem:[#allocation12 + $0x160] sm:$0xff]  }
 0xba5   : > { %v8923_v44 = vld [vmem:[#allocation3 + $0x1b8] sm:$0xff]  }
 0xba6   : > { %v4382_v43 = vsel %vm817_vm2, %v4369_v37, %v4381_v52 }
 0xba7   : > { %v4383_v23 = vsel %vm819_vm3, %v4376_v60, %v4382_v43 }
 0xba8   : > { %8409 = vmatmul.mubr.f32.vlgmr.msra.gmra.mxu1 %v4383_v23 }
 0xba9   : > { %8419 = vmatpush3.msra.mxu1 %v10727_v38  ;;  %8422 = vmatprep.mubr.msk.f32.mxu1 %vm9372_vm0, %v10595_v46  ;;  %v8902_v38 = vld [vmem:[#allocation12 + $0xf0] sm:$0xff]  }
 0xbaa   : > { %8420 = vmatprep.subr.mxu1 %v10595_v46 }
 0xbab   : > { %8421 = vmatpush3.msra.mxu1 %v10735_v45 }
 0xbac   : > { %8425 = vmatprep.subr.bf16.mxu1 %v8915_v12 }
 0xc68   : > { %v4451_v34 = vpop.f32.mrf.mxu1 }
 0xc69   : > { %v4455_v3 = vmul.f32 0.0078125, %v4451_v34 }
 0xc6a   : > { %v8410_v31 = vpop.f32.mrf.mxu1 }
 0xc6b   : > { %v4456_v5 = vmul.f32 %v4455_v3, %v4455_v3  ;;  %8416 = vmatmul.mubr.msk.f32.vlgmr.msra.gmra.mxu0 %vm900_vm4, %v4455_v3 }
 0xc6c   : > { %7757 = vmatpush3.bf16.msra.mxu0 %v8900_v62  ;;  %4955 = vmatprep.mubr.bf16.mxu0 %v4717_v24  ;;  %v8911_v24 = vld [vmem:[#allocation12 + $0x108] sm:$0xff]  }
 0xc6d   : > { %v4458_v25 = vrot.slane %v4456_v5, 6  ;;  %7758 = vmatprep.subr.bf16.mxu0 %v8901_v0 }
 0xc6f   : > { %v4460_v45 = vsub.f32 %v4455_v3, %v4458_v25 }
 0xc70   : > { %7759 = vmatpush3.bf16.msra.mxu0 %v8902_v38 }
 0xc71   : > { %v4461_v54 = vadd.f32 1e-05, %v4460_v45  ;;  %7760 = vmatprep.subr.bf16.mxu0 %v8903_v30  ;;  %v7381_v45 = vld [vmem:[#allocation8 + $0x5] ss:$0 sm:$0xff] }
 0xc73   : > { %8981 = vrsqrt.f32 %v4461_v54 }
 0xc74   : > { %7761 = vmatpush3.bf16.msra.mxu0 %v8904_v40 }
 0xc75   : > { %7762 = vmatprep.subr.bf16.mxu0 %v8905_v36 }
 0xc78   : > { %7763 = vmatpush3.bf16.msra.mxu0 %v8906_v57 }
 0xc79   : > { %7764 = vmatprep.subr.bf16.mxu0 %v8907_v14  ;;  %v7382_v14 = vld [vmem:[#allocation9 + $0x5] ss:$0 sm:$0xff] }
 0xc7c   : > { %7765 = vmatpush3.bf16.msra.mxu0 %v8908_v47 }
 0xc7d   : > { %7766 = vmatprep.subr.bf16.mxu0 %v8909_v19 }
 0xc80   : > { %v8982_v56 = vpop.eup %8981  ;;  %7767 = vmatpush3.bf16.msra.mxu0 %v8910_v32 }
 0xc81   : > { %v4560_v29 = vrot.slane %v8982_v56, 2  ;;  %7768 = vmatprep.subr.bf16.mxu0 %v8911_v24 }
 0xc83   : > { %8423 = vmatmul.mubr.msk.f32.vlgmr.msra.gmra.mxu1 %vm900_vm4, %v4560_v29 }
 0xc84   : > { %7769 = vmatpush3.bf16.msra.mxu0 %v8912_v39  ;;  %8426 = vmatpush3.bf16.msra.mxu1 %v8915_v12 }
 0xc85   : > { %7770 = vmatprep.subr.bf16.mxu0 %v8913_v58  ;;  %8427 = vmatprep.subr.bf16.mxu1 %v8916_v17 }
 0xc88   : > { %7771 = vmatpush3.bf16.msra.mxu0 %v8914_v20  ;;  %8428 = vmatpush3.bf16.msra.mxu1 %v8916_v17  ;;  %v9043_v17 = vld [vmem:[#allocation2 + $0x18] sm:$0xff] }
 0xc89   : > { %8429 = vmatprep.subr.bf16.mxu1 %v8917_v9  ;;  %8445 = vmatprep.subr.bf16.mxu0 %v8923_v44 }
 0xc8b   : > { %4956 = vmatmul.mubr.bf16.vlgmr.msra.gmra.mxu0 %v11619_v48  ;;  %v9042_v48 = vld [vmem:[#allocation2 + $0x10] sm:$0xff] }
 0xc8c   : > { %4963 = vmatprep.mubr.bf16.mxu0 %v4720_v53  ;;  %8430 = vmatpush3.bf16.msra.mxu1 %v8917_v9 }
 0xc8d   : > { %8431 = vmatprep.subr.bf16.mxu1 %v8918_v35  ;;  %8446 = vmatpush3.bf16.msra.mxu0 %v8923_v44  ;;  %v8929_v44 = vld [vmem:[#allocation3 + $0x188] sm:$0xff]  }
 0xc90   : > { %8432 = vmatpush3.bf16.msra.mxu1 %v8918_v35 }
 0xc91   : > { %8433 = vmatprep.subr.bf16.mxu1 %v8919_v7 }
 0xc93   : > { %4964 = vmatmul.mubr.bf16.gmra.mxu0 %v11620_v55 }
 0xc94   : > { %8434 = vmatpush3.bf16.msra.mxu1 %v8919_v7 }
 0xc95   : > { %8435 = vmatprep.subr.bf16.mxu1 %v8920_v18 }
 0xc98   : > { %8436 = vmatpush3.bf16.msra.mxu1 %v8920_v18 }
 0xc99   : > { %8437 = vmatprep.subr.bf16.mxu1 %v8921_v61 }
 0xc9c   : > { %8438 = vmatpush3.bf16.msra.mxu1 %v8921_v61 }
 0xc9d   : > { %8439 = vmatprep.subr.bf16.mxu1 %v8922_v8 }
 0xca0   : > { %8440 = vmatpush3.bf16.msra.mxu1 %v8922_v8  ;;  %v10874_v8 = vld [vmem:[%s11520_s11 + $0x78] sm:$0xff] }
 0xca1   : > { %8465 = vmatprep.subr.mxu1 %v10595_v46 }
 0xd2b   : > { %v4532_v33 = vpop.f32.mrf.mxu0 }
 0xd2c   : > { %v4543_v13 = vrot.slane %v4532_v33, %v9990_v10  ;;  %v8930_v33 = vld [vmem:[#allocation3 + $0x180] sm:$0xff]  }
 0xd2d   : > { %v8417_v53 = vpop.f32.mrf.mxu0 }
 0xd2e   : > { %v4544_v37 = vcombine.high %v4543_v13, %v4543_v13  ;;  %v4551_v52 = vrot.slane %v4543_v13, %v9990_v10 }
 0xd30   : > { %v4558_v60 = vrot.slane %v4544_v37, %v9990_v10  ;;  %v4659_v23 = vrot.slane %v4551_v52, %v9641_v11 }
 0xd32   : > { %v4663_v34 = vrot.slane %v4558_v60, %v9641_v11  ;;  %v4666_v31 = vsub.f32 %v10814_v21, %v4659_v23  ;;  %v4667_v5 = vsub.f32 %v10824_v63, %v4659_v23 }
 0xd34   : > { %v4668_v30 = vsub.f32 %v10812_v42, %v4663_v34  ;;  %v4669_v40 = vsub.f32 %v10816_v6, %v4663_v34 }
 0xd43   : > { %v4629_v43 = vpop.f32.mrf.mxu1 }
 0xd44   : > { %v4640_v16 = vrot.slane %v4629_v43, %v9990_v10 }
 0xd45   : > { %v8424_v62 = vpop.f32.mrf.mxu1 }
 0xd46   : > { %v4641_v3 = vcombine.high %v4640_v16, %v4640_v16  ;;  %v4648_v0 = vrot.slane %v4640_v16, %v9990_v10 }
 0xd48   : > { %v4655_v38 = vrot.slane %v4641_v3, %v9990_v10  ;;  %v4673_v25 = vrot.slane %v4648_v0, %v9641_v11 }
 0xd4a   : > { %v4677_v54 = vrot.slane %v4655_v38, %v9641_v11  ;;  %v4680_v36 = vmul.f32 %v4673_v25, %v4666_v31  ;;  %v4681_v57 = vmul.f32 %v4673_v25, %v4667_v5  ;;  %v7440_v31 = vld [vmem:[%s11510_s1 + $0x40] sm:$0x7f]  ;;  %v7383_v5 = vld [vmem:[#allocation14 + $0x1] ss:$0 sm:$0xff] }
 0xd4b   : > { %v7772_v53 = vpop.f32.mrf.mxu0  ;;  %v10920_v38 = vrot.slane %v7440_v31, %v9641_v11  ;;  %v6151_v25 = vld [vmem:[#allocation2 + $0x4] sm:$0xff] }
 0xd4c   : > { %v4682_v47 = vmul.f32 %v4677_v54, %v4668_v30  ;;  %v4683_v19 = vmul.f32 %v4677_v54, %v4669_v40  ;;  %v4692_v32 = vmul.f32 %v7381_v45, %v4680_v36  ;;  %v4693_v21 = vmul.f32 %v7381_v45, %v4681_v57  ;;  %v6153_v30 = vld [vmem:[#allocation2 + $0x34] sm:$0xff] }
 0xd4d   : > { %v7773_v13 = vpop.f32.mrf.mxu0  ;;  %v7408_v40 = vld [vmem:[%s11510_s1 + $0x30] sm:$0x7f]  ;;  %v7424_v54 = vld [vmem:[%s11510_s1 + $0x38] sm:$0x7f] }
 0xd4e   : > { %v4694_v24 = vmul.f32 %v7381_v45, %v4682_v47  ;;  %v4695_v63 = vmul.f32 %v7381_v45, %v4683_v19  ;;  %v4704_v56 = vadd.f32 %v7382_v14, %v4692_v32  ;;  %v4705_v39 = vadd.f32 %v7382_v14, %v4693_v21  ;;  %v11626_v36 = vld [vmem:[#allocation29_spill] sm:$0xff] }
 0xd4f   : > { %v7775_v37 = vpop.f32.mrf.mxu0  ;;  %v7774_v62 = vadd.f32 %v7773_v13, %v7772_v53  ;;  %v6166_v57 = vrot.slane %v7440_v31, %v11626_v36  ;;  %v10930_v21 = vrot.slane %v7408_v40, %v9641_v11 }
 0xd50   : > { %v4708_v29 = vmax.f32 %v4704_v56, 0.0  ;;  %v4706_v58 = vadd.f32 %v7382_v14, %v4694_v24  ;;  %v4707_v20 = vadd.f32 %v7382_v14, %v4695_v63  ;;  %v4709_v42 = vmax.f32 %v4705_v39, 0.0 }
 0xd51   : > { %v7776_v52 = vpop.f32.mrf.mxu0  ;;  %v4958_v47 = vadd.f32 %v7774_v62, %v7383_v5  ;;  %v6167_v63 = vmul.f32 %v10595_v46, %v6166_v57  ;;  %v6159_v56 = vmul.f32 %v10920_v38, %v6151_v25  ;;  %v6161_v39 = vmul.f32 %v10920_v38, %v6153_v30 }
 0xd52   : > { %v4712_v55 = vadd.f32 %v9042_v48, %v4708_v29  ;;  %v4710_v6 = vmax.f32 %v4706_v58, 0.0  ;;  %v4711_v12 = vmax.f32 %v4707_v20, 0.0  ;;  %v4713_v9 = vadd.f32 %v9043_v17, %v4709_v42  ;;  %v11628_v20 = vld [vmem:[#allocation30_spill] sm:$0xff] }
 0xd53   : > { %v7778_v60 = vpop.f32.mrf.mxu0  ;;  %v7777_v3 = vadd.f32 %v7776_v52, %v7775_v37  ;;  %v5046_v58 = vrot.slane %v7408_v40, %v11626_v36  ;;  %v10939_v42 = vrot.slane %v7408_v40, %v11628_v20  ;;  %v5585_v48 = vrot.slane %v7424_v54, %v9641_v11 }
 0xd54   : > { %v4714_v35 = vadd.f32 %v10800_v26, %v4710_v6  ;;  %v4715_v7 = vadd.f32 %v10805_v41, %v4711_v12  ;;  %v4718_v18 = vpack.c.bf16 %v4713_v9, %v4712_v55  ;;  %v10883_v26 = vld [vmem:[%s11520_s11 + $0x70] sm:$0xff]  ;;  %v5605_v55 = vrot.slane %v7424_v54, %v11628_v20  ;;  %v11630_v9 = vld [vmem:[#allocation31_spill] sm:$0xff] }
 0xd55   : > { %v8928_v41 = vld [vmem:[#allocation3 + $0x190] sm:$0xff]   ;;  %v7779_v43 = vpop.f32.mrf.mxu0  ;;  %v4961_v32 = vadd.f32 %v7777_v3, %v7383_v5 }
 0xd56   : > { %v4721_v61 = vpack.c.bf16 %v4715_v7, %v4714_v35  ;;  %8441 = vmatprep.mubr.bf16.mxu1 %v4718_v18  ;;  %v7780_v34 = vadd.f32 %v7779_v43, %v7778_v60  ;;  %v11629_v12 = vld [vmem:[#allocation32_spill] sm:$0xff]  ;;  %v6190_v35 = vrot.slane %v7440_v31, %v11630_v9  ;;  %v6214_v7 = vrot.slane %v7440_v31, %v11617_v27 }
 0xd57   : > { %v7781_v23 = vpop.f32.mrf.mxu0  ;;  %v5633_v17 = vrot.slane %v7424_v54, %v11629_v12  ;;  %v6224_v18 = vld [vmem:[#allocation2 + $0x24] sm:$0xff]  ;;  %v10965_v27 = vadd.f32 %v6167_v63, %v6159_v56 }
 0xd58   : > { %8442 = vmatmul.mubr.bf16.vlgmr.msra.gmra.mxu1 %v4721_v61  ;;  %v4966_v45 = vadd.f32 %v7780_v34, %v7383_v5 }
 0xd59   : > { %8466 = vmatpush3.msra.mxu1 %v10874_v8  ;;  %8497 = vmatprep.mubr.msk.f32.mxu1 %vm9372_vm0, %v10595_v46  ;;  %v7782_v16 = vpop.f32.mrf.mxu0 }
 0xd5a   : > { %8467 = vmatprep.subr.mxu1 %v10595_v46  ;;  %v7783_v0 = vadd.f32 %v7782_v16, %v7781_v23 }
 0xd5b   : > { %8468 = vmatpush3.msra.mxu1 %v10883_v26 }
 0xd5c   : > { %8469 = vmatprep.subr.mxu1 %v10595_v46  ;;  %v4969_v19 = vadd.f32 %v7783_v0, %v7383_v5 }
 0xd5d   : > { %8470 = vmatpush3.msra.mxu1 %v10605_v22  ;;  %v11621_v22 = vld [vmem:[#allocation34_spill] sm:$0xff] }
 0xd5e   : > { %8471 = vmatprep.subr.mxu1 %v10595_v46 }
 0xd5f   : > { %8472 = vmatpush3.msra.mxu1 %v10612_v50  ;;  %v11622_v50 = vld [vmem:[#allocation33_spill] sm:$0xff] }
 0xd60   : > { %8473 = vmatprep.subr.mxu1 %v10595_v46 }
 0xd61   : > { %8474 = vmatpush3.msra.mxu1 %v10619_v2  ;;  %v11623_v2 = vld [vmem:[#allocation37_spill] sm:$0xff] }
 0xd62   : > { %8475 = vmatprep.subr.mxu1 %v10595_v46 }
 0xd63   : > { %8476 = vmatpush3.msra.mxu1 %v10626_v59  ;;  %v11624_v59 = vld [vmem:[#allocation38_spill] sm:$0xff] }
 0xd64   : > { %8477 = vmatprep.subr.mxu1 %v10595_v46 }
 0xd65   : > { %8478 = vmatpush3.msra.mxu1 %v10633_v1  ;;  %v11625_v1 = vld [vmem:[#allocation39_spill] sm:$0xff] }
 0xd66   : > { %8479 = vmatprep.subr.mxu1 %v10595_v46 }
 0xd67   : > { %8480 = vmatpush3.msra.mxu1 %v10640_v51  ;;  %v8924_v51 = vld [vmem:[#allocation3 + $0x1b0] sm:$0xff]  }
 0xd68   : > { %8481 = vmatprep.subr.mxu1 %v10595_v46  ;;  %8447 = vmatprep.subr.bf16.mxu0 %v8924_v51 }
 0xd69   : > { %8482 = vmatpush3.msra.mxu1 %v10647_v15  ;;  %8448 = vmatpush3.bf16.msra.mxu0 %v8924_v51  ;;  %v8925_v15 = vld [vmem:[#allocation3 + $0x1a8] sm:$0xff]   ;;  %v10963_v51 = vrot.slane %v7424_v54, %v11630_v9 }
 0xd6a   : > { %8483 = vmatprep.subr.mxu1 %v10595_v46  ;;  %8449 = vmatprep.subr.bf16.mxu0 %v8925_v15 }
 0xd6b   : > { %8484 = vmatpush3.msra.mxu1 %v10654_v49  ;;  %v8926_v49 = vld [vmem:[#allocation3 + $0x1a0] sm:$0xff]  }
 0xd6c   : > { %8485 = vmatprep.subr.mxu1 %v10595_v46 }
 0xd6d   : > { %8486 = vmatpush3.msra.mxu1 %v10661_v28  ;;  %8450 = vmatpush3.bf16.msra.mxu0 %v8925_v15  ;;  %v8927_v28 = vld [vmem:[#allocation3 + $0x198] sm:$0xff]   ;;  %v6173_v15 = vadd.f32 %v6167_v63, %v6161_v39 }
 0xd6e   : > { %8487 = vmatprep.subr.mxu1 %v10595_v46  ;;  %8451 = vmatprep.subr.bf16.mxu0 %v8926_v49 }
 0xd6f   : > { %8488 = vmatpush3.msra.mxu1 %v11621_v22  ;;  %v10950_v22 = vrot.slane %v7440_v31, %v11628_v20 }
 0xd70   : > { %8489 = vmatprep.subr.mxu1 %v10595_v46 }
 0xd71   : > { %8490 = vmatpush3.msra.mxu1 %v11622_v50  ;;  %8452 = vmatpush3.bf16.msra.mxu0 %v8926_v49  ;;  %v5586_v50 = vmul.f32 %v10595_v46, %v5585_v48 }
 0xd72   : > { %8491 = vmatprep.subr.mxu1 %v10595_v46  ;;  %8453 = vmatprep.subr.bf16.mxu0 %v8927_v28 }
 0xd73   : > { %8492 = vmatpush3.msra.mxu1 %v11623_v2  ;;  %v10954_v2 = vrot.slane %v7424_v54, %v11626_v36 }
 0xd74   : > { %8493 = vmatprep.subr.mxu1 %v10595_v46 }
 0xd75   : > { %8494 = vmatpush3.msra.mxu1 %v11624_v59  ;;  %8454 = vmatpush3.bf16.msra.mxu0 %v8927_v28  ;;  %v10957_v59 = vrot.slane %v7440_v31, %v11618_v4  ;;  %v10968_v28 = vmul.f32 %v10595_v46, %v5633_v17  ;;  %v10974_v4 = vmul.f32 %v10595_v46, %v6214_v7 }
 0xd76   : > { %8495 = vmatprep.subr.mxu1 %v10595_v46  ;;  %8455 = vmatprep.subr.bf16.mxu0 %v8928_v41 }
 0xd77   : > { %8496 = vmatpush3.msra.mxu1 %v11625_v1 }
 0xd78   : > { %8500 = vmatprep.subr.mxu1 %v10595_v46 }
 0xd79   : > { %8456 = vmatpush3.bf16.msra.mxu0 %v8928_v41  ;;  %v10971_v41 = vrot.slane %v7440_v31, %v11629_v12 }
 0xd7a   : > { %8457 = vmatprep.subr.bf16.mxu0 %v8929_v44 }
 0xd7d   : > { %8458 = vmatpush3.bf16.msra.mxu0 %v8929_v44  ;;  %v10977_v44 = vmul.f32 %v10957_v59, %v6224_v18 }
 0xd7e   : > { %8459 = vmatprep.subr.bf16.mxu0 %v8930_v33 }
 0xd81   : > { %8460 = vmatpush3.bf16.msra.mxu0 %v8930_v33 }
 0xd82   : > { %8507 = vmatprep.subr.mxu0 %v10595_v46 }
 0xe18   : > { %v8443_v14 = vpop.f32.mrf.mxu1 }
 0xe19   : > { %v10932_v24 = vadd.f32 %v8443_v14, %v4966_v45 }
 0xe1a   : > { %v5006_v29 = vpop.f32.mrf.mxu1 }
 0xe1b   : > { %11627 = vst [vmem:[#allocation35_spill] sm:$0xff] %v10932_v24  ;;  %5023 = vst [vmem:[#allocation2 + $0x40] sm:$0xff] %v10932_v24  ;;  %v10944_v6 = vadd.f32 %v5006_v29, %v4958_v47  ;;  %v5049_v53 = vmul.f32 %v5046_v58, %v10932_v24  ;;  %v5589_v13 = vmul.f32 %v5585_v48, %v10932_v24 }
 0xe1c   : > { %v8444_v61 = vpop.f32.mrf.mxu1  ;;  %v5608_v37 = vmul.f32 %v5605_v55, %v10932_v24  ;;  %v6170_v46 = vmul.f32 %v6166_v57, %v10932_v24  ;;  %v10989_v43 = vmul.f32 %v6190_v35, %v10932_v24 }
 0xe1d   : > { %5021 = vst [vmem:[#allocation2 + $0x10] sm:$0xff] %v10944_v6  ;;  %v10960_v1 = vadd.f32 %v8444_v61, %v4969_v19  ;;  %v5047_v52 = vmul.f32 %v5046_v58, %v10944_v6  ;;  %v5587_v60 = vmul.f32 %v5585_v48, %v10944_v6  ;;  %v5606_v16 = vmul.f32 %v5605_v55, %v10944_v6 }
 0xe1e   : > { %v5009_v49 = vpop.f32.mrf.mxu1  ;;  %v10995_v34 = vmul.f32 %v6166_v57, %v10944_v6  ;;  %v10998_v62 = vmul.f32 %v6190_v35, %v10944_v6 }
 0xe1f   : > { %11631 = vst [vmem:[#allocation36_spill] sm:$0xff] %v10960_v1  ;;  %5024 = vst [vmem:[#allocation2 + $0x48] sm:$0xff] %v10960_v1  ;;  %v10980_v33 = vadd.f32 %v5009_v49, %v4961_v32  ;;  %v5050_v23 = vmul.f32 %v5046_v58, %v10960_v1  ;;  %v5609_v0 = vmul.f32 %v5605_v55, %v10960_v1 }
 0xe20   : > { %v11002_v31 = vmul.f32 %v5633_v17, %v10960_v1  ;;  %v11005_v5 = vmul.f32 %v6190_v35, %v10960_v1  ;;  %v11008_v25 = vmul.f32 %v6214_v7, %v10960_v1 }
 0xe21   : > { %11632 = vst [vmem:[#allocation34_spill] sm:$0xff] %v10980_v33  ;;  %5022 = vst [vmem:[#allocation2 + $0x18] sm:$0xff] %v10980_v33  ;;  %v5048_v57 = vmul.f32 %v5046_v58, %v10980_v33  ;;  %v5607_v14 = vmul.f32 %v5605_v55, %v10980_v33  ;;  %v5634_v47 = vmul.f32 %v5633_v17, %v10980_v33 }
 0xe22   : > { %v5033_v3 = vld [vmem:[#allocation2 + $0x3c] sm:$0xff]  ;;  %v11018_v19 = vmul.f32 %v6190_v35, %v10980_v33  ;;  %v11024_v39 = vmul.f32 %v6214_v7, %v10980_v33 }
 0xe23   : > { %v5041_v30 = vmul.f32 %v10930_v21, %v5033_v3  ;;  %v5596_v45 = vmul.f32 %v10954_v2, %v5033_v3  ;;  %v6162_v40 = vmul.f32 %v10920_v38, %v5033_v3  ;;  %v6181_v54 = vmul.f32 %v10950_v22, %v5033_v3 }
 0xe24   : > { %v5031_v36 = vld [vmem:[#allocation2 + $0xc] sm:$0xff] }
 0xe25   : > { %v5039_v32 = vmul.f32 %v10930_v21, %v5031_v36  ;;  %v6179_v63 = vmul.f32 %v10950_v22, %v5031_v36  ;;  %v5594_v56 = vmul.f32 %v10954_v2, %v5031_v36  ;;  %v5053_v20 = vadd.f32 %v5049_v53, %v5041_v30 }
 0xe26   : > { %v11026_v29 = vld [vmem:[#allocation2 + $0x44] sm:$0xff]  ;;  %v11028_v58 = vld [vmem:[#allocation2 + $0x4c] sm:$0xff]  ;;  %v5600_v48 = vadd.f32 %v5596_v45, %v5586_v50  ;;  %v6160_v55 = vmul.f32 %v10920_v38, %v5031_v36  ;;  %v11031_v12 = vadd.f32 %v6170_v46, %v6162_v40  ;;  %v6185_v18 = vadd.f32 %v6181_v54, %v6173_v15 }
 0xe27   : > { %v5051_v17 = vadd.f32 %v5047_v52, %v5039_v32  ;;  %v5042_v9 = vmul.f32 %v10930_v21, %v11026_v29  ;;  %v5063_v35 = vmul.f32 %v10939_v42, %v11026_v29  ;;  %v5064_v49 = vmul.f32 %v10939_v42, %v11028_v58  ;;  %v7410_v15 = vld [vmem:[%s11511_s2 + $0x6] ss:$0 sm:$0xff] }
 0xe28   : > { %v5032_v7 = vld [vmem:[#allocation2 + $0x14] sm:$0xff]  ;;  %v11037_v61 = vld [vmem:[#allocation2 + $0x1c] sm:$0xff]  ;;  %v5598_v53 = vadd.f32 %v5594_v56, %v5586_v50  ;;  %v5597_v38 = vmul.f32 %v10954_v2, %v11026_v29  ;;  %v5612_v46 = vadd.f32 %v5608_v37, %v5600_v48  ;;  %v5620_v45 = vmul.f32 %v10963_v51, %v11026_v29 }
 0xe29   : > { %v5040_v52 = vmul.f32 %v10930_v21, %v5032_v7  ;;  %v5061_v3 = vmul.f32 %v10939_v42, %v5032_v7  ;;  %v5054_v30 = vadd.f32 %v5050_v23, %v5042_v9  ;;  %v5067_v40 = vadd.f32 %v5063_v35, %v5053_v20 }
 0xe2a   : > { %v5595_v54 = vmul.f32 %v10954_v2, %v5032_v7  ;;  %v5610_v50 = vadd.f32 %v5606_v16, %v5598_v53  ;;  %v5618_v36 = vmul.f32 %v10963_v51, %v5032_v7  ;;  %v5062_v21 = vmul.f32 %v10939_v42, %v11037_v61 }
 0xe2b   : > { %v5052_v32 = vadd.f32 %v5048_v57, %v5040_v52  ;;  %v5065_v37 = vadd.f32 %v5061_v3, %v5051_v17  ;;  %v5068_v56 = vadd.f32 %v5064_v49, %v5054_v30  ;;  %v5619_v48 = vmul.f32 %v10963_v51, %v11037_v61 }
 0xe2c   : > { %v5599_v23 = vadd.f32 %v5595_v54, %v5587_v60  ;;  %v5622_v9 = vadd.f32 %v5618_v36, %v5610_v50  ;;  %v5601_v1 = vadd.f32 %v5597_v38, %v5589_v13  ;;  %v5079_v33 = vadd.f32 %v7410_v15, %v5067_v40  ;;  %v7426_v60 = vld [vmem:[%s11511_s2 + $0x7] ss:$0 sm:$0xff]  ;;  %v6226_v50 = vld [vmem:[#allocation2 + $0x54] sm:$0xff] }
 0xe2d   : > { %v5066_v24 = vadd.f32 %v5062_v21, %v5052_v32  ;;  %v5080_v20 = vadd.f32 %v7410_v15, %v5068_v56  ;;  %v5621_v2 = vmul.f32 %v10963_v51, %v11028_v58  ;;  %v5624_v53 = vadd.f32 %v5620_v45, %v5612_v46  ;;  %v11100_v36 = vld [vmem:[#allocation15] sm:$0xff] }
 0xe2e   : > { %v5611_v16 = vadd.f32 %v5607_v14, %v5599_v23  ;;  %v5638_v35 = vadd.f32 %v5634_v47, %v5622_v9  ;;  %v5613_v57 = vadd.f32 %v5609_v0, %v5601_v1  ;;  %v5077_v52 = vadd.f32 %v7410_v15, %v5065_v37 }
 0xe2f   : > { %v5078_v42 = vadd.f32 %v7410_v15, %v5066_v24  ;;  %v6172_v17 = vadd.f32 %v10995_v34, %v6160_v55  ;;  %v6180_v13 = vmul.f32 %v10950_v22, %v5032_v7  ;;  %v5082_v49 = vpack.c.bf16 %v5080_v20, %v5079_v33  ;;  %v11085_v15 = vld [vmem:[#allocation15 + $0x8] sm:$0xff] }
 0xe30   : > { %v5623_v38 = vadd.f32 %v5619_v48, %v5611_v16  ;;  %v5625_v3 = vadd.f32 %v5621_v2, %v5613_v57  ;;  %v5640_v30 = vadd.f32 %v11002_v31, %v5624_v53  ;;  %v6183_v14 = vadd.f32 %v6179_v63, %v10965_v27  ;;  %v7411_v53 = vld [vmem:[#allocation6 + $0x6] ss:$0 sm:$0xff] }
 0xe31   : > { %v5081_v51 = vpack.c.bf16 %v5078_v42, %v5077_v52  ;;  %v6184_v1 = vadd.f32 %v6180_v13, %v6172_v17  ;;  %v6203_v0 = vmul.f32 %v10971_v41, %v5032_v7  ;;  %v11067_v47 = vadd.f32 %v7426_v60, %v5638_v35 }
 0xe32   : > { %v5639_v24 = vadd.f32 %v10968_v28, %v5623_v38  ;;  %v5641_v46 = vadd.f32 %v10968_v28, %v5625_v3  ;;  %v11070_v34 = vadd.f32 %v7426_v60, %v5640_v30  ;;  %v6195_v33 = vadd.f32 %v10998_v62, %v6183_v14  ;;  %v11088_v62 = vld [vmem:[#allocation2 + $0x8] sm:$0xff] }
 0xe33   : > { %8461 = vmatprep.mubr.bf16.mxu0 %v5081_v51  ;;  %v6196_v55 = vadd.f32 %v11018_v19, %v6184_v1  ;;  %v6204_v31 = vmul.f32 %v10971_v41, %v11037_v61  ;;  %v6182_v27 = vmul.f32 %v10950_v22, %v11026_v29  ;;  %v6197_v28 = vadd.f32 %v10989_v43, %v6185_v18 }
 0xe34   : > { %8462 = vmatmul.mubr.bf16.vlgmr.msra.gmra.mxu0 %v5082_v49  ;;  %v11078_v63 = vadd.f32 %v7426_v60, %v5639_v24  ;;  %v11080_v7 = vadd.f32 %v7426_v60, %v5641_v46  ;;  %v6205_v45 = vmul.f32 %v10971_v41, %v11026_v29  ;;  %v6207_v22 = vadd.f32 %v6203_v0, %v6195_v33 }
 0xe35   : > { %8508 = vmatpush3.msra.mxu0 %v11085_v15  ;;  %8511 = vmatprep.mubr.msk.f32.mxu0 %vm9372_vm0, %v11088_v62  ;;  %v6208_v19 = vadd.f32 %v6204_v31, %v6196_v55  ;;  %v6186_v40 = vadd.f32 %v6182_v27, %v11031_v12  ;;  %v6231_v29 = vmul.f32 %v10957_v59, %v11037_v61 }
 0xe36   : > { %v5654_v54 = vpack.c.bf16 %v11078_v63, %v11067_v47  ;;  %8509 = vmatprep.subr.mxu0 %v11088_v62  ;;  %v5655_v43 = vpack.c.bf16 %v11080_v7, %v11070_v34  ;;  %v6209_v18 = vadd.f32 %v6205_v45, %v6197_v28  ;;  %v6219_v32 = vadd.f32 %v11024_v39, %v6207_v22  ;;  %v11199_v34 = vld [vmem:[%s11520_s11 + $0x50] sm:$0xff]  ;;  %v11209_v7 = vld [vmem:[%s11520_s11 + $0x48] sm:$0xff] }
 0xe37   : > { %8510 = vmatpush3.msra.mxu0 %v11100_v36  ;;  %v6220_v12 = vadd.f32 %v10974_v4, %v6208_v19  ;;  %v6198_v21 = vadd.f32 %v11005_v5, %v6186_v40  ;;  %v6206_v37 = vmul.f32 %v10971_v41, %v11028_v58  ;;  %v6233_v61 = vmul.f32 %v10957_v59, %v11028_v58  ;;  %v7442_v5 = vld [vmem:[%s11511_s2 + $0x8] ss:$0 sm:$0xff] }
 0xe38   : > { %8534 = vmatprep.subr.mxu0 %v11088_v62  ;;  %v6221_v56 = vadd.f32 %v11008_v25, %v6209_v18  ;;  %v6235_v23 = vadd.f32 %v6231_v29, %v6219_v32  ;;  %v6234_v39 = vmul.f32 %v10957_v59, %v6226_v50 }
 0xe39   : > { %v6236_v48 = vadd.f32 %v10977_v44, %v6220_v12  ;;  %v6210_v9 = vadd.f32 %v6206_v37, %v6198_v21 }
 0xe3a   : > { %v6237_v20 = vadd.f32 %v6233_v61, %v6221_v56  ;;  %v11117_v2 = vadd.f32 %v7442_v5, %v6235_v23 }
 0xe3b   : > { %v11119_v41 = vadd.f32 %v7442_v5, %v6236_v48  ;;  %v6222_v25 = vadd.f32 %v10974_v4, %v6210_v9 }
 0xe3c   : > { %v11124_v35 = vadd.f32 %v7442_v5, %v6237_v20 }
 0xe3d   : > { %v6251_v58 = vpack.c.bf16 %v11119_v41, %v11117_v2  ;;  %v6238_v16 = vadd.f32 %v6234_v39, %v6222_v25 }
 0xe3f   : > { %v11126_v44 = vadd.f32 %v7442_v5, %v6238_v16 }
 0xef4   : > { %v8463_v57 = vpop.f32.mrf.mxu0 }
 0xef5   : > { %v11130_v42 = vadd.f32 %v8463_v57, %v7411_v53  ;;  %v8931_v57 = vld [vmem:[#allocation3 + $0x1f8] sm:$0xff]  }
 0xef6   : > { %v5190_v52 = vpop.f32.mrf.mxu0 }
 0xef7   : > { %v11132_v60 = vadd.f32 %v7411_v53, %v5190_v52  ;;  %v5207_v49 = vmul.f32 %v11130_v42, %v11130_v42 }
 0xef8   : > { %v8464_v17 = vpop.f32.mrf.mxu0 }
 0xef9   : > { %v11134_v4 = vadd.f32 %v8464_v17, %v7411_v53  ;;  %v5205_v51 = vmul.f32 %v11132_v60, %v11132_v60  ;;  %v8932_v17 = vld [vmem:[#allocation3 + $0x1f0] sm:$0xff]  }
 0xefa   : > { %v5193_v13 = vpop.f32.mrf.mxu0 }
 0xefb   : > { %v5208_v38 = vmul.f32 %v11134_v4, %v11134_v4  ;;  %v5216_v3 = vadd.f32 %v11134_v4, %v11130_v42  ;;  %v11142_v30 = vadd.f32 %v7411_v53, %v5193_v13 }
 0xefd   : > { %v5217_v14 = vrot.slane %v5216_v3, 4  ;;  %v5230_v1 = vadd.f32 %v5208_v38, %v5207_v49  ;;  %v5206_v0 = vmul.f32 %v11142_v30, %v11142_v30  ;;  %v5209_v24 = vadd.f32 %v11142_v30, %v11132_v60 }
 0xeff   : > { %v5218_v46 = vadd.f32 %v5217_v14, %v5216_v3  ;;  %v5231_v33 = vrot.slane %v5230_v1, 4  ;;  %v5210_v55 = vrot.slane %v5209_v24, 4  ;;  %v5223_v31 = vadd.f32 %v5206_v0, %v5205_v51  ;;  %v8933_v3 = vld [vmem:[#allocation3 + $0x1e8] sm:$0xff]   ;;  %v8935_v0 = vld [vmem:[#allocation3 + $0x1d8] sm:$0xff]  }
 0xf01   : > { %v5219_v27 = vrot.slane %v5218_v46, 2  ;;  %v5232_v28 = vadd.f32 %v5231_v33, %v5230_v1  ;;  %v5211_v45 = vadd.f32 %v5210_v55, %v5209_v24  ;;  %v5224_v22 = vrot.slane %v5223_v31, 4  ;;  %v8934_v1 = vld [vmem:[#allocation3 + $0x1e0] sm:$0xff]   ;;  %v8936_v24 = vld [vmem:[#allocation3 + $0x1d0] sm:$0xff]   ;;  %v11172_v33 = vld [vmem:[%s11520_s11 + $0x68] sm:$0xff] }
 0xf02   : > { %v11180_v55 = vld [vmem:[%s11520_s11 + $0x60] sm:$0xff] }
 0xf03   : > { %v5220_v19 = vadd.f32 %v5219_v27, %v5218_v46  ;;  %v5233_v40 = vrot.slane %v5232_v28, 2  ;;  %v5212_v29 = vrot.slane %v5211_v45, 2  ;;  %v5225_v18 = vadd.f32 %v5224_v22, %v5223_v31  ;;  %v8937_v46 = vld [vmem:[#allocation3 + $0x1c8] sm:$0xff]   ;;  %v11190_v31 = vld [vmem:[%s11520_s11 + $0x58] sm:$0xff]  ;;  %v11245_v22 = vld [vmem:[%s11520_s11 + $0x20] sm:$0xff] }
 0xf04   : > { %v11224_v27 = vld [vmem:[%s11520_s11 + $0x38] sm:$0xff] }
 0xf05   : > { %v5221_v50 = vrot.slane %v5220_v19, 1  ;;  %v5213_v32 = vadd.f32 %v5212_v29, %v5211_v45  ;;  %v5226_v12 = vrot.slane %v5225_v18, 2  ;;  %v5234_v21 = vadd.f32 %v5233_v40, %v5232_v28  ;;  %v11231_v28 = vld [vmem:[%s11520_s11 + $0x30] sm:$0xff]  ;;  %v11238_v45 = vld [vmem:[%s11520_s11 + $0x28] sm:$0xff] }
 0xf06   : > { %v11259_v40 = vld [vmem:[%s11520_s11 + $0x10] sm:$0xff]  ;;  %v11266_v29 = vld [vmem:[%s11520_s11 + $0x8] sm:$0xff] }
 0xf07   : > { %v5214_v37 = vrot.slane %v5213_v32, 1  ;;  %v5227_v56 = vadd.f32 %v5226_v12, %v5225_v18  ;;  %v5235_v61 = vrot.slane %v5234_v21, 1  ;;  %v5222_v23 = vadd.f32 %v5221_v50, %v5220_v19  ;;  %v11252_v19 = vld [vmem:[%s11520_s11 + $0x18] sm:$0xff]  ;;  %v11273_v18 = vld [vmem:[%s11520_s11] sm:$0xff] }
 0xf09   : > { %v5215_v48 = vadd.f32 %v5214_v37, %v5213_v32  ;;  %v5228_v9 = vrot.slane %v5227_v56, 1  ;;  %v5236_v20 = vadd.f32 %v5235_v61, %v5234_v21 }
 0xf0b   : > { %v5229_v39 = vadd.f32 %v5228_v9, %v5227_v56  ;;  %v5241_v5 = vsel %vm815_vm1, %v5222_v23, %v5215_v48 }
 0xf0d   : > { %v5242_v25 = vsel %vm817_vm2, %v5229_v39, %v5241_v5 }
 0xf0e   : > { %v5243_v16 = vsel %vm819_vm3, %v5236_v20, %v5242_v25 }
 0xf0f   : > { %8498 = vmatmul.mubr.f32.vlgmr.msra.gmra.mxu1 %v5243_v16 }
 0xf10   : > { %8501 = vmatpush3.msra.mxu1 %v11085_v15  ;;  %8504 = vmatprep.mubr.msk.f32.mxu1 %vm9372_vm0, %v11088_v62 }
 0xf11   : > { %8502 = vmatprep.subr.mxu1 %v11088_v62 }
 0xf12   : > { %8503 = vmatpush3.msra.mxu1 %v11100_v36 }
 0xf13   : > { %8514 = vmatprep.subr.bf16.mxu1 %v8931_v57 }
 0xfcf   : > { %v5311_v53 = vpop.f32.mrf.mxu1 }
 0xfd0   : > { %v5315_v52 = vmul.f32 0.0078125, %v5311_v53 }
 0xfd1   : > { %v8499_v13 = vpop.f32.mrf.mxu1 }
 0xfd2   : > { %v5316_v49 = vmul.f32 %v5315_v52, %v5315_v52  ;;  %8505 = vmatmul.mubr.msk.f32.vlgmr.msra.gmra.mxu1 %vm900_vm4, %v5315_v52 }
 0xfd3   : > { %8515 = vmatpush3.bf16.msra.mxu1 %v8931_v57  ;;  %8530 = vmatprep.mubr.bf16.mxu1 %v5654_v54  ;;  %v8938_v54 = vld [vmem:[#allocation3 + $0x1c0] sm:$0xff]  }
 0xfd4   : > { %v5318_v38 = vrot.slane %v5316_v49, 6  ;;  %8516 = vmatprep.subr.bf16.mxu1 %v8932_v17 }
 0xfd6   : > { %v5320_v51 = vsub.f32 %v5315_v52, %v5318_v38 }
 0xfd7   : > { %8517 = vmatpush3.bf16.msra.mxu1 %v8932_v17  ;;  %v7422_v17 = vld [vmem:[#allocation8 + $0x6] ss:$0 sm:$0xff] }
 0xfd8   : > { %v5321_v14 = vadd.f32 1e-05, %v5320_v51  ;;  %8518 = vmatprep.subr.bf16.mxu1 %v8933_v3  ;;  %v7427_v51 = vld [vmem:[#allocation6 + $0x7] ss:$0 sm:$0xff] }
 0xfda   : > { %8983 = vrsqrt.f32 %v5321_v14  ;;  %v7423_v14 = vld [vmem:[#allocation9 + $0x6] ss:$0 sm:$0xff] }
 0xfdb   : > { %8519 = vmatpush3.bf16.msra.mxu1 %v8933_v3 }
 0xfdc   : > { %8520 = vmatprep.subr.bf16.mxu1 %v8934_v1 }
 0xfdf   : > { %8521 = vmatpush3.bf16.msra.mxu1 %v8934_v1 }
 0xfe0   : > { %8522 = vmatprep.subr.bf16.mxu1 %v8935_v0 }
 0xfe3   : > { %8523 = vmatpush3.bf16.msra.mxu1 %v8935_v0 }
 0xfe4   : > { %8524 = vmatprep.subr.bf16.mxu1 %v8936_v24 }
 0xfe7   : > { %v8984_v47 = vpop.eup %8983  ;;  %8525 = vmatpush3.bf16.msra.mxu1 %v8936_v24 }
 0xfe8   : > { %v5420_v63 = vrot.slane %v8984_v47, 2  ;;  %8526 = vmatprep.subr.bf16.mxu1 %v8937_v46 }
 0xfea   : > { %8512 = vmatmul.mubr.msk.f32.vlgmr.msra.gmra.mxu0 %vm900_vm4, %v5420_v63 }
 0xfeb   : > { %8527 = vmatpush3.bf16.msra.mxu1 %v8937_v46  ;;  %8535 = vmatpush3.msra.mxu0 %v10874_v8 }
 0xfec   : > { %8528 = vmatprep.subr.bf16.mxu1 %v8938_v54  ;;  %8536 = vmatprep.subr.mxu0 %v11088_v62 }
 0xfed   : > { %8537 = vmatpush3.msra.mxu0 %v10883_v26  ;;  %8566 = vmatprep.mubr.msk.f32.mxu0 %vm9372_vm0, %v11088_v62 }
 0xfee   : > { %8538 = vmatprep.subr.mxu0 %v11088_v62 }
 0xfef   : > { %8529 = vmatpush3.bf16.msra.mxu1 %v8938_v54  ;;  %8539 = vmatpush3.msra.mxu0 %v11172_v33 }
 0xff0   : > { %8540 = vmatprep.subr.mxu0 %v11088_v62  ;;  %8576 = vmatprep.subr.mxu1 %v11088_v62 }
 0xff1   : > { %8541 = vmatpush3.msra.mxu0 %v11180_v55 }
 0xff2   : > { %8531 = vmatmul.mubr.bf16.vlgmr.msra.gmra.mxu1 %v5655_v43  ;;  %8542 = vmatprep.subr.mxu0 %v11088_v62  ;;  %v11217_v43 = vld [vmem:[%s11520_s11 + $0x40] sm:$0xff] }
 0xff3   : > { %8543 = vmatpush3.msra.mxu0 %v11190_v31  ;;  %8577 = vmatpush3.msra.mxu1 %v11085_v15 }
 0xff4   : > { %8544 = vmatprep.subr.mxu0 %v11088_v62  ;;  %8578 = vmatprep.subr.mxu1 %v11088_v62 }
 0xff5   : > { %8545 = vmatpush3.msra.mxu0 %v11199_v34  ;;  %8579 = vmatpush3.msra.mxu1 %v11100_v36 }
 0xff6   : > { %8546 = vmatprep.subr.mxu0 %v11088_v62  ;;  %8580 = vmatprep.mubr.msk.f32.mxu1 %vm9372_vm0, %v11088_v62 }
 0xff7   : > { %8547 = vmatpush3.msra.mxu0 %v11209_v7  ;;  %8603 = vmatprep.subr.mxu1 %v11088_v62 }
 0xff8   : > { %8548 = vmatprep.subr.mxu0 %v11088_v62 }
 0xff9   : > { %8549 = vmatpush3.msra.mxu0 %v11217_v43 }
 0xffa   : > { %8550 = vmatprep.subr.mxu0 %v11088_v62 }
 0xffb   : > { %8551 = vmatpush3.msra.mxu0 %v11224_v27 }
 0xffc   : > { %8552 = vmatprep.subr.mxu0 %v11088_v62 }
 0xffd   : > { %8553 = vmatpush3.msra.mxu0 %v11231_v28 }
 0xffe   : > { %8554 = vmatprep.subr.mxu0 %v11088_v62 }
 0xfff   : > { %8555 = vmatpush3.msra.mxu0 %v11238_v45 }
0x1000   : > { %8556 = vmatprep.subr.mxu0 %v11088_v62 }
0x1001   : > { %8557 = vmatpush3.msra.mxu0 %v11245_v22 }
0x1002   : > { %8558 = vmatprep.subr.mxu0 %v11088_v62 }
0x1003   : > { %8559 = vmatpush3.msra.mxu0 %v11252_v19 }
0x1004   : > { %8560 = vmatprep.subr.mxu0 %v11088_v62 }
0x1005   : > { %8561 = vmatpush3.msra.mxu0 %v11259_v40 }
0x1006   : > { %8562 = vmatprep.subr.mxu0 %v11088_v62 }
0x1007   : > { %8563 = vmatpush3.msra.mxu0 %v11266_v29 }
0x1008   : > { %8564 = vmatprep.subr.mxu0 %v11088_v62 }
0x1009   : > { %8565 = vmatpush3.msra.mxu0 %v11273_v18 }
0x100a   : > { %8569 = vmatprep.subr.mxu0 %v11088_v62 }
0x1092   : > { %v5392_v50 = vpop.f32.mrf.mxu1 }
0x1093   : > { %v5403_v12 = vrot.slane %v5392_v50, %v9990_v10 }
0x1094   : > { %v8506_v32 = vpop.f32.mrf.mxu1 }
0x1095   : > { %v5404_v21 = vcombine.high %v5403_v12, %v5403_v12  ;;  %v5411_v37 = vrot.slane %v5403_v12, %v9990_v10 }
0x1097   : > { %v5418_v56 = vrot.slane %v5404_v21, %v9990_v10  ;;  %v5519_v23 = vrot.slane %v5411_v37, %v9641_v11 }
0x1099   : > { %v5523_v9 = vrot.slane %v5418_v56, %v9641_v11  ;;  %v5526_v25 = vsub.f32 %v11132_v60, %v5519_v23  ;;  %v5527_v16 = vsub.f32 %v11142_v30, %v5519_v23 }
0x109b   : > { %v5528_v52 = vsub.f32 %v11130_v42, %v5523_v9  ;;  %v5529_v13 = vsub.f32 %v11134_v4, %v5523_v9 }
0x10aa   : > { %v5489_v61 = vpop.f32.mrf.mxu0 }
0x10ab   : > { %v5500_v48 = vrot.slane %v5489_v61, %v9990_v10 }
0x10ac   : > { %v8513_v39 = vpop.f32.mrf.mxu0 }
0x10ad   : > { %v5501_v5 = vcombine.high %v5500_v48, %v5500_v48  ;;  %v5508_v20 = vrot.slane %v5500_v48, %v9990_v10 }
0x10af   : > { %v5515_v57 = vrot.slane %v5501_v5, %v9990_v10  ;;  %v5533_v53 = vrot.slane %v5508_v20, %v9641_v11 }
0x10b1   : > { %v5537_v49 = vrot.slane %v5515_v57, %v9641_v11  ;;  %v5540_v38 = vmul.f32 %v5533_v53, %v5526_v25  ;;  %v5541_v3 = vmul.f32 %v5533_v53, %v5527_v16  ;;  %v11633_v16 = vld [vmem:[#allocation34_spill] sm:$0xff] }
0x10b2   : > { %v8532_v1 = vpop.f32.mrf.mxu1 }
0x10b3   : > { %v5542_v0 = vmul.f32 %v5537_v49, %v5528_v52  ;;  %v5543_v60 = vmul.f32 %v5537_v49, %v5529_v13  ;;  %v5552_v24 = vmul.f32 %v7422_v17, %v5540_v38  ;;  %v5553_v30 = vmul.f32 %v7422_v17, %v5541_v3 }
0x10b4   : > { %v11291_v46 = vadd.f32 %v8532_v1, %v7427_v51  ;;  %v5763_v47 = vpop.f32.mrf.mxu1  ;;  %v11635_v1 = vld [vmem:[#allocation36_spill] sm:$0xff] }
0x10b5   : > { %v5564_v63 = vadd.f32 %v7423_v14, %v5552_v24  ;;  %v5565_v54 = vadd.f32 %v7423_v14, %v5553_v30  ;;  %v5554_v42 = vmul.f32 %v7422_v17, %v5542_v0  ;;  %v11293_v50 = vadd.f32 %v7427_v51, %v5763_v47 }
0x10b6   : > { %v8533_v4 = vpop.f32.mrf.mxu1  ;;  %v5555_v32 = vmul.f32 %v7422_v17, %v5543_v60  ;;  %v5780_v56 = vmul.f32 %v11291_v46, %v11291_v46 }
0x10b7   : > { %v5568_v12 = vmax.f32 %v5564_v63, 0.0  ;;  %v5569_v21 = vmax.f32 %v5565_v54, 0.0  ;;  %v11295_v37 = vadd.f32 %v8533_v4, %v7427_v51  ;;  %v5566_v23 = vadd.f32 %v7423_v14, %v5554_v42 }
0x10b8   : > { %v5766_v61 = vpop.f32.mrf.mxu1  ;;  %v5567_v48 = vadd.f32 %v7423_v14, %v5555_v32  ;;  %v5778_v25 = vmul.f32 %v11293_v50, %v11293_v50 }
0x10b9   : > { %v5781_v9 = vmul.f32 %v11295_v37, %v11295_v37  ;;  %v5789_v39 = vadd.f32 %v11295_v37, %v11291_v46  ;;  %v11303_v5 = vadd.f32 %v7427_v51, %v5766_v61  ;;  %v11306_v20 = vadd.f32 %v5568_v12, %v10944_v6  ;;  %v11634_v51 = vld [vmem:[#allocation35_spill] sm:$0xff] }
0x10ba   : > { %v11311_v57 = vadd.f32 %v5569_v21, %v11633_v16  ;;  %v5570_v53 = vmax.f32 %v5566_v23, 0.0  ;;  %v5571_v52 = vmax.f32 %v5567_v48, 0.0 }
0x10bb   : > { %v5790_v17 = vrot.slane %v5789_v39, 4  ;;  %v5803_v13 = vadd.f32 %v5781_v9, %v5780_v56  ;;  %v5779_v49 = vmul.f32 %v11303_v5, %v11303_v5  ;;  %v5782_v38 = vadd.f32 %v11303_v5, %v11293_v50 }
0x10bc   : > { %v11320_v14 = vadd.f32 %v5570_v53, %v11634_v51  ;;  %v11323_v0 = vadd.f32 %v5571_v52, %v11635_v1 }
0x10bd   : > { %v5791_v60 = vadd.f32 %v5790_v17, %v5789_v39  ;;  %v5804_v24 = vrot.slane %v5803_v13, 4  ;;  %v5783_v30 = vrot.slane %v5782_v38, 4  ;;  %v5796_v47 = vadd.f32 %v5779_v49, %v5778_v25 }
0x10bf   : > { %v5792_v54 = vrot.slane %v5791_v60, 2  ;;  %v5805_v42 = vadd.f32 %v5804_v24, %v5803_v13  ;;  %v5784_v4 = vadd.f32 %v5783_v30, %v5782_v38  ;;  %v5797_v32 = vrot.slane %v5796_v47, 4  ;;  %v8939_v24 = vld [vmem:[#allocation3 + $0x238] sm:$0xff]  }
0x10c1   : > { %v5793_v12 = vadd.f32 %v5792_v54, %v5791_v60  ;;  %v5806_v21 = vrot.slane %v5805_v42, 2  ;;  %v5785_v56 = vrot.slane %v5784_v4, 2  ;;  %v5798_v61 = vadd.f32 %v5797_v32, %v5796_v47 }
0x10c3   : > { %v5794_v23 = vrot.slane %v5793_v12, 1  ;;  %v5786_v48 = vadd.f32 %v5785_v56, %v5784_v4  ;;  %v5799_v9 = vrot.slane %v5798_v61, 2  ;;  %v5807_v53 = vadd.f32 %v5806_v21, %v5805_v42  ;;  %v8943_v21 = vld [vmem:[#allocation3 + $0x218] sm:$0xff]   ;;  %v8944_v56 = vld [vmem:[#allocation3 + $0x210] sm:$0xff]  }
0x10c5   : > { %v5787_v52 = vrot.slane %v5786_v48, 1  ;;  %v5800_v39 = vadd.f32 %v5799_v9, %v5798_v61  ;;  %v5808_v17 = vrot.slane %v5807_v53, 1  ;;  %v5795_v3 = vadd.f32 %v5794_v23, %v5793_v12  ;;  %v8942_v12 = vld [vmem:[#allocation3 + $0x220] sm:$0xff]   ;;  %v8945_v61 = vld [vmem:[#allocation3 + $0x208] sm:$0xff]  }
0x10c7   : > { %v5788_v25 = vadd.f32 %v5787_v52, %v5786_v48  ;;  %v5801_v49 = vrot.slane %v5800_v39, 1  ;;  %v5809_v13 = vadd.f32 %v5808_v17, %v5807_v53  ;;  %v7438_v48 = vld [vmem:[#allocation8 + $0x7] ss:$0 sm:$0xff]  ;;  %v7443_v17 = vld [vmem:[#allocation6 + $0x8] ss:$0 sm:$0xff] }
0x10c9   : > { %v5802_v59 = vadd.f32 %v5801_v49, %v5800_v39  ;;  %v5814_v63 = vsel %vm815_vm1, %v5795_v3, %v5788_v25  ;;  %v8940_v3 = vld [vmem:[#allocation3 + $0x230] sm:$0xff]   ;;  %v7439_v49 = vld [vmem:[#allocation9 + $0x7] ss:$0 sm:$0xff] }
0x10cb   : > { %v5815_v38 = vsel %vm817_vm2, %v5802_v59, %v5814_v63  ;;  %v8941_v63 = vld [vmem:[#allocation3 + $0x228] sm:$0xff]  }
0x10cc   : > { %v5816_v60 = vsel %vm819_vm3, %v5809_v13, %v5815_v38 }
0x10cd   : > { %8567 = vmatmul.mubr.f32.vlgmr.msra.gmra.mxu0 %v5816_v60 }
0x10ce   : > { %8570 = vmatpush3.msra.mxu0 %v11085_v15  ;;  %8573 = vmatprep.mubr.msk.f32.mxu0 %vm9372_vm0, %v11088_v62 }
0x10cf   : > { %8571 = vmatprep.subr.mxu0 %v11088_v62 }
0x10d0   : > { %8572 = vmatpush3.msra.mxu0 %v11100_v36 }
0x10d1   : > { %8583 = vmatprep.subr.bf16.mxu0 %v8939_v24 }
0x118d   : > { %v5884_v30 = vpop.f32.mrf.mxu0 }
0x118e   : > { %v5888_v47 = vmul.f32 0.0078125, %v5884_v30 }
0x118f   : > { %v8568_v54 = vpop.f32.mrf.mxu0 }
0x1190   : > { %v5889_v42 = vmul.f32 %v5888_v47, %v5888_v47  ;;  %8574 = vmatmul.mubr.msk.f32.vlgmr.msra.gmra.mxu0 %vm900_vm4, %v5888_v47 }
0x1191   : > { %8584 = vmatpush3.bf16.msra.mxu0 %v8939_v24  ;;  %8599 = vmatprep.mubr.bf16.mxu0 %v6251_v58  ;;  %v8946_v58 = vld [vmem:[#allocation3 + $0x200] sm:$0xff]  }
0x1192   : > { %v5891_v59 = vrot.slane %v5889_v42, 6  ;;  %8585 = vmatprep.subr.bf16.mxu0 %v8940_v3 }
0x1194   : > { %v5893_v4 = vsub.f32 %v5888_v47, %v5891_v59 }
0x1195   : > { %8586 = vmatpush3.bf16.msra.mxu0 %v8940_v3 }
0x1196   : > { %v5894_v32 = vadd.f32 1e-05, %v5893_v4  ;;  %8587 = vmatprep.subr.bf16.mxu0 %v8941_v63 }
0x1198   : > { %8985 = vrsqrt.f32 %v5894_v32 }
0x1199   : > { %8588 = vmatpush3.bf16.msra.mxu0 %v8941_v63 }
0x119a   : > { %8589 = vmatprep.subr.bf16.mxu0 %v8942_v12 }
0x119d   : > { %8590 = vmatpush3.bf16.msra.mxu0 %v8942_v12 }
0x119e   : > { %8591 = vmatprep.subr.bf16.mxu0 %v8943_v21 }
0x11a1   : > { %8592 = vmatpush3.bf16.msra.mxu0 %v8943_v21 }
0x11a2   : > { %8593 = vmatprep.subr.bf16.mxu0 %v8944_v56 }
0x11a5   : > { %v8986_v2 = vpop.eup %8985  ;;  %8594 = vmatpush3.bf16.msra.mxu0 %v8944_v56 }
0x11a6   : > { %v5993_v41 = vrot.slane %v8986_v2, 2  ;;  %8595 = vmatprep.subr.bf16.mxu0 %v8945_v61 }
0x11a8   : > { %8581 = vmatmul.mubr.msk.f32.vlgmr.msra.gmra.mxu1 %vm900_vm4, %v5993_v41 }
0x11a9   : > { %8596 = vmatpush3.bf16.msra.mxu0 %v8945_v61  ;;  %8604 = vmatpush3.msra.mxu1 %v10874_v8  ;;  %v11636_v8 = vpack.c.bf16 %v11126_v44, %v11124_v35 }
0x11aa   : > { %8597 = vmatprep.subr.bf16.mxu0 %v8946_v58  ;;  %8605 = vmatprep.subr.mxu1 %v11088_v62 }
0x11ab   : > { %8606 = vmatpush3.msra.mxu1 %v10883_v26  ;;  %8635 = vmatprep.mubr.msk.f32.mxu1 %vm9372_vm0, %v11088_v62 }
0x11ac   : > { %8607 = vmatprep.subr.mxu1 %v11088_v62 }
0x11ad   : > { %8598 = vmatpush3.bf16.msra.mxu0 %v8946_v58  ;;  %8608 = vmatpush3.msra.mxu1 %v11172_v33 }
0x11ae   : > { %8609 = vmatprep.subr.mxu1 %v11088_v62  ;;  %8645 = vmatprep.subr.mxu0 %v11088_v62 }
0x11af   : > { %8610 = vmatpush3.msra.mxu1 %v11180_v55 }
0x11b0   : > { %8600 = vmatmul.mubr.bf16.vlgmr.msra.gmra.mxu0 %v11636_v8  ;;  %8611 = vmatprep.subr.mxu1 %v11088_v62 }
0x11b1   : > { %8612 = vmatpush3.msra.mxu1 %v11190_v31  ;;  %8646 = vmatpush3.msra.mxu0 %v11085_v15 }
0x11b2   : > { %8613 = vmatprep.subr.mxu1 %v11088_v62  ;;  %8647 = vmatprep.subr.mxu0 %v11088_v62 }
0x11b3   : > { %8614 = vmatpush3.msra.mxu1 %v11199_v34  ;;  %8648 = vmatpush3.msra.mxu0 %v11100_v36 }
0x11b4   : > { %8615 = vmatprep.subr.mxu1 %v11088_v62  ;;  %8649 = vmatprep.mubr.msk.f32.mxu0 %vm9372_vm0, %v11088_v62 }
0x11b5   : > { %8616 = vmatpush3.msra.mxu1 %v11209_v7 }
0x11b6   : > { %8617 = vmatprep.subr.mxu1 %v11088_v62 }
0x11b7   : > { %8618 = vmatpush3.msra.mxu1 %v11217_v43 }
0x11b8   : > { %8619 = vmatprep.subr.mxu1 %v11088_v62 }
0x11b9   : > { %8620 = vmatpush3.msra.mxu1 %v11224_v27 }
0x11ba   : > { %8621 = vmatprep.subr.mxu1 %v11088_v62 }
0x11bb   : > { %8622 = vmatpush3.msra.mxu1 %v11231_v28 }
0x11bc   : > { %8623 = vmatprep.subr.mxu1 %v11088_v62 }
0x11bd   : > { %8624 = vmatpush3.msra.mxu1 %v11238_v45 }
0x11be   : > { %8625 = vmatprep.subr.mxu1 %v11088_v62 }
0x11bf   : > { %8626 = vmatpush3.msra.mxu1 %v11245_v22 }
0x11c0   : > { %8627 = vmatprep.subr.mxu1 %v11088_v62 }
0x11c1   : > { %8628 = vmatpush3.msra.mxu1 %v11252_v19 }
0x11c2   : > { %8629 = vmatprep.subr.mxu1 %v11088_v62 }
0x11c3   : > { %8630 = vmatpush3.msra.mxu1 %v11259_v40 }
0x11c4   : > { %8631 = vmatprep.subr.mxu1 %v11088_v62 }
0x11c5   : > { %8632 = vmatpush3.msra.mxu1 %v11266_v29 }
0x11c6   : > { %8633 = vmatprep.subr.mxu1 %v11088_v62 }
0x11c7   : > { %8634 = vmatpush3.msra.mxu1 %v11273_v18 }
0x11c8   : > { %8638 = vmatprep.subr.mxu1 %v11088_v62 }
0x1250   : > { %v5965_v26 = vpop.f32.mrf.mxu0 }
0x1251   : > { %v5976_v44 = vrot.slane %v5965_v26, %v9990_v10 }
0x1252   : > { %v8575_v35 = vpop.f32.mrf.mxu0 }
0x1253   : > { %v5977_v33 = vcombine.high %v5976_v44, %v5976_v44  ;;  %v5984_v55 = vrot.slane %v5976_v44, %v9990_v10 }
0x1255   : > { %v5991_v31 = vrot.slane %v5977_v33, %v9990_v10  ;;  %v6092_v7 = vrot.slane %v5984_v55, %v9641_v11 }
0x1257   : > { %v6096_v27 = vrot.slane %v5991_v31, %v9641_v11  ;;  %v6099_v19 = vsub.f32 %v11293_v50, %v6092_v7  ;;  %v6100_v40 = vsub.f32 %v11303_v5, %v6092_v7 }
0x1259   : > { %v6101_v23 = vsub.f32 %v11291_v46, %v6096_v27  ;;  %v6102_v9 = vsub.f32 %v11295_v37, %v6096_v27 }
0x1268   : > { %v6062_v34 = vpop.f32.mrf.mxu1 }
0x1269   : > { %v6073_v43 = vrot.slane %v6062_v34, %v9990_v10 }
0x126a   : > { %v8582_v28 = vpop.f32.mrf.mxu1 }
0x126b   : > { %v6074_v45 = vcombine.high %v6073_v43, %v6073_v43  ;;  %v6081_v22 = vrot.slane %v6073_v43, %v9990_v10 }
0x126d   : > { %v6088_v29 = vrot.slane %v6074_v45, %v9990_v10  ;;  %v6106_v18 = vrot.slane %v6081_v22, %v9641_v11 }
0x126f   : > { %v6110_v53 = vrot.slane %v6088_v29, %v9641_v11  ;;  %v6113_v52 = vmul.f32 %v6106_v18, %v6099_v19  ;;  %v6114_v39 = vmul.f32 %v6106_v18, %v6100_v40 }
0x1270   : > { %v8601_v25 = vpop.f32.mrf.mxu0 }
0x1271   : > { %v6115_v13 = vmul.f32 %v6110_v53, %v6101_v23  ;;  %v6116_v50 = vmul.f32 %v6110_v53, %v6102_v9  ;;  %v6125_v38 = vmul.f32 %v7438_v48, %v6113_v52  ;;  %v6126_v5 = vmul.f32 %v7438_v48, %v6114_v39 }
0x1272   : > { %v11397_v60 = vadd.f32 %v8601_v25, %v7443_v17  ;;  %v6360_v24 = vpop.f32.mrf.mxu0 }
0x1273   : > { %v6137_v30 = vadd.f32 %v7439_v49, %v6125_v38  ;;  %v6138_v47 = vadd.f32 %v7439_v49, %v6126_v5  ;;  %v6127_v46 = vmul.f32 %v7438_v48, %v6115_v13  ;;  %v11399_v3 = vadd.f32 %v7443_v17, %v6360_v24 }
0x1274   : > { %v8602_v37 = vpop.f32.mrf.mxu0  ;;  %v6128_v54 = vmul.f32 %v7438_v48, %v6116_v50  ;;  %v6377_v4 = vmul.f32 %v11397_v60, %v11397_v60 }
0x1275   : > { %v11401_v42 = vadd.f32 %v8602_v37, %v7443_v17  ;;  %v6141_v59 = vmax.f32 %v6137_v30, 0.0  ;;  %v6142_v63 = vmax.f32 %v6138_v47, 0.0  ;;  %v6139_v12 = vadd.f32 %v7439_v49, %v6127_v46  ;;  %v8947_v46 = vld [vmem:[#allocation12 + $0x1f8] sm:$0xff]  }
0x1276   : > { %v6363_v32 = vpop.f32.mrf.mxu0  ;;  %v6140_v21 = vadd.f32 %v7439_v49, %v6128_v54  ;;  %v6375_v58 = vmul.f32 %v11399_v3, %v11399_v3  ;;  %v8948_v54 = vld [vmem:[#allocation12 + $0x1b8] sm:$0xff]  }
0x1277   : > { %v6378_v56 = vmul.f32 %v11401_v42, %v11401_v42  ;;  %v6386_v61 = vadd.f32 %v11401_v42, %v11397_v60  ;;  %v11409_v2 = vadd.f32 %v7443_v17, %v6363_v32  ;;  %v6145_v41 = vadd.f32 %v6141_v59, %v10944_v6 }
0x1278   : > { %v6146_v8 = vadd.f32 %v6142_v63, %v11633_v16  ;;  %v6143_v26 = vmax.f32 %v6139_v12, 0.0  ;;  %v6144_v35 = vmax.f32 %v6140_v21, 0.0  ;;  %v8949_v63 = vld [vmem:[#allocation12 + $0x1f0] sm:$0xff]   ;;  %v8951_v21 = vld [vmem:[#allocation12 + $0x1e8] sm:$0xff]  }
0x1279   : > { %v6387_v44 = vrot.slane %v6386_v61, 4  ;;  %v6400_v33 = vadd.f32 %v6378_v56, %v6377_v4  ;;  %v6376_v55 = vmul.f32 %v11409_v2, %v11409_v2  ;;  %v6379_v31 = vadd.f32 %v11409_v2, %v11399_v3 }
0x127a   : > { %v6747_v34 = vpack.c.bf16 %v6146_v8, %v6145_v41  ;;  %v11420_v7 = vadd.f32 %v6143_v26, %v11634_v51  ;;  %v11423_v6 = vadd.f32 %v6144_v35, %v11635_v1  ;;  %v8954_v41 = vld [vmem:[#allocation12 + $0x1a0] sm:$0xff]   ;;  %v8956_v8 = vld [vmem:[#allocation12 + $0x198] sm:$0xff]   ;;  %v8957_v26 = vld [vmem:[#allocation12 + $0x1d0] sm:$0xff]  }
0x127b   : > { %v6388_v43 = vadd.f32 %v6387_v44, %v6386_v61  ;;  %v6401_v27 = vrot.slane %v6400_v33, 4  ;;  %v6380_v16 = vrot.slane %v6379_v31, 4  ;;  %v6393_v28 = vadd.f32 %v6376_v55, %v6375_v58  ;;  %v8953_v61 = vld [vmem:[#allocation12 + $0x1e0] sm:$0xff]   ;;  %v8955_v58 = vld [vmem:[#allocation12 + $0x1d8] sm:$0xff]   ;;  %v8958_v35 = vld [vmem:[#allocation12 + $0x190] sm:$0xff]  }
0x127c   : > { %v6750_v45 = vpack.c.bf16 %v11423_v6, %v11420_v7  ;;  %v8959_v44 = vld [vmem:[#allocation12 + $0x1c8] sm:$0xff]  }
0x127d   : > { %v6389_v22 = vrot.slane %v6388_v43, 2  ;;  %v6402_v19 = vadd.f32 %v6401_v27, %v6400_v33  ;;  %v6381_v40 = vadd.f32 %v6380_v16, %v6379_v31  ;;  %v6394_v29 = vrot.slane %v6393_v28, 4  ;;  %v8960_v55 = vld [vmem:[#allocation12 + $0x188] sm:$0xff]  }
0x127e   : > { %v11637_v27 = vpack.c.bf16 %v11311_v57, %v11306_v20  ;;  %v11638_v16 = vpack.c.bf16 %v11323_v0, %v11320_v14  ;;  %v8967_v20 = vld [vmem:[#allocation12 + $0x218] sm:$0xff]   ;;  %v8968_v57 = vld [vmem:[#allocation12 + $0x210] sm:$0xff]   ;;  %v8969_v7 = vld [vmem:[#allocation12 + $0x208] sm:$0xff]  }
0x127f   : > { %v6390_v18 = vadd.f32 %v6389_v22, %v6388_v43  ;;  %v6403_v23 = vrot.slane %v6402_v19, 2  ;;  %v6382_v48 = vrot.slane %v6381_v40, 2  ;;  %v6395_v9 = vadd.f32 %v6394_v29, %v6393_v28  ;;  %v8962_v43 = vld [vmem:[#allocation12 + $0x180] sm:$0xff]   ;;  %v8963_v28 = vld [vmem:[#allocation12 + $0x238] sm:$0xff]   ;;  %v8964_v22 = vld [vmem:[#allocation12 + $0x230] sm:$0xff]  }
0x1280   : > { %8652 = vmatprep.subr.bf16.mxu0 %v8963_v28  ;;  %v8970_v14 = vld [vmem:[#allocation12 + $0x200] sm:$0xff]  }
0x1281   : > { %v6391_v51 = vrot.slane %v6390_v18, 1  ;;  %v6383_v53 = vadd.f32 %v6382_v48, %v6381_v40  ;;  %v6396_v52 = vrot.slane %v6395_v9, 2  ;;  %v6404_v1 = vadd.f32 %v6403_v23, %v6402_v19  ;;  %v8965_v19 = vld [vmem:[#allocation12 + $0x228] sm:$0xff]   ;;  %v8966_v40 = vld [vmem:[#allocation12 + $0x220] sm:$0xff]  }
0x1283   : > { %v6384_v39 = vrot.slane %v6383_v53, 1  ;;  %v6397_v17 = vadd.f32 %v6396_v52, %v6395_v9  ;;  %v6405_v25 = vrot.slane %v6404_v1, 1  ;;  %v6392_v49 = vadd.f32 %v6391_v51, %v6390_v18 }
0x1285   : > { %v6385_v13 = vadd.f32 %v6384_v39, %v6383_v53  ;;  %v6398_v50 = vrot.slane %v6397_v17, 1  ;;  %v6406_v24 = vadd.f32 %v6405_v25, %v6404_v1 }
0x1287   : > { %v6399_v38 = vadd.f32 %v6398_v50, %v6397_v17  ;;  %v6411_v5 = vsel %vm815_vm1, %v6392_v49, %v6385_v13 }
0x1289   : > { %v6412_v30 = vsel %vm817_vm2, %v6399_v38, %v6411_v5  ;;  %v7454_v38 = vld [vmem:[#allocation8 + $0x8] ss:$0 sm:$0xff] }
0x128a   : > { %v6413_v47 = vsel %vm819_vm3, %v6406_v24, %v6412_v30 }
0x128b   : > { %8636 = vmatmul.mubr.f32.vlgmr.msra.gmra.mxu1 %v6413_v47 }
0x128c   : > { %8639 = vmatpush3.msra.mxu1 %v11085_v15  ;;  %8642 = vmatprep.mubr.msk.f32.mxu1 %vm9372_vm0, %v11088_v62  ;;  %v8950_v15 = vld [vmem:[#allocation12 + $0x1b0] sm:$0xff]  }
0x128d   : > { %8640 = vmatprep.subr.mxu1 %v11088_v62  ;;  %v8952_v62 = vld [vmem:[#allocation12 + $0x1a8] sm:$0xff]  }
0x128e   : > { %8641 = vmatpush3.msra.mxu1 %v11100_v36 }
0x128f   : > { %7893 = vmatprep.subr.bf16.mxu1 %v8947_v46  ;;  %v7455_v46 = vld [vmem:[#allocation9 + $0x8] ss:$0 sm:$0xff] }
0x134b   : > { %v6481_v37 = vpop.f32.mrf.mxu1 }
0x134c   : > { %v6485_v59 = vmul.f32 0.0078125, %v6481_v37 }
0x134d   : > { %v8637_v4 = vpop.f32.mrf.mxu1 }
0x134e   : > { %v6486_v32 = vmul.f32 %v6485_v59, %v6485_v59  ;;  %8643 = vmatmul.mubr.msk.f32.vlgmr.msra.gmra.mxu1 %vm900_vm4, %v6485_v59 }
0x134f   : > { %7894 = vmatpush3.bf16.msra.mxu1 %v8948_v54  ;;  %6985 = vmatprep.mubr.bf16.mxu1 %v6747_v34  ;;  %v8961_v34 = vld [vmem:[#allocation12 + $0x1c0] sm:$0xff]  }
0x1350   : > { %v6488_v12 = vrot.slane %v6486_v32, 6  ;;  %7895 = vmatprep.subr.bf16.mxu1 %v8949_v63 }
0x1352   : > { %v6490_v56 = vsub.f32 %v6485_v59, %v6488_v12 }
0x1353   : > { %7896 = vmatpush3.bf16.msra.mxu1 %v8950_v15 }
0x1354   : > { %v6491_v36 = vadd.f32 1e-05, %v6490_v56  ;;  %7897 = vmatprep.subr.bf16.mxu1 %v8951_v21  ;;  %v9063_v21 = vld [vmem:[#allocation2 + $0x10] sm:$0xff] }
0x1356   : > { %8987 = vrsqrt.f32 %v6491_v36 }
0x1357   : > { %7898 = vmatpush3.bf16.msra.mxu1 %v8952_v62 }
0x1358   : > { %7899 = vmatprep.subr.bf16.mxu1 %v8953_v61  ;;  %v9065_v61 = vld [vmem:[#allocation2 + $0x40] sm:$0xff] }
0x135b   : > { %7900 = vmatpush3.bf16.msra.mxu1 %v8954_v41 }
0x135c   : > { %7901 = vmatprep.subr.bf16.mxu1 %v8955_v58  ;;  %v9066_v58 = vld [vmem:[#allocation2 + $0x48] sm:$0xff] }
0x135f   : > { %7902 = vmatpush3.bf16.msra.mxu1 %v8956_v8 }
0x1360   : > { %7903 = vmatprep.subr.bf16.mxu1 %v8957_v26 }
0x1363   : > { %v8988_v33 = vpop.eup %8987  ;;  %7904 = vmatpush3.bf16.msra.mxu1 %v8958_v35 }
0x1364   : > { %v6590_v31 = vrot.slane %v8988_v33, 2  ;;  %7905 = vmatprep.subr.bf16.mxu1 %v8959_v44 }
0x1366   : > { %8650 = vmatmul.mubr.msk.f32.vlgmr.msra.gmra.mxu0 %vm900_vm4, %v6590_v31 }
0x1367   : > { %7906 = vmatpush3.bf16.msra.mxu1 %v8960_v55  ;;  %8653 = vmatpush3.bf16.msra.mxu0 %v8963_v28 }
0x1368   : > { %7907 = vmatprep.subr.bf16.mxu1 %v8961_v34  ;;  %8654 = vmatprep.subr.bf16.mxu0 %v8964_v22 }
0x136b   : > { %7908 = vmatpush3.bf16.msra.mxu1 %v8962_v43  ;;  %8655 = vmatpush3.bf16.msra.mxu0 %v8964_v22 }
0x136c   : > { %8656 = vmatprep.subr.bf16.mxu0 %v8965_v19 }
0x136e   : > { %6986 = vmatmul.mubr.bf16.vlgmr.msra.gmra.mxu1 %v11637_v27 }
0x136f   : > { %6993 = vmatprep.mubr.bf16.mxu1 %v6750_v45  ;;  %8657 = vmatpush3.bf16.msra.mxu0 %v8965_v19  ;;  %v7456_v19 = vld [vmem:[#allocation14 + $0x2] ss:$0 sm:$0xff] }
0x1370   : > { %8658 = vmatprep.subr.bf16.mxu0 %v8966_v40 }
0x1373   : > { %8659 = vmatpush3.bf16.msra.mxu0 %v8966_v40 }
0x1374   : > { %8660 = vmatprep.subr.bf16.mxu0 %v8967_v20 }
0x1376   : > { %6994 = vmatmul.mubr.bf16.gmra.mxu1 %v11638_v16 }
0x1377   : > { %8661 = vmatpush3.bf16.msra.mxu0 %v8967_v20 }
0x1378   : > { %8662 = vmatprep.subr.bf16.mxu0 %v8968_v57 }
0x137b   : > { %8663 = vmatpush3.bf16.msra.mxu0 %v8968_v57 }
0x137c   : > { %8664 = vmatprep.subr.bf16.mxu0 %v8969_v7 }
0x137f   : > { %8665 = vmatpush3.bf16.msra.mxu0 %v8969_v7 }
0x1380   : > { %8666 = vmatprep.subr.bf16.mxu0 %v8970_v14 }
0x1383   : > { %8667 = vmatpush3.bf16.msra.mxu0 %v8970_v14 }
0x140e   : > { %v6562_v0 = vpop.f32.mrf.mxu1 }
0x140f   : > { %v6573_v45 = vrot.slane %v6562_v0, %v9990_v10 }
0x1410   : > { %v8644_v6 = vpop.f32.mrf.mxu1 }
0x1411   : > { %v6574_v29 = vcombine.high %v6573_v45, %v6573_v45  ;;  %v6581_v18 = vrot.slane %v6573_v45, %v9990_v10 }
0x1413   : > { %v6588_v23 = vrot.slane %v6574_v29, %v9990_v10  ;;  %v6689_v9 = vrot.slane %v6581_v18, %v9641_v11 }
0x1415   : > { %v6693_v53 = vrot.slane %v6588_v23, %v9641_v11  ;;  %v6696_v17 = vsub.f32 %v11399_v3, %v6689_v9  ;;  %v6697_v25 = vsub.f32 %v11409_v2, %v6689_v9 }
0x1417   : > { %v6698_v50 = vsub.f32 %v11397_v60, %v6693_v53  ;;  %v6699_v5 = vsub.f32 %v11401_v42, %v6693_v53 }
0x1426   : > { %v6659_v48 = vpop.f32.mrf.mxu0 }
0x1427   : > { %v6670_v51 = vrot.slane %v6659_v48, %v9990_v10 }
0x1428   : > { %v8651_v52 = vpop.f32.mrf.mxu0 }
0x1429   : > { %v6671_v1 = vcombine.high %v6670_v51, %v6670_v51  ;;  %v6678_v39 = vrot.slane %v6670_v51, %v9990_v10 }
0x142b   : > { %v6685_v49 = vrot.slane %v6671_v1, %v9990_v10  ;;  %v6703_v13 = vrot.slane %v6678_v39, %v9641_v11 }
0x142d   : > { %v6707_v24 = vrot.slane %v6685_v49, %v9641_v11  ;;  %v6710_v30 = vmul.f32 %v6703_v13, %v6696_v17  ;;  %v6711_v47 = vmul.f32 %v6703_v13, %v6697_v25  ;;  %v9064_v11 = vld [vmem:[#allocation2 + $0x18] sm:$0xff] }
0x142e   : > { %v7909_v44 = vpop.f32.mrf.mxu1 }
0x142f   : > { %v6712_v37 = vmul.f32 %v6707_v24, %v6698_v50  ;;  %v6713_v54 = vmul.f32 %v6707_v24, %v6699_v5  ;;  %v6722_v59 = vmul.f32 %v7454_v38, %v6710_v30  ;;  %v6723_v3 = vmul.f32 %v7454_v38, %v6711_v47 }
0x1430   : > { %v7910_v33 = vpop.f32.mrf.mxu1 }
0x1431   : > { %v6724_v63 = vmul.f32 %v7454_v38, %v6712_v37  ;;  %v6725_v2 = vmul.f32 %v7454_v38, %v6713_v54  ;;  %v6734_v4 = vadd.f32 %v7455_v46, %v6722_v59  ;;  %v6735_v10 = vadd.f32 %v7455_v46, %v6723_v3 }
0x1432   : > { %v7912_v55 = vpop.f32.mrf.mxu1  ;;  %v7911_v22 = vadd.f32 %v7910_v33, %v7909_v44 }
0x1433   : > { %v6738_v32 = vmax.f32 %v6734_v4, 0.0  ;;  %v6736_v15 = vadd.f32 %v7455_v46, %v6724_v63  ;;  %v6737_v12 = vadd.f32 %v7455_v46, %v6725_v2  ;;  %v6739_v60 = vmax.f32 %v6735_v10, 0.0 }
0x1434   : > { %v7913_v31 = vpop.f32.mrf.mxu1  ;;  %v6988_v0 = vadd.f32 %v7911_v22, %v7456_v19 }
0x1435   : > { %v6742_v56 = vadd.f32 %v9063_v21, %v6738_v32  ;;  %v6740_v42 = vmax.f32 %v6736_v15, 0.0  ;;  %v6741_v62 = vmax.f32 %v6737_v12, 0.0  ;;  %v6743_v36 = vadd.f32 %v9064_v11, %v6739_v60 }
0x1436   : > { %v7915_v34 = vpop.f32.mrf.mxu1  ;;  %v7914_v7 = vadd.f32 %v7913_v31, %v7912_v55 }
0x1437   : > { %v6744_v41 = vadd.f32 %v9065_v61, %v6740_v42  ;;  %v6745_v8 = vadd.f32 %v9066_v58, %v6741_v62  ;;  %v6748_v26 = vpack.c.bf16 %v6743_v36, %v6742_v56 }
0x1438   : > { %v7916_v43 = vpop.f32.mrf.mxu1  ;;  %v6991_v48 = vadd.f32 %v7914_v7, %v7456_v19 }
0x1439   : > { %v6751_v35 = vpack.c.bf16 %v6745_v8, %v6744_v41  ;;  %8668 = vmatprep.mubr.bf16.mxu0 %v6748_v26  ;;  %v7917_v16 = vadd.f32 %v7916_v43, %v7915_v34 }
0x143a   : > { %v7918_v27 = vpop.f32.mrf.mxu1 }
0x143b   : > { %8669 = vmatmul.mubr.bf16.vlgmr.msra.gmra.mxu0 %v6751_v35  ;;  %v6996_v20 = vadd.f32 %v7917_v16, %v7456_v19 }
0x143c   : > { %v7919_v28 = vpop.f32.mrf.mxu1 }
0x143d   : > { %v7920_v40 = vadd.f32 %v7919_v28, %v7918_v27 }
0x143f   : > { %v6999_v29 = vadd.f32 %v7920_v40, %v7456_v19 }
0x14fb   : > { %v8670_v57 = vpop.f32.mrf.mxu0 }
0x14fc   : > { %v7045_v14 = vadd.f32 %v8670_v57, %v6996_v20 }
0x14fd   : > { %v7036_v6 = vpop.f32.mrf.mxu0 }
0x14fe   : > { %7053 = vst [vmem:[%s553_s20 + $0x10] sm:$0xff] %v7045_v14  ;;  %v7037_v45 = vadd.f32 %v7036_v6, %v6988_v0 }
0x14ff   : > { %v8671_v18 = vpop.f32.mrf.mxu0 }
0x1500   : > { %7051 = vst [vmem:[%s553_s20] sm:$0xff] %v7037_v45  ;;  %v7048_v23 = vadd.f32 %v8671_v18, %v6999_v29 }
0x1501   : > { %v7039_v9 = vpop.f32.mrf.mxu0 }
0x1502   : > { %7054 = vst [vmem:[%s553_s20 + $0x18] sm:$0xff] %v7048_v23  ;;  %v7040_v51 = vadd.f32 %v7039_v9, %v6991_v48 }
0x1504   : > { %7052 = vst [vmem:[%s553_s20 + $0x8] sm:$0xff] %v7040_v51 }
0x1505   : > { %9288 = shalt.err (!%p9285_p7)
}
0x1506   : > { %s9289_s25 = scalar_lea.hbm %s11467_s19, 512  ;;  %s9293_s27 = scalar_lea.hbm %s11522_s13, 1024 }
0x1507   : > { %p9290_p12 = scmp.ne.s32.totalorder %s11467_s19, %s9289_s25  ;;  %p9294_p8 = scmp.lt.s32.totalorder %s11467_s19, %s11522_s13 }
0x1508   : > { %p9295_p6 = scmp.lt.s32.totalorder %s9293_s27, %s9289_s25 }
0x1509   : > { %p9291_p10 = pnand %p9290_p12, %p9485_p5 }
0x150a   : > { %p9296_p9 = por %p9295_p6, %p9294_p8 }
0x150b   : > { %p9292_p11 = pneg %p9291_p10 }
0x150d   : > { %p9297_p0 = pnand %p9296_p9, %p9292_p11 }
0x150f   : > { %9300 = shalt.err (!%p9297_p0)
}
0x1510   : > { %s9375_s20 = smov 128   ;;  %s9376_s15 = smov 8  }
0x1511   : > { %8704 = dma.vmem_to_hbm [thread:$0]  (%p9485_p5), %s11462_s23, 512, %s11467_s19, %s11469_s14, %s9375_s20, %s9375_s20, %s9376_s15  }
0x1512 PF: > { %s11639_s4 = sld [smem:[#allocation24_spill]]  ;;  %p8751_p1 = scmp.ge.s32.totalorder %s9355_s28, 2 }
0x1513   : > { %s11640_s22 = sld [smem:[#allocation28_spill]] }
0x1518   : > { %s7085_s29 = sand.u32 1, %s11639_s4  }
0x1519   : > { %p11641_p2 = scmp.ne.s32.totalorder %s11640_s22, 0  ;;  %s7086_s21 = scalar_lea.sflag [#allocation5], %s7085_s29 }
0x151b   : > { %p8732_p13 = pnand %p8751_p1, %p11641_p2 }
0x151d   : > { %p8733_p3 = pneg %p8732_p13 }
0x151f   : > { %9338 = dma.done.wait (%p8733_p3), %s7086_s21, 512  }
0x1520   : > { %9340 = vsyncadd (%p8733_p3), %s7086_s21, 4294966784  ;;  %s11642_s28 = sld [smem:[#allocation26_spill]]  ;;  %s11645_s25 = smov %s9347_s26 }
0x1521   : > { %s11643_s17 = sld [smem:[#allocation25_spill]] }
0x1522   : > { %s11644_s27 = sld [smem:[#allocation27_spill]] }
0x1526   : > { %p28_p4 = scmp.ge.s32.totalorder %s11642_s28, 4  }
0x1527   : > { %s11646_s26 = smov %s11643_s17 }
0x1528   :  { %30 = sbr.rel (!%p28_p4) target bundleno = 12 (0xc), region = 196 }
0x152d   :  { %7091 = vsyncpa [#allocation4], 1 }
0x152e   :  { %7093 = vsyncpa [#allocation4 + $0x1], 1 }
0x152f   :  { %7094 = vsyncpa [#allocation7], 1 }
0x1530   :  { %7095 = vsyncpa [#allocation10], 1 }
0x1531   :  { %7096 = vsyncpa [#allocation13], 1 }
0x1532   :  { %7097 = vsyncpa [#allocation16], 1 }
0x1533   :  { %7098 = vsyncpa [#allocation5], 1 }
0x1534   :  { %7100 = vsyncpa [#allocation5 + $0x1], 1 }

</bundles_post_ra>
